<compile_context>
chip_gen: v7x
topology: tpu7x:2x2x1
jax: 0.10.0
libtpu: 0.0.40
codegen_flags: <defaults>
</compile_context>

<pallas_src>
import jax
import jax.numpy as jnp
from jax import lax
from jax.experimental import pallas as pl
from jax.experimental.pallas import tpu as pltpu


_LANES = 128    # max channel count of this network / slab width
_W_ALIGN = 16   # bf16 packs 16 sublanes per vreg -> 16-row aligned weight slots
_B_ALIGN = 8    # f32 sublane tile


def _round_up(v, m):
    return ((v + m - 1) // m) * m


# ------------------------------ fused Pallas kernel ------------------------------

def _make_fused_kernel(block_meta, head_meta):
    """refs = (x, weight_slab(bf16), bias_slab(f32), out, pool_scratch)."""

    def _shift_down(v):
        # w[0] = 0, w[l] = v[l-1]   (in-register sublane shift, no VMEM round trip)
        z = jnp.zeros((1, v.shape[1]), v.dtype)
        return jnp.concatenate([z, v[:-1, :]], axis=0)

    def _shift_up(v):
        # w[L-1] = 0, w[l] = v[l+1]
        z = jnp.zeros((1, v.shape[1]), v.dtype)
        return jnp.concatenate([v[1:, :], z], axis=0)

    def kernel(x_ref, w_ref, b_ref, out_ref, pool_ref):
        x = x_ref[0]                                   # (L0, c_in0_p) f32, (L, C) layout

        def conv3(inp_b, c_in, c_out, tap_offs, bias_off):
            """3-tap conv1d (pad=1) + folded BN: three per-tap bf16 matmuls on the
            unshifted input, shifts applied to the f32 outputs."""
            om, oz, op = tap_offs
            wm = w_ref[om:om + c_in, 0:c_out]          # tap t=0 -> multiplies x[l-1]
            wz = w_ref[oz:oz + c_in, 0:c_out]          # tap t=1 -> multiplies x[l]
            wp = w_ref[op:op + c_in, 0:c_out]          # tap t=2 -> multiplies x[l+1]
            am = jnp.dot(inp_b, wm, preferred_element_type=jnp.float32)
            az = jnp.dot(inp_b, wz, preferred_element_type=jnp.float32)
            ap = jnp.dot(inp_b, wp, preferred_element_type=jnp.float32)
            bias = b_ref[bias_off:bias_off + 1, 0:c_out]
            return az + _shift_down(am) + _shift_up(ap) + bias

        for m in block_meta:
            c_in, c_out, L = m["c_in"], m["c_out"], m["L"]
            xb = x.astype(jnp.bfloat16)

            # conv3 + BN1 + ReLU
            h = jnp.maximum(conv3(xb, c_in, c_out, m["w1"], m["b1"]), 0.0)
            # conv3 + BN2
            g = conv3(h.astype(jnp.bfloat16), c_out, c_out, m["w2"], m["b2"])

            # shortcut: identity blocks skip the 1x1 matmul entirely
            if m["has_ds"]:
                wd = w_ref[m["wd"]:m["wd"] + c_in, 0:c_out]
                idn = (jnp.dot(xb, wd, preferred_element_type=jnp.float32)
                       + b_ref[m["bd"]:m["bd"] + 1, 0:c_out])
            else:
                idn = x
            y = jnp.maximum(g + idn, 0.0)              # (L, c_out), y >= 0

            # MaxPool1d(kernel=3, stride=2, padding=1):
            #   pooled[j] = max(y[2j-1], y[2j], y[2j+1]); zero padding is equivalent
            #   to PyTorch's -inf padding because y >= 0 post-ReLU.
            p3 = jnp.maximum(jnp.maximum(_shift_down(y), y), _shift_up(y))
            pool_ref[0:L, 0:c_out] = p3
            x = pool_ref[pl.ds(0, L // 2, stride=2), 0:c_out]   # even rows 0,2,...,L-2

        # head: AdaptiveAvgPool1d(1) + Dropout(identity, eval) + Linear (f32)
        n_out, c_last = head_meta["n_out"], head_meta["c_last"]
        wo, bo = head_meta["w"], head_meta["b"]
        feat = jnp.mean(x, axis=0, keepdims=True)      # (1, c_last)
        bfc = b_ref[bo:bo + 1, 0:n_out]
        if n_out == 1:
            # VPU multiply + lane reduce instead of a 1x1-output MXU matmul.
            wrow = b_ref[wo:wo + 1, 0:c_last]
            out_ref[0] = jnp.sum(feat * wrow, axis=1, keepdims=True) + bfc
        else:
            wt = b_ref[wo:wo + c_last, 0:n_out]
            out_ref[0] = jnp.dot(feat, wt, preferred_element_type=jnp.float32) + bfc

    return kernel


# ------------------------------ wrapper ------------------------------

def simple_resnet_pallas(x, params, wfc, bfc):
    """x: (B, C_in, L) float32 -> (B, num_outputs) float32."""
    B, c_in0, L0 = x.shape
    c_in0_p = max(_round_up(c_in0, 8), 8)

    x_t = jnp.transpose(x, (0, 2, 1))                  # (B, L, C) layout
    if c_in0_p != c_in0:
        x_t = jnp.pad(x_t, ((0, 0), (0, 0), (0, c_in0_p - c_in0)))

    # ---- pack all folded weights into one bf16 slab, all biases into one f32 slab ----
    w_pieces, b_pieces = [], []
    w_rows, b_rows = 0, 0

    def add_w(a):                                      # a: (rows, cols) f32 weights
        nonlocal w_rows
        rows, cols = a.shape
        rows_p = _round_up(rows, _W_ALIGN)
        a = jnp.pad(a, ((0, rows_p - rows), (0, _LANES - cols)))
        w_pieces.append(a.astype(jnp.bfloat16))
        off = w_rows
        w_rows += rows_p
        return off

    def add_b(a):                                      # a: (rows, cols) f32 biases / FC
        nonlocal b_rows
        rows, cols = a.shape
        rows_p = _round_up(rows, _B_ALIGN)
        a = jnp.pad(a, ((0, rows_p - rows), (0, _LANES - cols)))
        b_pieces.append(a.astype(jnp.float32))
        off = b_rows
        b_rows += rows_p
        return off

    block_meta = []
    L = L0
    c_in_p = c_in0_p
    for p in params:
        c_out, c_in, _ = p["w1"].shape
        assert c_out <= _LANES and L % 2 == 0 and L <= L0

        def taps(w, scale, cin_pad):
            # w: (c_out, c_in, 3) -> three (cin_pad, c_out) matrices, BN scale folded.
            offs = []
            for t in range(3):
                mat = w[:, :, t].T * scale[None, :]
                if cin_pad != mat.shape[0]:
                    mat = jnp.pad(mat, ((0, cin_pad - mat.shape[0]), (0, 0)))
                offs.append(add_w(mat))
            return tuple(offs)

        meta = dict(c_in=c_in_p, c_out=c_out, L=L, has_ds=p["has_ds"],
                    w1=taps(p["w1"], p["s1"], c_in_p),
                    w2=taps(p["w2"], p["s2"], c_out),
                    b1=add_b(p["b1"][None, :]),
                    b2=add_b(p["b2"][None, :]))
        if p["has_ds"]:
            wd = p["wd"].T * p["sd"][None, :]
            if c_in_p != wd.shape[0]:
                wd = jnp.pad(wd, ((0, c_in_p - wd.shape[0]), (0, 0)))
            meta["wd"] = add_w(wd)
            meta["bd"] = add_b(p["bd"][None, :])
        block_meta.append(meta)
        L //= 2
        c_in_p = c_out

    c_last = c_in_p
    n_out = wfc.shape[0]
    if n_out == 1:
        fc_w_off = add_b(wfc.reshape(1, c_last))       # row layout for the VPU-reduce head
    else:
        fc_w_off = add_b(wfc.T)                        # (c_last, n_out) for the MXU head
    fc_b_off = add_b(bfc[None, :])
    head_meta = dict(n_out=n_out, c_last=c_last, w=fc_w_off, b=fc_b_off)

    wslab = jnp.concatenate(w_pieces, axis=0)          # (Rw, 128) bf16, ~1 MB
    bslab = jnp.concatenate(b_pieces, axis=0)          # (Rb, 128) f32, tiny

    kernel = _make_fused_kernel(block_meta, head_meta)

    out = pl.pallas_call(
        kernel,
        out_shape=jax.ShapeDtypeStruct((B, 1, n_out), jnp.float32),
        grid_spec=pltpu.PrefetchScalarGridSpec(
            num_scalar_prefetch=0,
            grid=(B,),
            in_specs=[
                pl.BlockSpec((1, L0, c_in0_p), lambda b: (b, 0, 0)),   # activation
                pl.BlockSpec(wslab.shape, lambda b: (0, 0)),           # weight slab
                pl.BlockSpec(bslab.shape, lambda b: (0, 0)),           # bias slab
            ],
            out_specs=pl.BlockSpec((1, 1, n_out), lambda b: (b, 0, 0)),
            scratch_shapes=[pltpu.VMEM((L0, _LANES), jnp.float32)],    # maxpool staging
        ),
        compiler_params=pltpu.CompilerParams(
            dimension_semantics=("parallel",)),
    )(x_t, wslab, bslab)
    return out[:, 0, :]


# ------------------------------ parameters ------------------------------

def _bn_fold(key, c):
    k1, k2, k3, k4 = jax.random.split(key, 4)
    gamma = 1.0 + 0.1 * jax.random.normal(k1, (c,), jnp.float32)
    beta = 0.1 * jax.random.normal(k2, (c,), jnp.float32)
    mean = 0.1 * jax.random.normal(k3, (c,), jnp.float32)
    var = 1.0 + 0.5 * jax.random.uniform(k4, (c,), jnp.float32)
    scale = gamma / jnp.sqrt(var + 1e-5)
    shift = beta - mean * scale
    return scale, shift


def init_params(key, in_features, out_features, num_outputs):
    params = []
    c_prev = in_features
    for c_out in out_features:
        key, k1, k2, k3, k4, k5, k6 = jax.random.split(key, 7)
        w1 = jax.random.normal(k1, (c_out, c_prev, 3), jnp.float32) / jnp.sqrt(3.0 * c_prev)
        w2 = jax.random.normal(k2, (c_out, c_out, 3), jnp.float32) / jnp.sqrt(3.0 * c_out)
        s1, b1 = _bn_fold(k3, c_out)
        s2, b2 = _bn_fold(k4, c_out)
        p = dict(w1=w1, s1=s1, b1=b1, w2=w2, s2=s2, b2=b2, has_ds=(c_prev != c_out))
        if p["has_ds"]:      # downsample: conv1x1 + BN
            p["wd"] = jax.random.normal(k5, (c_out, c_prev), jnp.float32) / jnp.sqrt(float(c_prev))
            p["sd"], p["bd"] = _bn_fold(k6, c_out)
        params.append(p)
        c_prev = c_out
    key, k1, k2 = jax.random.split(key, 3)
    wfc = jax.random.normal(k1, (num_outputs, out_features[-1]), jnp.float32) / jnp.sqrt(
        float(out_features[-1]))
    bfc = 0.1 * jax.random.normal(k2, (num_outputs,), jnp.float32)
    return params, wfc, bfc


# ------------------------------ pure-JAX reference ------------------------------

def reference_forward(x, params, wfc, bfc):
    dn = ("NCH", "OIH", "NCH")
    hp = lax.Precision.HIGHEST
    for p in params:
        identity = x
        h = lax.conv_general_dilated(x, p["w1"], (1,), [(1, 1)],
                                     dimension_numbers=dn, precision=hp)
        h = jnp.maximum(h * p["s1"][None, :, None] + p["b1"][None, :, None], 0.0)
        g = lax.conv_general_dilated(h, p["w2"], (1,), [(1, 1)],
                                     dimension_numbers=dn, precision=hp)
        g = g * p["s2"][None, :, None] + p["b2"][None, :, None]
        if p["has_ds"]:
            identity = lax.conv_general_dilated(x, p["wd"][:, :, None], (1,), [(0, 0)],
                                                dimension_numbers=dn, precision=hp)
            identity = identity * p["sd"][None, :, None] + p["bd"][None, :, None]
        y = jnp.maximum(g + identity, 0.0)
        x = lax.reduce_window(y, -jnp.inf, lax.max, (1, 1, 3), (1, 1, 2),
                              ((0, 0), (0, 0), (1, 1)))
    feat = jnp.mean(x, axis=2)
    return jnp.dot(feat, wfc.T, precision=hp) + bfc[None, :]


# ------------------------------ main ------------------------------

if __name__ == "__main__":
    in_features = 1
    out_features = (16, 32, 64, 128, 128, 128, 128, 128)
    num_outputs = 1
    B, L = 2, 256   # 8 maxpools: 256 -> 128 -> ... -> 1

    key = jax.random.PRNGKey(0)
    key, kx, kp = jax.random.split(key, 3)
    x = jax.random.normal(kx, (B, in_features, L), jnp.float32)
    params, wfc, bfc = init_params(kp, in_features, out_features, num_outputs)

    out = jax.block_until_ready(simple_resnet_pallas(x, params, wfc, bfc))
    ref = jax.block_until_ready(reference_forward(x, params, wfc, bfc))

    assert out.shape == (B, num_outputs), out.shape
    err = float(jnp.max(jnp.abs(out - ref)))
    # Tolerance sized for bf16 MXU operands (f32 accumulation) across 17 matmul layers
    # vs. the f32 Precision.HIGHEST reference.
    tol = 2e-2 + 5e-2 * float(jnp.max(jnp.abs(ref)))
    assert err < tol, f"max abs error vs reference: {err} (tol {tol})"
    print("KERNEL_OK")
</pallas_src>

<mosaic_0001>
module attributes {stable_mosaic.version = 11 : i64} {
  func.func @kernel(%arg0: i32, %arg1: memref<1x256x8xf32, #tpu.memory_space<vmem>>, %arg2: memref<4304x128xbf16, #tpu.memory_space<vmem>>, %arg3: memref<176x128xf32, #tpu.memory_space<vmem>>, %arg4: memref<1x1x1xf32, #tpu.memory_space<vmem>>, %arg5: memref<256x128xf32, #tpu.memory_space<vmem>>) attributes {dimension_semantics = [#tpu.dimension_semantics<parallel>], iteration_bounds = array<i64: 2>, scalar_prefetch = 0 : i64, scratch_operands = 1 : i64, tpu.core_type = #tpu.core_type<tc>, window_params = [{transform_indices = @transform_0, window_bounds = array<i64: 1, 256, 8>}, {pipeline_mode = #tpu.pipeline_mode<synchronous>, transform_indices = @transform_1, window_bounds = array<i64: 4304, 128>}, {pipeline_mode = #tpu.pipeline_mode<synchronous>, transform_indices = @transform_2, window_bounds = array<i64: 176, 128>}, {transform_indices = @transform_3, window_bounds = array<i64: 1, 1, 1>}]} {
    %c0 = arith.constant 0 : index
    %c0_0 = arith.constant 0 : index
    %c0_1 = arith.constant 0 : index
    %0 = vector.load %arg1[%c0, %c0_0, %c0_1] : memref<1x256x8xf32, #tpu.memory_space<vmem>>, vector<1x256x8xf32>
    %1 = vector.shape_cast %0 : vector<1x256x8xf32> to vector<256x8xf32>
    %2 = arith.truncf %1 : vector<256x8xf32> to vector<256x8xbf16>
    %c0_2 = arith.constant 0 : index
    %c0_3 = arith.constant 0 : index
    %3 = vector.load %arg2[%c0_2, %c0_3] : memref<4304x128xbf16, #tpu.memory_space<vmem>>, vector<8x16xbf16>
    %c16 = arith.constant 16 : index
    %c0_4 = arith.constant 0 : index
    %4 = vector.load %arg2[%c16, %c0_4] : memref<4304x128xbf16, #tpu.memory_space<vmem>>, vector<8x16xbf16>
    %c32 = arith.constant 32 : index
    %c0_5 = arith.constant 0 : index
    %5 = vector.load %arg2[%c32, %c0_5] : memref<4304x128xbf16, #tpu.memory_space<vmem>>, vector<8x16xbf16>
    %cst = arith.constant dense<0.000000e+00> : vector<256x16xf32>
    %6 = tpu.matmul %2, %3, %cst {dimension_numbers = #tpu.dot_dimension_numbers<[1], [0], [0], [1], [0, 0, 1, 1], [], []>} : vector<256x8xbf16>, vector<8x16xbf16>, vector<256x16xf32> -> vector<256x16xf32>
    %cst_6 = arith.constant dense<0.000000e+00> : vector<256x16xf32>
    %7 = tpu.matmul %2, %4, %cst_6 {dimension_numbers = #tpu.dot_dimension_numbers<[1], [0], [0], [1], [0, 0, 1, 1], [], []>} : vector<256x8xbf16>, vector<8x16xbf16>, vector<256x16xf32> -> vector<256x16xf32>
    %cst_7 = arith.constant dense<0.000000e+00> : vector<256x16xf32>
    %8 = tpu.matmul %2, %5, %cst_7 {dimension_numbers = #tpu.dot_dimension_numbers<[1], [0], [0], [1], [0, 0, 1, 1], [], []>} : vector<256x8xbf16>, vector<8x16xbf16>, vector<256x16xf32> -> vector<256x16xf32>
    %c0_8 = arith.constant 0 : index
    %c0_9 = arith.constant 0 : index
    %9 = vector.load %arg3[%c0_8, %c0_9] : memref<176x128xf32, #tpu.memory_space<vmem>>, vector<1x16xf32>
    %cst_10 = arith.constant 0.000000e+00 : f32
    %10 = vector.broadcast %cst_10 : f32 to vector<1x16xf32>
    %11 = vector.extract_strided_slice %6 {offsets = [0, 0], sizes = [255, 16], strides = [1, 1]} : vector<256x16xf32> to vector<255x16xf32>
    %12 = tpu.concatenate %10, %11 in 0 : vector<1x16xf32>, vector<255x16xf32> -> vector<256x16xf32>
    %13 = arith.addf %7, %12 : vector<256x16xf32>
    %cst_11 = arith.constant 0.000000e+00 : f32
    %14 = vector.broadcast %cst_11 : f32 to vector<1x16xf32>
    %15 = vector.extract_strided_slice %8 {offsets = [1, 0], sizes = [255, 16], strides = [1, 1]} : vector<256x16xf32> to vector<255x16xf32>
    %16 = tpu.concatenate %15, %14 in 0 : vector<255x16xf32>, vector<1x16xf32> -> vector<256x16xf32>
    %17 = arith.addf %13, %16 : vector<256x16xf32>
    %18 = vector.broadcast %9 : vector<1x16xf32> to vector<256x16xf32>
    %19 = arith.addf %17, %18 : vector<256x16xf32>
    %cst_12 = arith.constant 0.000000e+00 : f32
    %20 = vector.broadcast %cst_12 : f32 to vector<256x16xf32>
    %21 = arith.maximumf %19, %20 : vector<256x16xf32>
    %22 = arith.truncf %21 : vector<256x16xf32> to vector<256x16xbf16>
    %c48 = arith.constant 48 : index
    %c0_13 = arith.constant 0 : index
    %23 = vector.load %arg2[%c48, %c0_13] : memref<4304x128xbf16, #tpu.memory_space<vmem>>, vector<16x16xbf16>
    %c64 = arith.constant 64 : index
    %c0_14 = arith.constant 0 : index
    %24 = vector.load %arg2[%c64, %c0_14] : memref<4304x128xbf16, #tpu.memory_space<vmem>>, vector<16x16xbf16>
    %c80 = arith.constant 80 : index
    %c0_15 = arith.constant 0 : index
    %25 = vector.load %arg2[%c80, %c0_15] : memref<4304x128xbf16, #tpu.memory_space<vmem>>, vector<16x16xbf16>
    %cst_16 = arith.constant dense<0.000000e+00> : vector<256x16xf32>
    %26 = tpu.matmul %22, %23, %cst_16 {dimension_numbers = #tpu.dot_dimension_numbers<[1], [0], [0], [1], [0, 0, 1, 1], [], []>} : vector<256x16xbf16>, vector<16x16xbf16>, vector<256x16xf32> -> vector<256x16xf32>
    %cst_17 = arith.constant dense<0.000000e+00> : vector<256x16xf32>
    %27 = tpu.matmul %22, %24, %cst_17 {dimension_numbers = #tpu.dot_dimension_numbers<[1], [0], [0], [1], [0, 0, 1, 1], [], []>} : vector<256x16xbf16>, vector<16x16xbf16>, vector<256x16xf32> -> vector<256x16xf32>
    %cst_18 = arith.constant dense<0.000000e+00> : vector<256x16xf32>
    %28 = tpu.matmul %22, %25, %cst_18 {dimension_numbers = #tpu.dot_dimension_numbers<[1], [0], [0], [1], [0, 0, 1, 1], [], []>} : vector<256x16xbf16>, vector<16x16xbf16>, vector<256x16xf32> -> vector<256x16xf32>
    %c8 = arith.constant 8 : index
    %c0_19 = arith.constant 0 : index
    %29 = vector.load %arg3[%c8, %c0_19] : memref<176x128xf32, #tpu.memory_space<vmem>>, vector<1x16xf32>
    %cst_20 = arith.constant 0.000000e+00 : f32
    %30 = vector.broadcast %cst_20 : f32 to vector<1x16xf32>
    %31 = vector.extract_strided_slice %26 {offsets = [0, 0], sizes = [255, 16], strides = [1, 1]} : vector<256x16xf32> to vector<255x16xf32>
    %32 = tpu.concatenate %30, %31 in 0 : vector<1x16xf32>, vector<255x16xf32> -> vector<256x16xf32>
    %33 = arith.addf %27, %32 : vector<256x16xf32>
    %cst_21 = arith.constant 0.000000e+00 : f32
    %34 = vector.broadcast %cst_21 : f32 to vector<1x16xf32>
    %35 = vector.extract_strided_slice %28 {offsets = [1, 0], sizes = [255, 16], strides = [1, 1]} : vector<256x16xf32> to vector<255x16xf32>
    %36 = tpu.concatenate %35, %34 in 0 : vector<255x16xf32>, vector<1x16xf32> -> vector<256x16xf32>
    %37 = arith.addf %33, %36 : vector<256x16xf32>
    %38 = vector.broadcast %29 : vector<1x16xf32> to vector<256x16xf32>
    %39 = arith.addf %37, %38 : vector<256x16xf32>
    %c96 = arith.constant 96 : index
    %c0_22 = arith.constant 0 : index
    %40 = vector.load %arg2[%c96, %c0_22] : memref<4304x128xbf16, #tpu.memory_space<vmem>>, vector<8x16xbf16>
    %cst_23 = arith.constant dense<0.000000e+00> : vector<256x16xf32>
    %41 = tpu.matmul %2, %40, %cst_23 {dimension_numbers = #tpu.dot_dimension_numbers<[1], [0], [0], [1], [0, 0, 1, 1], [], []>} : vector<256x8xbf16>, vector<8x16xbf16>, vector<256x16xf32> -> vector<256x16xf32>
    %c16_24 = arith.constant 16 : index
    %c0_25 = arith.constant 0 : index
    %42 = vector.load %arg3[%c16_24, %c0_25] : memref<176x128xf32, #tpu.memory_space<vmem>>, vector<1x16xf32>
    %43 = vector.broadcast %42 : vector<1x16xf32> to vector<256x16xf32>
    %44 = arith.addf %41, %43 : vector<256x16xf32>
    %45 = arith.addf %39, %44 : vector<256x16xf32>
    %cst_26 = arith.constant 0.000000e+00 : f32
    %46 = vector.broadcast %cst_26 : f32 to vector<256x16xf32>
    %47 = arith.maximumf %45, %46 : vector<256x16xf32>
    %cst_27 = arith.constant 0.000000e+00 : f32
    %48 = vector.broadcast %cst_27 : f32 to vector<1x16xf32>
    %49 = vector.extract_strided_slice %47 {offsets = [0, 0], sizes = [255, 16], strides = [1, 1]} : vector<256x16xf32> to vector<255x16xf32>
    %50 = tpu.concatenate %48, %49 in 0 : vector<1x16xf32>, vector<255x16xf32> -> vector<256x16xf32>
    %51 = arith.maximumf %50, %47 : vector<256x16xf32>
    %cst_28 = arith.constant 0.000000e+00 : f32
    %52 = vector.broadcast %cst_28 : f32 to vector<1x16xf32>
    %53 = vector.extract_strided_slice %47 {offsets = [1, 0], sizes = [255, 16], strides = [1, 1]} : vector<256x16xf32> to vector<255x16xf32>
    %54 = tpu.concatenate %53, %52 in 0 : vector<255x16xf32>, vector<1x16xf32> -> vector<256x16xf32>
    %55 = arith.maximumf %51, %54 : vector<256x16xf32>
    %c0_29 = arith.constant 0 : index
    %c0_30 = arith.constant 0 : index
    %56 = vector.load %arg5[%c0_29, %c0_30] : memref<256x128xf32, #tpu.memory_space<vmem>>, vector<256x16xf32>
    tpu.vector_store %arg5[%c0_29, %c0_30], %55 {strides = array<i32>} : memref<256x128xf32, #tpu.memory_space<vmem>>, vector<256x16xf32>,
    %c0_31 = arith.constant 0 : index
    %c0_32 = arith.constant 0 : index
    %57 = tpu.strided_load %arg5[%c0_31, %c0_32] {strides = array<i32: 2, 1>} : memref<256x128xf32, #tpu.memory_space<vmem>>, vector<128x16xf32>
    %58 = arith.truncf %57 : vector<128x16xf32> to vector<128x16xbf16>
    %c112 = arith.constant 112 : index
    %c0_33 = arith.constant 0 : index
    %59 = vector.load %arg2[%c112, %c0_33] : memref<4304x128xbf16, #tpu.memory_space<vmem>>, vector<16x32xbf16>
    %c128 = arith.constant 128 : index
    %c0_34 = arith.constant 0 : index
    %60 = vector.load %arg2[%c128, %c0_34] : memref<4304x128xbf16, #tpu.memory_space<vmem>>, vector<16x32xbf16>
    %c144 = arith.constant 144 : index
    %c0_35 = arith.constant 0 : index
    %61 = vector.load %arg2[%c144, %c0_35] : memref<4304x128xbf16, #tpu.memory_space<vmem>>, vector<16x32xbf16>
    %cst_36 = arith.constant dense<0.000000e+00> : vector<128x32xf32>
    %62 = tpu.matmul %58, %59, %cst_36 {dimension_numbers = #tpu.dot_dimension_numbers<[1], [0], [0], [1], [0, 0, 1, 1], [], []>} : vector<128x16xbf16>, vector<16x32xbf16>, vector<128x32xf32> -> vector<128x32xf32>
    %cst_37 = arith.constant dense<0.000000e+00> : vector<128x32xf32>
    %63 = tpu.matmul %58, %60, %cst_37 {dimension_numbers = #tpu.dot_dimension_numbers<[1], [0], [0], [1], [0, 0, 1, 1], [], []>} : vector<128x16xbf16>, vector<16x32xbf16>, vector<128x32xf32> -> vector<128x32xf32>
    %cst_38 = arith.constant dense<0.000000e+00> : vector<128x32xf32>
    %64 = tpu.matmul %58, %61, %cst_38 {dimension_numbers = #tpu.dot_dimension_numbers<[1], [0], [0], [1], [0, 0, 1, 1], [], []>} : vector<128x16xbf16>, vector<16x32xbf16>, vector<128x32xf32> -> vector<128x32xf32>
    %c24 = arith.constant 24 : index
    %c0_39 = arith.constant 0 : index
    %65 = vector.load %arg3[%c24, %c0_39] : memref<176x128xf32, #tpu.memory_space<vmem>>, vector<1x32xf32>
    %cst_40 = arith.constant 0.000000e+00 : f32
    %66 = vector.broadcast %cst_40 : f32 to vector<1x32xf32>
    %67 = vector.extract_strided_slice %62 {offsets = [0, 0], sizes = [127, 32], strides = [1, 1]} : vector<128x32xf32> to vector<127x32xf32>
    %68 = tpu.concatenate %66, %67 in 0 : vector<1x32xf32>, vector<127x32xf32> -> vector<128x32xf32>
    %69 = arith.addf %63, %68 : vector<128x32xf32>
    %cst_41 = arith.constant 0.000000e+00 : f32
    %70 = vector.broadcast %cst_41 : f32 to vector<1x32xf32>
    %71 = vector.extract_strided_slice %64 {offsets = [1, 0], sizes = [127, 32], strides = [1, 1]} : vector<128x32xf32> to vector<127x32xf32>
    %72 = tpu.concatenate %71, %70 in 0 : vector<127x32xf32>, vector<1x32xf32> -> vector<128x32xf32>
    %73 = arith.addf %69, %72 : vector<128x32xf32>
    %74 = vector.broadcast %65 : vector<1x32xf32> to vector<128x32xf32>
    %75 = arith.addf %73, %74 : vector<128x32xf32>
    %cst_42 = arith.constant 0.000000e+00 : f32
    %76 = vector.broadcast %cst_42 : f32 to vector<128x32xf32>
    %77 = arith.maximumf %75, %76 : vector<128x32xf32>
    %78 = arith.truncf %77 : vector<128x32xf32> to vector<128x32xbf16>
    %c160 = arith.constant 160 : index
    %c0_43 = arith.constant 0 : index
    %79 = vector.load %arg2[%c160, %c0_43] : memref<4304x128xbf16, #tpu.memory_space<vmem>>, vector<32x32xbf16>
    %c192 = arith.constant 192 : index
    %c0_44 = arith.constant 0 : index
    %80 = vector.load %arg2[%c192, %c0_44] : memref<4304x128xbf16, #tpu.memory_space<vmem>>, vector<32x32xbf16>
    %c224 = arith.constant 224 : index
    %c0_45 = arith.constant 0 : index
    %81 = vector.load %arg2[%c224, %c0_45] : memref<4304x128xbf16, #tpu.memory_space<vmem>>, vector<32x32xbf16>
    %cst_46 = arith.constant dense<0.000000e+00> : vector<128x32xf32>
    %82 = tpu.matmul %78, %79, %cst_46 {dimension_numbers = #tpu.dot_dimension_numbers<[1], [0], [0], [1], [0, 0, 1, 1], [], []>} : vector<128x32xbf16>, vector<32x32xbf16>, vector<128x32xf32> -> vector<128x32xf32>
    %cst_47 = arith.constant dense<0.000000e+00> : vector<128x32xf32>
    %83 = tpu.matmul %78, %80, %cst_47 {dimension_numbers = #tpu.dot_dimension_numbers<[1], [0], [0], [1], [0, 0, 1, 1], [], []>} : vector<128x32xbf16>, vector<32x32xbf16>, vector<128x32xf32> -> vector<128x32xf32>
    %cst_48 = arith.constant dense<0.000000e+00> : vector<128x32xf32>
    %84 = tpu.matmul %78, %81, %cst_48 {dimension_numbers = #tpu.dot_dimension_numbers<[1], [0], [0], [1], [0, 0, 1, 1], [], []>} : vector<128x32xbf16>, vector<32x32xbf16>, vector<128x32xf32> -> vector<128x32xf32>
    %c32_49 = arith.constant 32 : index
    %c0_50 = arith.constant 0 : index
    %85 = vector.load %arg3[%c32_49, %c0_50] : memref<176x128xf32, #tpu.memory_space<vmem>>, vector<1x32xf32>
    %cst_51 = arith.constant 0.000000e+00 : f32
    %86 = vector.broadcast %cst_51 : f32 to vector<1x32xf32>
    %87 = vector.extract_strided_slice %82 {offsets = [0, 0], sizes = [127, 32], strides = [1, 1]} : vector<128x32xf32> to vector<127x32xf32>
    %88 = tpu.concatenate %86, %87 in 0 : vector<1x32xf32>, vector<127x32xf32> -> vector<128x32xf32>
    %89 = arith.addf %83, %88 : vector<128x32xf32>
    %cst_52 = arith.constant 0.000000e+00 : f32
    %90 = vector.broadcast %cst_52 : f32 to vector<1x32xf32>
    %91 = vector.extract_strided_slice %84 {offsets = [1, 0], sizes = [127, 32], strides = [1, 1]} : vector<128x32xf32> to vector<127x32xf32>
    %92 = tpu.concatenate %91, %90 in 0 : vector<127x32xf32>, vector<1x32xf32> -> vector<128x32xf32>
    %93 = arith.addf %89, %92 : vector<128x32xf32>
    %94 = vector.broadcast %85 : vector<1x32xf32> to vector<128x32xf32>
    %95 = arith.addf %93, %94 : vector<128x32xf32>
    %c256 = arith.constant 256 : index
    %c0_53 = arith.constant 0 : index
    %96 = vector.load %arg2[%c256, %c0_53] : memref<4304x128xbf16, #tpu.memory_space<vmem>>, vector<16x32xbf16>
    %cst_54 = arith.constant dense<0.000000e+00> : vector<128x32xf32>
    %97 = tpu.matmul %58, %96, %cst_54 {dimension_numbers = #tpu.dot_dimension_numbers<[1], [0], [0], [1], [0, 0, 1, 1], [], []>} : vector<128x16xbf16>, vector<16x32xbf16>, vector<128x32xf32> -> vector<128x32xf32>
    %c40 = arith.constant 40 : index
    %c0_55 = arith.constant 0 : index
    %98 = vector.load %arg3[%c40, %c0_55] : memref<176x128xf32, #tpu.memory_space<vmem>>, vector<1x32xf32>
    %99 = vector.broadcast %98 : vector<1x32xf32> to vector<128x32xf32>
    %100 = arith.addf %97, %99 : vector<128x32xf32>
    %101 = arith.addf %95, %100 : vector<128x32xf32>
    %cst_56 = arith.constant 0.000000e+00 : f32
    %102 = vector.broadcast %cst_56 : f32 to vector<128x32xf32>
    %103 = arith.maximumf %101, %102 : vector<128x32xf32>
    %cst_57 = arith.constant 0.000000e+00 : f32
    %104 = vector.broadcast %cst_57 : f32 to vector<1x32xf32>
    %105 = vector.extract_strided_slice %103 {offsets = [0, 0], sizes = [127, 32], strides = [1, 1]} : vector<128x32xf32> to vector<127x32xf32>
    %106 = tpu.concatenate %104, %105 in 0 : vector<1x32xf32>, vector<127x32xf32> -> vector<128x32xf32>
    %107 = arith.maximumf %106, %103 : vector<128x32xf32>
    %cst_58 = arith.constant 0.000000e+00 : f32
    %108 = vector.broadcast %cst_58 : f32 to vector<1x32xf32>
    %109 = vector.extract_strided_slice %103 {offsets = [1, 0], sizes = [127, 32], strides = [1, 1]} : vector<128x32xf32> to vector<127x32xf32>
    %110 = tpu.concatenate %109, %108 in 0 : vector<127x32xf32>, vector<1x32xf32> -> vector<128x32xf32>
    %111 = arith.maximumf %107, %110 : vector<128x32xf32>
    %c0_59 = arith.constant 0 : index
    %c0_60 = arith.constant 0 : index
    %112 = vector.load %arg5[%c0_59, %c0_60] : memref<256x128xf32, #tpu.memory_space<vmem>>, vector<128x32xf32>
    tpu.vector_store %arg5[%c0_59, %c0_60], %111 {strides = array<i32>} : memref<256x128xf32, #tpu.memory_space<vmem>>, vector<128x32xf32>,
    %c0_61 = arith.constant 0 : index
    %c0_62 = arith.constant 0 : index
    %113 = tpu.strided_load %arg5[%c0_61, %c0_62] {strides = array<i32: 2, 1>} : memref<256x128xf32, #tpu.memory_space<vmem>>, vector<64x32xf32>
    %114 = arith.truncf %113 : vector<64x32xf32> to vector<64x32xbf16>
    %c272 = arith.constant 272 : index
    %c0_63 = arith.constant 0 : index
    %115 = vector.load %arg2[%c272, %c0_63] : memref<4304x128xbf16, #tpu.memory_space<vmem>>, vector<32x64xbf16>
    %c304 = arith.constant 304 : index
    %c0_64 = arith.constant 0 : index
    %116 = vector.load %arg2[%c304, %c0_64] : memref<4304x128xbf16, #tpu.memory_space<vmem>>, vector<32x64xbf16>
    %c336 = arith.constant 336 : index
    %c0_65 = arith.constant 0 : index
    %117 = vector.load %arg2[%c336, %c0_65] : memref<4304x128xbf16, #tpu.memory_space<vmem>>, vector<32x64xbf16>
    %cst_66 = arith.constant dense<0.000000e+00> : vector<64x64xf32>
    %118 = tpu.matmul %114, %115, %cst_66 {dimension_numbers = #tpu.dot_dimension_numbers<[1], [0], [0], [1], [0, 0, 1, 1], [], []>} : vector<64x32xbf16>, vector<32x64xbf16>, vector<64x64xf32> -> vector<64x64xf32>
    %cst_67 = arith.constant dense<0.000000e+00> : vector<64x64xf32>
    %119 = tpu.matmul %114, %116, %cst_67 {dimension_numbers = #tpu.dot_dimension_numbers<[1], [0], [0], [1], [0, 0, 1, 1], [], []>} : vector<64x32xbf16>, vector<32x64xbf16>, vector<64x64xf32> -> vector<64x64xf32>
    %cst_68 = arith.constant dense<0.000000e+00> : vector<64x64xf32>
    %120 = tpu.matmul %114, %117, %cst_68 {dimension_numbers = #tpu.dot_dimension_numbers<[1], [0], [0], [1], [0, 0, 1, 1], [], []>} : vector<64x32xbf16>, vector<32x64xbf16>, vector<64x64xf32> -> vector<64x64xf32>
    %c48_69 = arith.constant 48 : index
    %c0_70 = arith.constant 0 : index
    %121 = vector.load %arg3[%c48_69, %c0_70] : memref<176x128xf32, #tpu.memory_space<vmem>>, vector<1x64xf32>
    %cst_71 = arith.constant 0.000000e+00 : f32
    %122 = vector.broadcast %cst_71 : f32 to vector<1x64xf32>
    %123 = vector.extract_strided_slice %118 {offsets = [0, 0], sizes = [63, 64], strides = [1, 1]} : vector<64x64xf32> to vector<63x64xf32>
    %124 = tpu.concatenate %122, %123 in 0 : vector<1x64xf32>, vector<63x64xf32> -> vector<64x64xf32>
    %125 = arith.addf %119, %124 : vector<64x64xf32>
    %cst_72 = arith.constant 0.000000e+00 : f32
    %126 = vector.broadcast %cst_72 : f32 to vector<1x64xf32>
    %127 = vector.extract_strided_slice %120 {offsets = [1, 0], sizes = [63, 64], strides = [1, 1]} : vector<64x64xf32> to vector<63x64xf32>
    %128 = tpu.concatenate %127, %126 in 0 : vector<63x64xf32>, vector<1x64xf32> -> vector<64x64xf32>
    %129 = arith.addf %125, %128 : vector<64x64xf32>
    %130 = vector.broadcast %121 : vector<1x64xf32> to vector<64x64xf32>
    %131 = arith.addf %129, %130 : vector<64x64xf32>
    %cst_73 = arith.constant 0.000000e+00 : f32
    %132 = vector.broadcast %cst_73 : f32 to vector<64x64xf32>
    %133 = arith.maximumf %131, %132 : vector<64x64xf32>
    %134 = arith.truncf %133 : vector<64x64xf32> to vector<64x64xbf16>
    %c368 = arith.constant 368 : index
    %c0_74 = arith.constant 0 : index
    %135 = vector.load %arg2[%c368, %c0_74] : memref<4304x128xbf16, #tpu.memory_space<vmem>>, vector<64x64xbf16>
    %c432 = arith.constant 432 : index
    %c0_75 = arith.constant 0 : index
    %136 = vector.load %arg2[%c432, %c0_75] : memref<4304x128xbf16, #tpu.memory_space<vmem>>, vector<64x64xbf16>
    %c496 = arith.constant 496 : index
    %c0_76 = arith.constant 0 : index
    %137 = vector.load %arg2[%c496, %c0_76] : memref<4304x128xbf16, #tpu.memory_space<vmem>>, vector<64x64xbf16>
    %cst_77 = arith.constant dense<0.000000e+00> : vector<64x64xf32>
    %138 = tpu.matmul %134, %135, %cst_77 {dimension_numbers = #tpu.dot_dimension_numbers<[1], [0], [0], [1], [0, 0, 1, 1], [], []>} : vector<64x64xbf16>, vector<64x64xbf16>, vector<64x64xf32> -> vector<64x64xf32>
    %cst_78 = arith.constant dense<0.000000e+00> : vector<64x64xf32>
    %139 = tpu.matmul %134, %136, %cst_78 {dimension_numbers = #tpu.dot_dimension_numbers<[1], [0], [0], [1], [0, 0, 1, 1], [], []>} : vector<64x64xbf16>, vector<64x64xbf16>, vector<64x64xf32> -> vector<64x64xf32>
    %cst_79 = arith.constant dense<0.000000e+00> : vector<64x64xf32>
    %140 = tpu.matmul %134, %137, %cst_79 {dimension_numbers = #tpu.dot_dimension_numbers<[1], [0], [0], [1], [0, 0, 1, 1], [], []>} : vector<64x64xbf16>, vector<64x64xbf16>, vector<64x64xf32> -> vector<64x64xf32>
    %c56 = arith.constant 56 : index
    %c0_80 = arith.constant 0 : index
    %141 = vector.load %arg3[%c56, %c0_80] : memref<176x128xf32, #tpu.memory_space<vmem>>, vector<1x64xf32>
    %cst_81 = arith.constant 0.000000e+00 : f32
    %142 = vector.broadcast %cst_81 : f32 to vector<1x64xf32>
    %143 = vector.extract_strided_slice %138 {offsets = [0, 0], sizes = [63, 64], strides = [1, 1]} : vector<64x64xf32> to vector<63x64xf32>
    %144 = tpu.concatenate %142, %143 in 0 : vector<1x64xf32>, vector<63x64xf32> -> vector<64x64xf32>
    %145 = arith.addf %139, %144 : vector<64x64xf32>
    %cst_82 = arith.constant 0.000000e+00 : f32
    %146 = vector.broadcast %cst_82 : f32 to vector<1x64xf32>
    %147 = vector.extract_strided_slice %140 {offsets = [1, 0], sizes = [63, 64], strides = [1, 1]} : vector<64x64xf32> to vector<63x64xf32>
    %148 = tpu.concatenate %147, %146 in 0 : vector<63x64xf32>, vector<1x64xf32> -> vector<64x64xf32>
    %149 = arith.addf %145, %148 : vector<64x64xf32>
    %150 = vector.broadcast %141 : vector<1x64xf32> to vector<64x64xf32>
    %151 = arith.addf %149, %150 : vector<64x64xf32>
    %c560 = arith.constant 560 : index
    %c0_83 = arith.constant 0 : index
    %152 = vector.load %arg2[%c560, %c0_83] : memref<4304x128xbf16, #tpu.memory_space<vmem>>, vector<32x64xbf16>
    %cst_84 = arith.constant dense<0.000000e+00> : vector<64x64xf32>
    %153 = tpu.matmul %114, %152, %cst_84 {dimension_numbers = #tpu.dot_dimension_numbers<[1], [0], [0], [1], [0, 0, 1, 1], [], []>} : vector<64x32xbf16>, vector<32x64xbf16>, vector<64x64xf32> -> vector<64x64xf32>
    %c64_85 = arith.constant 64 : index
    %c0_86 = arith.constant 0 : index
    %154 = vector.load %arg3[%c64_85, %c0_86] : memref<176x128xf32, #tpu.memory_space<vmem>>, vector<1x64xf32>
    %155 = vector.broadcast %154 : vector<1x64xf32> to vector<64x64xf32>
    %156 = arith.addf %153, %155 : vector<64x64xf32>
    %157 = arith.addf %151, %156 : vector<64x64xf32>
    %cst_87 = arith.constant 0.000000e+00 : f32
    %158 = vector.broadcast %cst_87 : f32 to vector<64x64xf32>
    %159 = arith.maximumf %157, %158 : vector<64x64xf32>
    %cst_88 = arith.constant 0.000000e+00 : f32
    %160 = vector.broadcast %cst_88 : f32 to vector<1x64xf32>
    %161 = vector.extract_strided_slice %159 {offsets = [0, 0], sizes = [63, 64], strides = [1, 1]} : vector<64x64xf32> to vector<63x64xf32>
    %162 = tpu.concatenate %160, %161 in 0 : vector<1x64xf32>, vector<63x64xf32> -> vector<64x64xf32>
    %163 = arith.maximumf %162, %159 : vector<64x64xf32>
    %cst_89 = arith.constant 0.000000e+00 : f32
    %164 = vector.broadcast %cst_89 : f32 to vector<1x64xf32>
    %165 = vector.extract_strided_slice %159 {offsets = [1, 0], sizes = [63, 64], strides = [1, 1]} : vector<64x64xf32> to vector<63x64xf32>
    %166 = tpu.concatenate %165, %164 in 0 : vector<63x64xf32>, vector<1x64xf32> -> vector<64x64xf32>
    %167 = arith.maximumf %163, %166 : vector<64x64xf32>
    %c0_90 = arith.constant 0 : index
    %c0_91 = arith.constant 0 : index
    %168 = vector.load %arg5[%c0_90, %c0_91] : memref<256x128xf32, #tpu.memory_space<vmem>>, vector<64x64xf32>
    tpu.vector_store %arg5[%c0_90, %c0_91], %167 {strides = array<i32>} : memref<256x128xf32, #tpu.memory_space<vmem>>, vector<64x64xf32>,
    %c0_92 = arith.constant 0 : index
    %c0_93 = arith.constant 0 : index
    %169 = tpu.strided_load %arg5[%c0_92, %c0_93] {strides = array<i32: 2, 1>} : memref<256x128xf32, #tpu.memory_space<vmem>>, vector<32x64xf32>
    %170 = arith.truncf %169 : vector<32x64xf32> to vector<32x64xbf16>
    %c592 = arith.constant 592 : index
    %c0_94 = arith.constant 0 : index
    %171 = vector.load %arg2[%c592, %c0_94] : memref<4304x128xbf16, #tpu.memory_space<vmem>>, vector<64x128xbf16>
    %c656 = arith.constant 656 : index
    %c0_95 = arith.constant 0 : index
    %172 = vector.load %arg2[%c656, %c0_95] : memref<4304x128xbf16, #tpu.memory_space<vmem>>, vector<64x128xbf16>
    %c720 = arith.constant 720 : index
    %c0_96 = arith.constant 0 : index
    %173 = vector.load %arg2[%c720, %c0_96] : memref<4304x128xbf16, #tpu.memory_space<vmem>>, vector<64x128xbf16>
    %cst_97 = arith.constant dense<0.000000e+00> : vector<32x128xf32>
    %174 = tpu.matmul %170, %171, %cst_97 {dimension_numbers = #tpu.dot_dimension_numbers<[1], [0], [0], [1], [0, 0, 1, 1], [], []>} : vector<32x64xbf16>, vector<64x128xbf16>, vector<32x128xf32> -> vector<32x128xf32>
    %cst_98 = arith.constant dense<0.000000e+00> : vector<32x128xf32>
    %175 = tpu.matmul %170, %172, %cst_98 {dimension_numbers = #tpu.dot_dimension_numbers<[1], [0], [0], [1], [0, 0, 1, 1], [], []>} : vector<32x64xbf16>, vector<64x128xbf16>, vector<32x128xf32> -> vector<32x128xf32>
    %cst_99 = arith.constant dense<0.000000e+00> : vector<32x128xf32>
    %176 = tpu.matmul %170, %173, %cst_99 {dimension_numbers = #tpu.dot_dimension_numbers<[1], [0], [0], [1], [0, 0, 1, 1], [], []>} : vector<32x64xbf16>, vector<64x128xbf16>, vector<32x128xf32> -> vector<32x128xf32>
    %c72 = arith.constant 72 : index
    %c0_100 = arith.constant 0 : index
    %177 = vector.load %arg3[%c72, %c0_100] : memref<176x128xf32, #tpu.memory_space<vmem>>, vector<1x128xf32>
    %cst_101 = arith.constant 0.000000e+00 : f32
    %178 = vector.broadcast %cst_101 : f32 to vector<1x128xf32>
    %179 = vector.extract_strided_slice %174 {offsets = [0, 0], sizes = [31, 128], strides = [1, 1]} : vector<32x128xf32> to vector<31x128xf32>
    %180 = tpu.concatenate %178, %179 in 0 : vector<1x128xf32>, vector<31x128xf32> -> vector<32x128xf32>
    %181 = arith.addf %175, %180 : vector<32x128xf32>
    %cst_102 = arith.constant 0.000000e+00 : f32
    %182 = vector.broadcast %cst_102 : f32 to vector<1x128xf32>
    %183 = vector.extract_strided_slice %176 {offsets = [1, 0], sizes = [31, 128], strides = [1, 1]} : vector<32x128xf32> to vector<31x128xf32>
    %184 = tpu.concatenate %183, %182 in 0 : vector<31x128xf32>, vector<1x128xf32> -> vector<32x128xf32>
    %185 = arith.addf %181, %184 : vector<32x128xf32>
    %186 = vector.broadcast %177 : vector<1x128xf32> to vector<32x128xf32>
    %187 = arith.addf %185, %186 : vector<32x128xf32>
    %cst_103 = arith.constant 0.000000e+00 : f32
    %188 = vector.broadcast %cst_103 : f32 to vector<32x128xf32>
    %189 = arith.maximumf %187, %188 : vector<32x128xf32>
    %190 = arith.truncf %189 : vector<32x128xf32> to vector<32x128xbf16>
    %c784 = arith.constant 784 : index
    %c0_104 = arith.constant 0 : index
    %191 = vector.load %arg2[%c784, %c0_104] : memref<4304x128xbf16, #tpu.memory_space<vmem>>, vector<128x128xbf16>
    %c912 = arith.constant 912 : index
    %c0_105 = arith.constant 0 : index
    %192 = vector.load %arg2[%c912, %c0_105] : memref<4304x128xbf16, #tpu.memory_space<vmem>>, vector<128x128xbf16>
    %c1040 = arith.constant 1040 : index
    %c0_106 = arith.constant 0 : index
    %193 = vector.load %arg2[%c1040, %c0_106] : memref<4304x128xbf16, #tpu.memory_space<vmem>>, vector<128x128xbf16>
    %cst_107 = arith.constant dense<0.000000e+00> : vector<32x128xf32>
    %194 = tpu.matmul %190, %191, %cst_107 {dimension_numbers = #tpu.dot_dimension_numbers<[1], [0], [0], [1], [0, 0, 1, 1], [], []>} : vector<32x128xbf16>, vector<128x128xbf16>, vector<32x128xf32> -> vector<32x128xf32>
    %cst_108 = arith.constant dense<0.000000e+00> : vector<32x128xf32>
    %195 = tpu.matmul %190, %192, %cst_108 {dimension_numbers = #tpu.dot_dimension_numbers<[1], [0], [0], [1], [0, 0, 1, 1], [], []>} : vector<32x128xbf16>, vector<128x128xbf16>, vector<32x128xf32> -> vector<32x128xf32>
    %cst_109 = arith.constant dense<0.000000e+00> : vector<32x128xf32>
    %196 = tpu.matmul %190, %193, %cst_109 {dimension_numbers = #tpu.dot_dimension_numbers<[1], [0], [0], [1], [0, 0, 1, 1], [], []>} : vector<32x128xbf16>, vector<128x128xbf16>, vector<32x128xf32> -> vector<32x128xf32>
    %c80_110 = arith.constant 80 : index
    %c0_111 = arith.constant 0 : index
    %197 = vector.load %arg3[%c80_110, %c0_111] : memref<176x128xf32, #tpu.memory_space<vmem>>, vector<1x128xf32>
    %cst_112 = arith.constant 0.000000e+00 : f32
    %198 = vector.broadcast %cst_112 : f32 to vector<1x128xf32>
    %199 = vector.extract_strided_slice %194 {offsets = [0, 0], sizes = [31, 128], strides = [1, 1]} : vector<32x128xf32> to vector<31x128xf32>
    %200 = tpu.concatenate %198, %199 in 0 : vector<1x128xf32>, vector<31x128xf32> -> vector<32x128xf32>
    %201 = arith.addf %195, %200 : vector<32x128xf32>
    %cst_113 = arith.constant 0.000000e+00 : f32
    %202 = vector.broadcast %cst_113 : f32 to vector<1x128xf32>
    %203 = vector.extract_strided_slice %196 {offsets = [1, 0], sizes = [31, 128], strides = [1, 1]} : vector<32x128xf32> to vector<31x128xf32>
    %204 = tpu.concatenate %203, %202 in 0 : vector<31x128xf32>, vector<1x128xf32> -> vector<32x128xf32>
    %205 = arith.addf %201, %204 : vector<32x128xf32>
    %206 = vector.broadcast %197 : vector<1x128xf32> to vector<32x128xf32>
    %207 = arith.addf %205, %206 : vector<32x128xf32>
    %c1168 = arith.constant 1168 : index
    %c0_114 = arith.constant 0 : index
    %208 = vector.load %arg2[%c1168, %c0_114] : memref<4304x128xbf16, #tpu.memory_space<vmem>>, vector<64x128xbf16>
    %cst_115 = arith.constant dense<0.000000e+00> : vector<32x128xf32>
    %209 = tpu.matmul %170, %208, %cst_115 {dimension_numbers = #tpu.dot_dimension_numbers<[1], [0], [0], [1], [0, 0, 1, 1], [], []>} : vector<32x64xbf16>, vector<64x128xbf16>, vector<32x128xf32> -> vector<32x128xf32>
    %c88 = arith.constant 88 : index
    %c0_116 = arith.constant 0 : index
    %210 = vector.load %arg3[%c88, %c0_116] : memref<176x128xf32, #tpu.memory_space<vmem>>, vector<1x128xf32>
    %211 = vector.broadcast %210 : vector<1x128xf32> to vector<32x128xf32>
    %212 = arith.addf %209, %211 : vector<32x128xf32>
    %213 = arith.addf %207, %212 : vector<32x128xf32>
    %cst_117 = arith.constant 0.000000e+00 : f32
    %214 = vector.broadcast %cst_117 : f32 to vector<32x128xf32>
    %215 = arith.maximumf %213, %214 : vector<32x128xf32>
    %cst_118 = arith.constant 0.000000e+00 : f32
    %216 = vector.broadcast %cst_118 : f32 to vector<1x128xf32>
    %217 = vector.extract_strided_slice %215 {offsets = [0, 0], sizes = [31, 128], strides = [1, 1]} : vector<32x128xf32> to vector<31x128xf32>
    %218 = tpu.concatenate %216, %217 in 0 : vector<1x128xf32>, vector<31x128xf32> -> vector<32x128xf32>
    %219 = arith.maximumf %218, %215 : vector<32x128xf32>
    %cst_119 = arith.constant 0.000000e+00 : f32
    %220 = vector.broadcast %cst_119 : f32 to vector<1x128xf32>
    %221 = vector.extract_strided_slice %215 {offsets = [1, 0], sizes = [31, 128], strides = [1, 1]} : vector<32x128xf32> to vector<31x128xf32>
    %222 = tpu.concatenate %221, %220 in 0 : vector<31x128xf32>, vector<1x128xf32> -> vector<32x128xf32>
    %223 = arith.maximumf %219, %222 : vector<32x128xf32>
    %c0_120 = arith.constant 0 : index
    %c0_121 = arith.constant 0 : index
    %224 = vector.load %arg5[%c0_120, %c0_121] : memref<256x128xf32, #tpu.memory_space<vmem>>, vector<32x128xf32>
    tpu.vector_store %arg5[%c0_120, %c0_121], %223 {strides = array<i32>} : memref<256x128xf32, #tpu.memory_space<vmem>>, vector<32x128xf32>,
    %c0_122 = arith.constant 0 : index
    %c0_123 = arith.constant 0 : index
    %225 = tpu.strided_load %arg5[%c0_122, %c0_123] {strides = array<i32: 2, 1>} : memref<256x128xf32, #tpu.memory_space<vmem>>, vector<16x128xf32>
    %226 = arith.truncf %225 : vector<16x128xf32> to vector<16x128xbf16>
    %c1232 = arith.constant 1232 : index
    %c0_124 = arith.constant 0 : index
    %227 = vector.load %arg2[%c1232, %c0_124] : memref<4304x128xbf16, #tpu.memory_space<vmem>>, vector<128x128xbf16>
    %c1360 = arith.constant 1360 : index
    %c0_125 = arith.constant 0 : index
    %228 = vector.load %arg2[%c1360, %c0_125] : memref<4304x128xbf16, #tpu.memory_space<vmem>>, vector<128x128xbf16>
    %c1488 = arith.constant 1488 : index
    %c0_126 = arith.constant 0 : index
    %229 = vector.load %arg2[%c1488, %c0_126] : memref<4304x128xbf16, #tpu.memory_space<vmem>>, vector<128x128xbf16>
    %cst_127 = arith.constant dense<0.000000e+00> : vector<16x128xf32>
    %230 = tpu.matmul %226, %227, %cst_127 {dimension_numbers = #tpu.dot_dimension_numbers<[1], [0], [0], [1], [0, 0, 1, 1], [], []>} : vector<16x128xbf16>, vector<128x128xbf16>, vector<16x128xf32> -> vector<16x128xf32>
    %cst_128 = arith.constant dense<0.000000e+00> : vector<16x128xf32>
    %231 = tpu.matmul %226, %228, %cst_128 {dimension_numbers = #tpu.dot_dimension_numbers<[1], [0], [0], [1], [0, 0, 1, 1], [], []>} : vector<16x128xbf16>, vector<128x128xbf16>, vector<16x128xf32> -> vector<16x128xf32>
    %cst_129 = arith.constant dense<0.000000e+00> : vector<16x128xf32>
    %232 = tpu.matmul %226, %229, %cst_129 {dimension_numbers = #tpu.dot_dimension_numbers<[1], [0], [0], [1], [0, 0, 1, 1], [], []>} : vector<16x128xbf16>, vector<128x128xbf16>, vector<16x128xf32> -> vector<16x128xf32>
    %c96_130 = arith.constant 96 : index
    %c0_131 = arith.constant 0 : index
    %233 = vector.load %arg3[%c96_130, %c0_131] : memref<176x128xf32, #tpu.memory_space<vmem>>, vector<1x128xf32>
    %cst_132 = arith.constant 0.000000e+00 : f32
    %234 = vector.broadcast %cst_132 : f32 to vector<1x128xf32>
    %235 = vector.extract_strided_slice %230 {offsets = [0, 0], sizes = [15, 128], strides = [1, 1]} : vector<16x128xf32> to vector<15x128xf32>
    %236 = tpu.concatenate %234, %235 in 0 : vector<1x128xf32>, vector<15x128xf32> -> vector<16x128xf32>
    %237 = arith.addf %231, %236 : vector<16x128xf32>
    %cst_133 = arith.constant 0.000000e+00 : f32
    %238 = vector.broadcast %cst_133 : f32 to vector<1x128xf32>
    %239 = vector.extract_strided_slice %232 {offsets = [1, 0], sizes = [15, 128], strides = [1, 1]} : vector<16x128xf32> to vector<15x128xf32>
    %240 = tpu.concatenate %239, %238 in 0 : vector<15x128xf32>, vector<1x128xf32> -> vector<16x128xf32>
    %241 = arith.addf %237, %240 : vector<16x128xf32>
    %242 = vector.broadcast %233 : vector<1x128xf32> to vector<16x128xf32>
    %243 = arith.addf %241, %242 : vector<16x128xf32>
    %cst_134 = arith.constant 0.000000e+00 : f32
    %244 = vector.broadcast %cst_134 : f32 to vector<16x128xf32>
    %245 = arith.maximumf %243, %244 : vector<16x128xf32>
    %246 = arith.truncf %245 : vector<16x128xf32> to vector<16x128xbf16>
    %c1616 = arith.constant 1616 : index
    %c0_135 = arith.constant 0 : index
    %247 = vector.load %arg2[%c1616, %c0_135] : memref<4304x128xbf16, #tpu.memory_space<vmem>>, vector<128x128xbf16>
    %c1744 = arith.constant 1744 : index
    %c0_136 = arith.constant 0 : index
    %248 = vector.load %arg2[%c1744, %c0_136] : memref<4304x128xbf16, #tpu.memory_space<vmem>>, vector<128x128xbf16>
    %c1872 = arith.constant 1872 : index
    %c0_137 = arith.constant 0 : index
    %249 = vector.load %arg2[%c1872, %c0_137] : memref<4304x128xbf16, #tpu.memory_space<vmem>>, vector<128x128xbf16>
    %cst_138 = arith.constant dense<0.000000e+00> : vector<16x128xf32>
    %250 = tpu.matmul %246, %247, %cst_138 {dimension_numbers = #tpu.dot_dimension_numbers<[1], [0], [0], [1], [0, 0, 1, 1], [], []>} : vector<16x128xbf16>, vector<128x128xbf16>, vector<16x128xf32> -> vector<16x128xf32>
    %cst_139 = arith.constant dense<0.000000e+00> : vector<16x128xf32>
    %251 = tpu.matmul %246, %248, %cst_139 {dimension_numbers = #tpu.dot_dimension_numbers<[1], [0], [0], [1], [0, 0, 1, 1], [], []>} : vector<16x128xbf16>, vector<128x128xbf16>, vector<16x128xf32> -> vector<16x128xf32>
    %cst_140 = arith.constant dense<0.000000e+00> : vector<16x128xf32>
    %252 = tpu.matmul %246, %249, %cst_140 {dimension_numbers = #tpu.dot_dimension_numbers<[1], [0], [0], [1], [0, 0, 1, 1], [], []>} : vector<16x128xbf16>, vector<128x128xbf16>, vector<16x128xf32> -> vector<16x128xf32>
    %c104 = arith.constant 104 : index
    %c0_141 = arith.constant 0 : index
    %253 = vector.load %arg3[%c104, %c0_141] : memref<176x128xf32, #tpu.memory_space<vmem>>, vector<1x128xf32>
    %cst_142 = arith.constant 0.000000e+00 : f32
    %254 = vector.broadcast %cst_142 : f32 to vector<1x128xf32>
    %255 = vector.extract_strided_slice %250 {offsets = [0, 0], sizes = [15, 128], strides = [1, 1]} : vector<16x128xf32> to vector<15x128xf32>
    %256 = tpu.concatenate %254, %255 in 0 : vector<1x128xf32>, vector<15x128xf32> -> vector<16x128xf32>
    %257 = arith.addf %251, %256 : vector<16x128xf32>
    %cst_143 = arith.constant 0.000000e+00 : f32
    %258 = vector.broadcast %cst_143 : f32 to vector<1x128xf32>
    %259 = vector.extract_strided_slice %252 {offsets = [1, 0], sizes = [15, 128], strides = [1, 1]} : vector<16x128xf32> to vector<15x128xf32>
    %260 = tpu.concatenate %259, %258 in 0 : vector<15x128xf32>, vector<1x128xf32> -> vector<16x128xf32>
    %261 = arith.addf %257, %260 : vector<16x128xf32>
    %262 = vector.broadcast %253 : vector<1x128xf32> to vector<16x128xf32>
    %263 = arith.addf %261, %262 : vector<16x128xf32>
    %264 = arith.addf %263, %225 : vector<16x128xf32>
    %cst_144 = arith.constant 0.000000e+00 : f32
    %265 = vector.broadcast %cst_144 : f32 to vector<16x128xf32>
    %266 = arith.maximumf %264, %265 : vector<16x128xf32>
    %cst_145 = arith.constant 0.000000e+00 : f32
    %267 = vector.broadcast %cst_145 : f32 to vector<1x128xf32>
    %268 = vector.extract_strided_slice %266 {offsets = [0, 0], sizes = [15, 128], strides = [1, 1]} : vector<16x128xf32> to vector<15x128xf32>
    %269 = tpu.concatenate %267, %268 in 0 : vector<1x128xf32>, vector<15x128xf32> -> vector<16x128xf32>
    %270 = arith.maximumf %269, %266 : vector<16x128xf32>
    %cst_146 = arith.constant 0.000000e+00 : f32
    %271 = vector.broadcast %cst_146 : f32 to vector<1x128xf32>
    %272 = vector.extract_strided_slice %266 {offsets = [1, 0], sizes = [15, 128], strides = [1, 1]} : vector<16x128xf32> to vector<15x128xf32>
    %273 = tpu.concatenate %272, %271 in 0 : vector<15x128xf32>, vector<1x128xf32> -> vector<16x128xf32>
    %274 = arith.maximumf %270, %273 : vector<16x128xf32>
    %c0_147 = arith.constant 0 : index
    %c0_148 = arith.constant 0 : index
    %275 = vector.load %arg5[%c0_147, %c0_148] : memref<256x128xf32, #tpu.memory_space<vmem>>, vector<16x128xf32>
    tpu.vector_store %arg5[%c0_147, %c0_148], %274 {strides = array<i32>} : memref<256x128xf32, #tpu.memory_space<vmem>>, vector<16x128xf32>,
    %c0_149 = arith.constant 0 : index
    %c0_150 = arith.constant 0 : index
    %276 = tpu.strided_load %arg5[%c0_149, %c0_150] {strides = array<i32: 2, 1>} : memref<256x128xf32, #tpu.memory_space<vmem>>, vector<8x128xf32>
    %277 = arith.truncf %276 : vector<8x128xf32> to vector<8x128xbf16>
    %c2000 = arith.constant 2000 : index
    %c0_151 = arith.constant 0 : index
    %278 = vector.load %arg2[%c2000, %c0_151] : memref<4304x128xbf16, #tpu.memory_space<vmem>>, vector<128x128xbf16>
    %c2128 = arith.constant 2128 : index
    %c0_152 = arith.constant 0 : index
    %279 = vector.load %arg2[%c2128, %c0_152] : memref<4304x128xbf16, #tpu.memory_space<vmem>>, vector<128x128xbf16>
    %c2256 = arith.constant 2256 : index
    %c0_153 = arith.constant 0 : index
    %280 = vector.load %arg2[%c2256, %c0_153] : memref<4304x128xbf16, #tpu.memory_space<vmem>>, vector<128x128xbf16>
    %cst_154 = arith.constant dense<0.000000e+00> : vector<8x128xf32>
    %281 = tpu.matmul %277, %278, %cst_154 {dimension_numbers = #tpu.dot_dimension_numbers<[1], [0], [0], [1], [0, 0, 1, 1], [], []>} : vector<8x128xbf16>, vector<128x128xbf16>, vector<8x128xf32> -> vector<8x128xf32>
    %cst_155 = arith.constant dense<0.000000e+00> : vector<8x128xf32>
    %282 = tpu.matmul %277, %279, %cst_155 {dimension_numbers = #tpu.dot_dimension_numbers<[1], [0], [0], [1], [0, 0, 1, 1], [], []>} : vector<8x128xbf16>, vector<128x128xbf16>, vector<8x128xf32> -> vector<8x128xf32>
    %cst_156 = arith.constant dense<0.000000e+00> : vector<8x128xf32>
    %283 = tpu.matmul %277, %280, %cst_156 {dimension_numbers = #tpu.dot_dimension_numbers<[1], [0], [0], [1], [0, 0, 1, 1], [], []>} : vector<8x128xbf16>, vector<128x128xbf16>, vector<8x128xf32> -> vector<8x128xf32>
    %c112_157 = arith.constant 112 : index
    %c0_158 = arith.constant 0 : index
    %284 = vector.load %arg3[%c112_157, %c0_158] : memref<176x128xf32, #tpu.memory_space<vmem>>, vector<1x128xf32>
    %cst_159 = arith.constant 0.000000e+00 : f32
    %285 = vector.broadcast %cst_159 : f32 to vector<1x128xf32>
    %286 = vector.extract_strided_slice %281 {offsets = [0, 0], sizes = [7, 128], strides = [1, 1]} : vector<8x128xf32> to vector<7x128xf32>
    %287 = tpu.concatenate %285, %286 in 0 : vector<1x128xf32>, vector<7x128xf32> -> vector<8x128xf32>
    %288 = arith.addf %282, %287 : vector<8x128xf32>
    %cst_160 = arith.constant 0.000000e+00 : f32
    %289 = vector.broadcast %cst_160 : f32 to vector<1x128xf32>
    %290 = vector.extract_strided_slice %283 {offsets = [1, 0], sizes = [7, 128], strides = [1, 1]} : vector<8x128xf32> to vector<7x128xf32>
    %291 = tpu.concatenate %290, %289 in 0 : vector<7x128xf32>, vector<1x128xf32> -> vector<8x128xf32>
    %292 = arith.addf %288, %291 : vector<8x128xf32>
    %293 = vector.broadcast %284 : vector<1x128xf32> to vector<8x128xf32>
    %294 = arith.addf %292, %293 : vector<8x128xf32>
    %cst_161 = arith.constant 0.000000e+00 : f32
    %295 = vector.broadcast %cst_161 : f32 to vector<8x128xf32>
    %296 = arith.maximumf %294, %295 : vector<8x128xf32>
    %297 = arith.truncf %296 : vector<8x128xf32> to vector<8x128xbf16>
    %c2384 = arith.constant 2384 : index
    %c0_162 = arith.constant 0 : index
    %298 = vector.load %arg2[%c2384, %c0_162] : memref<4304x128xbf16, #tpu.memory_space<vmem>>, vector<128x128xbf16>
    %c2512 = arith.constant 2512 : index
    %c0_163 = arith.constant 0 : index
    %299 = vector.load %arg2[%c2512, %c0_163] : memref<4304x128xbf16, #tpu.memory_space<vmem>>, vector<128x128xbf16>
    %c2640 = arith.constant 2640 : index
    %c0_164 = arith.constant 0 : index
    %300 = vector.load %arg2[%c2640, %c0_164] : memref<4304x128xbf16, #tpu.memory_space<vmem>>, vector<128x128xbf16>
    %cst_165 = arith.constant dense<0.000000e+00> : vector<8x128xf32>
    %301 = tpu.matmul %297, %298, %cst_165 {dimension_numbers = #tpu.dot_dimension_numbers<[1], [0], [0], [1], [0, 0, 1, 1], [], []>} : vector<8x128xbf16>, vector<128x128xbf16>, vector<8x128xf32> -> vector<8x128xf32>
    %cst_166 = arith.constant dense<0.000000e+00> : vector<8x128xf32>
    %302 = tpu.matmul %297, %299, %cst_166 {dimension_numbers = #tpu.dot_dimension_numbers<[1], [0], [0], [1], [0, 0, 1, 1], [], []>} : vector<8x128xbf16>, vector<128x128xbf16>, vector<8x128xf32> -> vector<8x128xf32>
    %cst_167 = arith.constant dense<0.000000e+00> : vector<8x128xf32>
    %303 = tpu.matmul %297, %300, %cst_167 {dimension_numbers = #tpu.dot_dimension_numbers<[1], [0], [0], [1], [0, 0, 1, 1], [], []>} : vector<8x128xbf16>, vector<128x128xbf16>, vector<8x128xf32> -> vector<8x128xf32>
    %c120 = arith.constant 120 : index
    %c0_168 = arith.constant 0 : index
    %304 = vector.load %arg3[%c120, %c0_168] : memref<176x128xf32, #tpu.memory_space<vmem>>, vector<1x128xf32>
    %cst_169 = arith.constant 0.000000e+00 : f32
    %305 = vector.broadcast %cst_169 : f32 to vector<1x128xf32>
    %306 = vector.extract_strided_slice %301 {offsets = [0, 0], sizes = [7, 128], strides = [1, 1]} : vector<8x128xf32> to vector<7x128xf32>
    %307 = tpu.concatenate %305, %306 in 0 : vector<1x128xf32>, vector<7x128xf32> -> vector<8x128xf32>
    %308 = arith.addf %302, %307 : vector<8x128xf32>
    %cst_170 = arith.constant 0.000000e+00 : f32
    %309 = vector.broadcast %cst_170 : f32 to vector<1x128xf32>
    %310 = vector.extract_strided_slice %303 {offsets = [1, 0], sizes = [7, 128], strides = [1, 1]} : vector<8x128xf32> to vector<7x128xf32>
    %311 = tpu.concatenate %310, %309 in 0 : vector<7x128xf32>, vector<1x128xf32> -> vector<8x128xf32>
    %312 = arith.addf %308, %311 : vector<8x128xf32>
    %313 = vector.broadcast %304 : vector<1x128xf32> to vector<8x128xf32>
    %314 = arith.addf %312, %313 : vector<8x128xf32>
    %315 = arith.addf %314, %276 : vector<8x128xf32>
    %cst_171 = arith.constant 0.000000e+00 : f32
    %316 = vector.broadcast %cst_171 : f32 to vector<8x128xf32>
    %317 = arith.maximumf %315, %316 : vector<8x128xf32>
    %cst_172 = arith.constant 0.000000e+00 : f32
    %318 = vector.broadcast %cst_172 : f32 to vector<1x128xf32>
    %319 = vector.extract_strided_slice %317 {offsets = [0, 0], sizes = [7, 128], strides = [1, 1]} : vector<8x128xf32> to vector<7x128xf32>
    %320 = tpu.concatenate %318, %319 in 0 : vector<1x128xf32>, vector<7x128xf32> -> vector<8x128xf32>
    %321 = arith.maximumf %320, %317 : vector<8x128xf32>
    %cst_173 = arith.constant 0.000000e+00 : f32
    %322 = vector.broadcast %cst_173 : f32 to vector<1x128xf32>
    %323 = vector.extract_strided_slice %317 {offsets = [1, 0], sizes = [7, 128], strides = [1, 1]} : vector<8x128xf32> to vector<7x128xf32>
    %324 = tpu.concatenate %323, %322 in 0 : vector<7x128xf32>, vector<1x128xf32> -> vector<8x128xf32>
    %325 = arith.maximumf %321, %324 : vector<8x128xf32>
    %c0_174 = arith.constant 0 : index
    %c0_175 = arith.constant 0 : index
    %326 = vector.load %arg5[%c0_174, %c0_175] : memref<256x128xf32, #tpu.memory_space<vmem>>, vector<8x128xf32>
    tpu.vector_store %arg5[%c0_174, %c0_175], %325 {strides = array<i32>} : memref<256x128xf32, #tpu.memory_space<vmem>>, vector<8x128xf32>,
    %c0_176 = arith.constant 0 : index
    %c0_177 = arith.constant 0 : index
    %327 = tpu.strided_load %arg5[%c0_176, %c0_177] {strides = array<i32: 2, 1>} : memref<256x128xf32, #tpu.memory_space<vmem>>, vector<4x128xf32>
    %328 = arith.truncf %327 : vector<4x128xf32> to vector<4x128xbf16>
    %c2768 = arith.constant 2768 : index
    %c0_178 = arith.constant 0 : index
    %329 = vector.load %arg2[%c2768, %c0_178] : memref<4304x128xbf16, #tpu.memory_space<vmem>>, vector<128x128xbf16>
    %c2896 = arith.constant 2896 : index
    %c0_179 = arith.constant 0 : index
    %330 = vector.load %arg2[%c2896, %c0_179] : memref<4304x128xbf16, #tpu.memory_space<vmem>>, vector<128x128xbf16>
    %c3024 = arith.constant 3024 : index
    %c0_180 = arith.constant 0 : index
    %331 = vector.load %arg2[%c3024, %c0_180] : memref<4304x128xbf16, #tpu.memory_space<vmem>>, vector<128x128xbf16>
    %cst_181 = arith.constant dense<0.000000e+00> : vector<4x128xf32>
    %332 = tpu.matmul %328, %329, %cst_181 {dimension_numbers = #tpu.dot_dimension_numbers<[1], [0], [0], [1], [0, 0, 1, 1], [], []>} : vector<4x128xbf16>, vector<128x128xbf16>, vector<4x128xf32> -> vector<4x128xf32>
    %cst_182 = arith.constant dense<0.000000e+00> : vector<4x128xf32>
    %333 = tpu.matmul %328, %330, %cst_182 {dimension_numbers = #tpu.dot_dimension_numbers<[1], [0], [0], [1], [0, 0, 1, 1], [], []>} : vector<4x128xbf16>, vector<128x128xbf16>, vector<4x128xf32> -> vector<4x128xf32>
    %cst_183 = arith.constant dense<0.000000e+00> : vector<4x128xf32>
    %334 = tpu.matmul %328, %331, %cst_183 {dimension_numbers = #tpu.dot_dimension_numbers<[1], [0], [0], [1], [0, 0, 1, 1], [], []>} : vector<4x128xbf16>, vector<128x128xbf16>, vector<4x128xf32> -> vector<4x128xf32>
    %c128_184 = arith.constant 128 : index
    %c0_185 = arith.constant 0 : index
    %335 = vector.load %arg3[%c128_184, %c0_185] : memref<176x128xf32, #tpu.memory_space<vmem>>, vector<1x128xf32>
    %cst_186 = arith.constant 0.000000e+00 : f32
    %336 = vector.broadcast %cst_186 : f32 to vector<1x128xf32>
    %337 = vector.extract_strided_slice %332 {offsets = [0, 0], sizes = [3, 128], strides = [1, 1]} : vector<4x128xf32> to vector<3x128xf32>
    %338 = tpu.concatenate %336, %337 in 0 : vector<1x128xf32>, vector<3x128xf32> -> vector<4x128xf32>
    %339 = arith.addf %333, %338 : vector<4x128xf32>
    %cst_187 = arith.constant 0.000000e+00 : f32
    %340 = vector.broadcast %cst_187 : f32 to vector<1x128xf32>
    %341 = vector.extract_strided_slice %334 {offsets = [1, 0], sizes = [3, 128], strides = [1, 1]} : vector<4x128xf32> to vector<3x128xf32>
    %342 = tpu.concatenate %341, %340 in 0 : vector<3x128xf32>, vector<1x128xf32> -> vector<4x128xf32>
    %343 = arith.addf %339, %342 : vector<4x128xf32>
    %344 = vector.broadcast %335 : vector<1x128xf32> to vector<4x128xf32>
    %345 = arith.addf %343, %344 : vector<4x128xf32>
    %cst_188 = arith.constant 0.000000e+00 : f32
    %346 = vector.broadcast %cst_188 : f32 to vector<4x128xf32>
    %347 = arith.maximumf %345, %346 : vector<4x128xf32>
    %348 = arith.truncf %347 : vector<4x128xf32> to vector<4x128xbf16>
    %c3152 = arith.constant 3152 : index
    %c0_189 = arith.constant 0 : index
    %349 = vector.load %arg2[%c3152, %c0_189] : memref<4304x128xbf16, #tpu.memory_space<vmem>>, vector<128x128xbf16>
    %c3280 = arith.constant 3280 : index
    %c0_190 = arith.constant 0 : index
    %350 = vector.load %arg2[%c3280, %c0_190] : memref<4304x128xbf16, #tpu.memory_space<vmem>>, vector<128x128xbf16>
    %c3408 = arith.constant 3408 : index
    %c0_191 = arith.constant 0 : index
    %351 = vector.load %arg2[%c3408, %c0_191] : memref<4304x128xbf16, #tpu.memory_space<vmem>>, vector<128x128xbf16>
    %cst_192 = arith.constant dense<0.000000e+00> : vector<4x128xf32>
    %352 = tpu.matmul %348, %349, %cst_192 {dimension_numbers = #tpu.dot_dimension_numbers<[1], [0], [0], [1], [0, 0, 1, 1], [], []>} : vector<4x128xbf16>, vector<128x128xbf16>, vector<4x128xf32> -> vector<4x128xf32>
    %cst_193 = arith.constant dense<0.000000e+00> : vector<4x128xf32>
    %353 = tpu.matmul %348, %350, %cst_193 {dimension_numbers = #tpu.dot_dimension_numbers<[1], [0], [0], [1], [0, 0, 1, 1], [], []>} : vector<4x128xbf16>, vector<128x128xbf16>, vector<4x128xf32> -> vector<4x128xf32>
    %cst_194 = arith.constant dense<0.000000e+00> : vector<4x128xf32>
    %354 = tpu.matmul %348, %351, %cst_194 {dimension_numbers = #tpu.dot_dimension_numbers<[1], [0], [0], [1], [0, 0, 1, 1], [], []>} : vector<4x128xbf16>, vector<128x128xbf16>, vector<4x128xf32> -> vector<4x128xf32>
    %c136 = arith.constant 136 : index
    %c0_195 = arith.constant 0 : index
    %355 = vector.load %arg3[%c136, %c0_195] : memref<176x128xf32, #tpu.memory_space<vmem>>, vector<1x128xf32>
    %cst_196 = arith.constant 0.000000e+00 : f32
    %356 = vector.broadcast %cst_196 : f32 to vector<1x128xf32>
    %357 = vector.extract_strided_slice %352 {offsets = [0, 0], sizes = [3, 128], strides = [1, 1]} : vector<4x128xf32> to vector<3x128xf32>
    %358 = tpu.concatenate %356, %357 in 0 : vector<1x128xf32>, vector<3x128xf32> -> vector<4x128xf32>
    %359 = arith.addf %353, %358 : vector<4x128xf32>
    %cst_197 = arith.constant 0.000000e+00 : f32
    %360 = vector.broadcast %cst_197 : f32 to vector<1x128xf32>
    %361 = vector.extract_strided_slice %354 {offsets = [1, 0], sizes = [3, 128], strides = [1, 1]} : vector<4x128xf32> to vector<3x128xf32>
    %362 = tpu.concatenate %361, %360 in 0 : vector<3x128xf32>, vector<1x128xf32> -> vector<4x128xf32>
    %363 = arith.addf %359, %362 : vector<4x128xf32>
    %364 = vector.broadcast %355 : vector<1x128xf32> to vector<4x128xf32>
    %365 = arith.addf %363, %364 : vector<4x128xf32>
    %366 = arith.addf %365, %327 : vector<4x128xf32>
    %cst_198 = arith.constant 0.000000e+00 : f32
    %367 = vector.broadcast %cst_198 : f32 to vector<4x128xf32>
    %368 = arith.maximumf %366, %367 : vector<4x128xf32>
    %cst_199 = arith.constant 0.000000e+00 : f32
    %369 = vector.broadcast %cst_199 : f32 to vector<1x128xf32>
    %370 = vector.extract_strided_slice %368 {offsets = [0, 0], sizes = [3, 128], strides = [1, 1]} : vector<4x128xf32> to vector<3x128xf32>
    %371 = tpu.concatenate %369, %370 in 0 : vector<1x128xf32>, vector<3x128xf32> -> vector<4x128xf32>
    %372 = arith.maximumf %371, %368 : vector<4x128xf32>
    %cst_200 = arith.constant 0.000000e+00 : f32
    %373 = vector.broadcast %cst_200 : f32 to vector<1x128xf32>
    %374 = vector.extract_strided_slice %368 {offsets = [1, 0], sizes = [3, 128], strides = [1, 1]} : vector<4x128xf32> to vector<3x128xf32>
    %375 = tpu.concatenate %374, %373 in 0 : vector<3x128xf32>, vector<1x128xf32> -> vector<4x128xf32>
    %376 = arith.maximumf %372, %375 : vector<4x128xf32>
    %c0_201 = arith.constant 0 : index
    %c0_202 = arith.constant 0 : index
    %377 = vector.load %arg5[%c0_201, %c0_202] : memref<256x128xf32, #tpu.memory_space<vmem>>, vector<4x128xf32>
    tpu.vector_store %arg5[%c0_201, %c0_202], %376 {strides = array<i32>} : memref<256x128xf32, #tpu.memory_space<vmem>>, vector<4x128xf32>,
    %c0_203 = arith.constant 0 : index
    %c0_204 = arith.constant 0 : index
    %378 = tpu.strided_load %arg5[%c0_203, %c0_204] {strides = array<i32: 2, 1>} : memref<256x128xf32, #tpu.memory_space<vmem>>, vector<2x128xf32>
    %379 = arith.truncf %378 : vector<2x128xf32> to vector<2x128xbf16>
    %c3536 = arith.constant 3536 : index
    %c0_205 = arith.constant 0 : index
    %380 = vector.load %arg2[%c3536, %c0_205] : memref<4304x128xbf16, #tpu.memory_space<vmem>>, vector<128x128xbf16>
    %c3664 = arith.constant 3664 : index
    %c0_206 = arith.constant 0 : index
    %381 = vector.load %arg2[%c3664, %c0_206] : memref<4304x128xbf16, #tpu.memory_space<vmem>>, vector<128x128xbf16>
    %c3792 = arith.constant 3792 : index
    %c0_207 = arith.constant 0 : index
    %382 = vector.load %arg2[%c3792, %c0_207] : memref<4304x128xbf16, #tpu.memory_space<vmem>>, vector<128x128xbf16>
    %cst_208 = arith.constant dense<0.000000e+00> : vector<2x128xf32>
    %383 = tpu.matmul %379, %380, %cst_208 {dimension_numbers = #tpu.dot_dimension_numbers<[1], [0], [0], [1], [0, 0, 1, 1], [], []>} : vector<2x128xbf16>, vector<128x128xbf16>, vector<2x128xf32> -> vector<2x128xf32>
    %cst_209 = arith.constant dense<0.000000e+00> : vector<2x128xf32>
    %384 = tpu.matmul %379, %381, %cst_209 {dimension_numbers = #tpu.dot_dimension_numbers<[1], [0], [0], [1], [0, 0, 1, 1], [], []>} : vector<2x128xbf16>, vector<128x128xbf16>, vector<2x128xf32> -> vector<2x128xf32>
    %cst_210 = arith.constant dense<0.000000e+00> : vector<2x128xf32>
    %385 = tpu.matmul %379, %382, %cst_210 {dimension_numbers = #tpu.dot_dimension_numbers<[1], [0], [0], [1], [0, 0, 1, 1], [], []>} : vector<2x128xbf16>, vector<128x128xbf16>, vector<2x128xf32> -> vector<2x128xf32>
    %c144_211 = arith.constant 144 : index
    %c0_212 = arith.constant 0 : index
    %386 = vector.load %arg3[%c144_211, %c0_212] : memref<176x128xf32, #tpu.memory_space<vmem>>, vector<1x128xf32>
    %cst_213 = arith.constant 0.000000e+00 : f32
    %387 = vector.broadcast %cst_213 : f32 to vector<1x128xf32>
    %388 = vector.extract_strided_slice %383 {offsets = [0, 0], sizes = [1, 128], strides = [1, 1]} : vector<2x128xf32> to vector<1x128xf32>
    %389 = tpu.concatenate %387, %388 in 0 : vector<1x128xf32>, vector<1x128xf32> -> vector<2x128xf32>
    %390 = arith.addf %384, %389 : vector<2x128xf32>
    %cst_214 = arith.constant 0.000000e+00 : f32
    %391 = vector.broadcast %cst_214 : f32 to vector<1x128xf32>
    %392 = vector.extract_strided_slice %385 {offsets = [1, 0], sizes = [1, 128], strides = [1, 1]} : vector<2x128xf32> to vector<1x128xf32>
    %393 = tpu.concatenate %392, %391 in 0 : vector<1x128xf32>, vector<1x128xf32> -> vector<2x128xf32>
    %394 = arith.addf %390, %393 : vector<2x128xf32>
    %395 = vector.broadcast %386 : vector<1x128xf32> to vector<2x128xf32>
    %396 = arith.addf %394, %395 : vector<2x128xf32>
    %cst_215 = arith.constant 0.000000e+00 : f32
    %397 = vector.broadcast %cst_215 : f32 to vector<2x128xf32>
    %398 = arith.maximumf %396, %397 : vector<2x128xf32>
    %399 = arith.truncf %398 : vector<2x128xf32> to vector<2x128xbf16>
    %c3920 = arith.constant 3920 : index
    %c0_216 = arith.constant 0 : index
    %400 = vector.load %arg2[%c3920, %c0_216] : memref<4304x128xbf16, #tpu.memory_space<vmem>>, vector<128x128xbf16>
    %c4048 = arith.constant 4048 : index
    %c0_217 = arith.constant 0 : index
    %401 = vector.load %arg2[%c4048, %c0_217] : memref<4304x128xbf16, #tpu.memory_space<vmem>>, vector<128x128xbf16>
    %c4176 = arith.constant 4176 : index
    %c0_218 = arith.constant 0 : index
    %402 = vector.load %arg2[%c4176, %c0_218] : memref<4304x128xbf16, #tpu.memory_space<vmem>>, vector<128x128xbf16>
    %cst_219 = arith.constant dense<0.000000e+00> : vector<2x128xf32>
    %403 = tpu.matmul %399, %400, %cst_219 {dimension_numbers = #tpu.dot_dimension_numbers<[1], [0], [0], [1], [0, 0, 1, 1], [], []>} : vector<2x128xbf16>, vector<128x128xbf16>, vector<2x128xf32> -> vector<2x128xf32>
    %cst_220 = arith.constant dense<0.000000e+00> : vector<2x128xf32>
    %404 = tpu.matmul %399, %401, %cst_220 {dimension_numbers = #tpu.dot_dimension_numbers<[1], [0], [0], [1], [0, 0, 1, 1], [], []>} : vector<2x128xbf16>, vector<128x128xbf16>, vector<2x128xf32> -> vector<2x128xf32>
    %cst_221 = arith.constant dense<0.000000e+00> : vector<2x128xf32>
    %405 = tpu.matmul %399, %402, %cst_221 {dimension_numbers = #tpu.dot_dimension_numbers<[1], [0], [0], [1], [0, 0, 1, 1], [], []>} : vector<2x128xbf16>, vector<128x128xbf16>, vector<2x128xf32> -> vector<2x128xf32>
    %c152 = arith.constant 152 : index
    %c0_222 = arith.constant 0 : index
    %406 = vector.load %arg3[%c152, %c0_222] : memref<176x128xf32, #tpu.memory_space<vmem>>, vector<1x128xf32>
    %cst_223 = arith.constant 0.000000e+00 : f32
    %407 = vector.broadcast %cst_223 : f32 to vector<1x128xf32>
    %408 = vector.extract_strided_slice %403 {offsets = [0, 0], sizes = [1, 128], strides = [1, 1]} : vector<2x128xf32> to vector<1x128xf32>
    %409 = tpu.concatenate %407, %408 in 0 : vector<1x128xf32>, vector<1x128xf32> -> vector<2x128xf32>
    %410 = arith.addf %404, %409 : vector<2x128xf32>
    %cst_224 = arith.constant 0.000000e+00 : f32
    %411 = vector.broadcast %cst_224 : f32 to vector<1x128xf32>
    %412 = vector.extract_strided_slice %405 {offsets = [1, 0], sizes = [1, 128], strides = [1, 1]} : vector<2x128xf32> to vector<1x128xf32>
    %413 = tpu.concatenate %412, %411 in 0 : vector<1x128xf32>, vector<1x128xf32> -> vector<2x128xf32>
    %414 = arith.addf %410, %413 : vector<2x128xf32>
    %415 = vector.broadcast %406 : vector<1x128xf32> to vector<2x128xf32>
    %416 = arith.addf %414, %415 : vector<2x128xf32>
    %417 = arith.addf %416, %378 : vector<2x128xf32>
    %cst_225 = arith.constant 0.000000e+00 : f32
    %418 = vector.broadcast %cst_225 : f32 to vector<2x128xf32>
    %419 = arith.maximumf %417, %418 : vector<2x128xf32>
    %cst_226 = arith.constant 0.000000e+00 : f32
    %420 = vector.broadcast %cst_226 : f32 to vector<1x128xf32>
    %421 = vector.extract_strided_slice %419 {offsets = [0, 0], sizes = [1, 128], strides = [1, 1]} : vector<2x128xf32> to vector<1x128xf32>
    %422 = tpu.concatenate %420, %421 in 0 : vector<1x128xf32>, vector<1x128xf32> -> vector<2x128xf32>
    %423 = arith.maximumf %422, %419 : vector<2x128xf32>
    %cst_227 = arith.constant 0.000000e+00 : f32
    %424 = vector.broadcast %cst_227 : f32 to vector<1x128xf32>
    %425 = vector.extract_strided_slice %419 {offsets = [1, 0], sizes = [1, 128], strides = [1, 1]} : vector<2x128xf32> to vector<1x128xf32>
    %426 = tpu.concatenate %425, %424 in 0 : vector<1x128xf32>, vector<1x128xf32> -> vector<2x128xf32>
    %427 = arith.maximumf %423, %426 : vector<2x128xf32>
    %c0_228 = arith.constant 0 : index
    %c0_229 = arith.constant 0 : index
    %428 = vector.load %arg5[%c0_228, %c0_229] : memref<256x128xf32, #tpu.memory_space<vmem>>, vector<2x128xf32>
    tpu.vector_store %arg5[%c0_228, %c0_229], %427 {strides = array<i32>} : memref<256x128xf32, #tpu.memory_space<vmem>>, vector<2x128xf32>,
    %c0_230 = arith.constant 0 : index
    %c0_231 = arith.constant 0 : index
    %429 = tpu.strided_load %arg5[%c0_230, %c0_231] {strides = array<i32: 2, 1>} : memref<256x128xf32, #tpu.memory_space<vmem>>, vector<1x128xf32>
    %cst_232 = arith.constant dense<0.000000e+00> : vector<128xf32>
    %430 = vector.multi_reduction <add>, %429, %cst_232 [0] : vector<1x128xf32> to vector<128xf32>
    %431 = vector.shape_cast %430 : vector<128xf32> to vector<1x128xf32>
    %cst_233 = arith.constant 1.000000e+00 : f32
    %432 = vector.broadcast %cst_233 : f32 to vector<1x128xf32>
    %433 = arith.divf %431, %432 : vector<1x128xf32>
    %c168 = arith.constant 168 : index
    %c0_234 = arith.constant 0 : index
    %434 = vector.load %arg3[%c168, %c0_234] : memref<176x128xf32, #tpu.memory_space<vmem>>, vector<1x1xf32>
    %c160_235 = arith.constant 160 : index
    %c0_236 = arith.constant 0 : index
    %435 = vector.load %arg3[%c160_235, %c0_236] : memref<176x128xf32, #tpu.memory_space<vmem>>, vector<1x128xf32>
    %436 = arith.mulf %433, %435 : vector<1x128xf32>
    %cst_237 = arith.constant dense<0.000000e+00> : vector<1xf32>
    %437 = vector.multi_reduction <add>, %436, %cst_237 [1] : vector<1x128xf32> to vector<1xf32>
    %438 = vector.shape_cast %437 : vector<1xf32> to vector<1x1xf32>
    %439 = arith.addf %438, %434 : vector<1x1xf32>
    %c0_238 = arith.constant 0 : index
    %c0_239 = arith.constant 0 : index
    %c0_240 = arith.constant 0 : index
    %440 = vector.load %arg4[%c0_238, %c0_239, %c0_240] : memref<1x1x1xf32, #tpu.memory_space<vmem>>, vector<1x1x1xf32>
    %441 = vector.shape_cast %440 : vector<1x1x1xf32> to vector<1x1xf32>
    %442 = vector.shape_cast %439 : vector<1x1xf32> to vector<1x1x1xf32>
    tpu.vector_store %arg4[%c0_238, %c0_239, %c0_240], %442 {strides = array<i32>} : memref<1x1x1xf32, #tpu.memory_space<vmem>>, vector<1x1x1xf32>,
    return
  }
  func.func @transform_0(%arg0: i32) -> (i32, i32, i32) {
    %c0_i32 = arith.constant 0 : i32
    %c0_i32_0 = arith.constant 0 : i32
    %c0_i32_1 = arith.constant 0 : i32
    return %arg0, %c0_i32, %c0_i32_0 : i32, i32, i32
  }
  func.func @transform_1(%arg0: i32) -> (i32, i32) {
    %c0_i32 = arith.constant 0 : i32
    %c0_i32_0 = arith.constant 0 : i32
    %c0_i32_1 = arith.constant 0 : i32
    return %c0_i32, %c0_i32_0 : i32, i32
  }
  func.func @transform_2(%arg0: i32) -> (i32, i32) {
    %c0_i32 = arith.constant 0 : i32
    %c0_i32_0 = arith.constant 0 : i32
    %c0_i32_1 = arith.constant 0 : i32
    return %c0_i32, %c0_i32_0 : i32, i32
  }
  func.func @transform_3(%arg0: i32) -> (i32, i32, i32) {
    %c0_i32 = arith.constant 0 : i32
    %c0_i32_0 = arith.constant 0 : i32
    %c0_i32_1 = arith.constant 0 : i32
    return %arg0, %c0_i32, %c0_i32_0 : i32, i32, i32
  }
}

</mosaic_0001>

<bundles_post_ra>
// kernel: tpu_custom_call.1
= control target key start
LH: loop header
LB: loop body
LE: loop exit
PB: predicated region body
PF: predicated region fallthrough
CT: control target
= control target key end

     0   :  { %8 = vsyncpa [#allocation4], 0  ;;  %s13369_s0 = inlined_call_operand.vmem [shape: f32[2,256,8], index: 0, kind: input, shape index: {}]   ;;  %s13370_s1 = inlined_call_operand.hbm [shape: bf16[4304,128], index: 1, kind: input, shape index: {}]   ;;  %s13371_s2 = inlined_call_operand.hbm [shape: f32[176,128], index: 2, kind: input, shape index: {}]   ;;  %s13372_s3 = inlined_call_operand.vmem [shape: f32[2,1,1], index: 3, kind: output, shape index: {}]  }
   0x1   :  { %9 = vsyncpa [#allocation6], 0  ;;  %s11333_s12 = smov 0  }
   0x2 LB: > { %s11305_s13 = smov [#allocation3]   ;;  %s11339_s15 = sadd.s32 4294967295, %s11303_s12   ;;  %s11303_s12 = sphi %s11333_s12, %s15_s12  }
   0x3   : > { %s126_s14 = sshll.u32 %s11305_s13, 4  ;;  %p8568_p0 = scmp.ge.s32.totalorder %s11303_s12, 1  ;;  %s127_s14 = int_to_ptr.vmem [resolvable:$true] %s126_s14 }
   0x4   : > { %p114_p1 = scmp.lt.s32.totalorder %s11303_s12, 3  ;;  %p13373_p3 = scmp.eq.s32.totalorder %s11339_s15, 0 }
   0x5   : > { %s11306_s17 = smov [#allocation5]   ;;  %s11233_s22 = scalar_lea.hbm %s13370_s1, 34432 }
   0x6   : > { %p11343_p2 = pnand %p8568_p0, %p114_p1  ;;  %s139_s18 = sshll.u32 %s11306_s17, 4  ;;  %s11356_s18 = int_to_ptr.vmem [resolvable:$true] %s139_s18 }
   0x7   : > { %p11234_p6 = scmp.ne.s32.totalorder %s13370_s1, %s11233_s22  ;;  %p11240_p10 = scmp.lt.u32.totalorder %s11233_s22, %s13370_s1 }
   0x8   : > { %s13395_s16 = scalar_select %p11343_p2, 1, 0 }
   0x9   : > { %p10941_p4 = pneg %p11343_p2 }
   0xb   : > { %p11352_p5 = pnand %p13373_p3, %p10941_p4 }
   0xd   : > { %p11235_p7 = pneg %p11352_p5 }
   0xf   : > { %p11236_p8 = pnand %p11235_p7, %p11234_p6 }
  0x11   : > { %p11237_p9 = pneg %p11236_p8 }
  0x13   : > { %p11242_p11 = pnand %p11240_p10, %p11237_p9 }
  0x15   : > { %11245 = shalt.err (!%p11242_p11)
}
  0x16   : > { %s11246_s27 = scalar_lea.vmem %s127_s14, 34432  ;;  %p11254_p1 = scmp.lt.s32.totalorder %s127_s14, %s127_s14 }
  0x17   : > { %p11247_p12 = scmp.ne.s32.totalorder %s127_s14, %s11246_s27  ;;  %p11255_p4 = scmp.lt.s32.totalorder %s11246_s27, %s11246_s27 }
  0x19   : > { %p11249_p13 = pnand %p11247_p12, %p11235_p7  ;;  %p11256_p3 = por %p11255_p4, %p11254_p1 }
  0x1b   : > { %p11250_p0 = pneg %p11249_p13 }
  0x1d   : > { %p11257_p2 = pnand %p11256_p3, %p11250_p0 }
  0x1f   : > { %11260 = shalt.err (!%p11257_p2)
}
  0x20   : > { %s11307_s28 = smov 64   ;;  %s11308_s29 = smov 4  }
  0x21   : > { %10944 = dma.hbm_to_vmem [thread:$0]  (!%p11352_p5), %s13370_s1, 34432, %s127_s14, [#allocation4], %s11307_s28, %s11307_s28, %s11308_s29  }
  0x22   : > { %s11261_s7 = scalar_lea.hbm %s13371_s2, 2816 }
  0x23   : > { %p11262_p6 = scmp.ne.s32.totalorder %s13371_s2, %s11261_s7  ;;  %p11268_p8 = scmp.lt.u32.totalorder %s11261_s7, %s13371_s2 }
  0x25   : > { %p11264_p2 = pnand %p11262_p6, %p11235_p7 }
  0x27   : > { %p11265_p3 = pneg %p11264_p2 }
  0x29   : > { %p11270_p9 = pnand %p11268_p8, %p11265_p3 }
  0x2b   : > { %11273 = shalt.err (!%p11270_p9)
}
  0x2c   : > { %s11274_s13 = scalar_lea.vmem %s11356_s18, 2816  ;;  %p11282_p13 = scmp.lt.s32.totalorder %s11356_s18, %s11356_s18 }
  0x2d   : > { %p11275_p10 = scmp.ne.s32.totalorder %s11356_s18, %s11274_s13  ;;  %p11283_p0 = scmp.lt.s32.totalorder %s11274_s13, %s11274_s13 }
  0x2f   : > { %p11277_p11 = pnand %p11275_p10, %p11235_p7  ;;  %p11284_p1 = por %p11283_p0, %p11282_p13 }
  0x31   : > { %p11278_p12 = pneg %p11277_p11 }
  0x33   : > { %p11285_p4 = pnand %p11284_p1, %p11278_p12 }
  0x35   : > { %11288 = shalt.err (!%p11285_p4)
}
  0x36   : > { %s11309_s14 = smov 128   ;;  %s11310_s17 = smov 8  }
  0x37   : > { %10947 = dma.hbm_to_vmem [thread:$0]  (!%p11352_p5), %s13371_s2, 2816, %s11356_s18, [#allocation6], %s11309_s14, %s11309_s14, %s11310_s17  }
  0x38   : > { %p13397_p6 = scmp.ne.s32.totalorder %s13395_s16, 0 }
  0x3a   : > { %163 = sbr.rel (%p13397_p6) target bundleno = 4706 (0x1262), region = 32 }
  0x41   : > { %p13398_p7 = scmp.eq.s32.totalorder %s11339_s15, 0 }
  0x43   : > { %11294 = dma.done.wait (%p13398_p7), [#allocation4], 34432   ;;  %p13399_p2 = pmov %p13398_p7 }
  0x45   : > { %11296 = vsyncadd (%p13399_p2), [#allocation4], 4294932864  ;;  %p13400_p3 = pmov %p13399_p2 }
  0x46   : > { %p13401_p8 = pmov %p13399_p2 }
  0x47   : > { %11298 = dma.done.wait (%p13400_p3), [#allocation6], 2816  }
  0x48   : > { %11300 = vsyncadd (%p13401_p8), [#allocation6], 4294964480  ;;  %p189_p9 = scmp.lt.s32.totalorder %s11339_s15, 1  ;;  %vm298_vm0 = vcmask 1043456   ;;  %v246_v0 = vld [vmem:[#allocation3] sm:$0xf] }
  0x49   : > { %vm249_vm1 = vcmask 64512   ;;  %10928 = vmatprep.subr.msk.bf16.mxu0 %vm298_vm0, %v246_v0  ;;  %v300_v3 = vsel %vm298_vm0, %v246_v0, 0  ;;  %v248_v7 = vld [vmem:[#allocation3 + $0x10] sm:$0xf]  ;;  %v247_v23 = vld [vmem:[#allocation3 + $0x8] sm:$0xf] }
  0x4a   : > { %s13472_s15 = smov (!%p189_p9, %s11339_s15), 1  ;;  %9573 = vmatpush3.bf16.msra.mxu0 %v300_v3  ;;  %v464_v9 = vsel %vm298_vm0, %v248_v7, 0  ;;  %10930 = vmatprep.subr.msk.bf16.mxu1 %vm298_vm0, %v248_v7  ;;  %v758_v24 = vsel %vm298_vm0, %v247_v23, 0  ;;  %v10968_v54 = vld [vmem:[#allocation3 + $0x18] sm:$0xff]   ;;  %v10969_v55 = vld [vmem:[#allocation3 + $0x28] sm:$0xff]   ;;  %v11592_v56 = vld [vmem:[#allocation3 + $0x20] sm:$0xff]  }
  0x4b   : > { %s9068_s16 = sshll.u32 %s13472_s15, 8  ;;  %10929 = vmatprep.subr.msk.bf16.mxu0 %vm298_vm0, %v248_v7  ;;  %10627 = vmatpush3.bf16.msra.mxu1 %v464_v9  ;;  %vm660_vm2 = vcmask 1040384   ;;  %vm953_vm3 = vcmask 1046528   ;;  %vm1178_vm4 = vcmask 130048   ;;  %vm3192_vm5 = vcmask 261120   ;;  %s196_s25 = scalar_lea.vmem %s13372_s3, %s13472_s15 }
  0x4c   : > { %s11423_s22 = scalar_lea.vmem %s13369_s0, %s9068_s16  ;;  %9674 = vmatprep.subr.bf16.mxu1 %v10968_v54  ;;  %vm4418_vm6 = vcmask 523264   ;;  %vm11312_vm7 = vmmov 0   ;;  %vm7467_vm8 = vcmask 1042432   ;;  %vm8495_vm9 = vcmask 0  }
  0x4d   : > { %v198_v1 = vld [vmem:[%s11423_s22] sm:$0xff]  ;;  %v199_v2 = vld [vmem:[%s11423_s22 + $0x8] sm:$0xff]  ;;  %v200_v5 = vld [vmem:[%s11423_s22 + $0x10] sm:$0xff] }
  0x4e   : > { %v11429_v4 = vpack.c.bf16 %v199_v2, %v198_v1  ;;  %v201_v6 = vld [vmem:[%s11423_s22 + $0x18] sm:$0xff]  ;;  %v202_v10 = vld [vmem:[%s11423_s22 + $0x20] sm:$0xff]  ;;  %v203_v11 = vld [vmem:[%s11423_s22 + $0x28] sm:$0xff] }
  0x4f   : > { %v11433_v8 = vpack.c.bf16 %v201_v6, %v200_v5  ;;  %v204_v12 = vld [vmem:[%s11423_s22 + $0x30] sm:$0xff]  ;;  %v11443_v13 = vpack.c.bf16 %v203_v11, %v202_v10  ;;  %v205_v14 = vld [vmem:[%s11423_s22 + $0x38] sm:$0xff]  ;;  %v206_v15 = vld [vmem:[%s11423_s22 + $0x40] sm:$0xff] }
  0x50   : > { %13402 = vst [vmem:[#allocation9_spill] sm:$0xff] %v11429_v4  ;;  %9574 = vmatprep.mubr.msk.bf16.mxu0 %vm249_vm1, %v11429_v4  ;;  %v207_v16 = vld [vmem:[%s11423_s22 + $0x48] sm:$0xff]  ;;  %v11450_v17 = vpack.c.bf16 %v205_v14, %v204_v12  ;;  %v208_v19 = vld [vmem:[%s11423_s22 + $0x50] sm:$0xff]  ;;  %v209_v20 = vld [vmem:[%s11423_s22 + $0x58] sm:$0xff] }
  0x51   : > { %13403 = vst [vmem:[#allocation10_spill] sm:$0xff] %v11433_v8  ;;  %13404 = vst [vmem:[#allocation11_spill] sm:$0xff] %v11443_v13  ;;  %9575 = vmatmul.mubr.msk.bf16.vlgmr.msra.gmra.mrb[0].mxu0 %vm249_vm1, %v11433_v8  ;;  %9612 = vmatprep.mubr.msk.bf16.mxu1 %vm249_vm1, %v11443_v13  ;;  %v11456_v18 = vpack.c.bf16 %v207_v16, %v206_v15  ;;  %v210_v21 = vld [vmem:[%s11423_s22 + $0x60] sm:$0xff]  ;;  %v211_v22 = vld [vmem:[%s11423_s22 + $0x68] sm:$0xff]  ;;  %v11470_v25 = vpack.c.bf16 %v209_v20, %v208_v19 }
  0x52   : > { %13405 = vst [vmem:[#allocation12_spill] sm:$0xff] %v11450_v17  ;;  %9607 = vmatpush3.bf16.msra.mxu0 %v464_v9  ;;  %9578 = vmatprep.mubr.msk.bf16.mxu0 %vm249_vm1, %v11443_v13  ;;  %v11474_v26 = vpack.c.bf16 %v211_v22, %v210_v21  ;;  %v212_v27 = vld [vmem:[%s11423_s22 + $0x70] sm:$0xff]  ;;  %v213_v28 = vld [vmem:[%s11423_s22 + $0x78] sm:$0xff]  ;;  %v214_v29 = vld [vmem:[%s11423_s22 + $0x80] sm:$0xff] }
  0x53   : > { %13406 = vst [vmem:[#allocation13_spill] sm:$0xff] %v11456_v18  ;;  %9613 = vmatmul.mubr.msk.bf16.vlgmr.msra.gmra.mrb[0].mxu1 %vm249_vm1, %v11450_v17  ;;  %10931 = vmatprep.subr.msk.bf16.mxu0 %vm298_vm0, %v247_v23  ;;  %13407 = vst [vmem:[#allocation14_spill] sm:$0xff] %v11470_v25  ;;  %v215_v30 = vld [vmem:[%s11423_s22 + $0x88] sm:$0xff]  ;;  %v11486_v31 = vpack.c.bf16 %v213_v28, %v212_v27  ;;  %v216_v33 = vld [vmem:[%s11423_s22 + $0x90] sm:$0xff] }
  0x54   : > { %9616 = vmatprep.mubr.msk.bf16.mxu1 %vm249_vm1, %v11456_v18  ;;  %13408 = vst [vmem:[#allocation15_spill] sm:$0xff] %v11474_v26  ;;  %v11490_v32 = vpack.c.bf16 %v215_v30, %v214_v29  ;;  %v217_v34 = vld [vmem:[%s11423_s22 + $0x98] sm:$0xff]  ;;  %v218_v35 = vld [vmem:[%s11423_s22 + $0xa0] sm:$0xff]  ;;  %v219_v36 = vld [vmem:[%s11423_s22 + $0xa8] sm:$0xff]  ;;  %9675 = vmatpush3.bf16.msra.mxu1 %v10968_v54 }
  0x55   : > { %13409 = vst [vmem:[#allocation16_spill] sm:$0xff] %v11486_v31  ;;  %v11502_v37 = vpack.c.bf16 %v217_v34, %v216_v33  ;;  %v11506_v38 = vpack.c.bf16 %v219_v36, %v218_v35  ;;  %v220_v39 = vld [vmem:[%s11423_s22 + $0xb0] sm:$0xff]  ;;  %v221_v40 = vld [vmem:[%s11423_s22 + $0xb8] sm:$0xff]  ;;  %v222_v41 = vld [vmem:[%s11423_s22 + $0xc0] sm:$0xff]  ;;  %9742 = vmatprep.subr.bf16.mxu1 %v11592_v56 }
  0x56   : > { %13410 = vst [vmem:[#allocation17_spill] sm:$0xff] %v11490_v32  ;;  %v223_v42 = vld [vmem:[%s11423_s22 + $0xc8] sm:$0xff]  ;;  %v11518_v43 = vpack.c.bf16 %v221_v40, %v220_v39  ;;  %v224_v45 = vld [vmem:[%s11423_s22 + $0xd0] sm:$0xff]  ;;  %v225_v46 = vld [vmem:[%s11423_s22 + $0xd8] sm:$0xff] }
  0x57   : > { %13411 = vst [vmem:[#allocation18_spill] sm:$0xff] %v11502_v37  ;;  %13412 = vst [vmem:[#allocation19_spill] sm:$0xff] %v11506_v38  ;;  %v11522_v44 = vpack.c.bf16 %v223_v42, %v222_v41  ;;  %v226_v47 = vld [vmem:[%s11423_s22 + $0xe0] sm:$0xff]  ;;  %v227_v48 = vld [vmem:[%s11423_s22 + $0xe8] sm:$0xff]  ;;  %v11534_v49 = vpack.c.bf16 %v225_v46, %v224_v45 }
  0x58   : > { %13413 = vst [vmem:[#allocation20_spill] sm:$0xff] %v11518_v43  ;;  %v11538_v50 = vpack.c.bf16 %v227_v48, %v226_v47  ;;  %v228_v51 = vld [vmem:[%s11423_s22 + $0xf0] sm:$0xff]  ;;  %v229_v52 = vld [vmem:[%s11423_s22 + $0xf8] sm:$0xff] }
  0x59   : > { %9579 = vmatmul.mubr.msk.bf16.gmra.mrb[4].mxu0 %vm249_vm1, %v11450_v17  ;;  %13414 = vst [vmem:[#allocation21_spill] sm:$0xff] %v11522_v44  ;;  %13415 = vst [vmem:[#allocation22_spill] sm:$0xff] %v11534_v49  ;;  %v11548_v53 = vpack.c.bf16 %v229_v52, %v228_v51 }
  0x5a   : > { %9582 = vmatprep.mubr.msk.bf16.mxu0 %vm249_vm1, %v11456_v18  ;;  %13416 = vst [vmem:[#allocation23_spill] sm:$0xff] %v11538_v50 }
  0x5b   : > { %9617 = vmatmul.mubr.msk.bf16.gmra.mrb[4].mxu1 %vm249_vm1, %v11470_v25  ;;  %13417 = vst [vmem:[#allocation24_spill] sm:$0xff] %v11548_v53 }
  0x5c   : > { %9620 = vmatprep.mubr.msk.bf16.mxu1 %vm249_vm1, %v11474_v26 }
  0x61   : > { %9583 = vmatmul.mubr.msk.bf16.gmra.mrb[8].mxu0 %vm249_vm1, %v11470_v25 }
  0x62   : > { %9586 = vmatprep.mubr.msk.bf16.mxu0 %vm249_vm1, %v11474_v26 }
  0x63   : > { %9621 = vmatmul.mubr.msk.bf16.gmra.mrb[8].mxu1 %vm249_vm1, %v11486_v31 }
  0x64   : > { %9624 = vmatprep.mubr.msk.bf16.mxu1 %vm249_vm1, %v11490_v32 }
  0x69   : > { %9587 = vmatmul.mubr.msk.bf16.gmra.mrb[12].mxu0 %vm249_vm1, %v11486_v31 }
  0x6a   : > { %9590 = vmatprep.mubr.msk.bf16.mxu0 %vm249_vm1, %v11490_v32 }
  0x6b   : > { %9625 = vmatmul.mubr.msk.bf16.gmra.mrb[12].mxu1 %vm249_vm1, %v11502_v37 }
  0x6c   : > { %9628 = vmatprep.mubr.msk.bf16.mxu1 %vm249_vm1, %v11506_v38 }
  0x71   : > { %9591 = vmatmul.mubr.msk.bf16.gmra.mrb[16].mxu0 %vm249_vm1, %v11502_v37 }
  0x72   : > { %9594 = vmatprep.mubr.msk.bf16.mxu0 %vm249_vm1, %v11506_v38 }
  0x73   : > { %9629 = vmatmul.mubr.msk.bf16.gmra.mrb[16].mxu1 %vm249_vm1, %v11518_v43 }
  0x74   : > { %9632 = vmatprep.mubr.msk.bf16.mxu1 %vm249_vm1, %v11522_v44 }
  0x79   : > { %9595 = vmatmul.mubr.msk.bf16.gmra.mrb[20].mxu0 %vm249_vm1, %v11518_v43 }
  0x7a   : > { %9598 = vmatprep.mubr.msk.bf16.mxu0 %vm249_vm1, %v11522_v44 }
  0x7b   : > { %9633 = vmatmul.mubr.msk.bf16.gmra.mrb[20].mxu1 %vm249_vm1, %v11534_v49 }
  0x7c   : > { %9636 = vmatprep.mubr.msk.bf16.mxu1 %vm249_vm1, %v11538_v50 }
  0x81   : > { %9599 = vmatmul.mubr.msk.bf16.gmra.mrb[24].mxu0 %vm249_vm1, %v11534_v49 }
  0x82   : > { %9602 = vmatprep.mubr.msk.bf16.mxu0 %vm249_vm1, %v11538_v50 }
  0x83   : > { %9637 = vmatmul.mubr.msk.bf16.gmra.mrb[24].mxu1 %vm249_vm1, %v11548_v53 }
  0x89   : > { %9603 = vmatmul.mubr.msk.bf16.gmra.mrb[28].mxu0 %vm249_vm1, %v11548_v53 }
  0x8a   : > { %9608 = vmatprep.mubr.msk.bf16.mxu0 %vm249_vm1, %v11429_v4 }
  0x91   : > { %9609 = vmatmul.mubr.msk.bf16.vlgmr.msra.gmra.mrb[32].mxu0 %vm249_vm1, %v11433_v8 }
  0x92   : > { %9641 = vmatpush3.bf16.msra.mxu0 %v758_v24  ;;  %9642 = vmatprep.mubr.msk.bf16.mxu0 %vm249_vm1, %v11429_v4 }
  0x93   : > { %9708 = vmatprep.subr.bf16.mxu0 %v10969_v55 }
  0x99   : > { %9643 = vmatmul.mubr.msk.bf16.vlgmr.msra.gmra.mrb[36].mxu0 %vm249_vm1, %v11433_v8 }
  0x9a   : > { %9646 = vmatprep.mubr.msk.bf16.mxu0 %vm249_vm1, %v11443_v13  ;;  %9709 = vmatpush3.bf16.msra.mxu0 %v10969_v55 }
  0xa1   : > { %9647 = vmatmul.mubr.msk.bf16.gmra.mrb[40].mxu0 %vm249_vm1, %v11450_v17 }
  0xa2   : > { %9650 = vmatprep.mubr.msk.bf16.mxu0 %vm249_vm1, %v11456_v18 }
  0xa9   : > { %9651 = vmatmul.mubr.msk.bf16.gmra.mrb[44].mxu0 %vm249_vm1, %v11470_v25 }
  0xaa   : > { %9654 = vmatprep.mubr.msk.bf16.mxu0 %vm249_vm1, %v11474_v26 }
  0xb1   : > { %9655 = vmatmul.mubr.msk.bf16.gmra.mrb[48].mxu0 %vm249_vm1, %v11486_v31 }
  0xb2   : > { %9658 = vmatprep.mubr.msk.bf16.mxu0 %vm249_vm1, %v11490_v32 }
  0xb9   : > { %9659 = vmatmul.mubr.msk.bf16.gmra.mrb[52].mxu0 %vm249_vm1, %v11502_v37 }
  0xba   : > { %9662 = vmatprep.mubr.msk.bf16.mxu0 %vm249_vm1, %v11506_v38 }
  0xc1   : > { %9663 = vmatmul.mubr.msk.bf16.gmra.mrb[56].mxu0 %vm249_vm1, %v11518_v43 }
  0xc2   : > { %9666 = vmatprep.mubr.msk.bf16.mxu0 %vm249_vm1, %v11522_v44 }
  0xc9   : > { %9667 = vmatmul.mubr.msk.bf16.gmra.mrb[60].mxu0 %vm249_vm1, %v11534_v49 }
  0xca   : > { %9670 = vmatprep.mubr.msk.bf16.mxu0 %vm249_vm1, %v11538_v50 }
  0xd1   : > { %9671 = vmatmul.mubr.msk.bf16.gmra.mrb[64].mxu0 %vm249_vm1, %v11548_v53 }
 0x124   : > { %v9576_v57 = vpop.f32.mrb[0].mxu0 }
 0x125   : > { %v11595_v58 = vpop.f32.mrb[1].mxu0  ;;  %v664_v61 = vrot.slane %v9576_v57, 7 }
 0x126   : > { %v9577_v59 = vpop.f32.mrb[2].mxu0  ;;  %v9614_v60 = vpop.f32.mrb[0].mxu1  ;;  %v13375_v2 = vrot.slane %v11595_v58, 7 }
 0x127   : > { %v666_v62 = vrot.slane %v9577_v59, 7  ;;  %v339_v63 = vpop.f32.mrb[3].mxu0  ;;  %v965_v0 = vrot.slane %v9614_v60, 1  ;;  %v11597_v1 = vpop.f32.mrb[1].mxu1 }
 0x128   : > { %v662_v3 = vrot.slane %v339_v63, 7  ;;  %v9615_v5 = vpop.f32.mrb[2].mxu1  ;;  %v13376_v10 = vrot.slane %v11597_v1, 1 }
 0x129   : > { %v967_v6 = vrot.slane %v9615_v5, 1  ;;  %v519_v7 = vpop.f32.mrb[3].mxu1  ;;  %v11601_v9 = vsel %vm660_vm2, %v664_v61, %v666_v62 }
 0x12a   : > { %v11605_v11 = vsel %vm660_vm2, %v662_v3, %v664_v61  ;;  %v963_v12 = vrot.slane %v519_v7, 1  ;;  %v11610_v14 = vsel %vm660_vm2, %v13375_v2, %v662_v3 }
 0x12b   : > { %v11613_v15 = vsel %vm953_vm3, %v965_v0, %v967_v6 }
 0x12c   : > { %v9580_v16 = vpop.f32.mrb[4].mxu0  ;;  %v11618_v19 = vsel %vm953_vm3, %v13376_v10, %v963_v12  ;;  %v11621_v20 = vsel %vm953_vm3, %v963_v12, %v965_v0 }
 0x12d   : > { %v352_v21 = vpop.f32.mrb[5].mxu0  ;;  %v672_v27 = vrot.slane %v9580_v16, 7 }
 0x12e   : > { %v668_v22 = vrot.slane %v352_v21, 7  ;;  %v9581_v23 = vpop.f32.mrb[6].mxu0  ;;  %v9618_v24 = vpop.f32.mrb[4].mxu1 }
 0x12f   : > { %v674_v28 = vrot.slane %v9581_v23, 7  ;;  %v355_v29 = vpop.f32.mrb[7].mxu0  ;;  %v973_v30 = vrot.slane %v9618_v24, 1  ;;  %v532_v33 = vpop.f32.mrb[5].mxu1 }
 0x130   : > { %v670_v34 = vrot.slane %v355_v29, 7  ;;  %v969_v35 = vrot.slane %v532_v33, 1  ;;  %v9619_v36 = vpop.f32.mrb[6].mxu1  ;;  %v11624_v39 = vsel %vm660_vm2, %v666_v62, %v668_v22 }
 0x131   : > { %v975_v40 = vrot.slane %v9619_v36, 1  ;;  %v535_v41 = vpop.f32.mrb[7].mxu1  ;;  %v11627_v42 = vsel %vm660_vm2, %v672_v27, %v674_v28 }
 0x132   : > { %v11630_v45 = vsel %vm660_vm2, %v670_v34, %v672_v27  ;;  %v971_v46 = vrot.slane %v535_v41, 1  ;;  %v11633_v47 = vsel %vm953_vm3, %v967_v6, %v969_v35  ;;  %v11636_v48 = vsel %vm660_vm2, %v668_v22, %v670_v34 }
 0x133   : > { %v11639_v51 = vsel %vm953_vm3, %v973_v30, %v975_v40 }
 0x134   : > { %v9584_v52 = vpop.f32.mrb[8].mxu0  ;;  %v11642_v54 = vsel %vm953_vm3, %v969_v35, %v971_v46  ;;  %v11645_v55 = vsel %vm953_vm3, %v971_v46, %v973_v30 }
 0x135   : > { %v368_v57 = vpop.f32.mrb[9].mxu0  ;;  %v680_v62 = vrot.slane %v9584_v52, 7 }
 0x136   : > { %v676_v59 = vrot.slane %v368_v57, 7  ;;  %v9585_v60 = vpop.f32.mrb[10].mxu0  ;;  %v9622_v61 = vpop.f32.mrb[8].mxu1 }
 0x137   : > { %v682_v63 = vrot.slane %v9585_v60, 7  ;;  %v371_v0 = vpop.f32.mrb[11].mxu0  ;;  %v981_v3 = vrot.slane %v9622_v61, 1  ;;  %v548_v5 = vpop.f32.mrb[9].mxu1 }
 0x138   : > { %v678_v6 = vrot.slane %v371_v0, 7  ;;  %v977_v7 = vrot.slane %v548_v5, 1  ;;  %v9623_v12 = vpop.f32.mrb[10].mxu1  ;;  %v11648_v16 = vsel %vm660_vm2, %v674_v28, %v676_v59 }
 0x139   : > { %v983_v21 = vrot.slane %v9623_v12, 1  ;;  %v551_v22 = vpop.f32.mrb[11].mxu1  ;;  %v11651_v23 = vsel %vm660_vm2, %v680_v62, %v682_v63 }
 0x13a   : > { %v11654_v24 = vsel %vm660_vm2, %v678_v6, %v680_v62  ;;  %v979_v27 = vrot.slane %v551_v22, 1  ;;  %v11657_v29 = vsel %vm953_vm3, %v975_v40, %v977_v7  ;;  %v11660_v30 = vsel %vm660_vm2, %v676_v59, %v678_v6 }
 0x13b   : > { %v11663_v33 = vsel %vm953_vm3, %v981_v3, %v983_v21 }
 0x13c   : > { %v9588_v28 = vpop.f32.mrb[12].mxu0  ;;  %v11666_v34 = vsel %vm953_vm3, %v977_v7, %v979_v27  ;;  %v11669_v35 = vsel %vm953_vm3, %v979_v27, %v981_v3 }
 0x13d   : > { %v384_v36 = vpop.f32.mrb[13].mxu0  ;;  %v688_v57 = vrot.slane %v9588_v28, 7 }
 0x13e   : > { %v684_v41 = vrot.slane %v384_v36, 7  ;;  %v9589_v46 = vpop.f32.mrb[14].mxu0  ;;  %v9626_v52 = vpop.f32.mrb[12].mxu1 }
 0x13f   : > { %v690_v40 = vrot.slane %v9589_v46, 7  ;;  %v387_v60 = vpop.f32.mrb[15].mxu0  ;;  %v989_v61 = vrot.slane %v9626_v52, 1  ;;  %v564_v59 = vpop.f32.mrb[13].mxu1 }
 0x140   : > { %v686_v62 = vrot.slane %v387_v60, 7  ;;  %v985_v0 = vrot.slane %v564_v59, 1  ;;  %v9627_v5 = vpop.f32.mrb[14].mxu1  ;;  %v11672_v6 = vsel %vm660_vm2, %v682_v63, %v684_v41 }
 0x141   : > { %v991_v7 = vrot.slane %v9627_v5, 1  ;;  %v567_v12 = vpop.f32.mrb[15].mxu1  ;;  %v11675_v3 = vsel %vm660_vm2, %v688_v57, %v690_v40 }
 0x142   : > { %v11678_v22 = vsel %vm660_vm2, %v686_v62, %v688_v57  ;;  %v987_v27 = vrot.slane %v567_v12, 1  ;;  %v11681_v28 = vsel %vm953_vm3, %v983_v21, %v985_v0  ;;  %v11684_v36 = vsel %vm660_vm2, %v684_v41, %v686_v62 }
 0x143   : > { %v11687_v46 = vsel %vm953_vm3, %v989_v61, %v991_v7 }
 0x144   : > { %v9592_v63 = vpop.f32.mrb[16].mxu0  ;;  %v11690_v52 = vsel %vm953_vm3, %v985_v0, %v987_v27  ;;  %v11693_v60 = vsel %vm953_vm3, %v987_v27, %v989_v61 }
 0x145   : > { %v400_v59 = vpop.f32.mrb[17].mxu0  ;;  %v696_v2 = vrot.slane %v9592_v63, 7 }
 0x146   : > { %v692_v57 = vrot.slane %v400_v59, 7  ;;  %v9593_v5 = vpop.f32.mrb[18].mxu0  ;;  %v9630_v12 = vpop.f32.mrb[16].mxu1 }
 0x147   : > { %v698_v21 = vrot.slane %v9593_v5, 7  ;;  %v403_v10 = vpop.f32.mrb[19].mxu0  ;;  %v997_v53 = vrot.slane %v9630_v12, 1  ;;  %v580_v41 = vpop.f32.mrb[17].mxu1 }
 0x148   : > { %v694_v62 = vrot.slane %v403_v10, 7  ;;  %v993_v50 = vrot.slane %v580_v41, 1  ;;  %v9631_v49 = vpop.f32.mrb[18].mxu1  ;;  %v11696_v44 = vsel %vm660_vm2, %v690_v40, %v692_v57 }
 0x149   : > { %v999_v0 = vrot.slane %v9631_v49, 1  ;;  %v583_v43 = vpop.f32.mrb[19].mxu1  ;;  %v11699_v61 = vsel %vm660_vm2, %v696_v2, %v698_v21 }
 0x14a   : > { %v11702_v27 = vsel %vm660_vm2, %v694_v62, %v696_v2  ;;  %v995_v59 = vrot.slane %v583_v43, 1  ;;  %v11705_v63 = vsel %vm953_vm3, %v991_v7, %v993_v50  ;;  %v11708_v5 = vsel %vm660_vm2, %v692_v57, %v694_v62 }
 0x14b   : > { %v11711_v10 = vsel %vm953_vm3, %v997_v53, %v999_v0 }
 0x14c   : > { %v9596_v40 = vpop.f32.mrb[20].mxu0  ;;  %v11714_v49 = vsel %vm953_vm3, %v993_v50, %v995_v59  ;;  %v11717_v12 = vsel %vm953_vm3, %v995_v59, %v997_v53 }
 0x14d   : > { %13418 = vst [vmem:[#allocation25_spill] sm:$0xff] %v11717_v12  ;;  %v416_v41 = vpop.f32.mrb[21].mxu0  ;;  %v704_v37 = vrot.slane %v9596_v40, 7 }
 0x14e   : > { %v700_v2 = vrot.slane %v416_v41, 7  ;;  %v9597_v38 = vpop.f32.mrb[22].mxu0  ;;  %v9634_v43 = vpop.f32.mrb[20].mxu1 }
 0x14f   : > { %v706_v7 = vrot.slane %v9597_v38, 7  ;;  %v419_v32 = vpop.f32.mrb[23].mxu0  ;;  %v1005_v31 = vrot.slane %v9634_v43, 1  ;;  %v596_v57 = vpop.f32.mrb[21].mxu1 }
 0x150   : > { %v702_v62 = vrot.slane %v419_v32, 7  ;;  %v1001_v26 = vrot.slane %v596_v57, 1  ;;  %v9635_v25 = vpop.f32.mrb[22].mxu1  ;;  %v11720_v18 = vsel %vm660_vm2, %v698_v21, %v700_v2 }
 0x151   : > { %v1007_v50 = vrot.slane %v9635_v25, 1  ;;  %v599_v17 = vpop.f32.mrb[23].mxu1  ;;  %v11723_v53 = vsel %vm660_vm2, %v704_v37, %v706_v7 }
 0x152   : > { %v11726_v59 = vsel %vm660_vm2, %v702_v62, %v704_v37  ;;  %v1003_v41 = vrot.slane %v599_v17, 1  ;;  %v11729_v38 = vsel %vm953_vm3, %v999_v0, %v1001_v26  ;;  %v11732_v40 = vsel %vm660_vm2, %v700_v2, %v702_v62 }
 0x153   : > { %13419 = vst [vmem:[#allocation26_spill] sm:$0xff] %v11729_v38  ;;  %13420 = vst [vmem:[#allocation27_spill] sm:$0xff] %v11732_v40  ;;  %v11735_v32 = vsel %vm953_vm3, %v1005_v31, %v1007_v50 }
 0x154   : > { %13421 = vst [vmem:[#allocation28_spill] sm:$0xff] %v11735_v32  ;;  %v9600_v21 = vpop.f32.mrb[24].mxu0  ;;  %v11738_v25 = vsel %vm953_vm3, %v1001_v26, %v1003_v41  ;;  %v11741_v43 = vsel %vm953_vm3, %v1003_v41, %v1005_v31 }
 0x155   : > { %13422 = vst [vmem:[#allocation29_spill] sm:$0xff] %v11738_v25  ;;  %13423 = vst [vmem:[#allocation30_spill] sm:$0xff] %v11741_v43  ;;  %v432_v57 = vpop.f32.mrb[25].mxu0  ;;  %v712_v8 = vrot.slane %v9600_v21, 7 }
 0x156   : > { %v708_v37 = vrot.slane %v432_v57, 7  ;;  %v9601_v13 = vpop.f32.mrb[26].mxu0  ;;  %v9638_v17 = vpop.f32.mrb[24].mxu1 }
 0x157   : > { %v714_v0 = vrot.slane %v9601_v13, 7  ;;  %v435_v4 = vpop.f32.mrb[27].mxu0  ;;  %v1013_v12 = vrot.slane %v9638_v17, 1  ;;  %v612_v2 = vpop.f32.mrb[25].mxu1 }
 0x158   : > { %v710_v62 = vrot.slane %v435_v4, 7  ;;  %v1009_v38 = vrot.slane %v612_v2, 1  ;;  %v11744_v32 = vsel %vm660_vm2, %v706_v7, %v708_v37  ;;  %v11746_v40 = vpop.f32.mrb[26].mxu1 }
 0x159   : > { %13424 = vst [vmem:[#allocation31_spill] sm:$0xff] %v11746_v40  ;;  %v13393_v26 = vrot.slane %v11746_v40, 1  ;;  %v11750_v31 = vsel %vm660_vm2, %v712_v8, %v714_v0  ;;  %v615_v41 = vpop.f32.mrb[27].mxu1 }
 0x15a   : > { %13425 = vst [vmem:[#allocation32_spill] sm:$0xff] %v11750_v31  ;;  %v11753_v57 = vsel %vm660_vm2, %v710_v62, %v712_v8  ;;  %v11756_v13 = vsel %vm953_vm3, %v1007_v50, %v1009_v38  ;;  %v1011_v21 = vrot.slane %v615_v41, 1  ;;  %v11759_v4 = vsel %vm660_vm2, %v708_v37, %v710_v62 }
 0x15b   : > { %13426 = vst [vmem:[#allocation33_spill] sm:$0xff] %v11756_v13  ;;  %13427 = vst [vmem:[#allocation34_spill] sm:$0xff] %v11759_v4  ;;  %v11764_v7 = vsel %vm953_vm3, %v1013_v12, %v13393_v26 }
 0x15c   : > { %13428 = vst [vmem:[#allocation35_spill] sm:$0xff] %v11764_v7  ;;  %v9604_v17 = vpop.f32.mrb[28].mxu0  ;;  %v11767_v2 = vsel %vm953_vm3, %v1009_v38, %v1011_v21  ;;  %v11770_v43 = vsel %vm953_vm3, %v1011_v21, %v1013_v12  ;;  %v13435_v7 = vrot.slane %v11597_v1, 1 }
 0x15d   : > { %13429 = vst [vmem:[#allocation36_spill] sm:$0xff] %v11767_v2  ;;  %13430 = vst [vmem:[#allocation37_spill] sm:$0xff] %v11770_v43  ;;  %v448_v8 = vpop.f32.mrb[29].mxu0  ;;  %v720_v13 = vrot.slane %v9604_v17, 7 }
 0x15e   : > { %v716_v25 = vrot.slane %v448_v8, 7  ;;  %v9605_v50 = vpop.f32.mrb[30].mxu0 }
 0x15f   : > { %v722_v41 = vrot.slane %v9605_v50, 7  ;;  %v451_v31 = vpop.f32.mrb[31].mxu0 }
 0x160   : > { %v718_v37 = vrot.slane %v451_v31, 7  ;;  %v11773_v62 = vsel %vm660_vm2, %v714_v0, %v716_v25 }
 0x161   : > { %13431 = vst [vmem:[#allocation38_spill] sm:$0xff] %v11773_v62  ;;  %v11776_v26 = vsel %vm660_vm2, %v720_v13, %v722_v41 }
 0x162   : > { %13432 = vst [vmem:[#allocation39_spill] sm:$0xff] %v11776_v26  ;;  %v11779_v40 = vsel %vm660_vm2, %v718_v37, %v720_v13  ;;  %v11782_v38 = vsel %vm660_vm2, %v716_v25, %v718_v37 }
 0x163   : > { %13433 = vst [vmem:[#allocation40_spill] sm:$0xff] %v11779_v40  ;;  %13434 = vst [vmem:[#allocation41_spill] sm:$0xff] %v11782_v38  ;;  %v13436_v38 = vrot.slane %v11595_v58, 7 }
 0x164   : > { %v9610_v12 = vpop.f32.mrb[32].mxu0 }
 0x165   : > { %v500_v21 = vpop.f32.mrb[33].mxu0  ;;  %v957_v43 = vrot.slane %v9610_v12, 1  ;;  %v756_v12 = vsel %vm660_vm2, 0.0, %v13436_v38 }
 0x166   : > { %v9611_v8 = vpop.f32.mrb[34].mxu0  ;;  %v954_v2 = vrot.slane %v500_v21, 1  ;;  %v11794_v21 = vld [vmem:[#allocation5] ss:$0 sm:$0xff] }
 0x167   : > { %v959_v17 = vrot.slane %v9611_v8, 1  ;;  %v503_v50 = vpop.f32.mrb[35].mxu0 }
 0x168   : > { %v955_v31 = vrot.slane %v503_v50, 1 }
 0x169   : > { %v960_v0 = vsel %vm953_vm3, %v957_v43, %v959_v17  ;;  %v962_v41 = vsel %vm953_vm3, %v959_v17, %v13435_v7 }
 0x16a   : > { %v956_v13 = vsel %vm953_vm3, %v954_v2, %v955_v31  ;;  %v958_v26 = vsel %vm953_vm3, %v955_v31, %v957_v43 }
 0x16c   : > { %v9644_v25 = vpop.f32.mrb[36].mxu0 }
 0x16d   : > { %v803_v37 = vadd.f32 %v9644_v25, %v11605_v11  ;;  %v794_v8 = vpop.f32.mrb[37].mxu0 }
 0x16e   : > { %v795_v50 = vadd.f32 %v794_v8, %v756_v12  ;;  %v9645_v62 = vpop.f32.mrb[38].mxu0 }
 0x16f   : > { %v1052_v40 = vadd.f32 %v960_v0, %v803_v37  ;;  %v806_v1 = vadd.f32 %v9645_v62, %v11601_v9  ;;  %v797_v7 = vpop.f32.mrb[39].mxu0 }
 0x170   : > { %v1050_v17 = vadd.f32 %v956_v13, %v795_v50  ;;  %v798_v2 = vadd.f32 %v797_v7, %v11610_v14 }
 0x171   : > { %v1088_v43 = vadd.f32 %v11794_v21, %v1052_v40  ;;  %v1053_v31 = vadd.f32 %v962_v41, %v806_v1 }
 0x172   : > { %v1086_v11 = vadd.f32 %v11794_v21, %v1050_v17  ;;  %v1051_v58 = vadd.f32 %v958_v26, %v798_v2 }
 0x173   : > { %v1089_v38 = vadd.f32 %v11794_v21, %v1053_v31  ;;  %v1120_v12 = vmax.f32 %v1088_v43, 0.0 }
 0x174   : > { %v1087_v25 = vadd.f32 %v11794_v21, %v1051_v58  ;;  %v9648_v4 = vpop.f32.mrb[40].mxu0  ;;  %v1118_v62 = vmax.f32 %v1086_v11, 0.0 }
 0x175   : > { %v1121_v8 = vmax.f32 %v1089_v38, 0.0  ;;  %v819_v0 = vadd.f32 %v9648_v4, %v11630_v45  ;;  %v810_v9 = vpop.f32.mrb[41].mxu0 }
 0x176   : > { %v1119_v13 = vmax.f32 %v1087_v25, 0.0  ;;  %v811_v14 = vadd.f32 %v810_v9, %v11624_v39  ;;  %v9649_v37 = vpop.f32.mrb[42].mxu0 }
 0x177   : > { %v11804_v40 = vpack.c.bf16 %v1121_v8, %v1120_v12  ;;  %v1056_v41 = vadd.f32 %v11613_v15, %v819_v0  ;;  %v822_v26 = vadd.f32 %v9649_v37, %v11627_v42  ;;  %v813_v50 = vpop.f32.mrb[43].mxu0  ;;  %v11820_v15 = vld [vmem:[#allocation3 + $0x30] sm:$0xf] }
 0x178   : > { %v11808_v1 = vpack.c.bf16 %v1119_v13, %v1118_v62  ;;  %v1054_v7 = vadd.f32 %v11618_v19, %v811_v14  ;;  %v814_v45 = vadd.f32 %v813_v50, %v11636_v48 }
 0x179   : > { %v1092_v4 = vadd.f32 %v11794_v21, %v1056_v41  ;;  %v1057_v17 = vadd.f32 %v11633_v47, %v822_v26 }
 0x17a   : > { %v1090_v39 = vadd.f32 %v11794_v21, %v1054_v7  ;;  %v1055_v2 = vadd.f32 %v11621_v20, %v814_v45  ;;  %9676 = vmatprep.mubr.msk.bf16.mxu1 %vm1178_vm4, %v11808_v1  ;;  %9710 = vmatprep.mubr.msk.bf16.mxu0 %vm1178_vm4, %v11808_v1 }
 0x17b   : > { %v1093_v19 = vadd.f32 %v11794_v21, %v1057_v17  ;;  %9677 = vmatmul.mubr.msk.bf16.vlgmr.msra.gmra.mrb[28].mxu1 %vm1178_vm4, %v11804_v40  ;;  %9711 = vmatmul.mubr.msk.bf16.vlgmr.msra.gmra.mrb[68].mxu0 %vm1178_vm4, %v11804_v40  ;;  %v1124_v20 = vmax.f32 %v1092_v4, 0.0 }
 0x17c   : > { %v1091_v42 = vadd.f32 %v11794_v21, %v1055_v2  ;;  %v9652_v47 = vpop.f32.mrb[44].mxu0  ;;  %9743 = vmatpush3.bf16.msra.mxu1 %v11592_v56  ;;  %v1122_v11 = vmax.f32 %v1090_v39, 0.0 }
 0x17d   : > { %v1125_v48 = vmax.f32 %v1093_v19, 0.0  ;;  %v835_v43 = vadd.f32 %v9652_v47, %v11654_v24  ;;  %v826_v31 = vpop.f32.mrb[45].mxu0  ;;  %10932 = vmatprep.subr.msk.bf16.mxu1 %vm298_vm0, %v11820_v15 }
 0x17e   : > { %v1123_v58 = vmax.f32 %v1091_v42, 0.0  ;;  %v827_v38 = vadd.f32 %v826_v31, %v11648_v16  ;;  %v9653_v25 = vpop.f32.mrb[46].mxu0 }
 0x17f   : > { %v11833_v12 = vpack.c.bf16 %v1125_v48, %v1124_v20  ;;  %v1060_v8 = vadd.f32 %v11639_v51, %v835_v43  ;;  %v838_v0 = vadd.f32 %v9653_v25, %v11651_v23  ;;  %v829_v56 = vpop.f32.mrb[47].mxu0 }
 0x180   : > { %v11837_v9 = vpack.c.bf16 %v1123_v58, %v1122_v11  ;;  %v1058_v24 = vadd.f32 %v11642_v54, %v827_v38  ;;  %v830_v62 = vadd.f32 %v829_v56, %v11660_v30 }
 0x181   : > { %v1096_v13 = vadd.f32 %v11794_v21, %v1060_v8  ;;  %v1061_v14 = vadd.f32 %v11657_v29, %v838_v0 }
 0x182   : > { %v1094_v16 = vadd.f32 %v11794_v21, %v1058_v24  ;;  %v1059_v37 = vadd.f32 %v11645_v55, %v830_v62  ;;  %9680 = vmatprep.mubr.msk.bf16.mxu1 %vm1178_vm4, %v11837_v9  ;;  %9714 = vmatprep.mubr.msk.bf16.mxu0 %vm1178_vm4, %v11837_v9 }
 0x183   : > { %v1097_v51 = vadd.f32 %v11794_v21, %v1061_v14  ;;  %9681 = vmatmul.mubr.msk.bf16.gmra.mrb[32].mxu1 %vm1178_vm4, %v11833_v12  ;;  %9715 = vmatmul.mubr.msk.bf16.gmra.mrb[72].mxu0 %vm1178_vm4, %v11833_v12  ;;  %v1128_v29 = vmax.f32 %v1096_v13, 0.0 }
 0x184   : > { %v1095_v54 = vadd.f32 %v11794_v21, %v1059_v37  ;;  %v9656_v23 = vpop.f32.mrb[48].mxu0  ;;  %v1126_v26 = vmax.f32 %v1094_v16, 0.0 }
 0x185   : > { %v1129_v30 = vmax.f32 %v1097_v51, 0.0  ;;  %v851_v55 = vadd.f32 %v9656_v23, %v11678_v22  ;;  %v842_v41 = vpop.f32.mrb[49].mxu0 }
 0x186   : > { %v1127_v50 = vmax.f32 %v1095_v54, 0.0  ;;  %v843_v7 = vadd.f32 %v842_v41, %v11672_v6  ;;  %v9657_v45 = vpop.f32.mrb[50].mxu0 }
 0x187   : > { %v11857_v4 = vpack.c.bf16 %v1129_v30, %v1128_v29  ;;  %v1064_v17 = vadd.f32 %v11663_v33, %v851_v55  ;;  %v854_v39 = vadd.f32 %v9657_v45, %v11675_v3  ;;  %v845_v2 = vpop.f32.mrb[51].mxu0  ;;  %v13437_v45 = vld [vmem:[#allocation27_spill] sm:$0xff] }
 0x188   : > { %v11861_v19 = vpack.c.bf16 %v1127_v50, %v1126_v26  ;;  %v1062_v42 = vadd.f32 %v11666_v34, %v843_v7  ;;  %v846_v47 = vadd.f32 %v845_v2, %v11684_v36 }
 0x189   : > { %v1100_v22 = vadd.f32 %v11794_v21, %v1064_v17  ;;  %v1065_v20 = vadd.f32 %v11681_v28, %v854_v39  ;;  %v13438_v39 = vld [vmem:[#allocation26_spill] sm:$0xff] }
 0x18a   : > { %v1098_v6 = vadd.f32 %v11794_v21, %v1062_v42  ;;  %v1063_v48 = vadd.f32 %v11669_v35, %v846_v47  ;;  %9684 = vmatprep.mubr.msk.bf16.mxu1 %vm1178_vm4, %v11861_v19  ;;  %9718 = vmatprep.mubr.msk.bf16.mxu0 %vm1178_vm4, %v11861_v19  ;;  %v13439_v42 = vld [vmem:[#allocation25_spill] sm:$0xff] }
 0x18b   : > { %v1101_v33 = vadd.f32 %v11794_v21, %v1065_v20  ;;  %9685 = vmatmul.mubr.msk.bf16.gmra.mrb[36].mxu1 %vm1178_vm4, %v11857_v4  ;;  %9719 = vmatmul.mubr.msk.bf16.gmra.mrb[76].mxu0 %vm1178_vm4, %v11857_v4  ;;  %v1132_v28 = vmax.f32 %v1100_v22, 0.0 }
 0x18c   : > { %v1099_v34 = vadd.f32 %v11794_v21, %v1063_v48  ;;  %v9660_v3 = vpop.f32.mrb[52].mxu0  ;;  %v1130_v31 = vmax.f32 %v1098_v6, 0.0 }
 0x18d   : > { %v1133_v36 = vmax.f32 %v1101_v33, 0.0  ;;  %v867_v35 = vadd.f32 %v9660_v3, %v11702_v27  ;;  %v858_v43 = vpop.f32.mrb[53].mxu0 }
 0x18e   : > { %v1131_v11 = vmax.f32 %v1099_v34, 0.0  ;;  %v859_v58 = vadd.f32 %v858_v43, %v11696_v44  ;;  %v9661_v38 = vpop.f32.mrb[54].mxu0 }
 0x18f   : > { %v11881_v25 = vpack.c.bf16 %v1133_v36, %v1132_v28  ;;  %v1068_v8 = vadd.f32 %v11687_v46, %v867_v35  ;;  %v870_v0 = vadd.f32 %v9661_v38, %v11699_v61  ;;  %v861_v56 = vpop.f32.mrb[55].mxu0  ;;  %v13440_v35 = vld [vmem:[#allocation28_spill] sm:$0xff] }
 0x190   : > { %v11885_v24 = vpack.c.bf16 %v1131_v11, %v1130_v31  ;;  %v1066_v62 = vadd.f32 %v11690_v52, %v859_v58  ;;  %v862_v13 = vadd.f32 %v861_v56, %v11708_v5  ;;  %v13441_v31 = vld [vmem:[#allocation32_spill] sm:$0xff]  ;;  %v13443_v56 = vld [vmem:[#allocation34_spill] sm:$0xff] }
 0x191   : > { %v1104_v27 = vadd.f32 %v11794_v21, %v1068_v8  ;;  %v1069_v14 = vadd.f32 %v11705_v63, %v870_v0  ;;  %v13442_v8 = vld [vmem:[#allocation29_spill] sm:$0xff] }
 0x192   : > { %v1102_v44 = vadd.f32 %v11794_v21, %v1066_v62  ;;  %v1067_v16 = vadd.f32 %v11693_v60, %v862_v13  ;;  %9688 = vmatprep.mubr.msk.bf16.mxu1 %vm1178_vm4, %v11885_v24  ;;  %9722 = vmatprep.mubr.msk.bf16.mxu0 %vm1178_vm4, %v11885_v24  ;;  %v13444_v13 = vld [vmem:[#allocation33_spill] sm:$0xff] }
 0x193   : > { %v1105_v46 = vadd.f32 %v11794_v21, %v1069_v14  ;;  %9689 = vmatmul.mubr.msk.bf16.gmra.mrb[40].mxu1 %vm1178_vm4, %v11881_v25  ;;  %9723 = vmatmul.mubr.msk.bf16.gmra.mrb[80].mxu0 %vm1178_vm4, %v11881_v25  ;;  %v1136_v63 = vmax.f32 %v1104_v27, 0.0 }
 0x194   : > { %v1103_v52 = vadd.f32 %v11794_v21, %v1067_v16  ;;  %v9664_v61 = vpop.f32.mrb[56].mxu0  ;;  %v1134_v51 = vmax.f32 %v1102_v44, 0.0 }
 0x195   : > { %v1137_v5 = vmax.f32 %v1105_v46, 0.0  ;;  %v883_v60 = vadd.f32 %v9664_v61, %v11726_v59  ;;  %v874_v37 = vpop.f32.mrb[57].mxu0 }
 0x196   : > { %v1135_v54 = vmax.f32 %v1103_v52, 0.0  ;;  %v875_v23 = vadd.f32 %v874_v37, %v11720_v18  ;;  %v9665_v29 = vpop.f32.mrb[58].mxu0 }
 0x197   : > { %v11905_v30 = vpack.c.bf16 %v1137_v5, %v1136_v63  ;;  %v1072_v55 = vadd.f32 %v11711_v10, %v883_v60  ;;  %v886_v41 = vadd.f32 %v9665_v29, %v11723_v53  ;;  %v877_v26 = vpop.f32.mrb[59].mxu0  ;;  %v13446_v5 = vld [vmem:[#allocation40_spill] sm:$0xff] }
 0x198   : > { %v11909_v50 = vpack.c.bf16 %v1135_v54, %v1134_v51  ;;  %v1070_v7 = vadd.f32 %v11714_v49, %v875_v23  ;;  %v878_v17 = vadd.f32 %v877_v26, %v13437_v45  ;;  %v13447_v23 = vld [vmem:[#allocation38_spill] sm:$0xff]  ;;  %v13448_v26 = vld [vmem:[#allocation35_spill] sm:$0xff] }
 0x199   : > { %v1108_v59 = vadd.f32 %v11794_v21, %v1072_v55  ;;  %v1073_v2 = vadd.f32 %v13438_v39, %v886_v41  ;;  %v13449_v45 = vld [vmem:[#allocation39_spill] sm:$0xff] }
 0x19a   : > { %v1106_v18 = vadd.f32 %v11794_v21, %v1070_v7  ;;  %v1071_v47 = vadd.f32 %v13439_v42, %v878_v17  ;;  %9692 = vmatprep.mubr.msk.bf16.mxu1 %vm1178_vm4, %v11909_v50  ;;  %9726 = vmatprep.mubr.msk.bf16.mxu0 %vm1178_vm4, %v11909_v50  ;;  %v13450_v39 = vld [vmem:[#allocation31_spill] sm:$0xff] }
 0x19b   : > { %v1109_v10 = vadd.f32 %v11794_v21, %v1073_v2  ;;  %9693 = vmatmul.mubr.msk.bf16.gmra.mrb[44].mxu1 %vm1178_vm4, %v11905_v30  ;;  %9727 = vmatmul.mubr.msk.bf16.gmra.mrb[84].mxu0 %vm1178_vm4, %v11905_v30  ;;  %v1140_v22 = vmax.f32 %v1108_v59, 0.0  ;;  %v13451_v2 = vrot.slane %v13450_v39, 1 }
 0x19c   : > { %v1107_v49 = vadd.f32 %v11794_v21, %v1071_v47  ;;  %v9668_v53 = vpop.f32.mrb[60].mxu0  ;;  %v1138_v33 = vmax.f32 %v1106_v18, 0.0  ;;  %v13452_v47 = vld [vmem:[#allocation36_spill] sm:$0xff] }
 0x19d   : > { %v1141_v20 = vmax.f32 %v1109_v10, 0.0  ;;  %v899_v6 = vadd.f32 %v9668_v53, %v11753_v57  ;;  %v890_v48 = vpop.f32.mrb[61].mxu0  ;;  %v1049_v18 = vsel %vm953_vm3, %v13451_v2, 0.0 }
 0x19e   : > { %v1139_v34 = vmax.f32 %v1107_v49, 0.0  ;;  %v891_v3 = vadd.f32 %v890_v48, %v11744_v32  ;;  %v9669_v28 = vpop.f32.mrb[62].mxu0  ;;  %v13445_v32 = vld [vmem:[#allocation30_spill] sm:$0xff]  ;;  %v13453_v49 = vld [vmem:[#allocation41_spill] sm:$0xff] }
 0x19f   : > { %v11929_v36 = vpack.c.bf16 %v1141_v20, %v1140_v22  ;;  %v1076_v43 = vadd.f32 %v13440_v35, %v899_v6  ;;  %v902_v11 = vadd.f32 %v9669_v28, %v13441_v31  ;;  %v893_v58 = vpop.f32.mrb[63].mxu0  ;;  %v13454_v48 = vld [vmem:[#allocation37_spill] sm:$0xff] }
 0x1a0   : > { %v1160_v38 = vpack.c.bf16 %v1139_v34, %v1138_v33  ;;  %v1074_v0 = vadd.f32 %v13442_v8, %v891_v3  ;;  %v894_v62 = vadd.f32 %v893_v58, %v13443_v56  ;;  %v13467_v8 = vld [vmem:[#allocation21_spill] sm:$0xff]  ;;  %v13469_v56 = vld [vmem:[#allocation23_spill] sm:$0xff] }
 0x1a1   : > { %v1112_v57 = vadd.f32 %v11794_v21, %v1076_v43  ;;  %v1077_v27 = vadd.f32 %v13444_v13, %v902_v11 }
 0x1a2   : > { %v1110_v14 = vadd.f32 %v11794_v21, %v1074_v0  ;;  %v1075_v44 = vadd.f32 %v13445_v32, %v894_v62  ;;  %9696 = vmatprep.mubr.msk.bf16.mxu1 %vm1178_vm4, %v1160_v38  ;;  %9730 = vmatprep.mubr.msk.bf16.mxu0 %vm1178_vm4, %v1160_v38  ;;  %v13468_v0 = vld [vmem:[#allocation22_spill] sm:$0xff]  ;;  %v13470_v62 = vld [vmem:[#allocation24_spill] sm:$0xff] }
 0x1a3   : > { %v1113_v16 = vadd.f32 %v11794_v21, %v1077_v27  ;;  %9697 = vmatmul.mubr.msk.bf16.gmra.mrb[48].mxu1 %vm1178_vm4, %v11929_v36  ;;  %9731 = vmatmul.mubr.msk.bf16.gmra.mrb[88].mxu0 %vm1178_vm4, %v11929_v36  ;;  %v1144_v61 = vmax.f32 %v1112_v57, 0.0  ;;  %v12030_v32 = vld [vmem:[#allocation5 + $0x8] ss:$0 sm:$0xff] }
 0x1a4   : > { %v1111_v46 = vadd.f32 %v11794_v21, %v1075_v44  ;;  %v9672_v52 = vpop.f32.mrb[64].mxu0  ;;  %v1142_v51 = vmax.f32 %v1110_v14, 0.0 }
 0x1a5   : > { %v1145_v63 = vmax.f32 %v1113_v16, 0.0  ;;  %v915_v60 = vadd.f32 %v9672_v52, %v13446_v5  ;;  %v906_v37 = vpop.f32.mrb[65].mxu0 }
 0x1a6   : > { %v1143_v54 = vmax.f32 %v1111_v46, 0.0  ;;  %v907_v29 = vadd.f32 %v906_v37, %v13447_v23  ;;  %v9673_v55 = vpop.f32.mrb[66].mxu0 }
 0x1a7   : > { %v1163_v41 = vpack.c.bf16 %v1145_v63, %v1144_v61  ;;  %v1080_v7 = vadd.f32 %v13448_v26, %v915_v60  ;;  %v918_v17 = vadd.f32 %v9673_v55, %v13449_v45  ;;  %v909_v59 = vpop.f32.mrb[67].mxu0 }
 0x1a8   : > { %v1162_v42 = vpack.c.bf16 %v1143_v54, %v1142_v51  ;;  %v1078_v10 = vadd.f32 %v13452_v47, %v907_v29  ;;  %v910_v53 = vadd.f32 %v909_v59, %v13453_v49 }
 0x1a9   : > { %v1116_v22 = vadd.f32 %v11794_v21, %v1080_v7  ;;  %v1081_v20 = vadd.f32 %v1049_v18, %v918_v17 }
 0x1aa   : > { %v1114_v6 = vadd.f32 %v11794_v21, %v1078_v10  ;;  %v1079_v33 = vadd.f32 %v13454_v48, %v910_v53  ;;  %9700 = vmatprep.mubr.msk.bf16.mxu1 %vm1178_vm4, %v1162_v42  ;;  %9734 = vmatprep.mubr.msk.bf16.mxu0 %vm1178_vm4, %v1162_v42 }
 0x1ab   : > { %v1117_v34 = vadd.f32 %v11794_v21, %v1081_v20  ;;  %9701 = vmatmul.mubr.msk.bf16.gmra.mrb[52].mxu1 %vm1178_vm4, %v1163_v41  ;;  %9735 = vmatmul.mubr.msk.bf16.gmra.mrb[92].mxu0 %vm1178_vm4, %v1163_v41  ;;  %v1148_v28 = vmax.f32 %v1116_v22, 0.0 }
 0x1ac   : > { %v1115_v3 = vadd.f32 %v11794_v21, %v1079_v33  ;;  %v1146_v43 = vmax.f32 %v1114_v6, 0.0  ;;  %v2054_v21 = vsel %vm298_vm0, %v11820_v15, 0  ;;  %v13457_v15 = vld [vmem:[#allocation11_spill] sm:$0xff] }
 0x1ad   : > { %v1149_v35 = vmax.f32 %v1117_v34, 0.0 }
 0x1ae   : > { %v1147_v31 = vmax.f32 %v1115_v3, 0.0 }
 0x1af   : > { %v1165_v11 = vpack.c.bf16 %v1149_v35, %v1148_v28 }
 0x1b0   : > { %v1164_v58 = vpack.c.bf16 %v1147_v31, %v1146_v43 }
 0x1b2   : > { %9704 = vmatprep.mubr.msk.bf16.mxu1 %vm1178_vm4, %v1164_v58  ;;  %9738 = vmatprep.mubr.msk.bf16.mxu0 %vm1178_vm4, %v1164_v58 }
 0x1b3   : > { %9705 = vmatmul.mubr.msk.bf16.gmra.mrb[56].mxu1 %vm1178_vm4, %v1165_v11  ;;  %9739 = vmatmul.mubr.msk.bf16.gmra.mrb[96].mxu0 %vm1178_vm4, %v1165_v11 }
 0x1b4   : > { %9744 = vmatprep.mubr.msk.bf16.mxu1 %vm1178_vm4, %v11808_v1  ;;  %v13456_v1 = vld [vmem:[#allocation10_spill] sm:$0xff] }
 0x1bb   : > { %9745 = vmatmul.mubr.msk.bf16.vlgmr.msra.gmra.mrb[60].mxu1 %vm1178_vm4, %v11804_v40  ;;  %v13455_v40 = vld [vmem:[#allocation9_spill] sm:$0xff] }
 0x1bc   : > { %9748 = vmatprep.mubr.msk.bf16.mxu1 %vm1178_vm4, %v11837_v9  ;;  %9777 = vmatpush3.bf16.msra.mxu1 %v2054_v21  ;;  %v13459_v9 = vld [vmem:[#allocation13_spill] sm:$0xff] }
 0x1c3   : > { %9749 = vmatmul.mubr.msk.bf16.gmra.mrb[64].mxu1 %vm1178_vm4, %v11833_v12  ;;  %v13458_v12 = vld [vmem:[#allocation12_spill] sm:$0xff] }
 0x1c4   : > { %9752 = vmatprep.mubr.msk.bf16.mxu1 %vm1178_vm4, %v11861_v19  ;;  %v13461_v19 = vld [vmem:[#allocation15_spill] sm:$0xff] }
 0x1cb   : > { %9753 = vmatmul.mubr.msk.bf16.gmra.mrb[68].mxu1 %vm1178_vm4, %v11857_v4  ;;  %v13460_v4 = vld [vmem:[#allocation14_spill] sm:$0xff] }
 0x1cc   : > { %9756 = vmatprep.mubr.msk.bf16.mxu1 %vm1178_vm4, %v11885_v24  ;;  %v13462_v24 = vld [vmem:[#allocation16_spill] sm:$0xff] }
 0x1d3   : > { %9757 = vmatmul.mubr.msk.bf16.gmra.mrb[72].mxu1 %vm1178_vm4, %v11881_v25  ;;  %v10971_v25 = vld [vmem:[#allocation3 + $0x38] sm:$0xff]  }
 0x1d4   : > { %9760 = vmatprep.mubr.msk.bf16.mxu1 %vm1178_vm4, %v11909_v50  ;;  %9810 = vmatprep.subr.bf16.mxu0 %v10971_v25  ;;  %v13464_v50 = vld [vmem:[#allocation18_spill] sm:$0xff] }
 0x1d5   : > { %9811 = vmatpush3.bf16.msra.mxu0 %v10971_v25 }
 0x1db   : > { %9761 = vmatmul.mubr.msk.bf16.gmra.mrb[76].mxu1 %vm1178_vm4, %v11905_v30  ;;  %v13463_v30 = vld [vmem:[#allocation17_spill] sm:$0xff] }
 0x1dc   : > { %9764 = vmatprep.mubr.msk.bf16.mxu1 %vm1178_vm4, %v1160_v38  ;;  %v13466_v38 = vld [vmem:[#allocation20_spill] sm:$0xff] }
 0x1e3   : > { %9765 = vmatmul.mubr.msk.bf16.gmra.mrb[80].mxu1 %vm1178_vm4, %v11929_v36  ;;  %v13465_v36 = vld [vmem:[#allocation19_spill] sm:$0xff] }
 0x1e4   : > { %9768 = vmatprep.mubr.msk.bf16.mxu1 %vm1178_vm4, %v1162_v42 }
 0x1eb   : > { %9769 = vmatmul.mubr.msk.bf16.gmra.mrb[84].mxu1 %vm1178_vm4, %v1163_v41 }
 0x1ec   : > { %9772 = vmatprep.mubr.msk.bf16.mxu1 %vm1178_vm4, %v1164_v58 }
 0x1f3   : > { %9773 = vmatmul.mubr.msk.bf16.gmra.mrb[88].mxu1 %vm1178_vm4, %v1165_v11 }
 0x1f4   : > { %9778 = vmatprep.mubr.msk.bf16.mxu1 %vm249_vm1, %v13455_v40 }
 0x1fb   : > { %9779 = vmatmul.mubr.msk.bf16.vlgmr.msra.gmra.mrb[60].mxu1 %vm249_vm1, %v13456_v1 }
 0x1fc   : > { %9782 = vmatprep.mubr.msk.bf16.mxu1 %vm249_vm1, %v13457_v15 }
 0x203   : > { %9783 = vmatmul.mubr.msk.bf16.gmra.mrb[64].mxu1 %vm249_vm1, %v13458_v12 }
 0x204   : > { %9786 = vmatprep.mubr.msk.bf16.mxu1 %vm249_vm1, %v13459_v9 }
 0x20b   : > { %9787 = vmatmul.mubr.msk.bf16.gmra.mrb[68].mxu1 %vm249_vm1, %v13460_v4 }
 0x20c   : > { %9790 = vmatprep.mubr.msk.bf16.mxu1 %vm249_vm1, %v13461_v19 }
 0x213   : > { %9791 = vmatmul.mubr.msk.bf16.gmra.mrb[72].mxu1 %vm249_vm1, %v13462_v24 }
 0x214   : > { %9794 = vmatprep.mubr.msk.bf16.mxu1 %vm249_vm1, %v13463_v30 }
 0x21b   : > { %9795 = vmatmul.mubr.msk.bf16.gmra.mrb[76].mxu1 %vm249_vm1, %v13464_v50 }
 0x21c   : > { %9798 = vmatprep.mubr.msk.bf16.mxu1 %vm249_vm1, %v13465_v36 }
 0x223   : > { %9799 = vmatmul.mubr.msk.bf16.gmra.mrb[80].mxu1 %vm249_vm1, %v13466_v38 }
 0x224   : > { %9802 = vmatprep.mubr.msk.bf16.mxu1 %vm249_vm1, %v13467_v8 }
 0x22b   : > { %9803 = vmatmul.mubr.msk.bf16.gmra.mrb[84].mxu1 %vm249_vm1, %v13468_v0 }
 0x22c   : > { %9806 = vmatprep.mubr.msk.bf16.mxu1 %vm249_vm1, %v13469_v56 }
 0x233   : > { %9807 = vmatmul.mubr.msk.bf16.gmra.mrb[88].mxu1 %vm249_vm1, %v13470_v62 }
 0x24e   : > { %v9678_v57 = vpop.f32.mrb[28].mxu1  ;;  %v9712_v13 = vpop.f32.mrb[68].mxu0 }
 0x24f   : > { %v1261_v27 = vpop.f32.mrb[29].mxu1  ;;  %v1428_v14 = vpop.f32.mrb[69].mxu0  ;;  %v1591_v52 = vrot.slane %v9678_v57, 7  ;;  %v1886_v61 = vrot.slane %v9712_v13, 1 }
 0x250   : > { %v1588_v44 = vrot.slane %v1261_v27, 7  ;;  %v9679_v16 = vpop.f32.mrb[30].mxu1  ;;  %v9713_v46 = vpop.f32.mrb[70].mxu0  ;;  %v1883_v55 = vrot.slane %v1428_v14, 1 }
 0x251   : > { %v1593_v63 = vrot.slane %v9679_v16, 7  ;;  %v1888_v5 = vrot.slane %v9713_v46, 1  ;;  %v1264_v60 = vpop.f32.mrb[31].mxu1  ;;  %v1431_v37 = vpop.f32.mrb[71].mxu0 }
 0x252   : > { %v1683_v51 = vsel %vm660_vm2, 0.0, %v1588_v44  ;;  %v1589_v54 = vrot.slane %v1264_v60, 7  ;;  %v1884_v23 = vrot.slane %v1431_v37, 1 }
 0x253   : > { %v10632_v29 = vadd.f32 %v12030_v32, %v1683_v51  ;;  %v1594_v41 = vsel %vm660_vm2, %v1591_v52, %v1593_v63  ;;  %v1889_v26 = vsel %vm953_vm3, %v1886_v61, %v1888_v5 }
 0x254   : > { %v1590_v7 = vsel %vm660_vm2, %v1588_v44, %v1589_v54  ;;  %v1592_v45 = vsel %vm660_vm2, %v1589_v54, %v1591_v52  ;;  %v1887_v17 = vsel %vm953_vm3, %v1884_v23, %v1886_v61  ;;  %v1885_v2 = vsel %vm953_vm3, %v1883_v55, %v1884_v23 }
 0x255   : > { %v10640_v59 = vadd.f32 %v12030_v32, %v1590_v7  ;;  %v10628_v39 = vadd.f32 %v12030_v32, %v1592_v45  ;;  %v12042_v47 = vadd.f32 %v10632_v29, %v1885_v2  ;;  %v10636_v20 = vadd.f32 %v12030_v32, %v1594_v41 }
 0x256   : > { %v9682_v18 = vpop.f32.mrb[32].mxu1  ;;  %v9716_v42 = vpop.f32.mrb[72].mxu0 }
 0x257   : > { %v1277_v10 = vpop.f32.mrb[33].mxu1  ;;  %v1444_v49 = vpop.f32.mrb[73].mxu0  ;;  %v12044_v53 = vadd.f32 %v10628_v39, %v1889_v26  ;;  %v12046_v22 = vadd.f32 %v10640_v59, %v1887_v17  ;;  %v1599_v3 = vrot.slane %v9682_v18, 7  ;;  %v1894_v28 = vrot.slane %v9716_v42, 1 }
 0x258   : > { %v1595_v6 = vrot.slane %v1277_v10, 7  ;;  %v1890_v48 = vrot.slane %v1444_v49, 1  ;;  %v9683_v33 = vpop.f32.mrb[34].mxu1  ;;  %v9717_v34 = vpop.f32.mrb[74].mxu0 }
 0x259   : > { %v1601_v35 = vrot.slane %v9683_v33, 7  ;;  %v1896_v43 = vrot.slane %v9717_v34, 1  ;;  %v1280_v31 = vpop.f32.mrb[35].mxu1  ;;  %v1447_v11 = vpop.f32.mrb[75].mxu0 }
 0x25a   : > { %v1596_v58 = vsel %vm660_vm2, %v1593_v63, %v1595_v6  ;;  %v1891_v21 = vsel %vm953_vm3, %v1888_v5, %v1890_v48  ;;  %v1597_v40 = vrot.slane %v1280_v31, 7  ;;  %v1892_v1 = vrot.slane %v1447_v11, 1 }
 0x25b   : > { %v10648_v15 = vadd.f32 %v12030_v32, %v1596_v58  ;;  %v1602_v12 = vsel %vm660_vm2, %v1599_v3, %v1601_v35  ;;  %v1897_v9 = vsel %vm953_vm3, %v1894_v28, %v1896_v43  ;;  %v12054_v4 = vadd.f32 %v10636_v20, %v1891_v21 }
 0x25c   : > { %v1598_v19 = vsel %vm660_vm2, %v1595_v6, %v1597_v40  ;;  %v1600_v25 = vsel %vm660_vm2, %v1597_v40, %v1599_v3  ;;  %v1893_v24 = vsel %vm953_vm3, %v1890_v48, %v1892_v1  ;;  %v1895_v36 = vsel %vm953_vm3, %v1892_v1, %v1894_v28 }
 0x25d   : > { %v10656_v30 = vadd.f32 %v12030_v32, %v1598_v19  ;;  %v10644_v50 = vadd.f32 %v12030_v32, %v1600_v25  ;;  %v12062_v0 = vadd.f32 %v10648_v15, %v1893_v24  ;;  %v10652_v27 = vadd.f32 %v12030_v32, %v1602_v12 }
 0x25e   : > { %v9686_v38 = vpop.f32.mrb[36].mxu1  ;;  %v9720_v8 = vpop.f32.mrb[76].mxu0 }
 0x25f   : > { %v1293_v56 = vpop.f32.mrb[37].mxu1  ;;  %v1460_v62 = vpop.f32.mrb[77].mxu0  ;;  %v12064_v57 = vadd.f32 %v10644_v50, %v1897_v9  ;;  %v12066_v13 = vadd.f32 %v10656_v30, %v1895_v36  ;;  %v1607_v52 = vrot.slane %v9686_v38, 7  ;;  %v1902_v61 = vrot.slane %v9720_v8, 1 }
 0x260   : > { %v1603_v14 = vrot.slane %v1293_v56, 7  ;;  %v1898_v44 = vrot.slane %v1460_v62, 1  ;;  %v9687_v16 = vpop.f32.mrb[38].mxu1  ;;  %v9721_v46 = vpop.f32.mrb[78].mxu0 }
 0x261   : > { %v1609_v63 = vrot.slane %v9687_v16, 7  ;;  %v1904_v5 = vrot.slane %v9721_v46, 1  ;;  %v1296_v60 = vpop.f32.mrb[39].mxu1  ;;  %v1463_v37 = vpop.f32.mrb[79].mxu0 }
 0x262   : > { %v1604_v51 = vsel %vm660_vm2, %v1601_v35, %v1603_v14  ;;  %v1899_v54 = vsel %vm953_vm3, %v1896_v43, %v1898_v44  ;;  %v1605_v23 = vrot.slane %v1296_v60, 7  ;;  %v1900_v29 = vrot.slane %v1463_v37, 1 }
 0x263   : > { %v10664_v55 = vadd.f32 %v12030_v32, %v1604_v51  ;;  %v1610_v41 = vsel %vm660_vm2, %v1607_v52, %v1609_v63  ;;  %v1905_v26 = vsel %vm953_vm3, %v1902_v61, %v1904_v5  ;;  %v12074_v7 = vadd.f32 %v10652_v27, %v1899_v54 }
 0x264   : > { %v1606_v45 = vsel %vm660_vm2, %v1603_v14, %v1605_v23  ;;  %v1608_v17 = vsel %vm660_vm2, %v1605_v23, %v1607_v52  ;;  %v1901_v59 = vsel %vm953_vm3, %v1898_v44, %v1900_v29  ;;  %v1903_v18 = vsel %vm953_vm3, %v1900_v29, %v1902_v61 }
 0x265   : > { %v10672_v39 = vadd.f32 %v12030_v32, %v1606_v45  ;;  %v10660_v2 = vadd.f32 %v12030_v32, %v1608_v17  ;;  %v12082_v49 = vadd.f32 %v10664_v55, %v1901_v59  ;;  %v10668_v34 = vadd.f32 %v12030_v32, %v1610_v41 }
 0x266   : > { %v9690_v42 = vpop.f32.mrb[40].mxu1  ;;  %v9724_v10 = vpop.f32.mrb[80].mxu0 }
 0x267   : > { %v1309_v20 = vpop.f32.mrb[41].mxu1  ;;  %v1476_v6 = vpop.f32.mrb[81].mxu0  ;;  %v12084_v48 = vadd.f32 %v10660_v2, %v1905_v26  ;;  %v12086_v33 = vadd.f32 %v10672_v39, %v1903_v18  ;;  %v1615_v31 = vrot.slane %v9690_v42, 7  ;;  %v1910_v11 = vrot.slane %v9724_v10, 1 }
 0x268   : > { %v1611_v3 = vrot.slane %v1309_v20, 7  ;;  %v1906_v28 = vrot.slane %v1476_v6, 1  ;;  %v9691_v35 = vpop.f32.mrb[42].mxu1  ;;  %v9725_v43 = vpop.f32.mrb[82].mxu0 }
 0x269   : > { %v1617_v58 = vrot.slane %v9691_v35, 7  ;;  %v1912_v21 = vrot.slane %v9725_v43, 1  ;;  %v1312_v40 = vpop.f32.mrb[43].mxu1  ;;  %v1479_v1 = vpop.f32.mrb[83].mxu0 }
 0x26a   : > { %v1612_v15 = vsel %vm660_vm2, %v1609_v63, %v1611_v3  ;;  %v1907_v12 = vsel %vm953_vm3, %v1904_v5, %v1906_v28  ;;  %v1613_v9 = vrot.slane %v1312_v40, 7  ;;  %v1908_v19 = vrot.slane %v1479_v1, 1 }
 0x26b   : > { %v10680_v25 = vadd.f32 %v12030_v32, %v1612_v15  ;;  %v1618_v24 = vsel %vm660_vm2, %v1615_v31, %v1617_v58  ;;  %v1913_v30 = vsel %vm953_vm3, %v1910_v11, %v1912_v21  ;;  %v12094_v50 = vadd.f32 %v10668_v34, %v1907_v12 }
 0x26c   : > { %v1614_v36 = vsel %vm660_vm2, %v1611_v3, %v1613_v9  ;;  %v1616_v38 = vsel %vm660_vm2, %v1613_v9, %v1615_v31  ;;  %v1909_v8 = vsel %vm953_vm3, %v1906_v28, %v1908_v19  ;;  %v1911_v27 = vsel %vm953_vm3, %v1908_v19, %v1910_v11 }
 0x26d   : > { %v10688_v56 = vadd.f32 %v12030_v32, %v1614_v36  ;;  %v10676_v62 = vadd.f32 %v12030_v32, %v1616_v38  ;;  %v12102_v16 = vadd.f32 %v10680_v25, %v1909_v8  ;;  %v10684_v5 = vadd.f32 %v12030_v32, %v1618_v24 }
 0x26e   : > { %v9694_v14 = vpop.f32.mrb[44].mxu1  ;;  %v9728_v44 = vpop.f32.mrb[84].mxu0 }
 0x26f   : > { %v1325_v46 = vpop.f32.mrb[45].mxu1  ;;  %v1492_v52 = vpop.f32.mrb[85].mxu0  ;;  %v12104_v61 = vadd.f32 %v10676_v62, %v1913_v30  ;;  %v12106_v63 = vadd.f32 %v10688_v56, %v1911_v27  ;;  %v1623_v23 = vrot.slane %v9694_v14, 7  ;;  %v1918_v29 = vrot.slane %v9728_v44, 1 }
 0x270   : > { %v1619_v60 = vrot.slane %v1325_v46, 7  ;;  %v1914_v37 = vrot.slane %v1492_v52, 1  ;;  %v9695_v51 = vpop.f32.mrb[46].mxu1  ;;  %v9729_v54 = vpop.f32.mrb[86].mxu0 }
 0x271   : > { %v1625_v55 = vrot.slane %v9695_v51, 7  ;;  %v1920_v41 = vrot.slane %v9729_v54, 1  ;;  %v1328_v26 = vpop.f32.mrb[47].mxu1  ;;  %v1495_v45 = vpop.f32.mrb[87].mxu0 }
 0x272   : > { %v1620_v17 = vsel %vm660_vm2, %v1617_v58, %v1619_v60  ;;  %v1915_v59 = vsel %vm953_vm3, %v1912_v21, %v1914_v37  ;;  %v1621_v39 = vrot.slane %v1328_v26, 7  ;;  %v1916_v2 = vrot.slane %v1495_v45, 1 }
 0x273   : > { %v10696_v18 = vadd.f32 %v12030_v32, %v1620_v17  ;;  %v1626_v42 = vsel %vm660_vm2, %v1623_v23, %v1625_v55  ;;  %v1921_v10 = vsel %vm953_vm3, %v1918_v29, %v1920_v41  ;;  %v12114_v20 = vadd.f32 %v10684_v5, %v1915_v59 }
 0x274   : > { %v1622_v6 = vsel %vm660_vm2, %v1619_v60, %v1621_v39  ;;  %v1624_v34 = vsel %vm660_vm2, %v1621_v39, %v1623_v23  ;;  %v1917_v3 = vsel %vm953_vm3, %v1914_v37, %v1916_v2  ;;  %v1919_v43 = vsel %vm953_vm3, %v1916_v2, %v1918_v29 }
 0x275   : > { %v10704_v28 = vadd.f32 %v12030_v32, %v1622_v6  ;;  %v10692_v35 = vadd.f32 %v12030_v32, %v1624_v34  ;;  %v12122_v58 = vadd.f32 %v10696_v18, %v1917_v3  ;;  %v10700_v12 = vadd.f32 %v12030_v32, %v1626_v42 }
 0x276   : > { %v9698_v31 = vpop.f32.mrb[48].mxu1  ;;  %v9732_v11 = vpop.f32.mrb[88].mxu0 }
 0x277   : > { %v1341_v21 = vpop.f32.mrb[49].mxu1  ;;  %v1508_v40 = vpop.f32.mrb[89].mxu0  ;;  %v12124_v1 = vadd.f32 %v10692_v35, %v1921_v10  ;;  %v12126_v15 = vadd.f32 %v10704_v28, %v1919_v43  ;;  %v1631_v30 = vrot.slane %v9698_v31, 7  ;;  %v1926_v36 = vrot.slane %v9732_v11, 1 }
 0x278   : > { %v1627_v9 = vrot.slane %v1341_v21, 7  ;;  %v1922_v19 = vrot.slane %v1508_v40, 1  ;;  %v9699_v25 = vpop.f32.mrb[50].mxu1  ;;  %v9733_v24 = vpop.f32.mrb[90].mxu0 }
 0x279   : > { %v1633_v38 = vrot.slane %v9699_v25, 7  ;;  %v1928_v8 = vrot.slane %v9733_v24, 1  ;;  %v1344_v56 = vpop.f32.mrb[51].mxu1  ;;  %v1511_v62 = vpop.f32.mrb[91].mxu0 }
 0x27a   : > { %v1628_v27 = vsel %vm660_vm2, %v1625_v55, %v1627_v9  ;;  %v1923_v14 = vsel %vm953_vm3, %v1920_v41, %v1922_v19  ;;  %v1629_v44 = vrot.slane %v1344_v56, 7  ;;  %v1924_v46 = vrot.slane %v1511_v62, 1 }
 0x27b   : > { %v10712_v52 = vadd.f32 %v12030_v32, %v1628_v27  ;;  %v1634_v5 = vsel %vm660_vm2, %v1631_v30, %v1633_v38  ;;  %v1929_v60 = vsel %vm953_vm3, %v1926_v36, %v1928_v8  ;;  %v12134_v37 = vadd.f32 %v10700_v12, %v1923_v14 }
 0x27c   : > { %v1630_v51 = vsel %vm660_vm2, %v1627_v9, %v1629_v44  ;;  %v1632_v54 = vsel %vm660_vm2, %v1629_v44, %v1631_v30  ;;  %v1925_v23 = vsel %vm953_vm3, %v1922_v19, %v1924_v46  ;;  %v1927_v41 = vsel %vm953_vm3, %v1924_v46, %v1926_v36 }
 0x27d   : > { %v10720_v29 = vadd.f32 %v12030_v32, %v1630_v51  ;;  %v10708_v55 = vadd.f32 %v12030_v32, %v1632_v54  ;;  %v12142_v17 = vadd.f32 %v10712_v52, %v1925_v23  ;;  %v10716_v42 = vadd.f32 %v12030_v32, %v1634_v5 }
 0x27e   : > { %v9702_v26 = vpop.f32.mrb[52].mxu1  ;;  %v9736_v45 = vpop.f32.mrb[92].mxu0 }
 0x27f   : > { %v1357_v59 = vpop.f32.mrb[53].mxu1  ;;  %v1524_v39 = vpop.f32.mrb[93].mxu0  ;;  %v12144_v2 = vadd.f32 %v10708_v55, %v1929_v60  ;;  %v12146_v18 = vadd.f32 %v10720_v29, %v1927_v41  ;;  %v1639_v28 = vrot.slane %v9702_v26, 7  ;;  %v1934_v35 = vrot.slane %v9736_v45, 1 }
 0x280   : > { %v1635_v10 = vrot.slane %v1357_v59, 7  ;;  %v1930_v6 = vrot.slane %v1524_v39, 1  ;;  %v9703_v34 = vpop.f32.mrb[54].mxu1  ;;  %v9737_v3 = vpop.f32.mrb[94].mxu0 }
 0x281   : > { %v1641_v43 = vrot.slane %v9703_v34, 7  ;;  %v1936_v31 = vrot.slane %v9737_v3, 1  ;;  %v1360_v11 = vpop.f32.mrb[55].mxu1  ;;  %v1527_v21 = vpop.f32.mrb[95].mxu0 }
 0x282   : > { %v1636_v40 = vsel %vm660_vm2, %v1633_v38, %v1635_v10  ;;  %v1931_v12 = vsel %vm953_vm3, %v1928_v8, %v1930_v6  ;;  %v1637_v9 = vrot.slane %v1360_v11, 7  ;;  %v1932_v19 = vrot.slane %v1527_v21, 1 }
 0x283   : > { %v10728_v25 = vadd.f32 %v12030_v32, %v1636_v40  ;;  %v1642_v24 = vsel %vm660_vm2, %v1639_v28, %v1641_v43  ;;  %v1937_v30 = vsel %vm953_vm3, %v1934_v35, %v1936_v31  ;;  %v12154_v36 = vadd.f32 %v10716_v42, %v1931_v12 }
 0x284   : > { %v1638_v56 = vsel %vm660_vm2, %v1635_v10, %v1637_v9  ;;  %v1640_v62 = vsel %vm660_vm2, %v1637_v9, %v1639_v28  ;;  %v1933_v27 = vsel %vm953_vm3, %v1930_v6, %v1932_v19  ;;  %v1935_v14 = vsel %vm953_vm3, %v1932_v19, %v1934_v35 }
 0x285   : > { %v10736_v38 = vadd.f32 %v12030_v32, %v1638_v56  ;;  %v10724_v8 = vadd.f32 %v12030_v32, %v1640_v62  ;;  %v12162_v52 = vadd.f32 %v10728_v25, %v1933_v27  ;;  %v10732_v23 = vadd.f32 %v12030_v32, %v1642_v24 }
 0x286   : > { %v9706_v44 = vpop.f32.mrb[56].mxu1  ;;  %v9740_v46 = vpop.f32.mrb[96].mxu0 }
 0x287   : > { %v1373_v5 = vpop.f32.mrb[57].mxu1  ;;  %v1540_v60 = vpop.f32.mrb[97].mxu0  ;;  %v12164_v51 = vadd.f32 %v10724_v8, %v1937_v30  ;;  %v12166_v54 = vadd.f32 %v10736_v38, %v1935_v14  ;;  %v1647_v45 = vrot.slane %v9706_v44, 7  ;;  %v1942_v59 = vrot.slane %v9740_v46, 1  ;;  %v12192_v14 = vld [vmem:[#allocation3 + $0x48] sm:$0xff]  }
 0x288   : > { %v1643_v29 = vrot.slane %v1373_v5, 7  ;;  %v1938_v55 = vrot.slane %v1540_v60, 1  ;;  %v9707_v41 = vpop.f32.mrb[58].mxu1  ;;  %v9741_v26 = vpop.f32.mrb[98].mxu0  ;;  %9828 = vmatprep.subr.bf16.mxu0 %v12192_v14  ;;  %v12195_v44 = vld [vmem:[#allocation5 + $0x10] ss:$0 sm:$0xff] }
 0x289   : > { %v1649_v39 = vrot.slane %v9707_v41, 7  ;;  %v1944_v42 = vrot.slane %v9741_v26, 1  ;;  %v1376_v10 = vpop.f32.mrb[59].mxu1  ;;  %v1543_v6 = vpop.f32.mrb[99].mxu0  ;;  %v10642_v5 = vadd.f32 %v12046_v22, %v12195_v44  ;;  %v10646_v60 = vadd.f32 %v12064_v57, %v12195_v44 }
 0x28a   : > { %v1644_v34 = vsel %vm660_vm2, %v1641_v43, %v1643_v29  ;;  %v1939_v3 = vsel %vm953_vm3, %v1936_v31, %v1938_v55  ;;  %v1645_v28 = vrot.slane %v1376_v10, 7  ;;  %v1940_v35 = vrot.slane %v1543_v6, 1 }
 0x28b   : > { %v10744_v11 = vadd.f32 %v12030_v32, %v1644_v34  ;;  %v1650_v21 = vsel %vm660_vm2, %v1647_v45, %v1649_v39  ;;  %v1945_v40 = vsel %vm953_vm3, %v1942_v59, %v1944_v42  ;;  %v1978_v12 = vsel %vm953_vm3, %v1944_v42, 0.0 }
 0x28c   : > { %v10748_v9 = vadd.f32 %v12030_v32, %v1650_v21  ;;  %v1646_v19 = vsel %vm660_vm2, %v1643_v29, %v1645_v28  ;;  %v1648_v25 = vsel %vm660_vm2, %v1645_v28, %v1647_v45  ;;  %v1941_v43 = vsel %vm953_vm3, %v1938_v55, %v1940_v35 }
 0x28d   : > { %v10752_v31 = vadd.f32 %v12030_v32, %v1646_v19  ;;  %v10740_v24 = vadd.f32 %v12030_v32, %v1648_v25  ;;  %v1943_v30 = vsel %vm953_vm3, %v1940_v35, %v1942_v59  ;;  %v12182_v56 = vadd.f32 %v10732_v23, %v1939_v3 }
 0x28e   : > { %v12184_v62 = vadd.f32 %v10748_v9, %v1978_v12  ;;  %v12186_v27 = vadd.f32 %v10744_v11, %v1941_v43  ;;  %v10638_v32 = vadd.f32 %v12054_v4, %v12195_v44  ;;  %v10650_v23 = vadd.f32 %v12062_v0, %v12195_v44 }
 0x28f   : > { %v12188_v38 = vadd.f32 %v10740_v24, %v1945_v40  ;;  %v12190_v8 = vadd.f32 %v10752_v31, %v1943_v30  ;;  %v10654_v41 = vadd.f32 %v12074_v7, %v12195_v44  ;;  %v10658_v26 = vadd.f32 %v12066_v13, %v12195_v44 }
 0x290   : > { %v12212_v4 = vadd.f32 %v12082_v49, %v12195_v44  ;;  %v12217_v57 = vadd.f32 %v12084_v48, %v12195_v44  ;;  %v12225_v0 = vadd.f32 %v12086_v33, %v12195_v44  ;;  %v12234_v48 = vadd.f32 %v12102_v16, %v12195_v44 }
 0x291   : > { %v12239_v39 = vadd.f32 %v12114_v20, %v12195_v44  ;;  %v12243_v33 = vadd.f32 %v12106_v63, %v12195_v44  ;;  %v12253_v16 = vadd.f32 %v12122_v58, %v12195_v44  ;;  %v12257_v20 = vadd.f32 %v12134_v37, %v12195_v44 }
 0x292   : > { %v12261_v63 = vadd.f32 %v12126_v15, %v12195_v44  ;;  %v12269_v15 = vadd.f32 %v12142_v17, %v12195_v44 }
 0x2ce   : > { %v9780_v46 = vpop.f32.mrb[60].mxu1 }
 0x2cf   : > { %v10630_v29 = vadd.f32 %v12044_v53, %v9780_v46  ;;  %v2090_v55 = vpop.f32.mrb[61].mxu1  ;;  %v12221_v53 = vadd.f32 %v12094_v50, %v12195_v44 }
 0x2d0   : > { %v10634_v22 = vadd.f32 %v12042_v47, %v2090_v55  ;;  %v9781_v45 = vpop.f32.mrb[62].mxu1  ;;  %v12230_v47 = vadd.f32 %v12104_v61, %v12195_v44  ;;  %v12249_v61 = vadd.f32 %v12124_v1, %v12195_v44 }
 0x2d1   : > { %v10631_v13 = vadd.f32 %v10630_v29, %v12195_v44  ;;  %v10639_v7 = vadd.f32 %v10638_v32, %v9781_v45  ;;  %v2093_v49 = vpop.f32.mrb[63].mxu1 }
 0x2d2   : > { %v10635_v59 = vadd.f32 %v10634_v22, %v12195_v44  ;;  %v10643_v50 = vadd.f32 %v10642_v5, %v2093_v49 }
 0x2d3   : > { %v2251_v42 = vmax.f32 %v10631_v13, 0.0  ;;  %v12245_v10 = vmax.f32 %v10639_v7, 0.0 }
 0x2d4   : > { %v2249_v6 = vmax.f32 %v10635_v59, 0.0  ;;  %v2250_v34 = vmax.f32 %v10643_v50, 0.0 }
 0x2d5   : > { %v2316_v3 = vrot.slane %v2251_v42, 7  ;;  %v2444_v28 = vrot.slane %v2251_v42, 1  ;;  %v2318_v35 = vrot.slane %v12245_v10, 7  ;;  %v2446_v1 = vrot.slane %v12245_v10, 1 }
 0x2d6   : > { %v2313_v11 = vrot.slane %v2249_v6, 7  ;;  %v2441_v21 = vrot.slane %v2249_v6, 1  ;;  %v2314_v58 = vrot.slane %v2250_v34, 7  ;;  %v2442_v40 = vrot.slane %v2250_v34, 1  ;;  %v9784_v12 = vpop.f32.mrb[64].mxu1 }
 0x2d7   : > { %v2319_v9 = vsel %vm660_vm2, %v2316_v3, %v2318_v35  ;;  %v2447_v37 = vsel %vm953_vm3, %v2444_v28, %v2446_v1  ;;  %v10647_v19 = vadd.f32 %v10646_v60, %v9784_v12  ;;  %v2106_v25 = vpop.f32.mrb[65].mxu1 }
 0x2d8   : > { %v2408_v43 = vsel %vm660_vm2, 0.0, %v2313_v11  ;;  %v2412_v31 = vmax.f32 %v2319_v9, %v12245_v10  ;;  %v2315_v24 = vsel %vm660_vm2, %v2313_v11, %v2314_v58  ;;  %v2317_v30 = vsel %vm660_vm2, %v2314_v58, %v2316_v3  ;;  %v9785_v46 = vpop.f32.mrb[66].mxu1 }
 0x2d9   : > { %v2409_v32 = vmax.f32 %v2408_v43, %v2249_v6  ;;  %v2410_v5 = vmax.f32 %v2315_v24, %v2250_v34  ;;  %v2411_v29 = vmax.f32 %v2317_v30, %v2251_v42  ;;  %v2443_v55 = vsel %vm953_vm3, %v2441_v21, %v2442_v40  ;;  %v2109_v60 = vpop.f32.mrb[67].mxu1 }
 0x2da   : > { %v2445_v22 = vsel %vm953_vm3, %v2442_v40, %v2444_v28  ;;  %v2255_v45 = vmax.f32 %v10647_v19, 0.0  ;;  %v10651_v17 = vadd.f32 %v10650_v23, %v2106_v25  ;;  %v10655_v13 = vadd.f32 %v10654_v41, %v9785_v46 }
 0x2db   : > { %v2537_v7 = vmax.f32 %v2409_v32, %v2443_v55  ;;  %v2538_v49 = vmax.f32 %v2410_v5, %v2445_v22  ;;  %v2539_v59 = vmax.f32 %v2411_v29, %v2447_v37  ;;  %v10659_v50 = vadd.f32 %v10658_v26, %v2109_v60 }
 0x2dc   : > { %v2253_v10 = vmax.f32 %v10651_v17, 0.0  ;;  %v12277_v11 = vmax.f32 %v10655_v13, 0.0  ;;  %v12281_v6 = vadd.f32 %v12144_v2, %v12195_v44  ;;  %v12285_v42 = vadd.f32 %v12146_v18, %v12195_v44 }
 0x2dd   : > { %2569 = vst.msk [vmem:[#allocation2] sm:$0xff] %vm1178_vm4, %v2537_v7  ;;  %2570 = vst.msk [vmem:[#allocation2 + $0x8] sm:$0xff] %vm1178_vm4, %v2538_v49  ;;  %v2324_v23 = vrot.slane %v2255_v45, 7  ;;  %v2452_v41 = vrot.slane %v2255_v45, 1  ;;  %v2254_v26 = vmax.f32 %v10659_v50, 0.0  ;;  %v12292_v34 = vadd.f32 %v12154_v36, %v12195_v44 }
 0x2de   : > { %2571 = vst.msk [vmem:[#allocation2 + $0x10] sm:$0xff] %vm1178_vm4, %v2539_v59  ;;  %v2320_v3 = vrot.slane %v2253_v10, 7  ;;  %v2448_v2 = vrot.slane %v2253_v10, 1  ;;  %v2326_v28 = vrot.slane %v12277_v11, 7  ;;  %v2454_v18 = vrot.slane %v12277_v11, 1  ;;  %v9788_v21 = vpop.f32.mrb[68].mxu1 }
 0x2df   : > { %v2322_v58 = vrot.slane %v2254_v26, 7  ;;  %v2450_v40 = vrot.slane %v2254_v26, 1  ;;  %v10663_v12 = vadd.f32 %v12217_v57, %v9788_v21  ;;  %v2122_v9 = vpop.f32.mrb[69].mxu1  ;;  %v12299_v37 = vadd.f32 %v12162_v52, %v12195_v44 }
 0x2e0   : > { %v2321_v19 = vsel %vm660_vm2, %v2318_v35, %v2320_v3  ;;  %v2449_v36 = vsel %vm953_vm3, %v2446_v1, %v2448_v2  ;;  %v2327_v25 = vsel %vm660_vm2, %v2324_v23, %v2326_v28  ;;  %v2455_v43 = vsel %vm953_vm3, %v2452_v41, %v2454_v18  ;;  %v9789_v24 = vpop.f32.mrb[70].mxu1 }
 0x2e1   : > { %v2413_v30 = vmax.f32 %v2321_v19, %v2253_v10  ;;  %v2540_v46 = vmax.f32 %v2412_v31, %v2449_v36  ;;  %v2416_v32 = vmax.f32 %v2327_v25, %v12277_v11  ;;  %v2323_v57 = vsel %vm660_vm2, %v2320_v3, %v2322_v58  ;;  %v2125_v5 = vpop.f32.mrb[71].mxu1 }
 0x2e2   : > { %v2325_v29 = vsel %vm660_vm2, %v2322_v58, %v2324_v23  ;;  %v2414_v52 = vmax.f32 %v2323_v57, %v2254_v26  ;;  %v2451_v55 = vsel %vm953_vm3, %v2448_v2, %v2450_v40  ;;  %v2453_v35 = vsel %vm953_vm3, %v2450_v40, %v2452_v41 }
 0x2e3   : > { %2572 = vst.msk [vmem:[#allocation2 + $0x18] sm:$0xff] %vm1178_vm4, %v2540_v46  ;;  %v2415_v1 = vmax.f32 %v2325_v29, %v2255_v45  ;;  %v2541_v60 = vmax.f32 %v2413_v30, %v2451_v55  ;;  %v2259_v22 = vmax.f32 %v10663_v12, 0.0  ;;  %v10667_v17 = vadd.f32 %v12212_v4, %v2122_v9 }
 0x2e4   : > { %v2542_v31 = vmax.f32 %v2414_v52, %v2453_v35  ;;  %v10671_v13 = vadd.f32 %v12221_v53, %v9789_v24  ;;  %v10675_v7 = vadd.f32 %v12225_v0, %v2125_v5  ;;  %v12316_v49 = vadd.f32 %v12164_v51, %v12195_v44  ;;  %v2601_v35 = vld [vmem:[#allocation2] ss:$2 sm:$0xff] }
 0x2e5   : > { %v2543_v59 = vmax.f32 %v2415_v1, %v2455_v43  ;;  %2573 = vst.msk [vmem:[#allocation2 + $0x20] sm:$0xff] %vm1178_vm4, %v2541_v60  ;;  %v2257_v50 = vmax.f32 %v10667_v17, 0.0  ;;  %v12321_v45 = vadd.f32 %v12182_v56, %v12195_v44  ;;  %v12325_v4 = vadd.f32 %v12166_v54, %v12195_v44 }
 0x2e6   : > { %2574 = vst.msk [vmem:[#allocation2 + $0x28] sm:$0xff] %vm1178_vm4, %v2542_v31  ;;  %v2332_v53 = vrot.slane %v2259_v22, 7  ;;  %v12328_v0 = vmax.f32 %v10671_v13, 0.0  ;;  %v2258_v10 = vmax.f32 %v10675_v7, 0.0  ;;  %v9792_v51 = vpop.f32.mrb[72].mxu1  ;;  %v12332_v11 = vadd.f32 %v12186_v27, %v12195_v44 }
 0x2e7   : > { %2575 = vst.msk [vmem:[#allocation2 + $0x30] sm:$0xff] %vm1178_vm4, %v2543_v59  ;;  %v2460_v23 = vrot.slane %v2259_v22, 1  ;;  %v2328_v56 = vrot.slane %v2257_v50, 7  ;;  %v2456_v41 = vrot.slane %v2257_v50, 1  ;;  %v10679_v26 = vadd.f32 %v12230_v47, %v9792_v51  ;;  %v2138_v54 = vpop.f32.mrb[73].mxu1 }
 0x2e8   : > { %v2334_v3 = vrot.slane %v12328_v0, 7  ;;  %v2462_v2 = vrot.slane %v12328_v0, 1  ;;  %v2330_v21 = vrot.slane %v2258_v10, 7  ;;  %v2458_v58 = vrot.slane %v2258_v10, 1  ;;  %v9793_v40 = vpop.f32.mrb[74].mxu1 }
 0x2e9   : > { %v2329_v12 = vsel %vm660_vm2, %v2326_v28, %v2328_v56  ;;  %v2457_v27 = vsel %vm953_vm3, %v2454_v18, %v2456_v41  ;;  %v12340_v9 = vmax.f32 %v10679_v26, 0.0  ;;  %v10683_v19 = vadd.f32 %v12234_v48, %v2138_v54  ;;  %v2141_v36 = vpop.f32.mrb[75].mxu1 }
 0x2ea   : > { %v2417_v25 = vmax.f32 %v2329_v12, %v2257_v50  ;;  %v2544_v43 = vmax.f32 %v2416_v32, %v2457_v27  ;;  %v2335_v47 = vsel %vm660_vm2, %v2332_v53, %v2334_v3  ;;  %v2463_v24 = vsel %vm953_vm3, %v2460_v23, %v2462_v2  ;;  %v2603_v18 = vld [vmem:[#allocation2 + $0x10] ss:$2 sm:$0xff] }
 0x2eb   : > { %v2420_v30 = vmax.f32 %v2335_v47, %v12328_v0  ;;  %v2331_v46 = vsel %vm660_vm2, %v2328_v56, %v2330_v21  ;;  %v2333_v57 = vsel %vm660_vm2, %v2330_v21, %v2332_v53  ;;  %v2459_v28 = vsel %vm953_vm3, %v2456_v41, %v2458_v58 }
 0x2ec   : > { %2576 = vst.msk [vmem:[#allocation2 + $0x38] sm:$0xff] %vm1178_vm4, %v2544_v43  ;;  %v2418_v5 = vmax.f32 %v2331_v46, %v2258_v10  ;;  %v2419_v48 = vmax.f32 %v2333_v57, %v2259_v22  ;;  %v2461_v29 = vsel %vm953_vm3, %v2458_v58, %v2460_v23  ;;  %v2545_v32 = vmax.f32 %v2417_v25, %v2459_v28 }
 0x2ed   : > { %v2261_v52 = vmax.f32 %v10683_v19, 0.0  ;;  %v10687_v55 = vadd.f32 %v12239_v39, %v9793_v40  ;;  %v12354_v1 = vadd.f32 %v12188_v38, %v12195_v44  ;;  %v12358_v60 = vadd.f32 %v12184_v62, %v12195_v44 }
 0x2ee   : > { %v2546_v17 = vmax.f32 %v2418_v5, %v2461_v29  ;;  %v2547_v31 = vmax.f32 %v2419_v48, %v2463_v24  ;;  %2577 = vst.msk [vmem:[#allocation2 + $0x40] sm:$0xff] %vm1178_vm4, %v2545_v32  ;;  %v10691_v22 = vadd.f32 %v12243_v33, %v2141_v36  ;;  %v12362_v13 = vpack.c.bf16 %v2603_v18, %v2601_v35  ;;  %v9796_v7 = vpop.f32.mrb[76].mxu1 }
 0x2ef   : > { %v2336_v59 = vrot.slane %v2261_v52, 7  ;;  %v2464_v39 = vrot.slane %v2261_v52, 1  ;;  %v2264_v50 = vmax.f32 %v10687_v55, 0.0  ;;  %v10695_v53 = vadd.f32 %v12249_v61, %v9796_v7  ;;  %v2154_v38 = vpop.f32.mrb[77].mxu1  ;;  %v2605_v55 = vld [vmem:[#allocation2 + $0x20] ss:$2 sm:$0xff] }
 0x2f0   : > { %2578 = vst.msk [vmem:[#allocation2 + $0x48] sm:$0xff] %vm1178_vm4, %v2546_v17  ;;  %2579 = vst.msk [vmem:[#allocation2 + $0x50] sm:$0xff] %vm1178_vm4, %v2547_v31  ;;  %v2340_v62 = vrot.slane %v12340_v9, 7  ;;  %v2468_v0 = vrot.slane %v12340_v9, 1  ;;  %v2262_v10 = vmax.f32 %v10691_v22, 0.0  ;;  %9812 = vmatprep.mubr.msk.bf16.mxu0 %vm1178_vm4, %v12362_v13  ;;  %v10699_v33 = vadd.f32 %v12253_v16, %v2154_v38  ;;  %v9797_v51 = vpop.f32.mrb[78].mxu1 }
 0x2f1   : > { %v2337_v23 = vsel %vm660_vm2, %v2334_v3, %v2336_v59  ;;  %v2465_v61 = vsel %vm953_vm3, %v2462_v2, %v2464_v39  ;;  %v2342_v56 = vrot.slane %v2264_v50, 7  ;;  %v2470_v41 = vrot.slane %v2264_v50, 1  ;;  %v2157_v26 = vpop.f32.mrb[79].mxu1 }
 0x2f2   : > { %v2421_v54 = vmax.f32 %v2337_v23, %v2261_v52  ;;  %v2548_v21 = vmax.f32 %v2420_v30, %v2465_v61  ;;  %v2338_v58 = vrot.slane %v2262_v10, 7  ;;  %v2466_v40 = vrot.slane %v2262_v10, 1 }
 0x2f3   : > { %v2343_v12 = vsel %vm660_vm2, %v2340_v62, %v2342_v56  ;;  %v2471_v27 = vsel %vm953_vm3, %v2468_v0, %v2470_v41  ;;  %v12376_v19 = vmax.f32 %v10695_v53, 0.0  ;;  %v12378_v36 = vmax.f32 %v10699_v33, 0.0  ;;  %v2607_v46 = vld [vmem:[#allocation2 + $0x30] ss:$2 sm:$0xff] }
 0x2f4   : > { %2580 = vst.msk [vmem:[#allocation2 + $0x58] sm:$0xff] %vm1178_vm4, %v2548_v21  ;;  %v2424_v16 = vmax.f32 %v2343_v12, %v2264_v50  ;;  %v2339_v3 = vsel %vm660_vm2, %v2336_v59, %v2338_v58  ;;  %v2341_v2 = vsel %vm660_vm2, %v2338_v58, %v2340_v62  ;;  %v2467_v25 = vsel %vm953_vm3, %v2464_v39, %v2466_v40  ;;  %v12398_v39 = vld [vmem:[#allocation3 + $0x40] sm:$0xff]  }
 0x2f5   : > { %v2422_v43 = vmax.f32 %v2339_v3, %v2262_v10  ;;  %v2423_v47 = vmax.f32 %v2341_v2, %v12340_v9  ;;  %v2469_v24 = vsel %vm953_vm3, %v2466_v40, %v2468_v0  ;;  %v2549_v30 = vmax.f32 %v2421_v54, %v2467_v25 }
 0x2f6   : > { %v2348_v57 = vrot.slane %v12376_v19, 7  ;;  %v2476_v28 = vrot.slane %v12376_v19, 1  ;;  %v2344_v18 = vrot.slane %v12378_v36, 7  ;;  %v2472_v5 = vrot.slane %v12378_v36, 1  ;;  %v9800_v48 = vpop.f32.mrb[80].mxu1 }
 0x2f7   : > { %v2550_v29 = vmax.f32 %v2422_v43, %v2469_v24  ;;  %v2551_v32 = vmax.f32 %v2423_v47, %v2471_v27  ;;  %2581 = vst.msk [vmem:[#allocation2 + $0x60] sm:$0xff] %vm1178_vm4, %v2549_v30  ;;  %v10703_v52 = vadd.f32 %v12257_v20, %v9797_v51  ;;  %v10707_v9 = vadd.f32 %v12261_v63, %v2157_v26  ;;  %v2170_v35 = vpop.f32.mrb[81].mxu1 }
 0x2f8   : > { %v2345_v17 = vsel %vm660_vm2, %v2342_v56, %v2344_v18  ;;  %v2473_v31 = vsel %vm953_vm3, %v2470_v41, %v2472_v5  ;;  %v12395_v22 = vpack.c.bf16 %v2607_v46, %v2605_v55  ;;  %v10711_v7 = vadd.f32 %v12281_v6, %v9800_v48  ;;  %v9801_v59 = vpop.f32.mrb[82].mxu1 }
 0x2f9   : > { %2582 = vst.msk [vmem:[#allocation2 + $0x68] sm:$0xff] %vm1178_vm4, %v2550_v29  ;;  %2583 = vst.msk [vmem:[#allocation2 + $0x70] sm:$0xff] %vm1178_vm4, %v2551_v32  ;;  %v2425_v20 = vmax.f32 %v2345_v17, %v12378_v36  ;;  %v2552_v63 = vmax.f32 %v2424_v16, %v2473_v31  ;;  %v2268_v50 = vmax.f32 %v10703_v52, 0.0  ;;  %v2266_v53 = vmax.f32 %v10707_v9, 0.0  ;;  %v2173_v38 = vpop.f32.mrb[83].mxu1 }
 0x2fa   : > { %9813 = vmatmul.mubr.msk.bf16.vlgmr.msra.gmra.mrb[100].mxu0 %vm1178_vm4, %v12395_v22  ;;  %v12405_v62 = vmax.f32 %v10711_v7, 0.0  ;;  %v10715_v6 = vadd.f32 %v12269_v15, %v2170_v35  ;;  %v10719_v0 = vadd.f32 %v12292_v34, %v9801_v59  ;;  %v10723_v10 = vadd.f32 %v12285_v42, %v2173_v38 }
 0x2fb   : > { %2584 = vst.msk [vmem:[#allocation2 + $0x78] sm:$0xff] %vm1178_vm4, %v2552_v63  ;;  %v2350_v33 = vrot.slane %v2268_v50, 7  ;;  %v2478_v51 = vrot.slane %v2268_v50, 1  ;;  %v2346_v23 = vrot.slane %v2266_v53, 7  ;;  %v2474_v61 = vrot.slane %v2266_v53, 1  ;;  %9829 = vmatpush3.bf16.msra.mxu0 %v12192_v14 }
 0x2fc   : > { %v2356_v56 = vrot.slane %v12405_v62, 7  ;;  %v2484_v41 = vrot.slane %v12405_v62, 1  ;;  %v2269_v26 = vmax.f32 %v10715_v6, 0.0  ;;  %v12414_v54 = vmax.f32 %v10719_v0, 0.0  ;;  %9846 = vmatprep.subr.bf16.mxu0 %v12398_v39  ;;  %v2611_v27 = vld [vmem:[#allocation2 + $0x50] ss:$2 sm:$0xff] }
 0x2fd   : > { %v2351_v15 = vsel %vm660_vm2, %v2348_v57, %v2350_v33  ;;  %v2479_v42 = vsel %vm953_vm3, %v2476_v28, %v2478_v51  ;;  %v2347_v34 = vsel %vm660_vm2, %v2344_v18, %v2346_v23  ;;  %v2349_v21 = vsel %vm660_vm2, %v2346_v23, %v2348_v57  ;;  %v2609_v57 = vld [vmem:[#allocation2 + $0x40] ss:$2 sm:$0xff] }
 0x2fe   : > { %v2428_v58 = vmax.f32 %v2351_v15, %v2268_v50  ;;  %v2426_v40 = vmax.f32 %v2347_v34, %v2266_v53  ;;  %v2427_v14 = vmax.f32 %v2349_v21, %v12376_v19  ;;  %v2475_v12 = vsel %vm953_vm3, %v2472_v5, %v2474_v61  ;;  %v9804_v36 = vpop.f32.mrb[84].mxu1 }
 0x2ff   : > { %v2477_v16 = vsel %vm953_vm3, %v2474_v61, %v2476_v28  ;;  %v2553_v3 = vmax.f32 %v2425_v20, %v2475_v12  ;;  %v2352_v2 = vrot.slane %v2269_v26, 7  ;;  %v2480_v25 = vrot.slane %v2269_v26, 1  ;;  %v2186_v43 = vpop.f32.mrb[85].mxu1 }
 0x300   : > { %v2554_v47 = vmax.f32 %v2426_v40, %v2477_v16  ;;  %v2555_v24 = vmax.f32 %v2427_v14, %v2479_v42  ;;  %v2358_v30 = vrot.slane %v12414_v54, 7  ;;  %v2486_v46 = vrot.slane %v12414_v54, 1  ;;  %v9805_v18 = vpop.f32.mrb[86].mxu1  ;;  %v2613_v20 = vld [vmem:[#allocation2 + $0x60] ss:$2 sm:$0xff] }
 0x301   : > { %2585 = vst.msk [vmem:[#allocation2 + $0x80] sm:$0xff] %vm1178_vm4, %v2553_v3  ;;  %v2353_v19 = vsel %vm660_vm2, %v2350_v33, %v2352_v2  ;;  %v2481_v5 = vsel %vm953_vm3, %v2478_v51, %v2480_v25  ;;  %v2270_v48 = vmax.f32 %v10723_v10, 0.0  ;;  %v12429_v28 = vpack.c.bf16 %v2611_v27, %v2609_v57  ;;  %v2189_v29 = vpop.f32.mrb[87].mxu1 }
 0x302   : > { %2586 = vst.msk [vmem:[#allocation2 + $0x88] sm:$0xff] %vm1178_vm4, %v2554_v47  ;;  %2587 = vst.msk [vmem:[#allocation2 + $0x90] sm:$0xff] %vm1178_vm4, %v2555_v24  ;;  %v2429_v32 = vmax.f32 %v2353_v19, %v2269_v26  ;;  %v2556_v52 = vmax.f32 %v2428_v58, %v2481_v5  ;;  %v2359_v9 = vsel %vm660_vm2, %v2356_v56, %v2358_v30  ;;  %v2615_v35 = vld [vmem:[#allocation2 + $0x70] ss:$2 sm:$0xff] }
 0x303   : > { %v2487_v55 = vsel %vm953_vm3, %v2484_v41, %v2486_v46  ;;  %v2432_v17 = vmax.f32 %v2359_v9, %v12414_v54  ;;  %v2354_v31 = vrot.slane %v2270_v48, 7  ;;  %v2482_v7 = vrot.slane %v2270_v48, 1  ;;  %9816 = vmatprep.mubr.msk.bf16.mxu0 %vm1178_vm4, %v12429_v28 }
 0x304   : > { %v10727_v59 = vadd.f32 %v12316_v49, %v9804_v36  ;;  %2588 = vst.msk [vmem:[#allocation2 + $0x98] sm:$0xff] %vm1178_vm4, %v2556_v52  ;;  %v10731_v63 = vadd.f32 %v12299_v37, %v2186_v43  ;;  %v10735_v50 = vadd.f32 %v12321_v45, %v9805_v18  ;;  %v10739_v53 = vadd.f32 %v12325_v4, %v2189_v29 }
 0x305   : > { %v12443_v38 = vpack.c.bf16 %v2615_v35, %v2613_v20  ;;  %v2355_v6 = vsel %vm660_vm2, %v2352_v2, %v2354_v31  ;;  %v2357_v0 = vsel %vm660_vm2, %v2354_v31, %v2356_v56  ;;  %v2483_v10 = vsel %vm953_vm3, %v2480_v25, %v2482_v7 }
 0x306   : > { %v2485_v33 = vsel %vm953_vm3, %v2482_v7, %v2484_v41  ;;  %v2430_v49 = vmax.f32 %v2355_v6, %v2270_v48  ;;  %v2431_v51 = vmax.f32 %v2357_v0, %v12405_v62  ;;  %v2557_v23 = vmax.f32 %v2429_v32, %v2483_v10  ;;  %v9808_v37 = vpop.f32.mrb[88].mxu1 }
 0x307   : > { %v2275_v61 = vmax.f32 %v10727_v59, 0.0  ;;  %9817 = vmatmul.mubr.msk.bf16.gmra.mrb[104].mxu0 %vm1178_vm4, %v12443_v38  ;;  %v2273_v45 = vmax.f32 %v10731_v63, 0.0  ;;  %v2276_v4 = vmax.f32 %v10735_v50, 0.0  ;;  %v2274_v26 = vmax.f32 %v10739_v53, 0.0  ;;  %v2202_v15 = vpop.f32.mrb[89].mxu1 }
 0x308   : > { %v10743_v54 = vadd.f32 %v12354_v1, %v9808_v37  ;;  %v2558_v56 = vmax.f32 %v2430_v49, %v2485_v33  ;;  %v2559_v42 = vmax.f32 %v2431_v51, %v2487_v55  ;;  %2589 = vst.msk [vmem:[#allocation2 + $0xa0] sm:$0xff] %vm1178_vm4, %v2557_v23  ;;  %v9809_v21 = vpop.f32.mrb[90].mxu1  ;;  %v10747_v1 = vadd.f32 %v12332_v11, %v2202_v15 }
 0x309   : > { %v2364_v41 = vrot.slane %v2275_v61, 7  ;;  %v2492_v34 = vrot.slane %v2275_v61, 1  ;;  %v2360_v62 = vrot.slane %v2273_v45, 7  ;;  %v2488_v58 = vrot.slane %v2273_v45, 1  ;;  %v2205_v12 = vpop.f32.mrb[91].mxu1 }
 0x30a   : > { %v2366_v40 = vrot.slane %v2276_v4, 7  ;;  %v2494_v14 = vrot.slane %v2276_v4, 1  ;;  %2590 = vst.msk [vmem:[#allocation2 + $0xa8] sm:$0xff] %vm1178_vm4, %v2558_v56  ;;  %2591 = vst.msk [vmem:[#allocation2 + $0xb0] sm:$0xff] %vm1178_vm4, %v2559_v42  ;;  %v2362_v27 = vrot.slane %v2274_v26, 7  ;;  %v2490_v36 = vrot.slane %v2274_v26, 1 }
 0x30b   : > { %v10754_v16 = vadd.f32 %v12190_v8, %v12195_v44  ;;  %v2361_v3 = vsel %vm660_vm2, %v2358_v30, %v2360_v62  ;;  %v2489_v2 = vsel %vm953_vm3, %v2486_v46, %v2488_v58  ;;  %v2619_v44 = vld [vmem:[#allocation2 + $0x90] ss:$2 sm:$0xff]  ;;  %v2279_v48 = vmax.f32 %v10743_v54, 0.0  ;;  %v2617_v55 = vld [vmem:[#allocation2 + $0x80] ss:$2 sm:$0xff] }
 0x30c   : > { %v2367_v25 = vsel %vm660_vm2, %v2364_v41, %v2366_v40  ;;  %v2495_v43 = vsel %vm953_vm3, %v2492_v34, %v2494_v14  ;;  %v2433_v47 = vmax.f32 %v2361_v3, %v2273_v45  ;;  %v2560_v24 = vmax.f32 %v2432_v17, %v2489_v2  ;;  %v10975_v2 = vld [vmem:[#allocation3 + $0x58] sm:$0xff]  }
 0x30d   : > { %v2436_v57 = vmax.f32 %v2367_v25, %v2276_v4  ;;  %v2363_v18 = vsel %vm660_vm2, %v2360_v62, %v2362_v27  ;;  %v2365_v19 = vsel %vm660_vm2, %v2362_v27, %v2364_v41  ;;  %v2491_v11 = vsel %vm953_vm3, %v2488_v58, %v2490_v36  ;;  %v10976_v25 = vld [vmem:[#allocation3 + $0x70] sm:$0xff]  }
 0x30e   : > { %v2434_v5 = vmax.f32 %v2363_v18, %v2274_v26  ;;  %v2493_v8 = vsel %vm953_vm3, %v2490_v36, %v2492_v34  ;;  %2592 = vst.msk [vmem:[#allocation2 + $0xb8] sm:$0xff] %vm1178_vm4, %v2560_v24  ;;  %v2435_v30 = vmax.f32 %v2365_v19, %v2275_v61  ;;  %v2561_v46 = vmax.f32 %v2433_v47, %v2491_v11  ;;  %v12535_v47 = vld [vmem:[#allocation3 + $0x60] sm:$0xff]  }
 0x30f   : > { %v2277_v32 = vmax.f32 %v10747_v1, 0.0  ;;  %v10751_v52 = vadd.f32 %v12358_v60, %v9809_v21  ;;  %v10755_v9 = vadd.f32 %v10754_v16, %v2205_v12  ;;  %v12470_v17 = vpack.c.bf16 %v2619_v44, %v2617_v55 }
 0x310   : > { %v2562_v29 = vmax.f32 %v2434_v5, %v2493_v8  ;;  %v2563_v35 = vmax.f32 %v2435_v30, %v2495_v43  ;;  %2593 = vst.msk [vmem:[#allocation2 + $0xc0] sm:$0xff] %vm1178_vm4, %v2561_v46  ;;  %v2372_v63 = vrot.slane %v2279_v48, 7  ;;  %v2500_v50 = vrot.slane %v2279_v48, 1  ;;  %v10977_v43 = vld [vmem:[#allocation3 + $0x78] sm:$0xff]  }
 0x311   : > { %v2368_v31 = vrot.slane %v2277_v32, 7  ;;  %v2496_v7 = vrot.slane %v2277_v32, 1  ;;  %v2280_v59 = vmax.f32 %v10751_v52, 0.0  ;;  %v2278_v20 = vmax.f32 %v10755_v9, 0.0  ;;  %9820 = vmatprep.mubr.msk.bf16.mxu0 %vm1178_vm4, %v12470_v17  ;;  %v2621_v21 = vld [vmem:[#allocation2 + $0xa0] ss:$2 sm:$0xff] }
 0x312   : > { %2594 = vst.msk [vmem:[#allocation2 + $0xc8] sm:$0xff] %vm1178_vm4, %v2562_v29  ;;  %2595 = vst.msk [vmem:[#allocation2 + $0xd0] sm:$0xff] %vm1178_vm4, %v2563_v35 }
 0x313   : > { %v2369_v60 = vsel %vm660_vm2, %v2366_v40, %v2368_v31  ;;  %v2497_v53 = vsel %vm953_vm3, %v2494_v14, %v2496_v7  ;;  %v2374_v6 = vrot.slane %v2280_v59, 7  ;;  %v2502_v0 = vrot.slane %v2280_v59, 1 }
 0x314   : > { %v2437_v10 = vmax.f32 %v2369_v60, %v2277_v32  ;;  %v2564_v33 = vmax.f32 %v2436_v57, %v2497_v53  ;;  %v2370_v49 = vrot.slane %v2278_v20, 7  ;;  %v2498_v51 = vrot.slane %v2278_v20, 1 }
 0x315   : > { %v2375_v23 = vsel %vm660_vm2, %v2372_v63, %v2374_v6  ;;  %v2503_v61 = vsel %vm953_vm3, %v2500_v50, %v2502_v0  ;;  %v2536_v37 = vsel %vm953_vm3, %v2502_v0, 0.0  ;;  %v2623_v45 = vld [vmem:[#allocation2 + $0xb0] ss:$2 sm:$0xff] }
 0x316   : > { %2596 = vst.msk [vmem:[#allocation2 + $0xd8] sm:$0xff] %vm1178_vm4, %v2564_v33  ;;  %v2440_v4 = vmax.f32 %v2375_v23, %v2280_v59  ;;  %v2371_v26 = vsel %vm660_vm2, %v2368_v31, %v2370_v49  ;;  %v2373_v54 = vsel %vm660_vm2, %v2370_v49, %v2372_v63  ;;  %v2499_v15 = vsel %vm953_vm3, %v2496_v7, %v2498_v51 }
 0x317   : > { %v2438_v56 = vmax.f32 %v2371_v26, %v2278_v20  ;;  %v2439_v42 = vmax.f32 %v2373_v54, %v2279_v48  ;;  %v2501_v41 = vsel %vm953_vm3, %v2498_v51, %v2500_v50  ;;  %v2565_v34 = vmax.f32 %v2437_v10, %v2499_v15 }
 0x318   : > { %v2568_v62 = vmax.f32 %v2440_v4, %v2536_v37  ;;  %v12486_v58 = vpack.c.bf16 %v2623_v45, %v2621_v21 }
 0x319   : > { %v2566_v40 = vmax.f32 %v2438_v56, %v2501_v41  ;;  %v2567_v14 = vmax.f32 %v2439_v42, %v2503_v61  ;;  %2597 = vst.msk [vmem:[#allocation2 + $0xe0] sm:$0xff] %vm1178_vm4, %v2565_v34  ;;  %v2625_v12 = vld [vmem:[#allocation2 + $0xc0] ss:$2 sm:$0xff] }
 0x31a   : > { %2600 = vst.msk [vmem:[#allocation2 + $0xf8] sm:$0xff] %vm1178_vm4, %v2568_v62  ;;  %9821 = vmatmul.mubr.msk.bf16.gmra.mrb[108].mxu0 %vm1178_vm4, %v12486_v58 }
 0x31b   : > { %2598 = vst.msk [vmem:[#allocation2 + $0xe8] sm:$0xff] %vm1178_vm4, %v2566_v40  ;;  %2599 = vst.msk [vmem:[#allocation2 + $0xf0] sm:$0xff] %vm1178_vm4, %v2567_v14 }
 0x31d   : > { %v2627_v27 = vld [vmem:[#allocation2 + $0xd0] ss:$2 sm:$0xff] }
 0x31e   : > { %v12494_v36 = vpack.c.bf16 %v2627_v27, %v2625_v12 }
 0x320   : > { %9824 = vmatprep.mubr.msk.bf16.mxu0 %vm1178_vm4, %v12494_v36 }
 0x322   : > { %v2629_v1 = vld [vmem:[#allocation2 + $0xe0] ss:$2 sm:$0xff]  ;;  %v2631_v16 = vld [vmem:[#allocation2 + $0xf0] ss:$2 sm:$0xff] }
 0x323   : > { %v12498_v3 = vpack.c.bf16 %v2631_v16, %v2629_v1 }
 0x325   : > { %9825 = vmatmul.mubr.msk.bf16.gmra.mrb[112].mxu0 %vm1178_vm4, %v12498_v3 }
 0x326   : > { %9830 = vmatprep.mubr.msk.bf16.mxu0 %vm1178_vm4, %v12362_v13 }
 0x32d   : > { %9831 = vmatmul.mubr.msk.bf16.vlgmr.msra.gmra.mrb[116].mxu0 %vm1178_vm4, %v12395_v22 }
 0x32e   : > { %9834 = vmatprep.mubr.msk.bf16.mxu0 %vm1178_vm4, %v12429_v28  ;;  %9847 = vmatpush3.bf16.msra.mxu0 %v12398_v39  ;;  %v10974_v39 = vld [vmem:[#allocation3 + $0x50] sm:$0xff]  }
 0x32f   : > { %9864 = vmatprep.subr.bf16.mxu1 %v10974_v39  ;;  %9884 = vmatprep.subr.bf16.mxu0 %v10976_v25 }
 0x330   : > { %9865 = vmatpush3.bf16.msra.mxu1 %v10974_v39 }
 0x331   : > { %9866 = vmatprep.subr.bf16.mxu1 %v10975_v2 }
 0x334   : > { %9867 = vmatpush3.bf16.msra.mxu1 %v10975_v2 }
 0x335   : > { %9835 = vmatmul.mubr.msk.bf16.gmra.mrb[120].mxu0 %vm1178_vm4, %v12443_v38  ;;  %9904 = vmatprep.subr.bf16.mxu1 %v12535_v47 }
 0x336   : > { %9838 = vmatprep.mubr.msk.bf16.mxu0 %vm1178_vm4, %v12470_v17 }
 0x33d   : > { %9839 = vmatmul.mubr.msk.bf16.gmra.mrb[124].mxu0 %vm1178_vm4, %v12486_v58 }
 0x33e   : > { %9842 = vmatprep.mubr.msk.bf16.mxu0 %vm1178_vm4, %v12494_v36 }
 0x345   : > { %9843 = vmatmul.mubr.msk.bf16.gmra.mrb[128].mxu0 %vm1178_vm4, %v12498_v3 }
 0x346   : > { %9848 = vmatprep.mubr.msk.bf16.mxu0 %vm1178_vm4, %v12362_v13 }
 0x34d   : > { %9849 = vmatmul.mubr.msk.bf16.vlgmr.msra.gmra.mrb[132].mxu0 %vm1178_vm4, %v12395_v22 }
 0x34e   : > { %9852 = vmatprep.mubr.msk.bf16.mxu0 %vm1178_vm4, %v12429_v28  ;;  %9885 = vmatpush3.bf16.msra.mxu0 %v10976_v25 }
 0x34f   : > { %9886 = vmatprep.subr.bf16.mxu0 %v10977_v43 }
 0x352   : > { %9887 = vmatpush3.bf16.msra.mxu0 %v10977_v43 }
 0x355   : > { %9853 = vmatmul.mubr.msk.bf16.gmra.mrb[136].mxu0 %vm1178_vm4, %v12443_v38 }
 0x356   : > { %9856 = vmatprep.mubr.msk.bf16.mxu0 %vm1178_vm4, %v12470_v17 }
 0x35d   : > { %9857 = vmatmul.mubr.msk.bf16.gmra.mrb[140].mxu0 %vm1178_vm4, %v12486_v58 }
 0x35e   : > { %9860 = vmatprep.mubr.msk.bf16.mxu0 %vm1178_vm4, %v12494_v36 }
 0x365   : > { %9861 = vmatmul.mubr.msk.bf16.gmra.mrb[144].mxu0 %vm1178_vm4, %v12498_v3 }
 0x3cd   : > { %v9814_v24 = vpop.f32.mrb[100].mxu0 }
 0x3ce   : > { %v12538_v57 = vpop.f32.mrb[101].mxu0  ;;  %v2896_v19 = vrot.slane %v9814_v24, 7 }
 0x3cf   : > { %v9815_v18 = vpop.f32.mrb[102].mxu0  ;;  %v2893_v8 = vrot.slane %v12538_v57, 7 }
 0x3d0   : > { %v2898_v5 = vrot.slane %v9815_v18, 7  ;;  %v2713_v11 = vpop.f32.mrb[103].mxu0 }
 0x3d1   : > { %v2894_v44 = vrot.slane %v2713_v11, 7 }
 0x3d2   : > { %v12542_v30 = vsel %vm660_vm2, %v2896_v19, %v2898_v5 }
 0x3d3   : > { %v12545_v46 = vsel %vm660_vm2, %v2894_v44, %v2896_v19  ;;  %v12550_v48 = vsel %vm660_vm2, %v2893_v8, %v2894_v44 }
 0x3da   : > { %v9818_v29 = vpop.f32.mrb[104].mxu0 }
 0x3db   : > { %v2726_v32 = vpop.f32.mrb[105].mxu0  ;;  %v2904_v55 = vrot.slane %v9818_v29, 7 }
 0x3dc   : > { %v2900_v52 = vrot.slane %v2726_v32, 7  ;;  %v9819_v9 = vpop.f32.mrb[106].mxu0 }
 0x3dd   : > { %v2906_v35 = vrot.slane %v9819_v9, 7  ;;  %v2729_v31 = vpop.f32.mrb[107].mxu0 }
 0x3de   : > { %v2902_v7 = vrot.slane %v2729_v31, 7  ;;  %v12553_v59 = vsel %vm660_vm2, %v2898_v5, %v2900_v52 }
 0x3df   : > { %v12556_v20 = vsel %vm660_vm2, %v2904_v55, %v2906_v35 }
 0x3e0   : > { %v12559_v63 = vsel %vm660_vm2, %v2902_v7, %v2904_v55  ;;  %v12562_v50 = vsel %vm660_vm2, %v2900_v52, %v2902_v7 }
 0x3ed   : > { %v9822_v60 = vpop.f32.mrb[108].mxu0 }
 0x3ee   : > { %v2742_v53 = vpop.f32.mrb[109].mxu0  ;;  %v2912_v10 = vrot.slane %v9822_v60, 7 }
 0x3ef   : > { %v2908_v6 = vrot.slane %v2742_v53, 7  ;;  %v9823_v0 = vpop.f32.mrb[110].mxu0 }
 0x3f0   : > { %v2914_v33 = vrot.slane %v9823_v0, 7  ;;  %v2745_v49 = vpop.f32.mrb[111].mxu0 }
 0x3f1   : > { %v2910_v51 = vrot.slane %v2745_v49, 7  ;;  %v12565_v23 = vsel %vm660_vm2, %v2906_v35, %v2908_v6 }
 0x3f2   : > { %v12568_v61 = vsel %vm660_vm2, %v2912_v10, %v2914_v33 }
 0x3f3   : > { %v12571_v37 = vsel %vm660_vm2, %v2910_v51, %v2912_v10  ;;  %v12574_v45 = vsel %vm660_vm2, %v2908_v6, %v2910_v51 }
 0x3f8   : > { %v9826_v4 = vpop.f32.mrb[112].mxu0 }
 0x3f9   : > { %v2758_v26 = vpop.f32.mrb[113].mxu0  ;;  %v2920_v56 = vrot.slane %v9826_v4, 7 }
 0x3fa   : > { %v2916_v54 = vrot.slane %v2758_v26, 7  ;;  %v9827_v15 = vpop.f32.mrb[114].mxu0 }
 0x3fb   : > { %v2922_v42 = vrot.slane %v9827_v15, 7  ;;  %v2761_v41 = vpop.f32.mrb[115].mxu0 }
 0x3fc   : > { %v2918_v34 = vrot.slane %v2761_v41, 7  ;;  %v12577_v21 = vsel %vm660_vm2, %v2914_v33, %v2916_v54 }
 0x3fd   : > { %v12580_v62 = vsel %vm660_vm2, %v2920_v56, %v2922_v42 }
 0x3fe   : > { %v12583_v40 = vsel %vm660_vm2, %v2918_v34, %v2920_v56  ;;  %v12586_v14 = vsel %vm660_vm2, %v2916_v54, %v2918_v34 }
 0x400   : > { %v9832_v12 = vpop.f32.mrb[116].mxu0 }
 0x401   : > { %v2813_v27 = vpop.f32.mrb[117].mxu0  ;;  %v3063_v16 = vrot.slane %v9832_v12, 1 }
 0x402   : > { %v9833_v1 = vpop.f32.mrb[118].mxu0  ;;  %v3060_v25 = vrot.slane %v2813_v27, 1 }
 0x403   : > { %v3065_v39 = vrot.slane %v9833_v1, 1  ;;  %v2816_v2 = vpop.f32.mrb[119].mxu0 }
 0x404   : > { %v3061_v43 = vrot.slane %v2816_v2, 1 }
 0x405   : > { %v3066_v24 = vsel %vm953_vm3, %v3063_v16, %v3065_v39 }
 0x406   : > { %v3062_v18 = vsel %vm953_vm3, %v3060_v25, %v3061_v43  ;;  %v3064_v19 = vsel %vm953_vm3, %v3061_v43, %v3063_v16 }
 0x408   : > { %v9836_v5 = vpop.f32.mrb[120].mxu0 }
 0x409   : > { %v2829_v11 = vpop.f32.mrb[121].mxu0  ;;  %v3071_v32 = vrot.slane %v9836_v5, 1 }
 0x40a   : > { %v3067_v44 = vrot.slane %v2829_v11, 1  ;;  %v9837_v29 = vpop.f32.mrb[122].mxu0 }
 0x40b   : > { %v3073_v52 = vrot.slane %v9837_v29, 1  ;;  %v2832_v9 = vpop.f32.mrb[123].mxu0  ;;  %v2940_v29 = vsel %vm660_vm2, 0.0, %v2893_v8 }
 0x40c   : > { %v3069_v55 = vrot.slane %v2832_v9, 1  ;;  %v3068_v35 = vsel %vm953_vm3, %v3065_v39, %v3067_v44 }
 0x40d   : > { %v3074_v31 = vsel %vm953_vm3, %v3071_v32, %v3073_v52 }
 0x40e   : > { %v3070_v7 = vsel %vm953_vm3, %v3067_v44, %v3069_v55  ;;  %v12595_v60 = vsel %vm953_vm3, %v3069_v55, %v3071_v32 }
 0x410   : > { %v9840_v53 = vpop.f32.mrb[124].mxu0 }
 0x411   : > { %v2845_v6 = vpop.f32.mrb[125].mxu0  ;;  %v3079_v33 = vrot.slane %v9840_v53, 1 }
 0x412   : > { %v3075_v0 = vrot.slane %v2845_v6, 1  ;;  %v9841_v10 = vpop.f32.mrb[126].mxu0 }
 0x413   : > { %v3081_v49 = vrot.slane %v9841_v10, 1  ;;  %v2848_v51 = vpop.f32.mrb[127].mxu0 }
 0x414   : > { %v3077_v4 = vrot.slane %v2848_v51, 1  ;;  %v3076_v26 = vsel %vm953_vm3, %v3073_v52, %v3075_v0  ;;  %v12628_v52 = vld [vmem:[#allocation5 + $0x18] ss:$0 sm:$0xff] }
 0x415   : > { %v12599_v54 = vsel %vm953_vm3, %v3079_v33, %v3081_v49 }
 0x416   : > { %v12602_v15 = vsel %vm953_vm3, %v3075_v0, %v3077_v4  ;;  %v12605_v56 = vsel %vm953_vm3, %v3077_v4, %v3079_v33 }
 0x418   : > { %v9844_v42 = vpop.f32.mrb[128].mxu0 }
 0x419   : > { %v2861_v41 = vpop.f32.mrb[129].mxu0  ;;  %v3087_v27 = vrot.slane %v9844_v42, 1 }
 0x41a   : > { %v3083_v34 = vrot.slane %v2861_v41, 1  ;;  %v12607_v12 = vpop.f32.mrb[130].mxu0 }
 0x41b   : > { %v3089_v1 = vrot.slane %v12607_v12, 1  ;;  %v2864_v16 = vpop.f32.mrb[131].mxu0 }
 0x41c   : > { %v3085_v39 = vrot.slane %v2864_v16, 1  ;;  %v12611_v2 = vsel %vm953_vm3, %v3081_v49, %v3083_v34 }
 0x41d   : > { %v12616_v25 = vsel %vm953_vm3, %v3087_v27, %v3089_v1 }
 0x41e   : > { %v12619_v43 = vsel %vm953_vm3, %v3083_v34, %v3085_v39  ;;  %v12622_v5 = vsel %vm953_vm3, %v3085_v39, %v3087_v27 }
 0x420   : > { %v9850_v11 = vpop.f32.mrb[132].mxu0 }
 0x421   : > { %v2990_v44 = vadd.f32 %v9850_v11, %v12545_v46  ;;  %v2981_v32 = vpop.f32.mrb[133].mxu0 }
 0x422   : > { %v2982_v9 = vadd.f32 %v2981_v32, %v2940_v29  ;;  %v9851_v55 = vpop.f32.mrb[134].mxu0 }
 0x423   : > { %v3110_v53 = vadd.f32 %v3066_v24, %v2990_v44  ;;  %v2993_v6 = vadd.f32 %v9851_v55, %v12542_v30  ;;  %v2984_v0 = vpop.f32.mrb[135].mxu0  ;;  %v10979_v55 = vld [vmem:[#allocation3 + $0x68] sm:$0xff]  }
 0x424   : > { %v3108_v10 = vadd.f32 %v3062_v18, %v2982_v9  ;;  %v2985_v33 = vadd.f32 %v2984_v0, %v12550_v48  ;;  %v12659_v0 = vld [vmem:[#allocation3 + $0x80] sm:$0xff]  }
 0x425   : > { %v3130_v49 = vadd.f32 %v12628_v52, %v3110_v53  ;;  %v3111_v51 = vadd.f32 %v3068_v35, %v2993_v6 }
 0x426   : > { %v3128_v46 = vadd.f32 %v12628_v52, %v3108_v10  ;;  %v3109_v57 = vadd.f32 %v3064_v19, %v2985_v33 }
 0x427   : > { %v3131_v8 = vadd.f32 %v12628_v52, %v3111_v51  ;;  %v3146_v41 = vmax.f32 %v3130_v49, 0.0 }
 0x428   : > { %v3129_v4 = vadd.f32 %v12628_v52, %v3109_v57  ;;  %v9854_v42 = vpop.f32.mrb[136].mxu0  ;;  %v3144_v27 = vmax.f32 %v3128_v46, 0.0 }
 0x429   : > { %v3147_v34 = vmax.f32 %v3131_v8, 0.0  ;;  %v3006_v24 = vadd.f32 %v9854_v42, %v12559_v63  ;;  %v2997_v30 = vpop.f32.mrb[137].mxu0 }
 0x42a   : > { %v3145_v18 = vmax.f32 %v3129_v4, 0.0  ;;  %v2998_v48 = vadd.f32 %v2997_v30, %v12553_v59  ;;  %v9855_v16 = vpop.f32.mrb[138].mxu0 }
 0x42b   : > { %v12638_v39 = vpack.c.bf16 %v3147_v34, %v3146_v41  ;;  %v3114_v35 = vadd.f32 %v3074_v31, %v3006_v24  ;;  %v3009_v19 = vadd.f32 %v9855_v16, %v12556_v20  ;;  %v3000_v11 = vpop.f32.mrb[139].mxu0 }
 0x42c   : > { %v12641_v44 = vpack.c.bf16 %v3145_v18, %v3144_v27  ;;  %v3112_v29 = vadd.f32 %v3070_v7, %v2998_v48  ;;  %v3001_v32 = vadd.f32 %v3000_v11, %v12562_v50 }
 0x42d   : > { %v3134_v63 = vadd.f32 %v12628_v52, %v3114_v35  ;;  %v3115_v9 = vadd.f32 %v3076_v26, %v3009_v19 }
 0x42e   : > { %v3132_v53 = vadd.f32 %v12628_v52, %v3112_v29  ;;  %v3113_v59 = vadd.f32 %v12595_v60, %v3001_v32  ;;  %9868 = vmatprep.mubr.msk.bf16.mxu1 %vm3192_vm5, %v12641_v44  ;;  %9888 = vmatprep.mubr.msk.bf16.mxu0 %vm3192_vm5, %v12641_v44  ;;  %v3107_v32 = vsel %vm953_vm3, %v3089_v1, 0.0 }
 0x42f   : > { %v3135_v20 = vadd.f32 %v12628_v52, %v3115_v9  ;;  %9869 = vmatmul.mubr.msk.bf16.vlgmr.msra.gmra.mrb[92].mxu1 %vm3192_vm5, %v12638_v39  ;;  %9889 = vmatmul.mubr.msk.bf16.vlgmr.msra.gmra.mrb[148].mxu0 %vm3192_vm5, %v12638_v39  ;;  %v3150_v7 = vmax.f32 %v3134_v63, 0.0 }
 0x430   : > { %v3133_v50 = vadd.f32 %v12628_v52, %v3113_v59  ;;  %v9858_v31 = vpop.f32.mrb[140].mxu0  ;;  %9905 = vmatpush3.bf16.msra.mxu1 %v12535_v47  ;;  %v3148_v10 = vmax.f32 %v3132_v53, 0.0 }
 0x431   : > { %v3151_v60 = vmax.f32 %v3135_v20, 0.0  ;;  %v3022_v26 = vadd.f32 %v9858_v31, %v12571_v37  ;;  %v3013_v6 = vpop.f32.mrb[141].mxu0  ;;  %9906 = vmatprep.subr.bf16.mxu1 %v10979_v55 }
 0x432   : > { %v3149_v33 = vmax.f32 %v3133_v50, 0.0  ;;  %v3014_v49 = vadd.f32 %v3013_v6, %v12565_v23  ;;  %v9859_v51 = vpop.f32.mrb[142].mxu0 }
 0x433   : > { %v3163_v46 = vpack.c.bf16 %v3151_v60, %v3150_v7  ;;  %v3118_v57 = vadd.f32 %v12599_v54, %v3022_v26  ;;  %v3025_v8 = vadd.f32 %v9859_v51, %v12568_v61  ;;  %v3016_v4 = vpop.f32.mrb[143].mxu0 }
 0x434   : > { %v3162_v47 = vpack.c.bf16 %v3149_v33, %v3148_v10  ;;  %v3116_v42 = vadd.f32 %v12602_v15, %v3014_v49  ;;  %v3017_v37 = vadd.f32 %v3016_v4, %v12574_v45  ;;  %9907 = vmatpush3.bf16.msra.mxu1 %v10979_v55 }
 0x435   : > { %v3138_v41 = vadd.f32 %v12628_v52, %v3118_v57  ;;  %v3119_v34 = vadd.f32 %v12611_v2, %v3025_v8  ;;  %9924 = vmatprep.subr.bf16.mxu1 %v12659_v0 }
 0x436   : > { %v3136_v23 = vadd.f32 %v12628_v52, %v3116_v42  ;;  %v3117_v24 = vadd.f32 %v12605_v56, %v3017_v37  ;;  %9872 = vmatprep.mubr.msk.bf16.mxu1 %vm3192_vm5, %v3162_v47  ;;  %9892 = vmatprep.mubr.msk.bf16.mxu0 %vm3192_vm5, %v3162_v47 }
 0x437   : > { %v3139_v61 = vadd.f32 %v12628_v52, %v3119_v34  ;;  %9873 = vmatmul.mubr.msk.bf16.gmra.mrb[96].mxu1 %vm3192_vm5, %v3163_v46  ;;  %9893 = vmatmul.mubr.msk.bf16.gmra.mrb[152].mxu0 %vm3192_vm5, %v3163_v46  ;;  %v3154_v15 = vmax.f32 %v3138_v41, 0.0 }
 0x438   : > { %v3137_v45 = vadd.f32 %v12628_v52, %v3117_v24  ;;  %v9862_v54 = vpop.f32.mrb[144].mxu0  ;;  %v3152_v18 = vmax.f32 %v3136_v23, 0.0 }
 0x439   : > { %v3155_v2 = vmax.f32 %v3139_v61, 0.0  ;;  %v3038_v30 = vadd.f32 %v9862_v54, %v12583_v40  ;;  %v3029_v27 = vpop.f32.mrb[145].mxu0 }
 0x43a   : > { %v3153_v56 = vmax.f32 %v3137_v45, 0.0  ;;  %v3030_v48 = vadd.f32 %v3029_v27, %v12577_v21  ;;  %v9863_v16 = vpop.f32.mrb[146].mxu0 }
 0x43b   : > { %v3165_v35 = vpack.c.bf16 %v3155_v2, %v3154_v15  ;;  %v3122_v19 = vadd.f32 %v12616_v25, %v3038_v30  ;;  %v3041_v11 = vadd.f32 %v9863_v16, %v12580_v62  ;;  %v3032_v29 = vpop.f32.mrb[147].mxu0 }
 0x43c   : > { %v3164_v63 = vpack.c.bf16 %v3153_v56, %v3152_v18  ;;  %v3120_v9 = vadd.f32 %v12619_v43, %v3030_v48  ;;  %v3033_v40 = vadd.f32 %v3032_v29, %v12586_v14 }
 0x43d   : > { %v3142_v55 = vadd.f32 %v12628_v52, %v3122_v19  ;;  %v3123_v53 = vadd.f32 %v3107_v32, %v3041_v11 }
 0x43e   : > { %v3140_v21 = vadd.f32 %v12628_v52, %v3120_v9  ;;  %v3121_v59 = vadd.f32 %v12622_v5, %v3033_v40  ;;  %9876 = vmatprep.mubr.msk.bf16.mxu1 %vm3192_vm5, %v3164_v63  ;;  %9896 = vmatprep.mubr.msk.bf16.mxu0 %vm3192_vm5, %v3164_v63 }
 0x43f   : > { %v3143_v62 = vadd.f32 %v12628_v52, %v3123_v53  ;;  %9877 = vmatmul.mubr.msk.bf16.gmra.mrb[100].mxu1 %vm3192_vm5, %v3165_v35  ;;  %9897 = vmatmul.mubr.msk.bf16.gmra.mrb[156].mxu0 %vm3192_vm5, %v3165_v35  ;;  %v3158_v14 = vmax.f32 %v3142_v55, 0.0 }
 0x440   : > { %v3141_v12 = vadd.f32 %v12628_v52, %v3121_v59  ;;  %v3156_v25 = vmax.f32 %v3140_v21, 0.0  ;;  %v12729_v52 = vld [vmem:[#allocation5 + $0x20] ss:$0 sm:$0xff] }
 0x441   : > { %v3159_v1 = vmax.f32 %v3143_v62, 0.0 }
 0x442   : > { %v3157_v43 = vmax.f32 %v3141_v12, 0.0 }
 0x443   : > { %v3167_v20 = vpack.c.bf16 %v3159_v1, %v3158_v14 }
 0x444   : > { %v3166_v50 = vpack.c.bf16 %v3157_v43, %v3156_v25 }
 0x446   : > { %9880 = vmatprep.mubr.msk.bf16.mxu1 %vm3192_vm5, %v3166_v50  ;;  %9900 = vmatprep.mubr.msk.bf16.mxu0 %vm3192_vm5, %v3166_v50 }
 0x447   : > { %9881 = vmatmul.mubr.msk.bf16.gmra.mrb[104].mxu1 %vm3192_vm5, %v3167_v20  ;;  %9901 = vmatmul.mubr.msk.bf16.gmra.mrb[160].mxu0 %vm3192_vm5, %v3167_v20 }
 0x448   : > { %9908 = vmatprep.mubr.msk.bf16.mxu1 %vm3192_vm5, %v12641_v44 }
 0x44f   : > { %9909 = vmatmul.mubr.msk.bf16.vlgmr.msra.gmra.mrb[108].mxu1 %vm3192_vm5, %v12638_v39 }
 0x450   : > { %9912 = vmatprep.mubr.msk.bf16.mxu1 %vm3192_vm5, %v3162_v47  ;;  %9925 = vmatpush3.bf16.msra.mxu1 %v12659_v0 }
 0x457   : > { %9913 = vmatmul.mubr.msk.bf16.gmra.mrb[112].mxu1 %vm3192_vm5, %v3163_v46 }
 0x458   : > { %9916 = vmatprep.mubr.msk.bf16.mxu1 %vm3192_vm5, %v3164_v63 }
 0x45f   : > { %9917 = vmatmul.mubr.msk.bf16.gmra.mrb[116].mxu1 %vm3192_vm5, %v3165_v35 }
 0x460   : > { %9920 = vmatprep.mubr.msk.bf16.mxu1 %vm3192_vm5, %v3166_v50 }
 0x467   : > { %9921 = vmatmul.mubr.msk.bf16.gmra.mrb[120].mxu1 %vm3192_vm5, %v3167_v20 }
 0x468   : > { %9926 = vmatprep.mubr.msk.bf16.mxu1 %vm1178_vm4, %v12362_v13  ;;  %v10981_v13 = vld [vmem:[#allocation3 + $0x88] sm:$0xff]  }
 0x469   : > { %9942 = vmatprep.subr.bf16.mxu0 %v10981_v13 }
 0x46a   : > { %9943 = vmatpush3.bf16.msra.mxu0 %v10981_v13 }
 0x46f   : > { %9927 = vmatmul.mubr.msk.bf16.vlgmr.msra.gmra.mrb[108].mxu1 %vm1178_vm4, %v12395_v22  ;;  %v10982_v22 = vld [vmem:[#allocation3 + $0x90] sm:$0xff]  }
 0x470   : > { %9930 = vmatprep.mubr.msk.bf16.mxu1 %vm1178_vm4, %v12429_v28  ;;  %9944 = vmatprep.subr.bf16.mxu0 %v10982_v22  ;;  %v12726_v28 = vld [vmem:[#allocation3 + $0xa8] sm:$0xff]  }
 0x471   : > { %9945 = vmatpush3.bf16.msra.mxu0 %v10982_v22 }
 0x472   : > { %9954 = vmatprep.subr.bf16.mxu0 %v12726_v28 }
 0x477   : > { %9931 = vmatmul.mubr.msk.bf16.gmra.mrb[112].mxu1 %vm1178_vm4, %v12443_v38 }
 0x478   : > { %9934 = vmatprep.mubr.msk.bf16.mxu1 %vm1178_vm4, %v12470_v17 }
 0x47f   : > { %9935 = vmatmul.mubr.msk.bf16.gmra.mrb[116].mxu1 %vm1178_vm4, %v12486_v58 }
 0x480   : > { %9938 = vmatprep.mubr.msk.bf16.mxu1 %vm1178_vm4, %v12494_v36 }
 0x487   : > { %9939 = vmatmul.mubr.msk.bf16.gmra.mrb[120].mxu1 %vm1178_vm4, %v12498_v3 }
 0x502   : > { %v9870_v38 = vpop.f32.mrb[92].mxu1  ;;  %v9890_v17 = vpop.f32.mrb[148].mxu0 }
 0x503   : > { %v3251_v5 = vpop.f32.mrb[93].mxu1  ;;  %v3360_v58 = vpop.f32.mrb[149].mxu0  ;;  %v3443_v3 = vrot.slane %v9870_v38, 7  ;;  %v3616_v31 = vrot.slane %v9890_v17, 1 }
 0x504   : > { %v3440_v36 = vrot.slane %v3251_v5, 7  ;;  %v9871_v39 = vpop.f32.mrb[94].mxu1  ;;  %v9891_v44 = vpop.f32.mrb[150].mxu0  ;;  %v3613_v51 = vrot.slane %v3360_v58, 1 }
 0x505   : > { %v3445_v7 = vrot.slane %v9871_v39, 7  ;;  %v3618_v60 = vrot.slane %v9891_v44, 1  ;;  %v3254_v26 = vpop.f32.mrb[95].mxu1  ;;  %v3363_v6 = vpop.f32.mrb[151].mxu0 }
 0x506   : > { %v3487_v0 = vsel %vm660_vm2, 0.0, %v3440_v36  ;;  %v3441_v10 = vrot.slane %v3254_v26, 7  ;;  %v3614_v33 = vrot.slane %v3363_v6, 1 }
 0x507   : > { %v10760_v49 = vadd.f32 %v12729_v52, %v3487_v0  ;;  %v3446_v46 = vsel %vm660_vm2, %v3443_v3, %v3445_v7  ;;  %v3619_v57 = vsel %vm953_vm3, %v3616_v31, %v3618_v60 }
 0x508   : > { %v3442_v8 = vsel %vm660_vm2, %v3440_v36, %v3441_v10  ;;  %v3444_v4 = vsel %vm660_vm2, %v3441_v10, %v3443_v3  ;;  %v3617_v47 = vsel %vm953_vm3, %v3614_v33, %v3616_v31  ;;  %v3615_v41 = vsel %vm953_vm3, %v3613_v51, %v3614_v33 }
 0x509   : > { %v10768_v42 = vadd.f32 %v12729_v52, %v3442_v8  ;;  %v10756_v37 = vadd.f32 %v12729_v52, %v3444_v4  ;;  %v12741_v24 = vadd.f32 %v10760_v49, %v3615_v41  ;;  %v10764_v2 = vadd.f32 %v12729_v52, %v3446_v46 }
 0x50a   : > { %v9874_v34 = vpop.f32.mrb[96].mxu1  ;;  %v9894_v23 = vpop.f32.mrb[152].mxu0 }
 0x50b   : > { %v3267_v61 = vpop.f32.mrb[97].mxu1  ;;  %v3376_v45 = vpop.f32.mrb[153].mxu0  ;;  %v12743_v54 = vadd.f32 %v10756_v37, %v3619_v57  ;;  %v12745_v15 = vadd.f32 %v10768_v42, %v3617_v47  ;;  %v3451_v48 = vrot.slane %v9874_v34, 7  ;;  %v3624_v16 = vrot.slane %v9894_v23, 1 }
 0x50c   : > { %v3447_v30 = vrot.slane %v3267_v61, 7  ;;  %v3620_v27 = vrot.slane %v3376_v45, 1  ;;  %v9875_v18 = vpop.f32.mrb[98].mxu1  ;;  %v9895_v56 = vpop.f32.mrb[154].mxu0 }
 0x50d   : > { %v3453_v35 = vrot.slane %v9875_v18, 7  ;;  %v3626_v19 = vrot.slane %v9895_v56, 1  ;;  %v3270_v11 = vpop.f32.mrb[99].mxu1  ;;  %v3379_v29 = vpop.f32.mrb[155].mxu0 }
 0x50e   : > { %v3448_v32 = vsel %vm660_vm2, %v3445_v7, %v3447_v30  ;;  %v3621_v63 = vsel %vm953_vm3, %v3618_v60, %v3620_v27  ;;  %v3449_v9 = vrot.slane %v3270_v11, 7  ;;  %v3622_v40 = vrot.slane %v3379_v29, 1 }
 0x50f   : > { %v10776_v55 = vadd.f32 %v12729_v52, %v3448_v32  ;;  %v3454_v53 = vsel %vm660_vm2, %v3451_v48, %v3453_v35  ;;  %v3627_v21 = vsel %vm953_vm3, %v3624_v16, %v3626_v19  ;;  %v12753_v59 = vadd.f32 %v10764_v2, %v3621_v63 }
 0x510   : > { %v3450_v62 = vsel %vm660_vm2, %v3447_v30, %v3449_v9  ;;  %v3452_v12 = vsel %vm660_vm2, %v3449_v9, %v3451_v48  ;;  %v3623_v14 = vsel %vm953_vm3, %v3620_v27, %v3622_v40  ;;  %v3625_v43 = vsel %vm953_vm3, %v3622_v40, %v3624_v16 }
 0x511   : > { %v10784_v1 = vadd.f32 %v12729_v52, %v3450_v62  ;;  %v10772_v25 = vadd.f32 %v12729_v52, %v3452_v12  ;;  %v12761_v13 = vadd.f32 %v10776_v55, %v3623_v14  ;;  %v10780_v58 = vadd.f32 %v12729_v52, %v3454_v53 }
 0x512   : > { %v9878_v20 = vpop.f32.mrb[100].mxu1  ;;  %v9898_v50 = vpop.f32.mrb[156].mxu0 }
 0x513   : > { %v3283_v22 = vpop.f32.mrb[101].mxu1  ;;  %v3392_v38 = vpop.f32.mrb[157].mxu0  ;;  %v12763_v17 = vadd.f32 %v10772_v25, %v3627_v21  ;;  %v12765_v5 = vadd.f32 %v10784_v1, %v3625_v43  ;;  %v3459_v31 = vrot.slane %v9878_v20, 7  ;;  %v3632_v7 = vrot.slane %v9898_v50, 1 }
 0x514   : > { %v3455_v36 = vrot.slane %v3283_v22, 7  ;;  %v3628_v39 = vrot.slane %v3392_v38, 1  ;;  %v9879_v44 = vpop.f32.mrb[102].mxu1  ;;  %v9899_v3 = vpop.f32.mrb[158].mxu0 }
 0x515   : > { %v3461_v60 = vrot.slane %v9879_v44, 7  ;;  %v3634_v26 = vrot.slane %v9899_v3, 1  ;;  %v3286_v6 = vpop.f32.mrb[103].mxu1  ;;  %v3395_v0 = vpop.f32.mrb[159].mxu0 }
 0x516   : > { %v3456_v10 = vsel %vm660_vm2, %v3453_v35, %v3455_v36  ;;  %v3629_v33 = vsel %vm953_vm3, %v3626_v19, %v3628_v39  ;;  %v3457_v49 = vrot.slane %v3286_v6, 7  ;;  %v3630_v51 = vrot.slane %v3395_v0, 1 }
 0x517   : > { %v10792_v46 = vadd.f32 %v12729_v52, %v3456_v10  ;;  %v3462_v57 = vsel %vm660_vm2, %v3459_v31, %v3461_v60  ;;  %v3635_v8 = vsel %vm953_vm3, %v3632_v7, %v3634_v26  ;;  %v12773_v4 = vadd.f32 %v10780_v58, %v3629_v33 }
 0x518   : > { %v3458_v47 = vsel %vm660_vm2, %v3455_v36, %v3457_v49  ;;  %v3460_v42 = vsel %vm660_vm2, %v3457_v49, %v3459_v31  ;;  %v3631_v37 = vsel %vm953_vm3, %v3628_v39, %v3630_v51  ;;  %v3633_v23 = vsel %vm953_vm3, %v3630_v51, %v3632_v7 }
 0x519   : > { %v10800_v41 = vadd.f32 %v12729_v52, %v3458_v47  ;;  %v10788_v34 = vadd.f32 %v12729_v52, %v3460_v42  ;;  %v12781_v2 = vadd.f32 %v10792_v46, %v3631_v37  ;;  %v10796_v48 = vadd.f32 %v12729_v52, %v3462_v57 }
 0x51a   : > { %v9882_v61 = vpop.f32.mrb[104].mxu1  ;;  %v9902_v45 = vpop.f32.mrb[160].mxu0 }
 0x51b   : > { %v3299_v30 = vpop.f32.mrb[105].mxu1  ;;  %v3408_v27 = vpop.f32.mrb[161].mxu0  ;;  %v12783_v18 = vadd.f32 %v10788_v34, %v3635_v8  ;;  %v12785_v56 = vadd.f32 %v10800_v41, %v3633_v23  ;;  %v3467_v29 = vrot.slane %v9882_v61, 7  ;;  %v3640_v32 = vrot.slane %v9902_v45, 1 }
 0x51c   : > { %v3463_v16 = vrot.slane %v3299_v30, 7  ;;  %v3636_v35 = vrot.slane %v3408_v27, 1  ;;  %v9883_v19 = vpop.f32.mrb[106].mxu1  ;;  %v9903_v11 = vpop.f32.mrb[162].mxu0 }
 0x51d   : > { %v3469_v63 = vrot.slane %v9883_v19, 7  ;;  %v3642_v9 = vrot.slane %v9903_v11, 1  ;;  %v3302_v40 = vpop.f32.mrb[107].mxu1  ;;  %v3411_v55 = vpop.f32.mrb[163].mxu0 }
 0x51e   : > { %v3464_v53 = vsel %vm660_vm2, %v3461_v60, %v3463_v16  ;;  %v3637_v21 = vsel %vm953_vm3, %v3634_v26, %v3636_v35  ;;  %v3465_v62 = vrot.slane %v3302_v40, 7  ;;  %v3638_v12 = vrot.slane %v3411_v55, 1  ;;  %v12811_v26 = vld [vmem:[#allocation5 + $0x28] ss:$0 sm:$0xff] }
 0x51f   : > { %v10808_v14 = vadd.f32 %v12729_v52, %v3464_v53  ;;  %v3470_v1 = vsel %vm660_vm2, %v3467_v29, %v3469_v63  ;;  %v3643_v25 = vsel %vm953_vm3, %v3640_v32, %v3642_v9  ;;  %v3660_v43 = vsel %vm953_vm3, %v3642_v9, 0.0 }
 0x520   : > { %v10812_v20 = vadd.f32 %v12729_v52, %v3470_v1  ;;  %v3466_v50 = vsel %vm660_vm2, %v3463_v16, %v3465_v62  ;;  %v3468_v22 = vsel %vm660_vm2, %v3465_v62, %v3467_v29  ;;  %v3639_v38 = vsel %vm953_vm3, %v3636_v35, %v3638_v12 }
 0x521   : > { %v10816_v58 = vadd.f32 %v12729_v52, %v3466_v50  ;;  %v10804_v36 = vadd.f32 %v12729_v52, %v3468_v22  ;;  %v3641_v39 = vsel %vm953_vm3, %v3638_v12, %v3640_v32  ;;  %v12801_v44 = vadd.f32 %v10796_v48, %v3637_v21 }
 0x522   : > { %v12803_v3 = vadd.f32 %v10812_v20, %v3660_v43  ;;  %v12805_v31 = vadd.f32 %v10808_v14, %v3639_v38  ;;  %v10766_v52 = vadd.f32 %v12753_v59, %v12811_v26  ;;  %v10770_v51 = vadd.f32 %v12745_v15, %v12811_v26 }
 0x523   : > { %v12807_v7 = vadd.f32 %v10804_v36, %v3643_v25  ;;  %v12809_v60 = vadd.f32 %v10816_v58, %v3641_v39  ;;  %v10786_v15 = vadd.f32 %v12765_v5, %v12811_v26  ;;  %v10782_v5 = vadd.f32 %v12773_v4, %v12811_v26 }
 0x524   : > { %v10790_v39 = vadd.f32 %v12783_v18, %v12811_v26 }
 0x542   : > { %v9928_v6 = vpop.f32.mrb[108].mxu1 }
 0x543   : > { %v10758_v0 = vadd.f32 %v12743_v54, %v9928_v6  ;;  %v3744_v10 = vpop.f32.mrb[109].mxu1  ;;  %v10778_v54 = vadd.f32 %v12761_v13, %v12811_v26  ;;  %v10794_v6 = vadd.f32 %v12781_v2, %v12811_v26 }
 0x544   : > { %v10762_v33 = vadd.f32 %v12741_v24, %v3744_v10  ;;  %v9929_v49 = vpop.f32.mrb[110].mxu1  ;;  %v10774_v24 = vadd.f32 %v12763_v17, %v12811_v26 }
 0x545   : > { %v10759_v46 = vadd.f32 %v10758_v0, %v12811_v26  ;;  %v10767_v57 = vadd.f32 %v10766_v52, %v9929_v49  ;;  %v3747_v8 = vpop.f32.mrb[111].mxu1 }
 0x546   : > { %v10763_v47 = vadd.f32 %v10762_v33, %v12811_v26  ;;  %v10771_v42 = vadd.f32 %v10770_v51, %v3747_v8  ;;  %v10802_v33 = vadd.f32 %v12785_v56, %v12811_v26 }
 0x547   : > { %v3825_v37 = vmax.f32 %v10759_v46, 0.0  ;;  %v12821_v41 = vmax.f32 %v10767_v57, 0.0 }
 0x548   : > { %v3823_v59 = vmax.f32 %v10763_v47, 0.0  ;;  %v3824_v34 = vmax.f32 %v10771_v42, 0.0 }
 0x549   : > { %v3858_v23 = vrot.slane %v3825_v37, 7  ;;  %v3922_v61 = vrot.slane %v3825_v37, 1  ;;  %v3860_v45 = vrot.slane %v12821_v41, 7  ;;  %v3924_v30 = vrot.slane %v12821_v41, 1 }
 0x54a   : > { %v3855_v27 = vrot.slane %v3823_v59, 7  ;;  %v3919_v48 = vrot.slane %v3823_v59, 1  ;;  %v3856_v16 = vrot.slane %v3824_v34, 7  ;;  %v3920_v35 = vrot.slane %v3824_v34, 1  ;;  %v9932_v19 = vpop.f32.mrb[112].mxu1 }
 0x54b   : > { %v3861_v13 = vsel %vm660_vm2, %v3858_v23, %v3860_v45  ;;  %v3925_v11 = vsel %vm953_vm3, %v3922_v61, %v3924_v30  ;;  %v10775_v29 = vadd.f32 %v10774_v24, %v9932_v19  ;;  %v3760_v17 = vpop.f32.mrb[113].mxu1 }
 0x54c   : > { %v3902_v32 = vsel %vm660_vm2, 0.0, %v3855_v27  ;;  %v3906_v63 = vmax.f32 %v3861_v13, %v12821_v41  ;;  %v3857_v9 = vsel %vm660_vm2, %v3855_v27, %v3856_v16  ;;  %v3859_v40 = vsel %vm660_vm2, %v3856_v16, %v3858_v23  ;;  %v9933_v55 = vpop.f32.mrb[114].mxu1 }
 0x54d   : > { %v3903_v53 = vmax.f32 %v3902_v32, %v3823_v59  ;;  %v3904_v21 = vmax.f32 %v3857_v9, %v3824_v34  ;;  %v3905_v62 = vmax.f32 %v3859_v40, %v3825_v37  ;;  %v3921_v12 = vsel %vm953_vm3, %v3919_v48, %v3920_v35  ;;  %v3763_v14 = vpop.f32.mrb[115].mxu1 }
 0x54e   : > { %v3923_v1 = vsel %vm953_vm3, %v3920_v35, %v3922_v61  ;;  %v3829_v25 = vmax.f32 %v10775_v29, 0.0  ;;  %v10779_v43 = vadd.f32 %v10778_v54, %v3760_v17  ;;  %v10783_v4 = vadd.f32 %v10782_v5, %v9933_v55 }
 0x54f   : > { %v3967_v20 = vmax.f32 %v3903_v53, %v3921_v12  ;;  %v3968_v50 = vmax.f32 %v3904_v21, %v3923_v1  ;;  %v3969_v22 = vmax.f32 %v3905_v62, %v3925_v11  ;;  %v10787_v38 = vadd.f32 %v10786_v15, %v3763_v14 }
 0x550   : > { %v3827_v58 = vmax.f32 %v10779_v43, 0.0  ;;  %v12841_v36 = vmax.f32 %v10783_v4, 0.0  ;;  %v3866_v0 = vrot.slane %v3829_v25, 7  ;;  %v3930_v10 = vrot.slane %v3829_v25, 1 }
 0x551   : > { %3983 = vst.msk [vmem:[#allocation2] sm:$0xff] %vm3192_vm5, %v3967_v20  ;;  %3984 = vst.msk [vmem:[#allocation2 + $0x8] sm:$0xff] %vm3192_vm5, %v3968_v50  ;;  %v3828_v52 = vmax.f32 %v10787_v38, 0.0  ;;  %v10798_v37 = vadd.f32 %v12801_v44, %v12811_v26  ;;  %v10810_v5 = vadd.f32 %v12805_v31, %v12811_v26  ;;  %v10806_v9 = vadd.f32 %v12807_v7, %v12811_v26 }
 0x552   : > { %3985 = vst.msk [vmem:[#allocation2 + $0x10] sm:$0xff] %vm3192_vm5, %v3969_v22  ;;  %v3862_v49 = vrot.slane %v3827_v58, 7  ;;  %v3926_v51 = vrot.slane %v3827_v58, 1  ;;  %v3868_v46 = vrot.slane %v12841_v36, 7  ;;  %v3932_v18 = vrot.slane %v12841_v36, 1  ;;  %v9936_v57 = vpop.f32.mrb[116].mxu1 }
 0x553   : > { %v3864_v2 = vrot.slane %v3828_v52, 7  ;;  %v3928_v8 = vrot.slane %v3828_v52, 1  ;;  %v10791_v47 = vadd.f32 %v10790_v39, %v9936_v57  ;;  %v3776_v42 = vpop.f32.mrb[117].mxu1  ;;  %v10814_v40 = vadd.f32 %v12803_v3, %v12811_v26 }
 0x554   : > { %v3863_v41 = vsel %vm660_vm2, %v3860_v45, %v3862_v49  ;;  %v3927_v54 = vsel %vm953_vm3, %v3924_v30, %v3926_v51  ;;  %v3869_v56 = vsel %vm660_vm2, %v3866_v0, %v3868_v46  ;;  %v3933_v59 = vsel %vm953_vm3, %v3930_v10, %v3932_v18  ;;  %v9937_v34 = vpop.f32.mrb[118].mxu1 }
 0x555   : > { %v3907_v24 = vmax.f32 %v3863_v41, %v3827_v58  ;;  %v3970_v15 = vmax.f32 %v3906_v63, %v3927_v54  ;;  %v3910_v23 = vmax.f32 %v3869_v56, %v12841_v36  ;;  %v3865_v61 = vsel %vm660_vm2, %v3862_v49, %v3864_v2  ;;  %v3779_v27 = vpop.f32.mrb[119].mxu1 }
 0x556   : > { %v3867_v48 = vsel %vm660_vm2, %v3864_v2, %v3866_v0  ;;  %v3908_v16 = vmax.f32 %v3865_v61, %v3828_v52  ;;  %v3929_v44 = vsel %vm953_vm3, %v3926_v51, %v3928_v8  ;;  %v3931_v45 = vsel %vm953_vm3, %v3928_v8, %v3930_v10 }
 0x557   : > { %3986 = vst.msk [vmem:[#allocation2 + $0x18] sm:$0xff] %vm3192_vm5, %v3970_v15  ;;  %v3909_v30 = vmax.f32 %v3867_v48, %v3829_v25  ;;  %v3971_v35 = vmax.f32 %v3907_v24, %v3929_v44  ;;  %v3833_v19 = vmax.f32 %v10791_v47, 0.0  ;;  %v10795_v13 = vadd.f32 %v10794_v6, %v3776_v42 }
 0x558   : > { %v3972_v11 = vmax.f32 %v3908_v16, %v3931_v45  ;;  %v10799_v29 = vadd.f32 %v10798_v37, %v9937_v34  ;;  %v10803_v17 = vadd.f32 %v10802_v33, %v3779_v27  ;;  %v10818_v12 = vadd.f32 %v12809_v60, %v12811_v26  ;;  %v3999_v42 = vld [vmem:[#allocation2] ss:$2 sm:$0xff] }
 0x559   : > { %v3973_v32 = vmax.f32 %v3909_v30, %v3933_v59  ;;  %3987 = vst.msk [vmem:[#allocation2 + $0x20] sm:$0xff] %vm3192_vm5, %v3971_v35  ;;  %v3831_v63 = vmax.f32 %v10795_v13, 0.0  ;;  %v3874_v55 = vrot.slane %v3833_v19, 7  ;;  %v3938_v31 = vrot.slane %v3833_v19, 1 }
 0x55a   : > { %3988 = vst.msk [vmem:[#allocation2 + $0x28] sm:$0xff] %vm3192_vm5, %v3972_v11  ;;  %v3834_v53 = vmax.f32 %v10799_v29, 0.0  ;;  %v3832_v21 = vmax.f32 %v10803_v17, 0.0  ;;  %v9940_v62 = vpop.f32.mrb[120].mxu1 }
 0x55b   : > { %3989 = vst.msk [vmem:[#allocation2 + $0x30] sm:$0xff] %vm3192_vm5, %v3973_v32  ;;  %v3870_v14 = vrot.slane %v3831_v63, 7  ;;  %v3934_v1 = vrot.slane %v3831_v63, 1  ;;  %v10807_v25 = vadd.f32 %v10806_v9, %v9940_v62  ;;  %v3792_v43 = vpop.f32.mrb[121].mxu1 }
 0x55c   : > { %v3876_v7 = vrot.slane %v3834_v53, 7  ;;  %v3940_v4 = vrot.slane %v3834_v53, 1  ;;  %v3872_v20 = vrot.slane %v3832_v21, 7  ;;  %v3936_v3 = vrot.slane %v3832_v21, 1  ;;  %v9941_v50 = vpop.f32.mrb[122].mxu1 }
 0x55d   : > { %v3871_v22 = vsel %vm660_vm2, %v3868_v46, %v3870_v14  ;;  %v3935_v38 = vsel %vm953_vm3, %v3932_v18, %v3934_v1  ;;  %v3837_v58 = vmax.f32 %v10807_v25, 0.0  ;;  %v10811_v36 = vadd.f32 %v10810_v5, %v3792_v43  ;;  %v3795_v39 = vpop.f32.mrb[123].mxu1  ;;  %v10985_v43 = vld [vmem:[#allocation3 + $0x98] sm:$0xff]  }
 0x55e   : > { %v3911_v60 = vmax.f32 %v3871_v22, %v3831_v63  ;;  %v3974_v26 = vmax.f32 %v3910_v23, %v3935_v38  ;;  %v3877_v6 = vsel %vm660_vm2, %v3874_v55, %v3876_v7  ;;  %v3941_v0 = vsel %vm953_vm3, %v3938_v31, %v3940_v4  ;;  %v4001_v51 = vld [vmem:[#allocation2 + $0x10] ss:$2 sm:$0xff] }
 0x55f   : > { %v3914_v10 = vmax.f32 %v3877_v6, %v3834_v53  ;;  %v3873_v52 = vsel %vm660_vm2, %v3870_v14, %v3872_v20  ;;  %v3875_v33 = vsel %vm660_vm2, %v3872_v20, %v3874_v55  ;;  %v3937_v49 = vsel %vm953_vm3, %v3934_v1, %v3936_v3  ;;  %v10984_v14 = vld [vmem:[#allocation3 + $0xb0] sm:$0xff]   ;;  %v10987_v38 = vld [vmem:[#allocation3 + $0xb8] sm:$0xff]  }
 0x560   : > { %3990 = vst.msk [vmem:[#allocation2 + $0x38] sm:$0xff] %vm3192_vm5, %v3974_v26  ;;  %v3912_v46 = vmax.f32 %v3873_v52, %v3832_v21  ;;  %v3913_v18 = vmax.f32 %v3875_v33, %v3833_v19  ;;  %v3939_v57 = vsel %vm953_vm3, %v3936_v3, %v3938_v31  ;;  %v3975_v2 = vmax.f32 %v3911_v60, %v3937_v49  ;;  %v10991_v60 = vld [vmem:[#allocation3 + $0x100] sm:$0xff]   ;;  %v10993_v26 = vld [vmem:[#allocation3 + $0x108] sm:$0xff]   ;;  %v10992_v6 = vld [vmem:[#allocation3 + $0xd0] sm:$0xff]  }
 0x561   : > { %v3835_v8 = vmax.f32 %v10811_v36, 0.0  ;;  %v10815_v47 = vadd.f32 %v10814_v40, %v9941_v50  ;;  %v10819_v54 = vadd.f32 %v10818_v12, %v3795_v39  ;;  %v12887_v56 = vpack.c.bf16 %v4001_v51, %v3999_v42  ;;  %v4003_v62 = vld [vmem:[#allocation2 + $0x20] ss:$2 sm:$0xff]  ;;  %9978 = vmatprep.subr.bf16.mxu1 %v10987_v38  ;;  %v10990_v39 = vld [vmem:[#allocation3 + $0xf8] sm:$0xff]  }
 0x562   : > { %v3976_v37 = vmax.f32 %v3912_v46, %v3939_v57  ;;  %v3977_v41 = vmax.f32 %v3913_v18, %v3941_v0  ;;  %3991 = vst.msk [vmem:[#allocation2 + $0x40] sm:$0xff] %vm3192_vm5, %v3975_v2  ;;  %v3882_v15 = vrot.slane %v3837_v58, 7  ;;  %v3946_v23 = vrot.slane %v3837_v58, 1  ;;  %9979 = vmatpush3.bf16.msra.mxu1 %v10987_v38  ;;  %v10989_v36 = vld [vmem:[#allocation3 + $0xc8] sm:$0xff]   ;;  %v10994_v0 = vld [vmem:[#allocation3 + $0x110] sm:$0xff]  }
 0x563   : > { %v3878_v59 = vrot.slane %v3835_v8, 7  ;;  %v3942_v34 = vrot.slane %v3835_v8, 1  ;;  %v3838_v24 = vmax.f32 %v10815_v47, 0.0  ;;  %v3836_v61 = vmax.f32 %v10819_v54, 0.0  ;;  %9946 = vmatprep.mubr.msk.bf16.mxu0 %vm3192_vm5, %v12887_v56 }
 0x564   : > { %3992 = vst.msk [vmem:[#allocation2 + $0x48] sm:$0xff] %vm3192_vm5, %v3976_v37  ;;  %3993 = vst.msk [vmem:[#allocation2 + $0x50] sm:$0xff] %vm3192_vm5, %v3977_v41 }
 0x565   : > { %v3879_v27 = vsel %vm660_vm2, %v3876_v7, %v3878_v59  ;;  %v3943_v48 = vsel %vm953_vm3, %v3940_v4, %v3942_v34  ;;  %v3884_v16 = vrot.slane %v3838_v24, 7  ;;  %v3948_v44 = vrot.slane %v3838_v24, 1 }
 0x566   : > { %v3915_v45 = vmax.f32 %v3879_v27, %v3835_v8  ;;  %v3978_v30 = vmax.f32 %v3914_v10, %v3943_v48  ;;  %v3880_v35 = vrot.slane %v3836_v61, 7  ;;  %v3944_v19 = vrot.slane %v3836_v61, 1  ;;  %v12936_v10 = vld [vmem:[#allocation3 + $0xd8] sm:$0xff]  }
 0x567   : > { %v3885_v13 = vsel %vm660_vm2, %v3882_v15, %v3884_v16  ;;  %v3949_v11 = vsel %vm953_vm3, %v3946_v23, %v3948_v44  ;;  %v3966_v29 = vsel %vm953_vm3, %v3948_v44, 0.0  ;;  %v4005_v17 = vld [vmem:[#allocation2 + $0x30] ss:$2 sm:$0xff] }
 0x568   : > { %3994 = vst.msk [vmem:[#allocation2 + $0x58] sm:$0xff] %vm3192_vm5, %v3978_v30  ;;  %v3918_v5 = vmax.f32 %v3885_v13, %v3838_v24  ;;  %v3881_v32 = vsel %vm660_vm2, %v3878_v59, %v3880_v35  ;;  %v3883_v63 = vsel %vm660_vm2, %v3880_v35, %v3882_v15  ;;  %v3945_v9 = vsel %vm953_vm3, %v3942_v34, %v3944_v19 }
 0x569   : > { %v3916_v40 = vmax.f32 %v3881_v32, %v3836_v61  ;;  %v3917_v55 = vmax.f32 %v3883_v63, %v3837_v58  ;;  %v3947_v53 = vsel %vm953_vm3, %v3944_v19, %v3946_v23  ;;  %v3979_v21 = vmax.f32 %v3915_v45, %v3945_v9  ;;  %v10988_v58 = vld [vmem:[#allocation3 + $0xc0] sm:$0xff]  }
 0x56a   : > { %v3982_v12 = vmax.f32 %v3918_v5, %v3966_v29  ;;  %v12903_v31 = vpack.c.bf16 %v4005_v17, %v4003_v62  ;;  %9980 = vmatprep.subr.bf16.mxu1 %v10988_v58 }
 0x56b   : > { %v3980_v1 = vmax.f32 %v3916_v40, %v3947_v53  ;;  %v3981_v25 = vmax.f32 %v3917_v55, %v3949_v11  ;;  %3995 = vst.msk [vmem:[#allocation2 + $0x60] sm:$0xff] %vm3192_vm5, %v3979_v21  ;;  %v4007_v7 = vld [vmem:[#allocation2 + $0x40] ss:$2 sm:$0xff]  ;;  %9981 = vmatpush3.bf16.msra.mxu1 %v10988_v58 }
 0x56c   : > { %3998 = vst.msk [vmem:[#allocation2 + $0x78] sm:$0xff] %vm3192_vm5, %v3982_v12  ;;  %9947 = vmatmul.mubr.msk.bf16.vlgmr.msra.gmra.mrb[164].mxu0 %vm3192_vm5, %v12903_v31  ;;  %9982 = vmatprep.subr.bf16.mxu1 %v10989_v36 }
 0x56d   : > { %3996 = vst.msk [vmem:[#allocation2 + $0x68] sm:$0xff] %vm3192_vm5, %v3980_v1  ;;  %3997 = vst.msk [vmem:[#allocation2 + $0x70] sm:$0xff] %vm3192_vm5, %v3981_v25  ;;  %9955 = vmatpush3.bf16.msra.mxu0 %v12726_v28  ;;  %v10986_v28 = vld [vmem:[#allocation3 + $0xa0] sm:$0xff]  }
 0x56e   : > { %9956 = vmatprep.subr.bf16.mxu0 %v10984_v14 }
 0x56f   : > { %v4009_v4 = vld [vmem:[#allocation2 + $0x50] ss:$2 sm:$0xff]  ;;  %9983 = vmatpush3.bf16.msra.mxu1 %v10989_v36 }
 0x570   : > { %v12912_v20 = vpack.c.bf16 %v4009_v4, %v4007_v7  ;;  %9984 = vmatprep.subr.bf16.mxu1 %v10992_v6 }
 0x571   : > { %9957 = vmatpush3.bf16.msra.mxu0 %v10984_v14 }
 0x572   : > { %9950 = vmatprep.mubr.msk.bf16.mxu0 %vm3192_vm5, %v12912_v20  ;;  %9966 = vmatprep.subr.bf16.mxu0 %v10985_v43 }
 0x573   : > { %9985 = vmatpush3.bf16.msra.mxu1 %v10992_v6 }
 0x574   : > { %v4011_v3 = vld [vmem:[#allocation2 + $0x60] ss:$2 sm:$0xff]  ;;  %v4013_v50 = vld [vmem:[#allocation2 + $0x70] ss:$2 sm:$0xff]  ;;  %10010 = vmatprep.subr.bf16.mxu1 %v12936_v10 }
 0x575   : > { %v12916_v22 = vpack.c.bf16 %v4013_v50, %v4011_v3 }
 0x577   : > { %9951 = vmatmul.mubr.msk.bf16.gmra.mrb[168].mxu0 %vm3192_vm5, %v12916_v22 }
 0x578   : > { %9958 = vmatprep.mubr.msk.bf16.mxu0 %vm3192_vm5, %v12887_v56 }
 0x57f   : > { %9959 = vmatmul.mubr.msk.bf16.vlgmr.msra.gmra.mrb[172].mxu0 %vm3192_vm5, %v12903_v31 }
 0x580   : > { %9962 = vmatprep.mubr.msk.bf16.mxu0 %vm3192_vm5, %v12912_v20  ;;  %9967 = vmatpush3.bf16.msra.mxu0 %v10985_v43 }
 0x581   : > { %9968 = vmatprep.subr.bf16.mxu0 %v10986_v28 }
 0x584   : > { %9969 = vmatpush3.bf16.msra.mxu0 %v10986_v28  ;;  %v8782_v28 = vld [vmem:[#allocation5 + $0x30] ss:$0 sm:$0xff] }
 0x585   : > { %9994 = vmatprep.subr.bf16.mxu0 %v10990_v39 }
 0x587   : > { %9963 = vmatmul.mubr.msk.bf16.gmra.mrb[176].mxu0 %vm3192_vm5, %v12916_v22 }
 0x588   : > { %9970 = vmatprep.mubr.msk.bf16.mxu0 %vm3192_vm5, %v12887_v56 }
 0x58f   : > { %9971 = vmatmul.mubr.msk.bf16.vlgmr.msra.gmra.mrb[180].mxu0 %vm3192_vm5, %v12903_v31 }
 0x590   : > { %9974 = vmatprep.mubr.msk.bf16.mxu0 %vm3192_vm5, %v12912_v20  ;;  %9995 = vmatpush3.bf16.msra.mxu0 %v10990_v39 }
 0x591   : > { %9996 = vmatprep.subr.bf16.mxu0 %v10991_v60 }
 0x594   : > { %9997 = vmatpush3.bf16.msra.mxu0 %v10991_v60 }
 0x595   : > { %9998 = vmatprep.subr.bf16.mxu0 %v10993_v26 }
 0x597   : > { %9975 = vmatmul.mubr.msk.bf16.gmra.mrb[184].mxu0 %vm3192_vm5, %v12916_v22 }
 0x598   : > { %9999 = vmatpush3.bf16.msra.mxu0 %v10993_v26 }
 0x599   : > { %10000 = vmatprep.subr.bf16.mxu0 %v10994_v0 }
 0x59c   : > { %10001 = vmatpush3.bf16.msra.mxu0 %v10994_v0 }
 0x63f   : > { %v9948_v52 = vpop.f32.mrb[164].mxu0 }
 0x640   : > { %v4088_v33 = vpop.f32.mrb[165].mxu0  ;;  %v4208_v51 = vrot.slane %v9948_v52, 7 }
 0x641   : > { %v9949_v49 = vpop.f32.mrb[166].mxu0  ;;  %v4205_v57 = vrot.slane %v4088_v33, 7 }
 0x642   : > { %v4210_v46 = vrot.slane %v9949_v49, 7  ;;  %v4091_v18 = vpop.f32.mrb[167].mxu0 }
 0x643   : > { %v4206_v2 = vrot.slane %v4091_v18, 7  ;;  %v4228_v3 = vsel %vm660_vm2, 0.0, %v4205_v57 }
 0x644   : > { %v4211_v8 = vsel %vm660_vm2, %v4208_v51, %v4210_v46 }
 0x645   : > { %v4209_v47 = vsel %vm660_vm2, %v4206_v2, %v4208_v51  ;;  %v4207_v42 = vsel %vm660_vm2, %v4205_v57, %v4206_v2 }
 0x64a   : > { %v9952_v37 = vpop.f32.mrb[168].mxu0 }
 0x64b   : > { %v4104_v41 = vpop.f32.mrb[169].mxu0  ;;  %v4216_v34 = vrot.slane %v9952_v37, 7 }
 0x64c   : > { %v4212_v54 = vrot.slane %v4104_v41, 7  ;;  %v9953_v59 = vpop.f32.mrb[170].mxu0 }
 0x64d   : > { %v4218_v24 = vrot.slane %v9953_v59, 7  ;;  %v4107_v15 = vpop.f32.mrb[171].mxu0 }
 0x64e   : > { %v4214_v23 = vrot.slane %v4107_v15, 7  ;;  %v4213_v61 = vsel %vm660_vm2, %v4210_v46, %v4212_v54 }
 0x64f   : > { %v4219_v27 = vsel %vm660_vm2, %v4216_v34, %v4218_v24 }
 0x650   : > { %v4217_v48 = vsel %vm660_vm2, %v4214_v23, %v4216_v34  ;;  %v4215_v16 = vsel %vm660_vm2, %v4212_v54, %v4214_v23 }
 0x652   : > { %v9960_v44 = vpop.f32.mrb[172].mxu0 }
 0x653   : > { %v4165_v45 = vpop.f32.mrb[173].mxu0  ;;  %v4317_v35 = vrot.slane %v9960_v44, 1 }
 0x654   : > { %v9961_v30 = vpop.f32.mrb[174].mxu0  ;;  %v4314_v11 = vrot.slane %v4165_v45, 1 }
 0x655   : > { %v4319_v19 = vrot.slane %v9961_v30, 1  ;;  %v4168_v13 = vpop.f32.mrb[175].mxu0 }
 0x656   : > { %v4315_v29 = vrot.slane %v4168_v13, 1  ;;  %v10996_v13 = vld [vmem:[#allocation3 + $0xe0] sm:$0xff]  }
 0x657   : > { %v4320_v17 = vsel %vm953_vm3, %v4317_v35, %v4319_v19 }
 0x658   : > { %v4316_v5 = vsel %vm953_vm3, %v4314_v11, %v4315_v29  ;;  %v4318_v32 = vsel %vm953_vm3, %v4315_v29, %v4317_v35 }
 0x65a   : > { %v9964_v63 = vpop.f32.mrb[176].mxu0 }
 0x65b   : > { %v4181_v9 = vpop.f32.mrb[177].mxu0  ;;  %v4325_v53 = vrot.slane %v9964_v63, 1 }
 0x65c   : > { %v4321_v40 = vrot.slane %v4181_v9, 1  ;;  %v9965_v55 = vpop.f32.mrb[178].mxu0 }
 0x65d   : > { %v4327_v21 = vrot.slane %v9965_v55, 1  ;;  %v4184_v62 = vpop.f32.mrb[179].mxu0  ;;  %v11000_v55 = vld [vmem:[#allocation3 + $0x120] sm:$0xff]  }
 0x65e   : > { %v4323_v12 = vrot.slane %v4184_v62, 1  ;;  %v4322_v14 = vsel %vm953_vm3, %v4319_v19, %v4321_v40  ;;  %v11003_v62 = vld [vmem:[#allocation3 + $0x130] sm:$0xff]  }
 0x65f   : > { %v4328_v1 = vsel %vm953_vm3, %v4325_v53, %v4327_v21 }
 0x660   : > { %v4324_v25 = vsel %vm953_vm3, %v4321_v40, %v4323_v12  ;;  %v4326_v43 = vsel %vm953_vm3, %v4323_v12, %v4325_v53  ;;  %v10998_v40 = vld [vmem:[#allocation3 + $0xf0] sm:$0xff]   ;;  %v11001_v53 = vld [vmem:[#allocation3 + $0x128] sm:$0xff]  }
 0x661   : > { %10038 = vmatprep.subr.bf16.mxu0 %v11001_v53  ;;  %v11004_v12 = vld [vmem:[#allocation3 + $0x150] sm:$0xff]  }
 0x662   : > { %v9972_v7 = vpop.f32.mrb[180].mxu0 }
 0x663   : > { %v4284_v4 = vadd.f32 %v9972_v7, %v4209_v47  ;;  %v4275_v50 = vpop.f32.mrb[181].mxu0 }
 0x664   : > { %v4276_v38 = vadd.f32 %v4275_v50, %v4228_v3  ;;  %v9973_v58 = vpop.f32.mrb[182].mxu0  ;;  %v8807_v3 = vld [vmem:[#allocation5 + $0x38] ss:$0 sm:$0xff] }
 0x665   : > { %v4340_v36 = vadd.f32 %v4320_v17, %v4284_v4  ;;  %v4287_v39 = vadd.f32 %v9973_v58, %v4211_v8  ;;  %v4278_v60 = vpop.f32.mrb[183].mxu0 }
 0x666   : > { %v4338_v26 = vadd.f32 %v4316_v5, %v4276_v38  ;;  %v4279_v6 = vadd.f32 %v4278_v60, %v4207_v42  ;;  %v4337_v42 = vsel %vm953_vm3, %v4327_v21, 0.0  ;;  %v11002_v21 = vld [vmem:[#allocation3 + $0x148] sm:$0xff]  }
 0x667   : > { %v4352_v0 = vadd.f32 %v8782_v28, %v4340_v36  ;;  %v4341_v52 = vadd.f32 %v4322_v14, %v4287_v39  ;;  %v11007_v14 = vld [vmem:[#allocation3 + $0x140] sm:$0xff]  }
 0x668   : > { %v4350_v33 = vadd.f32 %v8782_v28, %v4338_v26  ;;  %v4339_v49 = vadd.f32 %v4318_v32, %v4279_v6 }
 0x669   : > { %v4353_v51 = vadd.f32 %v8782_v28, %v4341_v52  ;;  %v4360_v2 = vmax.f32 %v4352_v0, 0.0 }
 0x66a   : > { %v4351_v46 = vadd.f32 %v8782_v28, %v4339_v49  ;;  %v9976_v18 = vpop.f32.mrb[184].mxu0  ;;  %v4358_v41 = vmax.f32 %v4350_v33, 0.0 }
 0x66b   : > { %v4361_v47 = vmax.f32 %v4353_v51, 0.0  ;;  %v4300_v37 = vadd.f32 %v9976_v18, %v4217_v48  ;;  %v4291_v57 = vpop.f32.mrb[185].mxu0 }
 0x66c   : > { %v4359_v54 = vmax.f32 %v4351_v46, 0.0  ;;  %v4292_v59 = vadd.f32 %v4291_v57, %v4213_v61  ;;  %v9977_v34 = vpop.f32.mrb[186].mxu0 }
 0x66d   : > { %v4367_v24 = vpack.c.bf16 %v4361_v47, %v4360_v2  ;;  %v4344_v8 = vadd.f32 %v4328_v1, %v4300_v37  ;;  %v4303_v15 = vadd.f32 %v9977_v34, %v4219_v27  ;;  %v4294_v23 = vpop.f32.mrb[187].mxu0  ;;  %v12979_v1 = vld [vmem:[#allocation3 + $0x208] sm:$0xff]  }
 0x66e   : > { %v4366_v44 = vpack.c.bf16 %v4359_v54, %v4358_v41  ;;  %v4342_v45 = vadd.f32 %v4324_v25, %v4292_v59  ;;  %v4295_v30 = vadd.f32 %v4294_v23, %v4215_v16  ;;  %v10997_v16 = vld [vmem:[#allocation3 + $0xe8] sm:$0xff]  }
 0x66f   : > { %v4356_v35 = vadd.f32 %v8782_v28, %v4344_v8  ;;  %v4345_v19 = vadd.f32 %v4337_v42, %v4303_v15 }
 0x670   : > { %v4354_v11 = vadd.f32 %v8782_v28, %v4342_v45  ;;  %v4343_v48 = vadd.f32 %v4326_v43, %v4295_v30  ;;  %9986 = vmatprep.mubr.msk.bf16.mxu1 %vm4418_vm6, %v4366_v44  ;;  %10002 = vmatprep.mubr.msk.bf16.mxu0 %vm4418_vm6, %v4366_v44 }
 0x671   : > { %v4357_v61 = vadd.f32 %v8782_v28, %v4345_v19  ;;  %9987 = vmatmul.mubr.msk.bf16.vlgmr.msra.gmra.mrb[124].mxu1 %vm4418_vm6, %v4367_v24  ;;  %10003 = vmatmul.mubr.msk.bf16.vlgmr.msra.gmra.mrb[188].mxu0 %vm4418_vm6, %v4367_v24  ;;  %v4364_v29 = vmax.f32 %v4356_v35, 0.0 }
 0x672   : > { %v4355_v27 = vadd.f32 %v8782_v28, %v4343_v48  ;;  %10011 = vmatpush3.bf16.msra.mxu1 %v12936_v10  ;;  %v4362_v5 = vmax.f32 %v4354_v11, 0.0  ;;  %v10999_v10 = vld [vmem:[#allocation3 + $0x118] sm:$0xff]   ;;  %10039 = vmatpush3.bf16.msra.mxu0 %v11001_v53 }
 0x673   : > { %v4365_v17 = vmax.f32 %v4357_v61, 0.0  ;;  %10012 = vmatprep.subr.bf16.mxu1 %v10996_v13  ;;  %10040 = vmatprep.subr.bf16.mxu0 %v11003_v62 }
 0x674   : > { %v4363_v32 = vmax.f32 %v4355_v27, 0.0 }
 0x675   : > { %v4369_v63 = vpack.c.bf16 %v4365_v17, %v4364_v29 }
 0x676   : > { %v4368_v9 = vpack.c.bf16 %v4363_v32, %v4362_v5  ;;  %10013 = vmatpush3.bf16.msra.mxu1 %v10996_v13  ;;  %10041 = vmatpush3.bf16.msra.mxu0 %v11003_v62 }
 0x677   : > { %10014 = vmatprep.subr.bf16.mxu1 %v10997_v16 }
 0x678   : > { %9990 = vmatprep.mubr.msk.bf16.mxu1 %vm4418_vm6, %v4368_v9  ;;  %10006 = vmatprep.mubr.msk.bf16.mxu0 %vm4418_vm6, %v4368_v9 }
 0x679   : > { %9991 = vmatmul.mubr.msk.bf16.gmra.mrb[128].mxu1 %vm4418_vm6, %v4369_v63  ;;  %10007 = vmatmul.mubr.msk.bf16.gmra.mrb[192].mxu0 %vm4418_vm6, %v4369_v63 }
 0x67a   : > { %10015 = vmatpush3.bf16.msra.mxu1 %v10997_v16  ;;  %10018 = vmatprep.mubr.msk.bf16.mxu1 %vm4418_vm6, %v4366_v44 }
 0x67b   : > { %10016 = vmatprep.subr.bf16.mxu1 %v10998_v40 }
 0x67e   : > { %10017 = vmatpush3.bf16.msra.mxu1 %v10998_v40 }
 0x67f   : > { %10026 = vmatprep.subr.bf16.mxu1 %v10999_v10 }
 0x681   : > { %10019 = vmatmul.mubr.msk.bf16.vlgmr.msra.gmra.mrb[132].mxu1 %vm4418_vm6, %v4367_v24 }
 0x682   : > { %10022 = vmatprep.mubr.msk.bf16.mxu1 %vm4418_vm6, %v4368_v9  ;;  %10027 = vmatpush3.bf16.msra.mxu1 %v10999_v10 }
 0x683   : > { %10028 = vmatprep.subr.bf16.mxu1 %v11000_v55 }
 0x686   : > { %10029 = vmatpush3.bf16.msra.mxu1 %v11000_v55 }
 0x687   : > { %10062 = vmatprep.subr.bf16.mxu1 %v11002_v21 }
 0x689   : > { %10023 = vmatmul.mubr.msk.bf16.gmra.mrb[136].mxu1 %vm4418_vm6, %v4369_v63 }
 0x68a   : > { %10030 = vmatprep.mubr.msk.bf16.mxu1 %vm3192_vm5, %v12887_v56  ;;  %v11005_v56 = vld [vmem:[#allocation3 + $0x138] sm:$0xff]  }
 0x68b   : > { %10042 = vmatprep.subr.bf16.mxu0 %v11005_v56 }
 0x68c   : > { %10043 = vmatpush3.bf16.msra.mxu0 %v11005_v56 }
 0x68d   : > { %10044 = vmatprep.subr.bf16.mxu0 %v11007_v14 }
 0x690   : > { %10045 = vmatpush3.bf16.msra.mxu0 %v11007_v14 }
 0x691   : > { %10031 = vmatmul.mubr.msk.bf16.vlgmr.msra.gmra.mrb[132].mxu1 %vm3192_vm5, %v12903_v31  ;;  %v11006_v31 = vld [vmem:[#allocation3 + $0x158] sm:$0xff]  }
 0x692   : > { %10034 = vmatprep.mubr.msk.bf16.mxu1 %vm3192_vm5, %v12912_v20  ;;  %10063 = vmatpush3.bf16.msra.mxu1 %v11002_v21  ;;  %v11008_v20 = vld [vmem:[#allocation3 + $0x160] sm:$0xff]  }
 0x693   : > { %10064 = vmatprep.subr.bf16.mxu1 %v11004_v12 }
 0x696   : > { %10065 = vmatpush3.bf16.msra.mxu1 %v11004_v12 }
 0x697   : > { %10066 = vmatprep.subr.bf16.mxu1 %v11006_v31 }
 0x699   : > { %10035 = vmatmul.mubr.msk.bf16.gmra.mrb[136].mxu1 %vm3192_vm5, %v12916_v22  ;;  %v12976_v22 = vld [vmem:[#allocation3 + $0x168] sm:$0xff]  }
 0x69a   : > { %10067 = vmatpush3.bf16.msra.mxu1 %v11006_v31  ;;  %10050 = vmatprep.subr.bf16.mxu0 %v12976_v22 }
 0x69b   : > { %10068 = vmatprep.subr.bf16.mxu1 %v11008_v20 }
 0x69e   : > { %10069 = vmatpush3.bf16.msra.mxu1 %v11008_v20 }
 0x69f   : > { %10094 = vmatprep.subr.bf16.mxu1 %v12979_v1 }
 0x744   : > { %v9988_v25 = vpop.f32.mrb[124].mxu1  ;;  %v10004_v43 = vpop.f32.mrb[188].mxu0 }
 0x745   : > { %v4465_v7 = vpop.f32.mrb[125].mxu1  ;;  %v4554_v4 = vpop.f32.mrb[189].mxu0  ;;  %v4597_v58 = vrot.slane %v9988_v25, 7  ;;  %v4718_v36 = vrot.slane %v10004_v43, 1 }
 0x746   : > { %v4594_v50 = vrot.slane %v4465_v7, 7  ;;  %v9989_v28 = vpop.f32.mrb[126].mxu1  ;;  %v10005_v38 = vpop.f32.mrb[190].mxu0  ;;  %v4715_v51 = vrot.slane %v4554_v4, 1  ;;  %v8808_v4 = vld [vmem:[#allocation5 + $0x40] ss:$0 sm:$0xff] }
 0x747   : > { %v4599_v39 = vrot.slane %v9989_v28, 7  ;;  %v4720_v60 = vrot.slane %v10005_v38, 1  ;;  %v4468_v26 = vpop.f32.mrb[127].mxu1  ;;  %v4557_v6 = vpop.f32.mrb[191].mxu0 }
 0x748   : > { %v4617_v0 = vsel %vm660_vm2, 0.0, %v4594_v50  ;;  %v4595_v52 = vrot.slane %v4468_v26, 7  ;;  %v4716_v33 = vrot.slane %v4557_v6, 1 }
 0x749   : > { %v10824_v49 = vadd.f32 %v8807_v3, %v4617_v0  ;;  %v4600_v46 = vsel %vm660_vm2, %v4597_v58, %v4599_v39  ;;  %v4721_v18 = vsel %vm953_vm3, %v4718_v36, %v4720_v60 }
 0x74a   : > { %v4596_v2 = vsel %vm660_vm2, %v4594_v50, %v4595_v52  ;;  %v4598_v47 = vsel %vm660_vm2, %v4595_v52, %v4597_v58  ;;  %v4719_v37 = vsel %vm953_vm3, %v4716_v33, %v4718_v36  ;;  %v4717_v54 = vsel %vm953_vm3, %v4715_v51, %v4716_v33 }
 0x74b   : > { %v10832_v57 = vadd.f32 %v8807_v3, %v4596_v2  ;;  %v10820_v41 = vadd.f32 %v8807_v3, %v4598_v47  ;;  %v10825_v24 = vadd.f32 %v10824_v49, %v4717_v54  ;;  %v10828_v44 = vadd.f32 %v8807_v3, %v4600_v46 }
 0x74c   : > { %v9992_v59 = vpop.f32.mrb[128].mxu1  ;;  %v10008_v34 = vpop.f32.mrb[192].mxu0 }
 0x74d   : > { %v4481_v8 = vpop.f32.mrb[129].mxu1  ;;  %v4570_v15 = vpop.f32.mrb[193].mxu0  ;;  %v10821_v23 = vadd.f32 %v10820_v41, %v4721_v18  ;;  %v10833_v42 = vadd.f32 %v10832_v57, %v4719_v37  ;;  %v4605_v13 = vrot.slane %v9992_v59, 7  ;;  %v4726_v11 = vrot.slane %v10008_v34, 1 }
 0x74e   : > { %v4601_v45 = vrot.slane %v4481_v8, 7  ;;  %v4722_v30 = vrot.slane %v4570_v15, 1  ;;  %v9993_v35 = vpop.f32.mrb[130].mxu1  ;;  %v10009_v19 = vpop.f32.mrb[194].mxu0 }
 0x74f   : > { %v4607_v48 = vrot.slane %v9993_v35, 7  ;;  %v4728_v61 = vrot.slane %v10009_v19, 1  ;;  %v4484_v27 = vpop.f32.mrb[131].mxu1  ;;  %v4573_v29 = vpop.f32.mrb[195].mxu0 }
 0x750   : > { %v4602_v17 = vsel %vm660_vm2, %v4599_v39, %v4601_v45  ;;  %v4723_v16 = vsel %vm953_vm3, %v4720_v60, %v4722_v30  ;;  %v4603_v5 = vrot.slane %v4484_v27, 7  ;;  %v4724_v32 = vrot.slane %v4573_v29, 1 }
 0x751   : > { %v10840_v63 = vadd.f32 %v8807_v3, %v4602_v17  ;;  %v4608_v9 = vsel %vm660_vm2, %v4605_v13, %v4607_v48  ;;  %v4729_v40 = vsel %vm953_vm3, %v4726_v11, %v4728_v61  ;;  %v4738_v10 = vsel %vm953_vm3, %v4728_v61, 0.0 }
 0x752   : > { %v10844_v55 = vadd.f32 %v8807_v3, %v4608_v9  ;;  %v4604_v53 = vsel %vm660_vm2, %v4601_v45, %v4603_v5  ;;  %v4606_v21 = vsel %vm660_vm2, %v4603_v5, %v4605_v13  ;;  %v4725_v62 = vsel %vm953_vm3, %v4722_v30, %v4724_v32 }
 0x753   : > { %v10848_v12 = vadd.f32 %v8807_v3, %v4604_v53  ;;  %v10836_v56 = vadd.f32 %v8807_v3, %v4606_v21  ;;  %v4727_v31 = vsel %vm953_vm3, %v4724_v32, %v4726_v11  ;;  %v10829_v14 = vadd.f32 %v10828_v44, %v4723_v16 }
 0x754   : > { %v10845_v20 = vadd.f32 %v10844_v55, %v4738_v10  ;;  %v10841_v25 = vadd.f32 %v10840_v63, %v4725_v62  ;;  %v10834_v60 = vadd.f32 %v10833_v42, %v8808_v4 }
 0x755   : > { %v10837_v43 = vadd.f32 %v10836_v56, %v4729_v40  ;;  %v10849_v7 = vadd.f32 %v10848_v12, %v4727_v31  ;;  %v10830_v58 = vadd.f32 %v10829_v14, %v8808_v4 }
 0x756   : > { %v10842_v51 = vadd.f32 %v10841_v25, %v8808_v4  ;;  %v10846_v47 = vadd.f32 %v10845_v20, %v8808_v4 }
 0x757   : > { %v10838_v2 = vadd.f32 %v10837_v43, %v8808_v4  ;;  %v10850_v30 = vadd.f32 %v10849_v7, %v8808_v4 }
 0x764   : > { %v10032_v50 = vpop.f32.mrb[132].mxu1 }
 0x765   : > { %v10822_v28 = vadd.f32 %v10821_v23, %v10032_v50  ;;  %v4814_v38 = vpop.f32.mrb[133].mxu1 }
 0x766   : > { %v10826_v36 = vadd.f32 %v10825_v24, %v4814_v38  ;;  %v10033_v39 = vpop.f32.mrb[134].mxu1 }
 0x767   : > { %v10823_v26 = vadd.f32 %v10822_v28, %v8808_v4  ;;  %v10831_v6 = vadd.f32 %v10830_v58, %v10033_v39  ;;  %v4817_v0 = vpop.f32.mrb[135].mxu1 }
 0x768   : > { %v10827_v52 = vadd.f32 %v10826_v36, %v8808_v4  ;;  %v10835_v3 = vadd.f32 %v10834_v60, %v4817_v0 }
 0x769   : > { %v4855_v33 = vmax.f32 %v10823_v26, 0.0  ;;  %v4856_v49 = vmax.f32 %v10831_v6, 0.0 }
 0x76a   : > { %v4853_v46 = vmax.f32 %v10827_v52, 0.0  ;;  %v4854_v18 = vmax.f32 %v10835_v3, 0.0 }
 0x76b   : > { %v4872_v37 = vrot.slane %v4855_v33, 7  ;;  %v4904_v57 = vrot.slane %v4855_v33, 1  ;;  %v4874_v41 = vrot.slane %v4856_v49, 7  ;;  %v4906_v54 = vrot.slane %v4856_v49, 1 }
 0x76c   : > { %v4869_v59 = vrot.slane %v4853_v46, 7  ;;  %v4901_v34 = vrot.slane %v4853_v46, 1  ;;  %v4870_v24 = vrot.slane %v4854_v18, 7  ;;  %v4902_v8 = vrot.slane %v4854_v18, 1  ;;  %v10036_v15 = vpop.f32.mrb[136].mxu1 }
 0x76d   : > { %v4875_v23 = vsel %vm660_vm2, %v4872_v37, %v4874_v41  ;;  %v4907_v42 = vsel %vm953_vm3, %v4904_v57, %v4906_v54  ;;  %v10839_v44 = vadd.f32 %v10838_v2, %v10036_v15  ;;  %v4830_v45 = vpop.f32.mrb[137].mxu1  ;;  %v11013_v15 = vld [vmem:[#allocation3 + $0x188] sm:$0xff]  }
 0x76e   : > { %v4892_v35 = vsel %vm660_vm2, 0.0, %v4869_v59  ;;  %v4896_v19 = vmax.f32 %v4875_v23, %v4856_v49  ;;  %v4871_v13 = vsel %vm660_vm2, %v4869_v59, %v4870_v24  ;;  %v4873_v11 = vsel %vm660_vm2, %v4870_v24, %v4872_v37  ;;  %v10037_v48 = vpop.f32.mrb[138].mxu1  ;;  %v11011_v24 = vld [vmem:[#allocation3 + $0x178] sm:$0xff]   ;;  %v11016_v23 = vld [vmem:[#allocation3 + $0x210] sm:$0xff]  }
 0x76f   : > { %v4893_v61 = vmax.f32 %v4892_v35, %v4853_v46  ;;  %v4894_v27 = vmax.f32 %v4871_v13, %v4854_v18  ;;  %v4895_v29 = vmax.f32 %v4873_v11, %v4855_v33  ;;  %v4903_v17 = vsel %vm953_vm3, %v4901_v34, %v4902_v8  ;;  %v4833_v16 = vpop.f32.mrb[139].mxu1  ;;  %v11010_v34 = vld [vmem:[#allocation3 + $0x170] sm:$0xff]   ;;  %v11022_v35 = vld [vmem:[#allocation3 + $0x228] sm:$0xff]   ;;  %v11025_v11 = vld [vmem:[#allocation3 + $0x1b8] sm:$0xff]  }
 0x770   : > { %v4905_v5 = vsel %vm953_vm3, %v4902_v8, %v4904_v57  ;;  %v4859_v32 = vmax.f32 %v10839_v44, 0.0  ;;  %v10843_v63 = vadd.f32 %v10842_v51, %v4830_v45  ;;  %v10847_v9 = vadd.f32 %v10846_v47, %v10037_v48  ;;  %v11012_v8 = vld [vmem:[#allocation3 + $0x180] sm:$0xff]   ;;  %v11024_v13 = vld [vmem:[#allocation3 + $0x230] sm:$0xff]   ;;  %v11026_v48 = vld [vmem:[#allocation3 + $0x238] sm:$0xff]  }
 0x771   : > { %v4925_v40 = vmax.f32 %v4893_v61, %v4903_v17  ;;  %v4926_v10 = vmax.f32 %v4894_v27, %v4905_v5  ;;  %v4927_v55 = vmax.f32 %v4895_v29, %v4907_v42  ;;  %v10851_v53 = vadd.f32 %v10850_v30, %v4833_v16  ;;  %v11017_v42 = vld [vmem:[#allocation3 + $0x198] sm:$0xff]   ;;  %v11019_v44 = vld [vmem:[#allocation3 + $0x1a0] sm:$0xff]   ;;  %v11021_v30 = vld [vmem:[#allocation3 + $0x1a8] sm:$0xff]  }
 0x772   : > { %v4857_v21 = vmax.f32 %v10843_v63, 0.0  ;;  %v4860_v62 = vmax.f32 %v10847_v9, 0.0  ;;  %v4880_v12 = vrot.slane %v4859_v32, 7  ;;  %v4912_v56 = vrot.slane %v4859_v32, 1  ;;  %v11020_v45 = vld [vmem:[#allocation3 + $0x220] sm:$0xff]   ;;  %v11029_v29 = vld [vmem:[#allocation3 + $0x1c8] sm:$0xff]  }
 0x773   : > { %4933 = vst.msk [vmem:[#allocation2] sm:$0xff] %vm4418_vm6, %v4925_v40  ;;  %4934 = vst.msk [vmem:[#allocation2 + $0x8] sm:$0xff] %vm4418_vm6, %v4926_v10  ;;  %v4858_v31 = vmax.f32 %v10851_v53, 0.0  ;;  %v11027_v61 = vld [vmem:[#allocation3 + $0x1c0] sm:$0xff]  }
 0x774   : > { %4935 = vst.msk [vmem:[#allocation2 + $0x10] sm:$0xff] %vm4418_vm6, %v4927_v55  ;;  %v4876_v14 = vrot.slane %v4857_v21, 7  ;;  %v4908_v20 = vrot.slane %v4857_v21, 1  ;;  %v4882_v25 = vrot.slane %v4860_v62, 7  ;;  %v4914_v43 = vrot.slane %v4860_v62, 1  ;;  %v11028_v27 = vld [vmem:[#allocation3 + $0x240] sm:$0xff]  }
 0x775   : > { %v4878_v7 = vrot.slane %v4858_v31, 7  ;;  %v4910_v4 = vrot.slane %v4858_v31, 1 }
 0x776   : > { %v4877_v50 = vsel %vm660_vm2, %v4874_v41, %v4876_v14  ;;  %v4909_v28 = vsel %vm953_vm3, %v4906_v54, %v4908_v20  ;;  %v4883_v38 = vsel %vm660_vm2, %v4880_v12, %v4882_v25  ;;  %v4915_v58 = vsel %vm953_vm3, %v4912_v56, %v4914_v43 }
 0x777   : > { %v4897_v36 = vmax.f32 %v4877_v50, %v4857_v21  ;;  %v4928_v39 = vmax.f32 %v4896_v19, %v4909_v28  ;;  %v4900_v60 = vmax.f32 %v4883_v38, %v4860_v62  ;;  %v4924_v26 = vsel %vm953_vm3, %v4914_v43, 0.0  ;;  %v11023_v19 = vld [vmem:[#allocation3 + $0x1b0] sm:$0xff]  }
 0x778   : > { %v4879_v6 = vsel %vm660_vm2, %v4876_v14, %v4878_v7  ;;  %v4881_v0 = vsel %vm660_vm2, %v4878_v7, %v4880_v12  ;;  %v4911_v52 = vsel %vm953_vm3, %v4908_v20, %v4910_v4  ;;  %v4913_v3 = vsel %vm953_vm3, %v4910_v4, %v4912_v56 }
 0x779   : > { %4936 = vst.msk [vmem:[#allocation2 + $0x18] sm:$0xff] %vm4418_vm6, %v4928_v39  ;;  %v4932_v33 = vmax.f32 %v4900_v60, %v4924_v26  ;;  %v4898_v49 = vmax.f32 %v4879_v6, %v4858_v31  ;;  %v4899_v51 = vmax.f32 %v4881_v0, %v4859_v32  ;;  %v4929_v46 = vmax.f32 %v4897_v36, %v4911_v52  ;;  %v8833_v26 = vld [vmem:[#allocation5 + $0x48] ss:$0 sm:$0xff] }
 0x77a   : > { %v4941_v47 = vld [vmem:[#allocation2] ss:$2 sm:$0xff] }
 0x77b   : > { %4940 = vst.msk [vmem:[#allocation2 + $0x38] sm:$0xff] %vm4418_vm6, %v4932_v33  ;;  %v4930_v18 = vmax.f32 %v4898_v49, %v4913_v3  ;;  %v4931_v2 = vmax.f32 %v4899_v51, %v4915_v58  ;;  %4937 = vst.msk [vmem:[#allocation2 + $0x20] sm:$0xff] %vm4418_vm6, %v4929_v46 }
 0x77d   : > { %4938 = vst.msk [vmem:[#allocation2 + $0x28] sm:$0xff] %vm4418_vm6, %v4930_v18  ;;  %4939 = vst.msk [vmem:[#allocation2 + $0x30] sm:$0xff] %vm4418_vm6, %v4931_v2 }
 0x780   : > { %v4942_v37 = vld [vmem:[#allocation2 + $0x10] ss:$2 sm:$0xff] }
 0x781   : > { %v13022_v57 = vpack.c.bf16 %v4942_v37, %v4941_v47 }
 0x783   : > { %10046 = vmatprep.mubr.msk.bf16.mxu0 %vm4418_vm6, %v13022_v57  ;;  %10070 = vmatprep.mubr.msk.bf16.mxu1 %vm4418_vm6, %v13022_v57 }
 0x784   : > { %v4943_v41 = vld [vmem:[#allocation2 + $0x20] ss:$2 sm:$0xff]  ;;  %v4944_v54 = vld [vmem:[#allocation2 + $0x30] ss:$2 sm:$0xff] }
 0x785   : > { %v13028_v59 = vpack.c.bf16 %v4944_v54, %v4943_v41 }
 0x787   : > { %10047 = vmatmul.mubr.msk.bf16.vlgmr.msra.gmra.mrb[196].mxu0 %vm4418_vm6, %v13028_v59  ;;  %10071 = vmatmul.mubr.msk.bf16.vlgmr.msra.gmra.mrb[140].mxu1 %vm4418_vm6, %v13028_v59 }
 0x788   : > { %10051 = vmatpush3.bf16.msra.mxu0 %v12976_v22  ;;  %10058 = vmatprep.mubr.msk.bf16.mxu0 %vm4418_vm6, %v13022_v57  ;;  %v11015_v22 = vld [vmem:[#allocation3 + $0x190] sm:$0xff]  }
 0x789   : > { %10052 = vmatprep.subr.bf16.mxu0 %v11010_v34  ;;  %10095 = vmatpush3.bf16.msra.mxu1 %v12979_v1  ;;  %v11018_v1 = vld [vmem:[#allocation3 + $0x218] sm:$0xff]  }
 0x78a   : > { %10096 = vmatprep.subr.bf16.mxu1 %v11016_v23 }
 0x78c   : > { %10053 = vmatpush3.bf16.msra.mxu0 %v11010_v34 }
 0x78d   : > { %10054 = vmatprep.subr.bf16.mxu0 %v11011_v24  ;;  %10097 = vmatpush3.bf16.msra.mxu1 %v11016_v23  ;;  %v11031_v23 = vld [vmem:[#allocation3 + $0x1d8] sm:$0xff]  }
 0x78e   : > { %10098 = vmatprep.subr.bf16.mxu1 %v11018_v1 }
 0x790   : > { %10055 = vmatpush3.bf16.msra.mxu0 %v11011_v24 }
 0x791   : > { %10056 = vmatprep.subr.bf16.mxu0 %v11012_v8  ;;  %10099 = vmatpush3.bf16.msra.mxu1 %v11018_v1  ;;  %v11033_v1 = vld [vmem:[#allocation3 + $0x1e8] sm:$0xff]  }
 0x792   : > { %10100 = vmatprep.subr.bf16.mxu1 %v11020_v45 }
 0x794   : > { %10057 = vmatpush3.bf16.msra.mxu0 %v11012_v8 }
 0x795   : > { %10074 = vmatprep.subr.bf16.mxu0 %v11013_v15  ;;  %10101 = vmatpush3.bf16.msra.mxu1 %v11020_v45  ;;  %v11035_v45 = vld [vmem:[#allocation3 + $0x1f8] sm:$0xff]  }
 0x796   : > { %10102 = vmatprep.subr.bf16.mxu1 %v11022_v35 }
 0x797   : > { %10059 = vmatmul.mubr.msk.bf16.vlgmr.msra.gmra.mrb[200].mxu0 %vm4418_vm6, %v13028_v59 }
 0x798   : > { %10075 = vmatpush3.bf16.msra.mxu0 %v11013_v15 }
 0x799   : > { %10076 = vmatprep.subr.bf16.mxu0 %v11015_v22  ;;  %10103 = vmatpush3.bf16.msra.mxu1 %v11022_v35  ;;  %v11037_v35 = vld [vmem:[#allocation3 + $0x248] sm:$0xff]  }
 0x79a   : > { %10104 = vmatprep.subr.bf16.mxu1 %v11024_v13 }
 0x79c   : > { %10077 = vmatpush3.bf16.msra.mxu0 %v11015_v22  ;;  %v11030_v22 = vld [vmem:[#allocation3 + $0x1d0] sm:$0xff]  }
 0x79d   : > { %10078 = vmatprep.subr.bf16.mxu0 %v11017_v42  ;;  %10105 = vmatpush3.bf16.msra.mxu1 %v11024_v13  ;;  %v11039_v13 = vld [vmem:[#allocation3 + $0x258] sm:$0xff]  }
 0x79e   : > { %10106 = vmatprep.subr.bf16.mxu1 %v11026_v48 }
 0x7a0   : > { %10079 = vmatpush3.bf16.msra.mxu0 %v11017_v42  ;;  %v11032_v42 = vld [vmem:[#allocation3 + $0x1e0] sm:$0xff]  }
 0x7a1   : > { %10080 = vmatprep.subr.bf16.mxu0 %v11019_v44  ;;  %10107 = vmatpush3.bf16.msra.mxu1 %v11026_v48  ;;  %v11041_v48 = vld [vmem:[#allocation3 + $0x268] sm:$0xff]  }
 0x7a2   : > { %10108 = vmatprep.subr.bf16.mxu1 %v11028_v27 }
 0x7a4   : > { %10081 = vmatpush3.bf16.msra.mxu0 %v11019_v44  ;;  %v11034_v44 = vld [vmem:[#allocation3 + $0x1f0] sm:$0xff]  }
 0x7a5   : > { %10082 = vmatprep.subr.bf16.mxu0 %v11021_v30  ;;  %10109 = vmatpush3.bf16.msra.mxu1 %v11028_v27  ;;  %v11311_v27 = vmov 0.0  }
 0x7a6   : > { %10146 = vmatprep.subr.bf16.mxu1 %v11311_v27 }
 0x7a8   : > { %10083 = vmatpush3.bf16.msra.mxu0 %v11021_v30  ;;  %v11036_v30 = vld [vmem:[#allocation3 + $0x200] sm:$0xff]  }
 0x7a9   : > { %10084 = vmatprep.subr.bf16.mxu0 %v11023_v19 }
 0x7ac   : > { %10085 = vmatpush3.bf16.msra.mxu0 %v11023_v19  ;;  %v11038_v19 = vld [vmem:[#allocation3 + $0x250] sm:$0xff]  }
 0x7ad   : > { %10086 = vmatprep.subr.bf16.mxu0 %v11025_v11 }
 0x7b0   : > { %10087 = vmatpush3.bf16.msra.mxu0 %v11025_v11  ;;  %v11040_v11 = vld [vmem:[#allocation3 + $0x260] sm:$0xff]  }
 0x7b1   : > { %10088 = vmatprep.subr.bf16.mxu0 %v11027_v61 }
 0x7b4   : > { %10089 = vmatpush3.bf16.msra.mxu0 %v11027_v61  ;;  %v11042_v61 = vld [vmem:[#allocation3 + $0x2a8] sm:$0xff]  }
 0x7b5   : > { %10114 = vmatprep.subr.bf16.mxu0 %v11029_v29 }
 0x85a   : > { %v10048_v17 = vpop.f32.mrb[196].mxu0  ;;  %v10072_v16 = vpop.f32.mrb[140].mxu1 }
 0x85b   : > { %v5035_v5 = vpop.f32.mrb[197].mxu0  ;;  %v5198_v32 = vpop.f32.mrb[141].mxu1  ;;  %v5131_v10 = vrot.slane %v10048_v17, 7  ;;  %v11046_v17 = vld [vmem:[#allocation3 + $0x2b8] sm:$0xff]  }
 0x85c   : > { %v5128_v63 = vrot.slane %v5035_v5, 7  ;;  %v10049_v9 = vpop.f32.mrb[198].mxu0  ;;  %v10073_v40 = vpop.f32.mrb[142].mxu1  ;;  %v11048_v5 = vld [vmem:[#allocation3 + $0x2c0] sm:$0xff]  }
 0x85d   : > { %v5133_v55 = vrot.slane %v10049_v9, 7  ;;  %v5038_v53 = vpop.f32.mrb[199].mxu0  ;;  %v5201_v21 = vpop.f32.mrb[143].mxu1  ;;  %v11051_v9 = vld [vmem:[#allocation3 + $0x290] sm:$0xff]  }
 0x85e   : > { %v5139_v62 = vsel %vm660_vm2, 0.0, %v5128_v63  ;;  %v5129_v12 = vrot.slane %v5038_v53, 7  ;;  %v11055_v53 = vld [vmem:[#allocation3 + $0x2a0] sm:$0xff]  }
 0x85f   : > { %v5199_v56 = vadd.f32 %v5198_v32, %v5139_v62  ;;  %v5134_v31 = vsel %vm660_vm2, %v5131_v10, %v5133_v55  ;;  %v11049_v32 = vld [vmem:[#allocation3 + $0x288] sm:$0xff]   ;;  %v11054_v55 = vld [vmem:[#allocation3 + $0x2d8] sm:$0xff]  }
 0x860   : > { %v5210_v14 = vadd.f32 %v10073_v40, %v5134_v31  ;;  %v5132_v20 = vsel %vm660_vm2, %v5129_v12, %v5131_v10  ;;  %v5130_v25 = vsel %vm660_vm2, %v5128_v63, %v5129_v12  ;;  %v11050_v63 = vld [vmem:[#allocation3 + $0x2c8] sm:$0xff]   ;;  %v11052_v40 = vld [vmem:[#allocation3 + $0x2d0] sm:$0xff]   ;;  %v11053_v10 = vld [vmem:[#allocation3 + $0x298] sm:$0xff]  }
 0x861   : > { %v5207_v43 = vadd.f32 %v10072_v16, %v5132_v20  ;;  %v5202_v7 = vadd.f32 %v5201_v21, %v5130_v25  ;;  %v11047_v16 = vld [vmem:[#allocation3 + $0x280] sm:$0xff]  }
 0x862   : > { %v11056_v21 = vld [vmem:[#allocation3 + $0x2e0] sm:$0xff]  }
 0x86a   : > { %v10060_v4 = vpop.f32.mrb[200].mxu0 }
 0x86b   : > { %v5108_v50 = vpop.f32.mrb[201].mxu0  ;;  %v5220_v38 = vrot.slane %v10060_v4, 1 }
 0x86c   : > { %v10061_v28 = vpop.f32.mrb[202].mxu0  ;;  %v5217_v39 = vrot.slane %v5108_v50, 1 }
 0x86d   : > { %v5222_v58 = vrot.slane %v10061_v28, 1  ;;  %v5111_v36 = vpop.f32.mrb[203].mxu0 }
 0x86e   : > { %v5218_v60 = vrot.slane %v5111_v36, 1 }
 0x86f   : > { %v5223_v6 = vsel %vm953_vm3, %v5220_v38, %v5222_v58  ;;  %v5228_v0 = vsel %vm953_vm3, %v5222_v58, 0.0 }
 0x870   : > { %v5231_v52 = vadd.f32 %v5223_v6, %v5207_v43  ;;  %v5232_v3 = vadd.f32 %v5228_v0, %v5210_v14  ;;  %v5219_v33 = vsel %vm953_vm3, %v5217_v39, %v5218_v60  ;;  %v5221_v49 = vsel %vm953_vm3, %v5218_v60, %v5220_v38  ;;  %v8858_v14 = vld [vmem:[#allocation5 + $0x50] ss:$0 sm:$0xff] }
 0x871   : > { %v5229_v51 = vadd.f32 %v5219_v33, %v5199_v56  ;;  %v5230_v46 = vadd.f32 %v5221_v49, %v5202_v7 }
 0x872   : > { %v5239_v18 = vadd.f32 %v8833_v26, %v5231_v52  ;;  %v5240_v2 = vadd.f32 %v8833_v26, %v5232_v3 }
 0x873   : > { %v5237_v47 = vadd.f32 %v8833_v26, %v5229_v51  ;;  %v5238_v37 = vadd.f32 %v8833_v26, %v5230_v46 }
 0x874   : > { %v5243_v41 = vmax.f32 %v5239_v18, 0.0  ;;  %v5244_v54 = vmax.f32 %v5240_v2, 0.0 }
 0x875   : > { %v5241_v34 = vmax.f32 %v5237_v47, 0.0  ;;  %v5242_v24 = vmax.f32 %v5238_v37, 0.0 }
 0x876   : > { %v5246_v8 = vpack.c.bf16 %v5244_v54, %v5243_v41 }
 0x877   : > { %v5245_v15 = vpack.c.bf16 %v5242_v24, %v5241_v34  ;;  %v8859_v24 = vld [vmem:[#allocation5 + $0x58] ss:$0 sm:$0xff] }
 0x879   : > { %10090 = vmatprep.mubr.bf16.mxu0 %v5245_v15  ;;  %10110 = vmatprep.mubr.bf16.mxu1 %v5245_v15 }
 0x87a   : > { %10091 = vmatmul.mubr.bf16.vlgmr.msra.gmra.mrb[204].mxu0 %v5246_v8  ;;  %10111 = vmatmul.mubr.bf16.vlgmr.msra.gmra.mrb[144].mxu1 %v5246_v8 }
 0x87b   : > { %10115 = vmatpush3.bf16.msra.mxu0 %v11029_v29  ;;  %10130 = vmatprep.mubr.bf16.mxu0 %v5245_v15  ;;  %v11044_v29 = vld [vmem:[#allocation3 + $0x2b0] sm:$0xff]  }
 0x87c   : > { %10116 = vmatprep.subr.bf16.mxu0 %v11030_v22  ;;  %10147 = vmatpush3.bf16.msra.mxu1 %v11041_v48 }
 0x87d   : > { %10148 = vmatprep.subr.bf16.mxu1 %v11311_v27  ;;  %10162 = vmatprep.mubr.msk.bf16.mxu1 %vm11312_vm7, %v11311_v27 }
 0x87f   : > { %10117 = vmatpush3.bf16.msra.mxu0 %v11030_v22 }
 0x880   : > { %10118 = vmatprep.subr.bf16.mxu0 %v11031_v23 }
 0x883   : > { %10119 = vmatpush3.bf16.msra.mxu0 %v11031_v23 }
 0x884   : > { %10120 = vmatprep.subr.bf16.mxu0 %v11032_v42 }
 0x887   : > { %10121 = vmatpush3.bf16.msra.mxu0 %v11032_v42 }
 0x888   : > { %10122 = vmatprep.subr.bf16.mxu0 %v11033_v1 }
 0x88b   : > { %10123 = vmatpush3.bf16.msra.mxu0 %v11033_v1 }
 0x88c   : > { %10124 = vmatprep.subr.bf16.mxu0 %v11034_v44 }
 0x88f   : > { %10125 = vmatpush3.bf16.msra.mxu0 %v11034_v44 }
 0x890   : > { %10126 = vmatprep.subr.bf16.mxu0 %v11035_v45 }
 0x893   : > { %10127 = vmatpush3.bf16.msra.mxu0 %v11035_v45 }
 0x894   : > { %10128 = vmatprep.subr.bf16.mxu0 %v11036_v30 }
 0x897   : > { %10129 = vmatpush3.bf16.msra.mxu0 %v11036_v30 }
 0x898   : > { %10134 = vmatprep.subr.bf16.mxu0 %v11037_v35 }
 0x89a   : > { %10131 = vmatmul.mubr.bf16.vlgmr.msra.gmra.mrb[208].mxu0 %v5246_v8 }
 0x89b   : > { %10135 = vmatpush3.bf16.msra.mxu0 %v11037_v35  ;;  %10142 = vmatprep.mubr.msk.bf16.mxu0 %vm4418_vm6, %v13022_v57  ;;  %v11043_v57 = vld [vmem:[#allocation3 + $0x270] sm:$0xff]  }
 0x89c   : > { %10136 = vmatprep.subr.bf16.mxu0 %v11038_v19  ;;  %10149 = vmatpush3.bf16.msra.mxu1 %v11043_v57 }
 0x89d   : > { %10150 = vmatprep.subr.bf16.mxu1 %v11311_v27 }
 0x89f   : > { %10137 = vmatpush3.bf16.msra.mxu0 %v11038_v19 }
 0x8a0   : > { %10138 = vmatprep.subr.bf16.mxu0 %v11039_v13 }
 0x8a3   : > { %10139 = vmatpush3.bf16.msra.mxu0 %v11039_v13 }
 0x8a4   : > { %10140 = vmatprep.subr.bf16.mxu0 %v11040_v11 }
 0x8a7   : > { %10141 = vmatpush3.bf16.msra.mxu0 %v11040_v11 }
 0x8a8   : > { %10186 = vmatprep.subr.bf16.mxu0 %v11311_v27 }
 0x8aa   : > { %10143 = vmatmul.mubr.msk.bf16.vlgmr.msra.gmra.mrb[208].mxu0 %vm4418_vm6, %v13028_v59  ;;  %v11045_v59 = vld [vmem:[#allocation3 + $0x278] sm:$0xff]  }
 0x8ab   : > { %10187 = vmatpush3.bf16.msra.mxu0 %v11042_v61  ;;  %10151 = vmatpush3.bf16.msra.mxu1 %v11045_v59 }
 0x8ac   : > { %10188 = vmatprep.subr.bf16.mxu0 %v11311_v27  ;;  %10152 = vmatprep.subr.bf16.mxu1 %v11311_v27 }
 0x8ad   : > { %10202 = vmatprep.mubr.msk.bf16.mxu0 %vm11312_vm7, %v11311_v27 }
 0x8af   : > { %10189 = vmatpush3.bf16.msra.mxu0 %v11044_v29  ;;  %10153 = vmatpush3.bf16.msra.mxu1 %v11047_v16 }
 0x8b0   : > { %10190 = vmatprep.subr.bf16.mxu0 %v11311_v27  ;;  %10154 = vmatprep.subr.bf16.mxu1 %v11311_v27 }
 0x8b3   : > { %10191 = vmatpush3.bf16.msra.mxu0 %v11046_v17  ;;  %10155 = vmatpush3.bf16.msra.mxu1 %v11049_v32 }
 0x8b4   : > { %10192 = vmatprep.subr.bf16.mxu0 %v11311_v27  ;;  %10156 = vmatprep.subr.bf16.mxu1 %v11311_v27 }
 0x8b7   : > { %10193 = vmatpush3.bf16.msra.mxu0 %v11048_v5  ;;  %10157 = vmatpush3.bf16.msra.mxu1 %v11051_v9 }
 0x8b8   : > { %10194 = vmatprep.subr.bf16.mxu0 %v11311_v27  ;;  %10158 = vmatprep.subr.bf16.mxu1 %v11311_v27 }
 0x8bb   : > { %10195 = vmatpush3.bf16.msra.mxu0 %v11050_v63  ;;  %10159 = vmatpush3.bf16.msra.mxu1 %v11053_v10 }
 0x8bc   : > { %10196 = vmatprep.subr.bf16.mxu0 %v11311_v27  ;;  %10160 = vmatprep.subr.bf16.mxu1 %v11311_v27 }
 0x8bf   : > { %10197 = vmatpush3.bf16.msra.mxu0 %v11052_v40  ;;  %10161 = vmatpush3.bf16.msra.mxu1 %v11055_v53 }
 0x8c0   : > { %10198 = vmatprep.subr.bf16.mxu0 %v11311_v27  ;;  %10166 = vmatprep.subr.bf16.mxu1 %v11311_v27 }
 0x8c3   : > { %10199 = vmatpush3.bf16.msra.mxu0 %v11054_v55 }
 0x8c4   : > { %10200 = vmatprep.subr.bf16.mxu0 %v11311_v27 }
 0x8c7   : > { %10201 = vmatpush3.bf16.msra.mxu0 %v11056_v21 }
 0x8c8   : > { %10226 = vmatprep.subr.bf16.mxu0 %v11311_v27 }
 0x94d   : > { %v10092_v62 = vpop.f32.mrb[204].mxu0  ;;  %v10112_v12 = vpop.f32.mrb[144].mxu1 }
 0x94e   : > { %v5377_v56 = vpop.f32.mrb[205].mxu0  ;;  %v5474_v31 = vpop.f32.mrb[145].mxu1  ;;  %v5497_v7 = vrot.slane %v10092_v62, 7  ;;  %v5610_v4 = vrot.slane %v10112_v12, 1 }
 0x94f   : > { %v5494_v20 = vrot.slane %v5377_v56, 7  ;;  %v10093_v25 = vpop.f32.mrb[206].mxu0  ;;  %v10113_v43 = vpop.f32.mrb[146].mxu1  ;;  %v5607_v6 = vrot.slane %v5474_v31, 1 }
 0x950   : > { %v5499_v50 = vrot.slane %v10093_v25, 7  ;;  %v5612_v28 = vrot.slane %v10113_v43, 1  ;;  %v5380_v38 = vpop.f32.mrb[207].mxu0  ;;  %v5477_v58 = vpop.f32.mrb[147].mxu1 }
 0x951   : > { %v5505_v36 = vsel %vm660_vm2, 0.0, %v5494_v20  ;;  %v5495_v39 = vrot.slane %v5380_v38, 7  ;;  %v5608_v60 = vrot.slane %v5477_v58, 1  ;;  %v11057_v58 = vld [vmem:[#allocation3 + $0x2e8] sm:$0xff]  }
 0x952   : > { %v10856_v26 = vadd.f32 %v8858_v14, %v5505_v36  ;;  %v5500_v0 = vsel %vm660_vm2, %v5497_v7, %v5499_v50  ;;  %v5613_v52 = vsel %vm953_vm3, %v5610_v4, %v5612_v28  ;;  %v5618_v46 = vsel %vm953_vm3, %v5612_v28, 0.0 }
 0x953   : > { %v10860_v3 = vadd.f32 %v8858_v14, %v5500_v0  ;;  %v5496_v33 = vsel %vm660_vm2, %v5494_v20, %v5495_v39  ;;  %v5498_v49 = vsel %vm660_vm2, %v5495_v39, %v5497_v7  ;;  %v5611_v51 = vsel %vm953_vm3, %v5608_v60, %v5610_v4  ;;  %v11058_v39 = vld [vmem:[#allocation3 + $0x2f0] sm:$0xff]  }
 0x954   : > { %v10864_v18 = vadd.f32 %v8858_v14, %v5496_v33  ;;  %v10852_v2 = vadd.f32 %v8858_v14, %v5498_v49  ;;  %v5609_v47 = vsel %vm953_vm3, %v5607_v6, %v5608_v60  ;;  %v11059_v60 = vld [vmem:[#allocation3 + $0x2f8] sm:$0xff]   ;;  %v11061_v6 = vld [vmem:[#allocation3 + $0x308] sm:$0xff]   ;;  %v11062_v0 = vld [vmem:[#allocation3 + $0x310] sm:$0xff]  }
 0x955   : > { %v10861_v37 = vadd.f32 %v10860_v3, %v5618_v46  ;;  %v10857_v41 = vadd.f32 %v10856_v26, %v5609_v47  ;;  %v11060_v26 = vld [vmem:[#allocation3 + $0x300] sm:$0xff]   ;;  %v11065_v33 = vld [vmem:[#allocation3 + $0x328] sm:$0xff]   ;;  %v11068_v46 = vld [vmem:[#allocation3 + $0x3b0] sm:$0xff]  }
 0x956   : > { %v10853_v54 = vadd.f32 %v10852_v2, %v5613_v52  ;;  %v10865_v34 = vadd.f32 %v10864_v18, %v5611_v51  ;;  %v11063_v52 = vld [vmem:[#allocation3 + $0x318] sm:$0xff]   ;;  %v11064_v3 = vld [vmem:[#allocation3 + $0x320] sm:$0xff]   ;;  %v11066_v49 = vld [vmem:[#allocation3 + $0x3a8] sm:$0xff]  }
 0x957   : > { %v10862_v23 = vadd.f32 %v10861_v37, %v8859_v24  ;;  %v11067_v51 = vld [vmem:[#allocation3 + $0x330] sm:$0xff]   ;;  %v11069_v18 = vld [vmem:[#allocation3 + $0x338] sm:$0xff]   ;;  %v11071_v47 = vld [vmem:[#allocation3 + $0x340] sm:$0xff]  }
 0x958   : > { %v10866_v44 = vadd.f32 %v10865_v34, %v8859_v24  ;;  %v11070_v2 = vld [vmem:[#allocation3 + $0x3b8] sm:$0xff]   ;;  %v11072_v37 = vld [vmem:[#allocation3 + $0x3c0] sm:$0xff]   ;;  %v11075_v34 = vld [vmem:[#allocation3 + $0x350] sm:$0xff]  }
 0x97d   : > { %v10144_v8 = vpop.f32.mrb[208].mxu0 }
 0x97e   : > { %v10854_v15 = vadd.f32 %v10853_v54, %v10144_v8  ;;  %v5702_v22 = vpop.f32.mrb[209].mxu0  ;;  %v11074_v54 = vld [vmem:[#allocation3 + $0x3c8] sm:$0xff]   ;;  %v11077_v8 = vld [vmem:[#allocation3 + $0x358] sm:$0xff]  }
 0x97f   : > { %v10858_v42 = vadd.f32 %v10857_v41, %v5702_v22  ;;  %v10145_v1 = vpop.f32.mrb[210].mxu0  ;;  %v11073_v41 = vld [vmem:[#allocation3 + $0x348] sm:$0xff]   ;;  %v11079_v22 = vld [vmem:[#allocation3 + $0x360] sm:$0xff]  }
 0x980   : > { %v10855_v45 = vadd.f32 %v10854_v15, %v8859_v24  ;;  %v10863_v30 = vadd.f32 %v10862_v23, %v10145_v1  ;;  %v5705_v35 = vpop.f32.mrb[211].mxu0  ;;  %v11078_v15 = vld [vmem:[#allocation3 + $0x3d8] sm:$0xff]   ;;  %v11080_v23 = vld [vmem:[#allocation3 + $0x3e0] sm:$0xff]  }
 0x981   : > { %v10859_v19 = vadd.f32 %v10858_v42, %v8859_v24  ;;  %v10867_v13 = vadd.f32 %v10866_v44, %v5705_v35  ;;  %v11076_v24 = vld [vmem:[#allocation3 + $0x3d0] sm:$0xff]  }
 0x982   : > { %v5723_v11 = vmax.f32 %v10855_v45, 0.0  ;;  %v5724_v48 = vmax.f32 %v10863_v30, 0.0 }
 0x983   : > { %v5721_v61 = vmax.f32 %v10859_v19, 0.0  ;;  %v5722_v57 = vmax.f32 %v10867_v13, 0.0 }
 0x984   : > { %v5732_v29 = vrot.slane %v5723_v11, 7  ;;  %v5748_v59 = vrot.slane %v5723_v11, 1  ;;  %v5734_v17 = vrot.slane %v5724_v48, 7  ;;  %v5750_v16 = vrot.slane %v5724_v48, 1 }
 0x985   : > { %v5729_v5 = vrot.slane %v5721_v61, 7  ;;  %v5745_v32 = vrot.slane %v5721_v61, 1  ;;  %v5730_v63 = vrot.slane %v5722_v57, 7  ;;  %v5746_v9 = vrot.slane %v5722_v57, 1 }
 0x986   : > { %v5735_v40 = vsel %vm660_vm2, %v5732_v29, %v5734_v17  ;;  %v5751_v10 = vsel %vm953_vm3, %v5748_v59, %v5750_v16  ;;  %v5756_v55 = vsel %vm953_vm3, %v5750_v16, 0.0 }
 0x987   : > { %v5740_v53 = vsel %vm660_vm2, 0.0, %v5729_v5  ;;  %v5744_v21 = vmax.f32 %v5735_v40, %v5724_v48  ;;  %v5731_v62 = vsel %vm660_vm2, %v5729_v5, %v5730_v63  ;;  %v5733_v12 = vsel %vm660_vm2, %v5730_v63, %v5732_v29  ;;  %v8890_v40 = vld [vmem:[#allocation5 + $0x60] ss:$0 sm:$0xff] }
 0x988   : > { %v5741_v56 = vmax.f32 %v5740_v53, %v5721_v61  ;;  %v5742_v31 = vmax.f32 %v5731_v62, %v5722_v57  ;;  %v5743_v14 = vmax.f32 %v5733_v12, %v5723_v11  ;;  %v5747_v20 = vsel %vm953_vm3, %v5745_v32, %v5746_v9 }
 0x989   : > { %v5760_v25 = vmax.f32 %v5744_v21, %v5756_v55  ;;  %v5749_v43 = vsel %vm953_vm3, %v5746_v9, %v5748_v59 }
 0x98a   : > { %v5757_v7 = vmax.f32 %v5741_v56, %v5747_v20  ;;  %v5758_v4 = vmax.f32 %v5742_v31, %v5749_v43  ;;  %v5759_v50 = vmax.f32 %v5743_v14, %v5751_v10  ;;  %v11081_v14 = vld [vmem:[#allocation3 + $0x368] sm:$0xff]   ;;  %v11083_v43 = vld [vmem:[#allocation3 + $0x378] sm:$0xff]  }
 0x98b   : > { %5764 = vst [vmem:[#allocation2 + $0x18] sm:$0xff] %v5760_v25  ;;  %v11082_v25 = vld [vmem:[#allocation3 + $0x370] sm:$0xff]  }
 0x98c   : > { %5761 = vst [vmem:[#allocation2] sm:$0xff] %v5757_v7  ;;  %5762 = vst [vmem:[#allocation2 + $0x8] sm:$0xff] %v5758_v4  ;;  %v11084_v7 = vld [vmem:[#allocation3 + $0x380] sm:$0xff]   ;;  %v11085_v4 = vld [vmem:[#allocation3 + $0x388] sm:$0xff]  }
 0x98d   : > { %5763 = vst [vmem:[#allocation2 + $0x10] sm:$0xff] %v5759_v50  ;;  %v11086_v50 = vld [vmem:[#allocation3 + $0x390] sm:$0xff]  }
 0x993   : > { %v13090_v28 = vld [vmem:[#allocation2] ss:$2 sm:$0xff] }
 0x994   : > { %v13092_v38 = vld [vmem:[#allocation2 + $0x10] ss:$2 sm:$0xff] }
 0x995   : > { %v5767_v36 = vpack.c.bf16 %v13092_v38, %v13090_v28 }
 0x997   : > { %10163 = vmatmul.mubr.bf16.vlgmr.msra.gmra.mrb[148].mxu1 %v5767_v36  ;;  %10203 = vmatmul.mubr.bf16.vlgmr.msra.gmra.mrb[212].mxu0 %v5767_v36 }
 0x998   : > { %10167 = vmatpush3.bf16.msra.mxu1 %v11057_v58  ;;  %10182 = vmatprep.mubr.msk.bf16.mxu1 %vm11312_vm7, %v11311_v27  ;;  %v11087_v58 = vld [vmem:[#allocation3 + $0x398] sm:$0xff]  }
 0x999   : > { %10168 = vmatprep.subr.bf16.mxu1 %v11311_v27  ;;  %10242 = vmatprep.mubr.msk.bf16.mxu0 %vm11312_vm7, %v11311_v27 }
 0x99a   : > { %10227 = vmatpush3.bf16.msra.mxu0 %v11066_v49  ;;  %v11097_v49 = vld [vmem:[#allocation3 + $0x408] sm:$0xff]  }
 0x99b   : > { %10228 = vmatprep.subr.bf16.mxu0 %v11311_v27 }
 0x99c   : > { %10169 = vmatpush3.bf16.msra.mxu1 %v11058_v39  ;;  %v11089_v39 = vld [vmem:[#allocation3 + $0x3e8] sm:$0xff]  }
 0x99d   : > { %10170 = vmatprep.subr.bf16.mxu1 %v11311_v27 }
 0x99e   : > { %10229 = vmatpush3.bf16.msra.mxu0 %v11068_v46  ;;  %v11099_v46 = vld [vmem:[#allocation3 + $0x410] sm:$0xff]  }
 0x99f   : > { %10230 = vmatprep.subr.bf16.mxu0 %v11311_v27 }
 0x9a0   : > { %10171 = vmatpush3.bf16.msra.mxu1 %v11059_v60  ;;  %v11090_v60 = vld [vmem:[#allocation3 + $0x468] sm:$0xff]  }
 0x9a1   : > { %10172 = vmatprep.subr.bf16.mxu1 %v11311_v27 }
 0x9a2   : > { %10231 = vmatpush3.bf16.msra.mxu0 %v11070_v2  ;;  %v11101_v2 = vld [vmem:[#allocation3 + $0x418] sm:$0xff]  }
 0x9a3   : > { %10232 = vmatprep.subr.bf16.mxu0 %v11311_v27 }
 0x9a4   : > { %10173 = vmatpush3.bf16.msra.mxu1 %v11060_v26  ;;  %v11091_v26 = vld [vmem:[#allocation3 + $0x3f0] sm:$0xff]  }
 0x9a5   : > { %10174 = vmatprep.subr.bf16.mxu1 %v11311_v27 }
 0x9a6   : > { %10233 = vmatpush3.bf16.msra.mxu0 %v11072_v37  ;;  %v11103_v37 = vld [vmem:[#allocation3 + $0x420] sm:$0xff]  }
 0x9a7   : > { %10234 = vmatprep.subr.bf16.mxu0 %v11311_v27 }
 0x9a8   : > { %10175 = vmatpush3.bf16.msra.mxu1 %v11061_v6  ;;  %v11092_v6 = vld [vmem:[#allocation3 + $0x470] sm:$0xff]  }
 0x9a9   : > { %10176 = vmatprep.subr.bf16.mxu1 %v11311_v27 }
 0x9aa   : > { %10235 = vmatpush3.bf16.msra.mxu0 %v11074_v54 }
 0x9ab   : > { %10236 = vmatprep.subr.bf16.mxu0 %v11311_v27 }
 0x9ac   : > { %10177 = vmatpush3.bf16.msra.mxu1 %v11062_v0  ;;  %v11093_v0 = vld [vmem:[#allocation3 + $0x3f8] sm:$0xff]  }
 0x9ad   : > { %10178 = vmatprep.subr.bf16.mxu1 %v11311_v27 }
 0x9ae   : > { %10237 = vmatpush3.bf16.msra.mxu0 %v11076_v24 }
 0x9af   : > { %10238 = vmatprep.subr.bf16.mxu0 %v11311_v27 }
 0x9b0   : > { %10179 = vmatpush3.bf16.msra.mxu1 %v11063_v52  ;;  %v11094_v52 = vld [vmem:[#allocation3 + $0x478] sm:$0xff]  }
 0x9b1   : > { %10180 = vmatprep.subr.bf16.mxu1 %v11311_v27 }
 0x9b2   : > { %10239 = vmatpush3.bf16.msra.mxu0 %v11078_v15 }
 0x9b3   : > { %10240 = vmatprep.subr.bf16.mxu0 %v11311_v27 }
 0x9b4   : > { %10181 = vmatpush3.bf16.msra.mxu1 %v11064_v3  ;;  %v11095_v3 = vld [vmem:[#allocation3 + $0x400] sm:$0xff]  }
 0x9b5   : > { %10206 = vmatprep.subr.bf16.mxu1 %v11311_v27 }
 0x9b6   : > { %10241 = vmatpush3.bf16.msra.mxu0 %v11080_v23 }
 0x9b7   : > { %10183 = vmatmul.mubr.bf16.vlgmr.msra.gmra.mrb[152].mxu1 %v5767_v36  ;;  %10266 = vmatprep.subr.bf16.mxu0 %v11311_v27  ;;  %v11088_v36 = vld [vmem:[#allocation3 + $0x3a0] sm:$0xff]  }
 0x9b8   : > { %10222 = vmatprep.mubr.msk.bf16.mxu1 %vm11312_vm7, %v11311_v27  ;;  %10207 = vmatpush3.bf16.msra.mxu1 %v11065_v33  ;;  %v11096_v33 = vld [vmem:[#allocation3 + $0x480] sm:$0xff]  }
 0x9b9   : > { %10208 = vmatprep.subr.bf16.mxu1 %v11311_v27 }
 0x9bc   : > { %10209 = vmatpush3.bf16.msra.mxu1 %v11067_v51  ;;  %v11098_v51 = vld [vmem:[#allocation3 + $0x488] sm:$0xff]  }
 0x9bd   : > { %10210 = vmatprep.subr.bf16.mxu1 %v11311_v27 }
 0x9c0   : > { %10211 = vmatpush3.bf16.msra.mxu1 %v11069_v18  ;;  %v11100_v18 = vld [vmem:[#allocation3 + $0x490] sm:$0xff]  }
 0x9c1   : > { %10212 = vmatprep.subr.bf16.mxu1 %v11311_v27 }
 0x9c4   : > { %10213 = vmatpush3.bf16.msra.mxu1 %v11071_v47  ;;  %v11102_v47 = vld [vmem:[#allocation3 + $0x498] sm:$0xff]  }
 0x9c5   : > { %10214 = vmatprep.subr.bf16.mxu1 %v11311_v27 }
 0x9c8   : > { %10215 = vmatpush3.bf16.msra.mxu1 %v11073_v41  ;;  %v11104_v41 = vld [vmem:[#allocation3 + $0x4a0] sm:$0xff]  }
 0x9c9   : > { %10216 = vmatprep.subr.bf16.mxu1 %v11311_v27 }
 0x9cc   : > { %10217 = vmatpush3.bf16.msra.mxu1 %v11075_v34 }
 0x9cd   : > { %10218 = vmatprep.subr.bf16.mxu1 %v11311_v27 }
 0x9d0   : > { %10219 = vmatpush3.bf16.msra.mxu1 %v11077_v8 }
 0x9d1   : > { %10220 = vmatprep.subr.bf16.mxu1 %v11311_v27 }
 0x9d4   : > { %10221 = vmatpush3.bf16.msra.mxu1 %v11079_v22 }
 0x9d5   : > { %10246 = vmatprep.subr.bf16.mxu1 %v11311_v27 }
 0xa6a   : > { %v5898_v42 = vpop.f32.mrb[148].mxu1  ;;  %v6085_v1 = vpop.f32.mrb[212].mxu0 }
 0xa6b   : > { %v5997_v44 = vrot.slane %v5898_v42, 7  ;;  %v10164_v45 = vpop.f32.mrb[149].mxu1  ;;  %v10204_v30 = vpop.f32.mrb[213].mxu0 }
 0xa6c   : > { %v5901_v35 = vpop.f32.mrb[150].mxu1  ;;  %v6088_v19 = vpop.f32.mrb[214].mxu0 }
 0xa6d   : > { %v6002_v13 = vsel %vm660_vm2, 0.0, %v5997_v44  ;;  %v5998_v11 = vrot.slane %v5901_v35, 7  ;;  %v10165_v48 = vpop.f32.mrb[151].mxu1  ;;  %v10205_v61 = vpop.f32.mrb[215].mxu0 }
 0xa6e   : > { %v6086_v57 = vadd.f32 %v6085_v1, %v6002_v13 }
 0xa6f   : > { %v5999_v29 = vsel %vm660_vm2, %v5997_v44, %v5998_v11 }
 0xa70   : > { %v6089_v59 = vadd.f32 %v6088_v19, %v5999_v29 }
 0xa8a   : > { %v5987_v17 = vpop.f32.mrb[152].mxu1 }
 0xa8b   : > { %v10184_v16 = vpop.f32.mrb[153].mxu1  ;;  %v6094_v32 = vrot.slane %v5987_v17, 1 }
 0xa8c   : > { %v5990_v5 = vpop.f32.mrb[154].mxu1 }
 0xa8d   : > { %v6095_v63 = vrot.slane %v5990_v5, 1  ;;  %v10185_v9 = vpop.f32.mrb[155].mxu1 }
 0xa8f   : > { %v6096_v10 = vsel %vm953_vm3, %v6094_v32, %v6095_v63  ;;  %v6099_v55 = vsel %vm953_vm3, %v6095_v63, 0.0 }
 0xa90   : > { %v6100_v53 = vadd.f32 %v6096_v10, %v6086_v57  ;;  %v6101_v21 = vadd.f32 %v6099_v55, %v6089_v59  ;;  %v8915_v57 = vld [vmem:[#allocation5 + $0x68] ss:$0 sm:$0xff] }
 0xa92   : > { %v6106_v62 = vadd.f32 %v8890_v40, %v6100_v53  ;;  %v6107_v12 = vadd.f32 %v8890_v40, %v6101_v21 }
 0xa94   : > { %v6108_v56 = vmax.f32 %v6106_v62, 0.0  ;;  %v6109_v31 = vmax.f32 %v6107_v12, 0.0 }
 0xa96   : > { %v6110_v20 = vpack.c.bf16 %v6109_v31, %v6108_v56 }
 0xa98   : > { %10223 = vmatmul.mubr.bf16.vlgmr.msra.gmra.mrb[156].mxu1 %v6110_v20  ;;  %10243 = vmatmul.mubr.bf16.vlgmr.msra.gmra.mrb[216].mxu0 %v6110_v20 }
 0xa99   : > { %10247 = vmatpush3.bf16.msra.mxu1 %v11081_v14  ;;  %10262 = vmatprep.mubr.msk.bf16.mxu1 %vm11312_vm7, %v11311_v27 }
 0xa9a   : > { %10248 = vmatprep.subr.bf16.mxu1 %v11311_v27  ;;  %10282 = vmatprep.mubr.msk.bf16.mxu0 %vm11312_vm7, %v11311_v27 }
 0xa9b   : > { %10267 = vmatpush3.bf16.msra.mxu0 %v11089_v39  ;;  %v11107_v39 = vld [vmem:[#allocation3 + $0x438] sm:$0xff]  }
 0xa9c   : > { %10268 = vmatprep.subr.bf16.mxu0 %v11311_v27 }
 0xa9d   : > { %10249 = vmatpush3.bf16.msra.mxu1 %v11082_v25 }
 0xa9e   : > { %10250 = vmatprep.subr.bf16.mxu1 %v11311_v27 }
 0xa9f   : > { %10269 = vmatpush3.bf16.msra.mxu0 %v11091_v26  ;;  %v11109_v26 = vld [vmem:[#allocation3 + $0x448] sm:$0xff]  }
 0xaa0   : > { %10270 = vmatprep.subr.bf16.mxu0 %v11311_v27 }
 0xaa1   : > { %10251 = vmatpush3.bf16.msra.mxu1 %v11083_v43 }
 0xaa2   : > { %10252 = vmatprep.subr.bf16.mxu1 %v11311_v27 }
 0xaa3   : > { %10271 = vmatpush3.bf16.msra.mxu0 %v11093_v0  ;;  %v11111_v0 = vld [vmem:[#allocation3 + $0x458] sm:$0xff]  }
 0xaa4   : > { %10272 = vmatprep.subr.bf16.mxu0 %v11311_v27 }
 0xaa5   : > { %10253 = vmatpush3.bf16.msra.mxu1 %v11084_v7 }
 0xaa6   : > { %10254 = vmatprep.subr.bf16.mxu1 %v11311_v27 }
 0xaa7   : > { %10273 = vmatpush3.bf16.msra.mxu0 %v11095_v3  ;;  %v11113_v3 = vld [vmem:[#allocation3 + $0x4a8] sm:$0xff]  }
 0xaa8   : > { %10274 = vmatprep.subr.bf16.mxu0 %v11311_v27 }
 0xaa9   : > { %10255 = vmatpush3.bf16.msra.mxu1 %v11085_v4 }
 0xaaa   : > { %10256 = vmatprep.subr.bf16.mxu1 %v11311_v27 }
 0xaab   : > { %10275 = vmatpush3.bf16.msra.mxu0 %v11097_v49  ;;  %v11115_v49 = vld [vmem:[#allocation3 + $0x4b0] sm:$0xff]  }
 0xaac   : > { %10276 = vmatprep.subr.bf16.mxu0 %v11311_v27 }
 0xaad   : > { %10257 = vmatpush3.bf16.msra.mxu1 %v11086_v50  ;;  %v11105_v50 = vld [vmem:[#allocation3 + $0x428] sm:$0xff]  }
 0xaae   : > { %10258 = vmatprep.subr.bf16.mxu1 %v11311_v27 }
 0xaaf   : > { %10277 = vmatpush3.bf16.msra.mxu0 %v11099_v46  ;;  %v11117_v46 = vld [vmem:[#allocation3 + $0x4b8] sm:$0xff]  }
 0xab0   : > { %10278 = vmatprep.subr.bf16.mxu0 %v11311_v27 }
 0xab1   : > { %10259 = vmatpush3.bf16.msra.mxu1 %v11087_v58 }
 0xab2   : > { %10260 = vmatprep.subr.bf16.mxu1 %v11311_v27 }
 0xab3   : > { %10279 = vmatpush3.bf16.msra.mxu0 %v11101_v2  ;;  %v11119_v2 = vld [vmem:[#allocation3 + $0x4c0] sm:$0xff]  }
 0xab4   : > { %10280 = vmatprep.subr.bf16.mxu0 %v11311_v27 }
 0xab5   : > { %10261 = vmatpush3.bf16.msra.mxu1 %v11088_v36  ;;  %v11106_v36 = vld [vmem:[#allocation3 + $0x430] sm:$0xff]  }
 0xab6   : > { %10286 = vmatprep.subr.bf16.mxu1 %v11311_v27 }
 0xab7   : > { %10281 = vmatpush3.bf16.msra.mxu0 %v11103_v37  ;;  %v11121_v37 = vld [vmem:[#allocation3 + $0x4c8] sm:$0xff]  }
 0xab8   : > { %10263 = vmatmul.mubr.bf16.vlgmr.msra.gmra.mrb[160].mxu1 %v6110_v20  ;;  %10306 = vmatprep.subr.bf16.mxu0 %v11311_v27 }
 0xab9   : > { %10302 = vmatprep.mubr.msk.bf16.mxu1 %vm11312_vm7, %v11311_v27  ;;  %10287 = vmatpush3.bf16.msra.mxu1 %v11090_v60  ;;  %v11108_v60 = vld [vmem:[#allocation3 + $0x440] sm:$0xff]  }
 0xaba   : > { %10288 = vmatprep.subr.bf16.mxu1 %v11311_v27 }
 0xabd   : > { %10289 = vmatpush3.bf16.msra.mxu1 %v11092_v6  ;;  %v11110_v6 = vld [vmem:[#allocation3 + $0x450] sm:$0xff]  }
 0xabe   : > { %10290 = vmatprep.subr.bf16.mxu1 %v11311_v27 }
 0xac1   : > { %10291 = vmatpush3.bf16.msra.mxu1 %v11094_v52  ;;  %v11112_v52 = vld [vmem:[#allocation3 + $0x460] sm:$0xff]  }
 0xac2   : > { %10292 = vmatprep.subr.bf16.mxu1 %v11311_v27 }
 0xac5   : > { %10293 = vmatpush3.bf16.msra.mxu1 %v11096_v33  ;;  %v11114_v33 = vld [vmem:[#allocation3 + $0x528] sm:$0xff]  }
 0xac6   : > { %10294 = vmatprep.subr.bf16.mxu1 %v11311_v27 }
 0xac9   : > { %10295 = vmatpush3.bf16.msra.mxu1 %v11098_v51  ;;  %v11116_v51 = vld [vmem:[#allocation3 + $0x530] sm:$0xff]  }
 0xaca   : > { %10296 = vmatprep.subr.bf16.mxu1 %v11311_v27 }
 0xacd   : > { %10297 = vmatpush3.bf16.msra.mxu1 %v11100_v18  ;;  %v11118_v18 = vld [vmem:[#allocation3 + $0x538] sm:$0xff]  }
 0xace   : > { %10298 = vmatprep.subr.bf16.mxu1 %v11311_v27 }
 0xad1   : > { %10299 = vmatpush3.bf16.msra.mxu1 %v11102_v47  ;;  %v11120_v47 = vld [vmem:[#allocation3 + $0x540] sm:$0xff]  }
 0xad2   : > { %10300 = vmatprep.subr.bf16.mxu1 %v11311_v27 }
 0xad5   : > { %10301 = vmatpush3.bf16.msra.mxu1 %v11104_v41  ;;  %v11122_v41 = vld [vmem:[#allocation3 + $0x548] sm:$0xff]  }
 0xad6   : > { %10326 = vmatprep.subr.bf16.mxu1 %v11311_v27 }
 0xb6b   : > { %v6241_v54 = vpop.f32.mrb[156].mxu1  ;;  %v6330_v34 = vpop.f32.mrb[216].mxu0 }
 0xb6c   : > { %v10224_v24 = vpop.f32.mrb[157].mxu1  ;;  %v10244_v8 = vpop.f32.mrb[217].mxu0  ;;  %v6340_v23 = vrot.slane %v6241_v54, 7  ;;  %v6437_v42 = vrot.slane %v6330_v34, 1  ;;  %v11123_v54 = vld [vmem:[#allocation3 + $0x4d0] sm:$0xff]  }
 0xb6d   : > { %v6244_v15 = vpop.f32.mrb[158].mxu1  ;;  %v6333_v22 = vpop.f32.mrb[218].mxu0  ;;  %v11124_v34 = vld [vmem:[#allocation3 + $0x550] sm:$0xff]   ;;  %v11125_v24 = vld [vmem:[#allocation3 + $0x4d8] sm:$0xff]  }
 0xb6e   : > { %v6341_v1 = vrot.slane %v6244_v15, 7  ;;  %v6438_v44 = vrot.slane %v6333_v22, 1  ;;  %v10225_v45 = vpop.f32.mrb[159].mxu1  ;;  %v10245_v30 = vpop.f32.mrb[219].mxu0  ;;  %v6345_v13 = vsel %vm660_vm2, 0.0, %v6340_v23  ;;  %v11126_v8 = vld [vmem:[#allocation3 + $0x558] sm:$0xff]  }
 0xb6f   : > { %v11127_v15 = vld [vmem:[#allocation3 + $0x4e0] sm:$0xff]  }
 0xb70   : > { %v6439_v35 = vsel %vm953_vm3, %v6437_v42, %v6438_v44  ;;  %v6342_v19 = vsel %vm660_vm2, %v6340_v23, %v6341_v1  ;;  %v6442_v5 = vsel %vm953_vm3, %v6438_v44, 0.0  ;;  %v11128_v22 = vld [vmem:[#allocation3 + $0x560] sm:$0xff]  }
 0xb8b   : > { %v6428_v11 = vpop.f32.mrb[160].mxu1 }
 0xb8c   : > { %v6429_v48 = vadd.f32 %v6428_v11, %v6345_v13  ;;  %v10264_v61 = vpop.f32.mrb[161].mxu1 }
 0xb8d   : > { %v6431_v29 = vpop.f32.mrb[162].mxu1 }
 0xb8e   : > { %v6443_v59 = vadd.f32 %v6439_v35, %v6429_v48  ;;  %v6432_v17 = vadd.f32 %v6431_v29, %v6342_v19  ;;  %v10265_v16 = vpop.f32.mrb[163].mxu1 }
 0xb90   : > { %v6449_v32 = vadd.f32 %v8915_v57, %v6443_v59  ;;  %v6444_v63 = vadd.f32 %v6442_v5, %v6432_v17  ;;  %v8940_v17 = vld [vmem:[#allocation5 + $0x70] ss:$0 sm:$0xff] }
 0xb92   : > { %v6451_v9 = vadd.f32 %v6449_v32, %v13090_v28  ;;  %v6450_v40 = vadd.f32 %v8915_v57, %v6444_v63 }
 0xb94   : > { %v6453_v10 = vmax.f32 %v6451_v9, 0.0  ;;  %v6452_v55 = vadd.f32 %v6450_v40, %v13092_v38  ;;  %v11129_v40 = vld [vmem:[#allocation3 + $0x4e8] sm:$0xff]  }
 0xb96   : > { %v6457_v53 = vrot.slane %v6453_v10, 7  ;;  %v6454_v21 = vmax.f32 %v6452_v55, 0.0  ;;  %v6465_v12 = vrot.slane %v6453_v10, 1  ;;  %v11130_v55 = vld [vmem:[#allocation3 + $0x4f0] sm:$0xff]  }
 0xb98   : > { %v6462_v62 = vsel %vm660_vm2, 0.0, %v6457_v53  ;;  %v6458_v56 = vrot.slane %v6454_v21, 7  ;;  %v6466_v31 = vrot.slane %v6454_v21, 1 }
 0xb99   : > { %v6463_v14 = vmax.f32 %v6462_v62, %v6453_v10  ;;  %v11133_v62 = vld [vmem:[#allocation3 + $0x508] sm:$0xff]  }
 0xb9a   : > { %v6459_v20 = vsel %vm660_vm2, %v6457_v53, %v6458_v56  ;;  %v6467_v25 = vsel %vm953_vm3, %v6465_v12, %v6466_v31  ;;  %v6470_v28 = vsel %vm953_vm3, %v6466_v31, 0.0  ;;  %v11131_v53 = vld [vmem:[#allocation3 + $0x4f8] sm:$0xff]   ;;  %v11134_v12 = vld [vmem:[#allocation3 + $0x510] sm:$0xff]   ;;  %v11136_v31 = vld [vmem:[#allocation3 + $0x520] sm:$0xff]  }
 0xb9b   : > { %v6464_v43 = vmax.f32 %v6459_v20, %v6454_v21  ;;  %v6471_v7 = vmax.f32 %v6463_v14, %v6467_v25  ;;  %v11132_v21 = vld [vmem:[#allocation3 + $0x500] sm:$0xff]   ;;  %v11135_v56 = vld [vmem:[#allocation3 + $0x518] sm:$0xff]   ;;  %v11137_v14 = vld [vmem:[#allocation3 + $0x568] sm:$0xff]  }
 0xb9c   : > { %v11138_v20 = vld [vmem:[#allocation3 + $0x5e8] sm:$0xff]   ;;  %v11139_v25 = vld [vmem:[#allocation3 + $0x570] sm:$0xff]  }
 0xb9d   : > { %v6472_v4 = vmax.f32 %v6464_v43, %v6470_v28  ;;  %6473 = vst [vmem:[#allocation2] sm:$0xff] %v6471_v7  ;;  %v11140_v43 = vld [vmem:[#allocation3 + $0x5f0] sm:$0xff]   ;;  %v11141_v7 = vld [vmem:[#allocation3 + $0x578] sm:$0xff]  }
 0xb9e   : > { %v11142_v28 = vld [vmem:[#allocation3 + $0x5f8] sm:$0xff]  }
 0xb9f   : > { %6474 = vst [vmem:[#allocation2 + $0x8] sm:$0xff] %v6472_v4  ;;  %v11143_v4 = vld [vmem:[#allocation3 + $0x580] sm:$0xff]  }
 0xba6   : > { %v13170_v38 = vld [vmem:[#allocation2] ss:$2 sm:$0xff] }
 0xba7   : > { %v6476_v58 = vpack.c.bf16 %v13170_v38, %v13170_v38 }
 0xba9   : > { %10283 = vmatmul.mubr.bf16.vlgmr.msra.gmra.mrb[220].mxu0 %v6476_v58  ;;  %10303 = vmatmul.mubr.bf16.vlgmr.msra.gmra.mrb[164].mxu1 %v6476_v58 }
 0xbaa   : > { %10307 = vmatpush3.bf16.msra.mxu0 %v11105_v50  ;;  %10322 = vmatprep.mubr.msk.bf16.mxu0 %vm11312_vm7, %v11311_v27  ;;  %v11144_v50 = vld [vmem:[#allocation3 + $0x600] sm:$0xff]  }
 0xbab   : > { %10308 = vmatprep.subr.bf16.mxu0 %v11311_v27  ;;  %10342 = vmatprep.mubr.msk.bf16.mxu1 %vm11312_vm7, %v11311_v27 }
 0xbac   : > { %10327 = vmatpush3.bf16.msra.mxu1 %v11113_v3 }
 0xbad   : > { %10328 = vmatprep.subr.bf16.mxu1 %v11311_v27 }
 0xbae   : > { %10309 = vmatpush3.bf16.msra.mxu0 %v11106_v36  ;;  %v11146_v36 = vld [vmem:[#allocation3 + $0x608] sm:$0xff]  }
 0xbaf   : > { %10310 = vmatprep.subr.bf16.mxu0 %v11311_v27 }
 0xbb0   : > { %10329 = vmatpush3.bf16.msra.mxu1 %v11115_v49 }
 0xbb1   : > { %10330 = vmatprep.subr.bf16.mxu1 %v11311_v27 }
 0xbb2   : > { %10311 = vmatpush3.bf16.msra.mxu0 %v11107_v39  ;;  %v11147_v39 = vld [vmem:[#allocation3 + $0x590] sm:$0xff]  }
 0xbb3   : > { %10312 = vmatprep.subr.bf16.mxu0 %v11311_v27 }
 0xbb4   : > { %10331 = vmatpush3.bf16.msra.mxu1 %v11117_v46 }
 0xbb5   : > { %10332 = vmatprep.subr.bf16.mxu1 %v11311_v27 }
 0xbb6   : > { %10313 = vmatpush3.bf16.msra.mxu0 %v11108_v60  ;;  %v11148_v60 = vld [vmem:[#allocation3 + $0x610] sm:$0xff]  }
 0xbb7   : > { %10314 = vmatprep.subr.bf16.mxu0 %v11311_v27 }
 0xbb8   : > { %10333 = vmatpush3.bf16.msra.mxu1 %v11119_v2 }
 0xbb9   : > { %10334 = vmatprep.subr.bf16.mxu1 %v11311_v27 }
 0xbba   : > { %10315 = vmatpush3.bf16.msra.mxu0 %v11109_v26  ;;  %v11149_v26 = vld [vmem:[#allocation3 + $0x598] sm:$0xff]  }
 0xbbb   : > { %10316 = vmatprep.subr.bf16.mxu0 %v11311_v27 }
 0xbbc   : > { %10335 = vmatpush3.bf16.msra.mxu1 %v11121_v37 }
 0xbbd   : > { %10336 = vmatprep.subr.bf16.mxu1 %v11311_v27 }
 0xbbe   : > { %10317 = vmatpush3.bf16.msra.mxu0 %v11110_v6  ;;  %v11150_v6 = vld [vmem:[#allocation3 + $0x618] sm:$0xff]  }
 0xbbf   : > { %10318 = vmatprep.subr.bf16.mxu0 %v11311_v27 }
 0xbc0   : > { %10337 = vmatpush3.bf16.msra.mxu1 %v11123_v54 }
 0xbc1   : > { %10338 = vmatprep.subr.bf16.mxu1 %v11311_v27 }
 0xbc2   : > { %10319 = vmatpush3.bf16.msra.mxu0 %v11111_v0  ;;  %v11151_v0 = vld [vmem:[#allocation3 + $0x5a0] sm:$0xff]  }
 0xbc3   : > { %10320 = vmatprep.subr.bf16.mxu0 %v11311_v27 }
 0xbc4   : > { %10339 = vmatpush3.bf16.msra.mxu1 %v11125_v24 }
 0xbc5   : > { %10340 = vmatprep.subr.bf16.mxu1 %v11311_v27 }
 0xbc6   : > { %10321 = vmatpush3.bf16.msra.mxu0 %v11112_v52  ;;  %v11152_v52 = vld [vmem:[#allocation3 + $0x620] sm:$0xff]  }
 0xbc7   : > { %10346 = vmatprep.subr.bf16.mxu0 %v11311_v27 }
 0xbc8   : > { %10341 = vmatpush3.bf16.msra.mxu1 %v11127_v15 }
 0xbc9   : > { %10323 = vmatmul.mubr.bf16.vlgmr.msra.gmra.mrb[224].mxu0 %v6476_v58  ;;  %10366 = vmatprep.subr.bf16.mxu1 %v11311_v27  ;;  %v11145_v58 = vld [vmem:[#allocation3 + $0x588] sm:$0xff]  }
 0xbca   : > { %10362 = vmatprep.mubr.msk.bf16.mxu0 %vm11312_vm7, %v11311_v27  ;;  %10347 = vmatpush3.bf16.msra.mxu0 %v11114_v33 }
 0xbcb   : > { %10348 = vmatprep.subr.bf16.mxu0 %v11311_v27 }
 0xbce   : > { %10349 = vmatpush3.bf16.msra.mxu0 %v11116_v51 }
 0xbcf   : > { %10350 = vmatprep.subr.bf16.mxu0 %v11311_v27 }
 0xbd2   : > { %10351 = vmatpush3.bf16.msra.mxu0 %v11118_v18 }
 0xbd3   : > { %10352 = vmatprep.subr.bf16.mxu0 %v11311_v27 }
 0xbd6   : > { %10353 = vmatpush3.bf16.msra.mxu0 %v11120_v47 }
 0xbd7   : > { %10354 = vmatprep.subr.bf16.mxu0 %v11311_v27 }
 0xbda   : > { %10355 = vmatpush3.bf16.msra.mxu0 %v11122_v41 }
 0xbdb   : > { %10356 = vmatprep.subr.bf16.mxu0 %v11311_v27 }
 0xbde   : > { %10357 = vmatpush3.bf16.msra.mxu0 %v11124_v34 }
 0xbdf   : > { %10358 = vmatprep.subr.bf16.mxu0 %v11311_v27 }
 0xbe2   : > { %10359 = vmatpush3.bf16.msra.mxu0 %v11126_v8 }
 0xbe3   : > { %10360 = vmatprep.subr.bf16.mxu0 %v11311_v27 }
 0xbe6   : > { %10361 = vmatpush3.bf16.msra.mxu0 %v11128_v22  ;;  %v8965_v22 = vld [vmem:[#allocation5 + $0x78] ss:$0 sm:$0xff] }
 0xbe7   : > { %10386 = vmatprep.subr.bf16.mxu0 %v11311_v27 }
 0xc7c   : > { %v6607_v23 = vpop.f32.mrb[220].mxu0  ;;  %v6695_v42 = vpop.f32.mrb[164].mxu1 }
 0xc7d   : > { %v10284_v1 = vpop.f32.mrb[221].mxu0  ;;  %v10304_v44 = vpop.f32.mrb[165].mxu1  ;;  %v6703_v13 = vrot.slane %v6607_v23, 7  ;;  %v6795_v11 = vrot.slane %v6695_v42, 1 }
 0xc7e   : > { %v6610_v45 = vpop.f32.mrb[222].mxu0  ;;  %v6698_v30 = vpop.f32.mrb[166].mxu1 }
 0xc7f   : > { %v10285_v35 = vpop.f32.mrb[223].mxu0  ;;  %v10305_v19 = vpop.f32.mrb[167].mxu1  ;;  %v6705_v48 = vsel %vm660_vm2, 0.0, %v6703_v13  ;;  %v6797_v59 = vsel %vm953_vm3, %v6795_v11, 0.0 }
 0xc9c   : > { %v6788_v61 = vpop.f32.mrb[224].mxu0 }
 0xc9d   : > { %v6789_v57 = vadd.f32 %v6788_v61, %v6705_v48  ;;  %v10324_v29 = vpop.f32.mrb[225].mxu0 }
 0xc9e   : > { %v6791_v16 = vpop.f32.mrb[226].mxu0  ;;  %v11153_v29 = vld [vmem:[#allocation3 + $0x5a8] sm:$0xff]  }
 0xc9f   : > { %v6798_v5 = vadd.f32 %v6797_v59, %v6789_v57  ;;  %v10325_v32 = vpop.f32.mrb[227].mxu0  ;;  %v11156_v16 = vld [vmem:[#allocation3 + $0x5c0] sm:$0xff]  }
 0xca0   : > { %v11158_v32 = vld [vmem:[#allocation3 + $0x5d0] sm:$0xff]  }
 0xca1   : > { %v6803_v63 = vadd.f32 %v8940_v17, %v6798_v5  ;;  %v11155_v17 = vld [vmem:[#allocation3 + $0x5b8] sm:$0xff]   ;;  %v11157_v5 = vld [vmem:[#allocation3 + $0x5c8] sm:$0xff]  }
 0xca3   : > { %v6804_v9 = vmax.f32 %v6803_v63, 0.0  ;;  %v11159_v63 = vld [vmem:[#allocation3 + $0x5d8] sm:$0xff]  }
 0xca5   : > { %v6805_v10 = vpack.c.bf16 %v6804_v9, %v6804_v9  ;;  %v11160_v9 = vld [vmem:[#allocation3 + $0x5e0] sm:$0xff]  }
 0xca7   : > { %10343 = vmatmul.mubr.bf16.vlgmr.msra.gmra.mrb[168].mxu1 %v6805_v10  ;;  %10363 = vmatmul.mubr.bf16.vlgmr.msra.gmra.mrb[228].mxu0 %v6805_v10 }
 0xca8   : > { %10367 = vmatpush3.bf16.msra.mxu1 %v11129_v40  ;;  %10382 = vmatprep.mubr.msk.bf16.mxu1 %vm11312_vm7, %v11311_v27  ;;  %v11161_v40 = vld [vmem:[#allocation3 + $0x628] sm:$0xff]  }
 0xca9   : > { %10368 = vmatprep.subr.bf16.mxu1 %v11311_v27  ;;  %10402 = vmatprep.mubr.msk.bf16.mxu0 %vm11312_vm7, %v11311_v27 }
 0xcaa   : > { %10387 = vmatpush3.bf16.msra.mxu0 %v11137_v14  ;;  %v11170_v14 = vld [vmem:[#allocation3 + $0x6c8] sm:$0xff]  }
 0xcab   : > { %10388 = vmatprep.subr.bf16.mxu0 %v11311_v27 }
 0xcac   : > { %10369 = vmatpush3.bf16.msra.mxu1 %v11130_v55  ;;  %v11163_v55 = vld [vmem:[#allocation3 + $0x630] sm:$0xff]  }
 0xcad   : > { %10370 = vmatprep.subr.bf16.mxu1 %v11311_v27 }
 0xcae   : > { %10389 = vmatpush3.bf16.msra.mxu0 %v11139_v25  ;;  %v11172_v25 = vld [vmem:[#allocation3 + $0x6d0] sm:$0xff]  }
 0xcaf   : > { %10390 = vmatprep.subr.bf16.mxu0 %v11311_v27 }
 0xcb0   : > { %10371 = vmatpush3.bf16.msra.mxu1 %v11131_v53  ;;  %v11164_v53 = vld [vmem:[#allocation3 + $0x6b0] sm:$0xff]  }
 0xcb1   : > { %10372 = vmatprep.subr.bf16.mxu1 %v11311_v27 }
 0xcb2   : > { %10391 = vmatpush3.bf16.msra.mxu0 %v11141_v7  ;;  %v11174_v7 = vld [vmem:[#allocation3 + $0x6d8] sm:$0xff]  }
 0xcb3   : > { %10392 = vmatprep.subr.bf16.mxu0 %v11311_v27 }
 0xcb4   : > { %10373 = vmatpush3.bf16.msra.mxu1 %v11132_v21  ;;  %v11165_v21 = vld [vmem:[#allocation3 + $0x638] sm:$0xff]  }
 0xcb5   : > { %10374 = vmatprep.subr.bf16.mxu1 %v11311_v27 }
 0xcb6   : > { %10393 = vmatpush3.bf16.msra.mxu0 %v11143_v4  ;;  %v11176_v4 = vld [vmem:[#allocation3 + $0x6e0] sm:$0xff]  }
 0xcb7   : > { %10394 = vmatprep.subr.bf16.mxu0 %v11311_v27 }
 0xcb8   : > { %10375 = vmatpush3.bf16.msra.mxu1 %v11133_v62  ;;  %v11166_v62 = vld [vmem:[#allocation3 + $0x6b8] sm:$0xff]  }
 0xcb9   : > { %10376 = vmatprep.subr.bf16.mxu1 %v11311_v27 }
 0xcba   : > { %10395 = vmatpush3.bf16.msra.mxu0 %v11145_v58 }
 0xcbb   : > { %10396 = vmatprep.subr.bf16.mxu0 %v11311_v27 }
 0xcbc   : > { %10377 = vmatpush3.bf16.msra.mxu1 %v11134_v12  ;;  %v11167_v12 = vld [vmem:[#allocation3 + $0x640] sm:$0xff]  }
 0xcbd   : > { %10378 = vmatprep.subr.bf16.mxu1 %v11311_v27 }
 0xcbe   : > { %10397 = vmatpush3.bf16.msra.mxu0 %v11147_v39 }
 0xcbf   : > { %10398 = vmatprep.subr.bf16.mxu0 %v11311_v27 }
 0xcc0   : > { %10379 = vmatpush3.bf16.msra.mxu1 %v11135_v56  ;;  %v11168_v56 = vld [vmem:[#allocation3 + $0x6c0] sm:$0xff]  }
 0xcc1   : > { %10380 = vmatprep.subr.bf16.mxu1 %v11311_v27 }
 0xcc2   : > { %10399 = vmatpush3.bf16.msra.mxu0 %v11149_v26 }
 0xcc3   : > { %10400 = vmatprep.subr.bf16.mxu0 %v11311_v27 }
 0xcc4   : > { %10381 = vmatpush3.bf16.msra.mxu1 %v11136_v31  ;;  %v11169_v31 = vld [vmem:[#allocation3 + $0x648] sm:$0xff]  }
 0xcc5   : > { %10406 = vmatprep.subr.bf16.mxu1 %v11311_v27 }
 0xcc6   : > { %10401 = vmatpush3.bf16.msra.mxu0 %v11151_v0 }
 0xcc7   : > { %10383 = vmatmul.mubr.bf16.vlgmr.msra.gmra.mrb[172].mxu1 %v6805_v10  ;;  %10426 = vmatprep.subr.bf16.mxu0 %v11311_v27  ;;  %v11162_v10 = vld [vmem:[#allocation3 + $0x6a8] sm:$0xff]  }
 0xcc8   : > { %10422 = vmatprep.mubr.msk.bf16.mxu1 %vm11312_vm7, %v11311_v27  ;;  %10407 = vmatpush3.bf16.msra.mxu1 %v11138_v20  ;;  %v11171_v20 = vld [vmem:[#allocation3 + $0x650] sm:$0xff]  }
 0xcc9   : > { %10408 = vmatprep.subr.bf16.mxu1 %v11311_v27 }
 0xccc   : > { %10409 = vmatpush3.bf16.msra.mxu1 %v11140_v43  ;;  %v11173_v43 = vld [vmem:[#allocation3 + $0x658] sm:$0xff]  }
 0xccd   : > { %10410 = vmatprep.subr.bf16.mxu1 %v11311_v27 }
 0xcd0   : > { %10411 = vmatpush3.bf16.msra.mxu1 %v11142_v28  ;;  %v11175_v28 = vld [vmem:[#allocation3 + $0x660] sm:$0xff]  }
 0xcd1   : > { %10412 = vmatprep.subr.bf16.mxu1 %v11311_v27 }
 0xcd4   : > { %10413 = vmatpush3.bf16.msra.mxu1 %v11144_v50 }
 0xcd5   : > { %10414 = vmatprep.subr.bf16.mxu1 %v11311_v27 }
 0xcd8   : > { %10415 = vmatpush3.bf16.msra.mxu1 %v11146_v36 }
 0xcd9   : > { %10416 = vmatprep.subr.bf16.mxu1 %v11311_v27 }
 0xcdc   : > { %10417 = vmatpush3.bf16.msra.mxu1 %v11148_v60 }
 0xcdd   : > { %10418 = vmatprep.subr.bf16.mxu1 %v11311_v27 }
 0xce0   : > { %10419 = vmatpush3.bf16.msra.mxu1 %v11150_v6 }
 0xce1   : > { %10420 = vmatprep.subr.bf16.mxu1 %v11311_v27 }
 0xce4   : > { %10421 = vmatpush3.bf16.msra.mxu1 %v11152_v52 }
 0xce5   : > { %10446 = vmatprep.subr.bf16.mxu1 %v11311_v27 }
 0xd7a   : > { %v6936_v3 = vpop.f32.mrb[168].mxu1  ;;  %v7024_v33 = vpop.f32.mrb[228].mxu0 }
 0xd7b   : > { %v10344_v49 = vpop.f32.mrb[169].mxu1  ;;  %v10364_v51 = vpop.f32.mrb[229].mxu0  ;;  %v7032_v37 = vrot.slane %v6936_v3, 7  ;;  %v7124_v41 = vrot.slane %v7024_v33, 1 }
 0xd7c   : > { %v6939_v46 = vpop.f32.mrb[170].mxu1  ;;  %v7027_v18 = vpop.f32.mrb[230].mxu0 }
 0xd7d   : > { %v10345_v2 = vpop.f32.mrb[171].mxu1  ;;  %v10365_v47 = vpop.f32.mrb[231].mxu0  ;;  %v7034_v54 = vsel %vm660_vm2, 0.0, %v7032_v37  ;;  %v7126_v15 = vsel %vm953_vm3, %v7124_v41, 0.0 }
 0xd7e   : > { %v8990_v2 = vld [vmem:[#allocation5 + $0x80] ss:$0 sm:$0xff] }
 0xd9a   : > { %v7117_v34 = vpop.f32.mrb[172].mxu1 }
 0xd9b   : > { %v7118_v24 = vadd.f32 %v7117_v34, %v7034_v54  ;;  %v10384_v8 = vpop.f32.mrb[173].mxu1 }
 0xd9c   : > { %v7120_v23 = vpop.f32.mrb[174].mxu1 }
 0xd9d   : > { %v7127_v42 = vadd.f32 %v7126_v15, %v7118_v24  ;;  %v10385_v1 = vpop.f32.mrb[175].mxu1  ;;  %v11177_v24 = vld [vmem:[#allocation3 + $0x668] sm:$0xff]   ;;  %v11178_v15 = vld [vmem:[#allocation3 + $0x670] sm:$0xff]   ;;  %v11180_v23 = vld [vmem:[#allocation3 + $0x680] sm:$0xff]  }
 0xd9e   : > { %v11182_v1 = vld [vmem:[#allocation3 + $0x690] sm:$0xff]  }
 0xd9f   : > { %v7132_v44 = vadd.f32 %v8965_v22, %v7127_v42  ;;  %v11179_v22 = vld [vmem:[#allocation3 + $0x678] sm:$0xff]   ;;  %v11181_v42 = vld [vmem:[#allocation3 + $0x688] sm:$0xff]  }
 0xda1   : > { %v7133_v45 = vadd.f32 %v7132_v44, %v13170_v38  ;;  %v11154_v38 = vld [vmem:[#allocation3 + $0x5b0] sm:$0xff]   ;;  %v11183_v44 = vld [vmem:[#allocation3 + $0x698] sm:$0xff]  }
 0xda3   : > { %v7134_v30 = vmax.f32 %v7133_v45, 0.0  ;;  %v11184_v45 = vld [vmem:[#allocation3 + $0x6a0] sm:$0xff]  }
 0xda5   : > { %v7136_v35 = vrot.slane %v7134_v30, 7  ;;  %v7140_v19 = vrot.slane %v7134_v30, 1 }
 0xda7   : > { %v7138_v13 = vsel %vm660_vm2, 0.0, %v7136_v35  ;;  %v7142_v48 = vsel %vm953_vm3, %v7140_v19, 0.0  ;;  %v11186_v35 = vld [vmem:[#allocation3 + $0x768] sm:$0xff]   ;;  %v11187_v19 = vld [vmem:[#allocation3 + $0x6f0] sm:$0xff]  }
 0xda8   : > { %v7139_v11 = vmax.f32 %v7138_v13, %v7134_v30  ;;  %v11185_v30 = vld [vmem:[#allocation3 + $0x6e8] sm:$0xff]   ;;  %v11188_v13 = vld [vmem:[#allocation3 + $0x770] sm:$0xff]  }
 0xdaa   : > { %v7143_v61 = vmax.f32 %v7139_v11, %v7142_v48  ;;  %v11189_v11 = vld [vmem:[#allocation3 + $0x6f8] sm:$0xff]  }
 0xdab   : > { %v11190_v48 = vld [vmem:[#allocation3 + $0x778] sm:$0xff]  }
 0xdac   : > { %7144 = vst [vmem:[#allocation2] sm:$0xff] %v7143_v61  ;;  %v11191_v61 = vld [vmem:[#allocation3 + $0x700] sm:$0xff]  }
 0xdb3   : > { %v13241_v57 = vld [vmem:[#allocation2] ss:$2 sm:$0xf] }
 0xdb4   : > { %v7146_v59 = vpack.c.bf16 %v13241_v57, %v13241_v57 }
 0xdb6   : > { %10403 = vmatmul.mubr.bf16.vlgmr.msra.gmra.mrb[232].mxu0 %v7146_v59  ;;  %10423 = vmatmul.mubr.bf16.vlgmr.msra.gmra.mrb[176].mxu1 %v7146_v59 }
 0xdb7   : > { %10427 = vmatpush3.bf16.msra.mxu0 %v11153_v29  ;;  %10442 = vmatprep.mubr.msk.bf16.mxu0 %vm11312_vm7, %v11311_v27  ;;  %v11192_v29 = vld [vmem:[#allocation3 + $0x780] sm:$0xff]  }
 0xdb8   : > { %10428 = vmatprep.subr.bf16.mxu0 %v11311_v27  ;;  %10462 = vmatprep.mubr.msk.bf16.mxu1 %vm11312_vm7, %v11311_v27 }
 0xdb9   : > { %10447 = vmatpush3.bf16.msra.mxu1 %v11161_v40 }
 0xdba   : > { %10448 = vmatprep.subr.bf16.mxu1 %v11311_v27 }
 0xdbb   : > { %10429 = vmatpush3.bf16.msra.mxu0 %v11154_v38  ;;  %v11194_v38 = vld [vmem:[#allocation3 + $0x788] sm:$0xff]  }
 0xdbc   : > { %10430 = vmatprep.subr.bf16.mxu0 %v11311_v27 }
 0xdbd   : > { %10449 = vmatpush3.bf16.msra.mxu1 %v11163_v55 }
 0xdbe   : > { %10450 = vmatprep.subr.bf16.mxu1 %v11311_v27 }
 0xdbf   : > { %10431 = vmatpush3.bf16.msra.mxu0 %v11155_v17  ;;  %v11195_v17 = vld [vmem:[#allocation3 + $0x710] sm:$0xff]  }
 0xdc0   : > { %10432 = vmatprep.subr.bf16.mxu0 %v11311_v27 }
 0xdc1   : > { %10451 = vmatpush3.bf16.msra.mxu1 %v11165_v21 }
 0xdc2   : > { %10452 = vmatprep.subr.bf16.mxu1 %v11311_v27 }
 0xdc3   : > { %10433 = vmatpush3.bf16.msra.mxu0 %v11156_v16  ;;  %v11196_v16 = vld [vmem:[#allocation3 + $0x790] sm:$0xff]  }
 0xdc4   : > { %10434 = vmatprep.subr.bf16.mxu0 %v11311_v27 }
 0xdc5   : > { %10453 = vmatpush3.bf16.msra.mxu1 %v11167_v12 }
 0xdc6   : > { %10454 = vmatprep.subr.bf16.mxu1 %v11311_v27 }
 0xdc7   : > { %10435 = vmatpush3.bf16.msra.mxu0 %v11157_v5  ;;  %v11197_v5 = vld [vmem:[#allocation3 + $0x718] sm:$0xff]  }
 0xdc8   : > { %10436 = vmatprep.subr.bf16.mxu0 %v11311_v27 }
 0xdc9   : > { %10455 = vmatpush3.bf16.msra.mxu1 %v11169_v31 }
 0xdca   : > { %10456 = vmatprep.subr.bf16.mxu1 %v11311_v27 }
 0xdcb   : > { %10437 = vmatpush3.bf16.msra.mxu0 %v11158_v32  ;;  %v11198_v32 = vld [vmem:[#allocation3 + $0x798] sm:$0xff]  }
 0xdcc   : > { %10438 = vmatprep.subr.bf16.mxu0 %v11311_v27 }
 0xdcd   : > { %10457 = vmatpush3.bf16.msra.mxu1 %v11171_v20 }
 0xdce   : > { %10458 = vmatprep.subr.bf16.mxu1 %v11311_v27 }
 0xdcf   : > { %10439 = vmatpush3.bf16.msra.mxu0 %v11159_v63  ;;  %v11199_v63 = vld [vmem:[#allocation3 + $0x720] sm:$0xff]  }
 0xdd0   : > { %10440 = vmatprep.subr.bf16.mxu0 %v11311_v27 }
 0xdd1   : > { %10459 = vmatpush3.bf16.msra.mxu1 %v11173_v43 }
 0xdd2   : > { %10460 = vmatprep.subr.bf16.mxu1 %v11311_v27 }
 0xdd3   : > { %10441 = vmatpush3.bf16.msra.mxu0 %v11160_v9  ;;  %v11200_v9 = vld [vmem:[#allocation3 + $0x7a0] sm:$0xff]  }
 0xdd4   : > { %10466 = vmatprep.subr.bf16.mxu0 %v11311_v27 }
 0xdd5   : > { %10461 = vmatpush3.bf16.msra.mxu1 %v11175_v28 }
 0xdd6   : > { %10443 = vmatmul.mubr.bf16.vlgmr.msra.gmra.mrb[236].mxu0 %v7146_v59  ;;  %10486 = vmatprep.subr.bf16.mxu1 %v11311_v27  ;;  %v11193_v59 = vld [vmem:[#allocation3 + $0x708] sm:$0xff]  }
 0xdd7   : > { %10482 = vmatprep.mubr.msk.bf16.mxu0 %vm11312_vm7, %v11311_v27  ;;  %10467 = vmatpush3.bf16.msra.mxu0 %v11162_v10 }
 0xdd8   : > { %10468 = vmatprep.subr.bf16.mxu0 %v11311_v27 }
 0xddb   : > { %10469 = vmatpush3.bf16.msra.mxu0 %v11164_v53 }
 0xddc   : > { %10470 = vmatprep.subr.bf16.mxu0 %v11311_v27 }
 0xddf   : > { %10471 = vmatpush3.bf16.msra.mxu0 %v11166_v62 }
 0xde0   : > { %10472 = vmatprep.subr.bf16.mxu0 %v11311_v27 }
 0xde3   : > { %10473 = vmatpush3.bf16.msra.mxu0 %v11168_v56 }
 0xde4   : > { %10474 = vmatprep.subr.bf16.mxu0 %v11311_v27 }
 0xde7   : > { %10475 = vmatpush3.bf16.msra.mxu0 %v11170_v14 }
 0xde8   : > { %10476 = vmatprep.subr.bf16.mxu0 %v11311_v27 }
 0xdeb   : > { %10477 = vmatpush3.bf16.msra.mxu0 %v11172_v25 }
 0xdec   : > { %10478 = vmatprep.subr.bf16.mxu0 %v11311_v27 }
 0xdef   : > { %10479 = vmatpush3.bf16.msra.mxu0 %v11174_v7 }
 0xdf0   : > { %10480 = vmatprep.subr.bf16.mxu0 %v11311_v27 }
 0xdf3   : > { %10481 = vmatpush3.bf16.msra.mxu0 %v11176_v4  ;;  %v9015_v4 = vld [vmem:[#allocation5 + $0x88] ss:$0 sm:$0xff] }
 0xdf4   : > { %10506 = vmatprep.subr.bf16.mxu0 %v11311_v27 }
 0xe89   : > { %v7277_v50 = vpop.f32.mrb[232].mxu0  ;;  %v7365_v58 = vpop.f32.mrb[176].mxu1 }
 0xe8a   : > { %v10404_v36 = vpop.f32.mrb[233].mxu0  ;;  %v10424_v39 = vpop.f32.mrb[177].mxu1  ;;  %v7373_v52 = vrot.slane %v7277_v50, 7  ;;  %v7465_v3 = vrot.slane %v7365_v58, 1 }
 0xe8b   : > { %v7280_v60 = vpop.f32.mrb[234].mxu0  ;;  %v7368_v26 = vpop.f32.mrb[178].mxu1 }
 0xe8c   : > { %v10405_v6 = vpop.f32.mrb[235].mxu0  ;;  %v10425_v0 = vpop.f32.mrb[179].mxu1  ;;  %v7375_v33 = vsel %vm660_vm2, 0.0, %v7373_v52  ;;  %v7468_v18 = vsel %vm7467_vm8, %v7465_v3, 0.0 }
 0xea9   : > { %v7458_v49 = vpop.f32.mrb[236].mxu0 }
 0xeaa   : > { %v7459_v51 = vadd.f32 %v7458_v49, %v7375_v33  ;;  %v10444_v46 = vpop.f32.mrb[237].mxu0 }
 0xeab   : > { %v7461_v47 = vpop.f32.mrb[238].mxu0  ;;  %v11201_v46 = vld [vmem:[#allocation3 + $0x728] sm:$0xff]  }
 0xeac   : > { %v7469_v37 = vadd.f32 %v7468_v18, %v7459_v51  ;;  %v10445_v41 = vpop.f32.mrb[239].mxu0  ;;  %v11204_v47 = vld [vmem:[#allocation3 + $0x740] sm:$0xff]  }
 0xead   : > { %v11206_v41 = vld [vmem:[#allocation3 + $0x750] sm:$0xff]  }
 0xeae   : > { %v7474_v54 = vadd.f32 %v8990_v2, %v7469_v37  ;;  %v11203_v2 = vld [vmem:[#allocation3 + $0x738] sm:$0xff]   ;;  %v11205_v37 = vld [vmem:[#allocation3 + $0x748] sm:$0xff]  }
 0xeb0   : > { %v7475_v34 = vmax.f32 %v7474_v54, 0.0  ;;  %v11207_v54 = vld [vmem:[#allocation3 + $0x758] sm:$0xff]  }
 0xeb2   : > { %v7476_v8 = vpack.c.bf16 %v7475_v34, %v7475_v34  ;;  %v11208_v34 = vld [vmem:[#allocation3 + $0x760] sm:$0xff]  }
 0xeb4   : > { %10463 = vmatmul.mubr.bf16.vlgmr.msra.gmra.mrb[180].mxu1 %v7476_v8  ;;  %10483 = vmatmul.mubr.bf16.vlgmr.msra.gmra.mrb[240].mxu0 %v7476_v8 }
 0xeb5   : > { %10487 = vmatpush3.bf16.msra.mxu1 %v11177_v24  ;;  %10502 = vmatprep.mubr.msk.bf16.mxu1 %vm11312_vm7, %v11311_v27  ;;  %v11209_v24 = vld [vmem:[#allocation3 + $0x7a8] sm:$0xff]  }
 0xeb6   : > { %10488 = vmatprep.subr.bf16.mxu1 %v11311_v27  ;;  %10522 = vmatprep.mubr.msk.bf16.mxu0 %vm11312_vm7, %v11311_v27 }
 0xeb7   : > { %10507 = vmatpush3.bf16.msra.mxu0 %v11185_v30  ;;  %v11218_v30 = vld [vmem:[#allocation3 + $0x848] sm:$0xff]  }
 0xeb8   : > { %10508 = vmatprep.subr.bf16.mxu0 %v11311_v27 }
 0xeb9   : > { %10489 = vmatpush3.bf16.msra.mxu1 %v11178_v15  ;;  %v11211_v15 = vld [vmem:[#allocation3 + $0x7b0] sm:$0xff]  }
 0xeba   : > { %10490 = vmatprep.subr.bf16.mxu1 %v11311_v27 }
 0xebb   : > { %10509 = vmatpush3.bf16.msra.mxu0 %v11187_v19  ;;  %v11220_v19 = vld [vmem:[#allocation3 + $0x850] sm:$0xff]  }
 0xebc   : > { %10510 = vmatprep.subr.bf16.mxu0 %v11311_v27 }
 0xebd   : > { %10491 = vmatpush3.bf16.msra.mxu1 %v11179_v22  ;;  %v11212_v22 = vld [vmem:[#allocation3 + $0x830] sm:$0xff]  }
 0xebe   : > { %10492 = vmatprep.subr.bf16.mxu1 %v11311_v27 }
 0xebf   : > { %10511 = vmatpush3.bf16.msra.mxu0 %v11189_v11  ;;  %v11222_v11 = vld [vmem:[#allocation3 + $0x858] sm:$0xff]  }
 0xec0   : > { %10512 = vmatprep.subr.bf16.mxu0 %v11311_v27 }
 0xec1   : > { %10493 = vmatpush3.bf16.msra.mxu1 %v11180_v23  ;;  %v11213_v23 = vld [vmem:[#allocation3 + $0x7b8] sm:$0xff]  }
 0xec2   : > { %10494 = vmatprep.subr.bf16.mxu1 %v11311_v27 }
 0xec3   : > { %10513 = vmatpush3.bf16.msra.mxu0 %v11191_v61  ;;  %v11224_v61 = vld [vmem:[#allocation3 + $0x860] sm:$0xff]  }
 0xec4   : > { %10514 = vmatprep.subr.bf16.mxu0 %v11311_v27 }
 0xec5   : > { %10495 = vmatpush3.bf16.msra.mxu1 %v11181_v42  ;;  %v11214_v42 = vld [vmem:[#allocation3 + $0x838] sm:$0xff]  }
 0xec6   : > { %10496 = vmatprep.subr.bf16.mxu1 %v11311_v27 }
 0xec7   : > { %10515 = vmatpush3.bf16.msra.mxu0 %v11193_v59 }
 0xec8   : > { %10516 = vmatprep.subr.bf16.mxu0 %v11311_v27 }
 0xec9   : > { %10497 = vmatpush3.bf16.msra.mxu1 %v11182_v1  ;;  %v11215_v1 = vld [vmem:[#allocation3 + $0x7c0] sm:$0xff]  }
 0xeca   : > { %10498 = vmatprep.subr.bf16.mxu1 %v11311_v27 }
 0xecb   : > { %10517 = vmatpush3.bf16.msra.mxu0 %v11195_v17 }
 0xecc   : > { %10518 = vmatprep.subr.bf16.mxu0 %v11311_v27 }
 0xecd   : > { %10499 = vmatpush3.bf16.msra.mxu1 %v11183_v44  ;;  %v11216_v44 = vld [vmem:[#allocation3 + $0x840] sm:$0xff]  }
 0xece   : > { %10500 = vmatprep.subr.bf16.mxu1 %v11311_v27 }
 0xecf   : > { %10519 = vmatpush3.bf16.msra.mxu0 %v11197_v5 }
 0xed0   : > { %10520 = vmatprep.subr.bf16.mxu0 %v11311_v27 }
 0xed1   : > { %10501 = vmatpush3.bf16.msra.mxu1 %v11184_v45  ;;  %v11217_v45 = vld [vmem:[#allocation3 + $0x7c8] sm:$0xff]  }
 0xed2   : > { %10526 = vmatprep.subr.bf16.mxu1 %v11311_v27 }
 0xed3   : > { %10521 = vmatpush3.bf16.msra.mxu0 %v11199_v63 }
 0xed4   : > { %10503 = vmatmul.mubr.bf16.vlgmr.msra.gmra.mrb[184].mxu1 %v7476_v8  ;;  %10546 = vmatprep.subr.bf16.mxu0 %v11311_v27  ;;  %v11210_v8 = vld [vmem:[#allocation3 + $0x828] sm:$0xff]  }
 0xed5   : > { %10542 = vmatprep.mubr.msk.bf16.mxu1 %vm11312_vm7, %v11311_v27  ;;  %10527 = vmatpush3.bf16.msra.mxu1 %v11186_v35  ;;  %v11219_v35 = vld [vmem:[#allocation3 + $0x7d0] sm:$0xff]  }
 0xed6   : > { %10528 = vmatprep.subr.bf16.mxu1 %v11311_v27 }
 0xed9   : > { %10529 = vmatpush3.bf16.msra.mxu1 %v11188_v13  ;;  %v11221_v13 = vld [vmem:[#allocation3 + $0x7d8] sm:$0xff]  }
 0xeda   : > { %10530 = vmatprep.subr.bf16.mxu1 %v11311_v27 }
 0xedd   : > { %10531 = vmatpush3.bf16.msra.mxu1 %v11190_v48  ;;  %v11223_v48 = vld [vmem:[#allocation3 + $0x7e0] sm:$0xff]  }
 0xede   : > { %10532 = vmatprep.subr.bf16.mxu1 %v11311_v27 }
 0xee1   : > { %10533 = vmatpush3.bf16.msra.mxu1 %v11192_v29 }
 0xee2   : > { %10534 = vmatprep.subr.bf16.mxu1 %v11311_v27 }
 0xee5   : > { %10535 = vmatpush3.bf16.msra.mxu1 %v11194_v38 }
 0xee6   : > { %10536 = vmatprep.subr.bf16.mxu1 %v11311_v27 }
 0xee9   : > { %10537 = vmatpush3.bf16.msra.mxu1 %v11196_v16 }
 0xeea   : > { %10538 = vmatprep.subr.bf16.mxu1 %v11311_v27 }
 0xeed   : > { %10539 = vmatpush3.bf16.msra.mxu1 %v11198_v32 }
 0xeee   : > { %10540 = vmatprep.subr.bf16.mxu1 %v11311_v27 }
 0xef1   : > { %10541 = vmatpush3.bf16.msra.mxu1 %v11200_v9 }
 0xef2   : > { %10566 = vmatprep.subr.bf16.mxu1 %v11311_v27 }
 0xf87   : > { %v7607_v40 = vpop.f32.mrb[180].mxu1  ;;  %v7695_v10 = vpop.f32.mrb[240].mxu0 }
 0xf88   : > { %v10464_v55 = vpop.f32.mrb[181].mxu1  ;;  %v10484_v53 = vpop.f32.mrb[241].mxu0  ;;  %v7703_v31 = vrot.slane %v7607_v40, 7  ;;  %v7795_v14 = vrot.slane %v7695_v10, 1 }
 0xf89   : > { %v7610_v21 = vpop.f32.mrb[182].mxu1  ;;  %v7698_v62 = vpop.f32.mrb[242].mxu0 }
 0xf8a   : > { %v10465_v12 = vpop.f32.mrb[183].mxu1  ;;  %v10485_v56 = vpop.f32.mrb[243].mxu0  ;;  %v7705_v20 = vsel %vm660_vm2, 0.0, %v7703_v31  ;;  %v7797_v28 = vsel %vm7467_vm8, %v7795_v14, 0.0 }
 0xf8b   : > { %v9040_v12 = vld [vmem:[#allocation5 + $0x90] ss:$0 sm:$0xff] }
 0xfa7   : > { %v7788_v25 = vpop.f32.mrb[184].mxu1 }
 0xfa8   : > { %v7789_v43 = vadd.f32 %v7788_v25, %v7705_v20  ;;  %v10504_v7 = vpop.f32.mrb[185].mxu1 }
 0xfa9   : > { %v7791_v50 = vpop.f32.mrb[186].mxu1 }
 0xfaa   : > { %v7798_v58 = vadd.f32 %v7797_v28, %v7789_v43  ;;  %v10505_v36 = vpop.f32.mrb[187].mxu1  ;;  %v11225_v43 = vld [vmem:[#allocation3 + $0x7e8] sm:$0xff]   ;;  %v11226_v28 = vld [vmem:[#allocation3 + $0x7f0] sm:$0xff]   ;;  %v11228_v50 = vld [vmem:[#allocation3 + $0x800] sm:$0xff]  }
 0xfab   : > { %v11230_v36 = vld [vmem:[#allocation3 + $0x810] sm:$0xff]  }
 0xfac   : > { %v7803_v39 = vadd.f32 %v9015_v4, %v7798_v58  ;;  %v11227_v4 = vld [vmem:[#allocation3 + $0x7f8] sm:$0xff]   ;;  %v11229_v58 = vld [vmem:[#allocation3 + $0x808] sm:$0xff]  }
 0xfae   : > { %v7804_v60 = vadd.f32 %v7803_v39, %v13241_v57  ;;  %v11202_v57 = vld [vmem:[#allocation3 + $0x730] sm:$0xff]   ;;  %v11231_v39 = vld [vmem:[#allocation3 + $0x818] sm:$0xff]  }
 0xfb0   : > { %v7805_v26 = vmax.f32 %v7804_v60, 0.0  ;;  %v11232_v60 = vld [vmem:[#allocation3 + $0x820] sm:$0xff]  }
 0xfb2   : > { %v7807_v6 = vrot.slane %v7805_v26, 7  ;;  %v7811_v0 = vrot.slane %v7805_v26, 1 }
 0xfb4   : > { %v7809_v52 = vsel %vm660_vm2, 0.0, %v7807_v6  ;;  %v7813_v33 = vsel %vm7467_vm8, %v7811_v0, 0.0 }
 0xfb5   : > { %v7810_v3 = vmax.f32 %v7809_v52, %v7805_v26 }
 0xfb7   : > { %v7814_v49 = vmax.f32 %v7810_v3, %v7813_v33 }
 0xfb9   : > { %7815 = vst [vmem:[#allocation2] sm:$0xf] %v7814_v49 }
 0xfc0   : > { %v13312_v51 = vld [vmem:[#allocation2] ss:$2 sm:$0x3] }
 0xfc1   : > { %v7817_v18 = vpack.c.bf16 %v13312_v51, %v13312_v51 }
 0xfc3   : > { %10523 = vmatmul.mubr.bf16.vlgmr.msra.gmra.mrb[244].mxu0 %v7817_v18  ;;  %10543 = vmatmul.mubr.bf16.vlgmr.msra.gmra.mrb[188].mxu1 %v7817_v18 }
 0xfc4   : > { %10547 = vmatpush3.bf16.msra.mxu0 %v11201_v46  ;;  %10562 = vmatprep.mubr.msk.bf16.mxu0 %vm11312_vm7, %v11311_v27 }
 0xfc5   : > { %10548 = vmatprep.subr.bf16.mxu0 %v11311_v27  ;;  %10582 = vmatprep.mubr.msk.bf16.mxu1 %vm11312_vm7, %v11311_v27 }
 0xfc6   : > { %10567 = vmatpush3.bf16.msra.mxu1 %v11209_v24 }
 0xfc7   : > { %10568 = vmatprep.subr.bf16.mxu1 %v11311_v27 }
 0xfc8   : > { %10549 = vmatpush3.bf16.msra.mxu0 %v11202_v57 }
 0xfc9   : > { %10550 = vmatprep.subr.bf16.mxu0 %v11311_v27 }
 0xfca   : > { %10569 = vmatpush3.bf16.msra.mxu1 %v11211_v15 }
 0xfcb   : > { %10570 = vmatprep.subr.bf16.mxu1 %v11311_v27 }
 0xfcc   : > { %10551 = vmatpush3.bf16.msra.mxu0 %v11203_v2 }
 0xfcd   : > { %10552 = vmatprep.subr.bf16.mxu0 %v11311_v27 }
 0xfce   : > { %10571 = vmatpush3.bf16.msra.mxu1 %v11213_v23 }
 0xfcf   : > { %10572 = vmatprep.subr.bf16.mxu1 %v11311_v27 }
 0xfd0   : > { %10553 = vmatpush3.bf16.msra.mxu0 %v11204_v47 }
 0xfd1   : > { %10554 = vmatprep.subr.bf16.mxu0 %v11311_v27 }
 0xfd2   : > { %10573 = vmatpush3.bf16.msra.mxu1 %v11215_v1 }
 0xfd3   : > { %10574 = vmatprep.subr.bf16.mxu1 %v11311_v27 }
 0xfd4   : > { %10555 = vmatpush3.bf16.msra.mxu0 %v11205_v37 }
 0xfd5   : > { %10556 = vmatprep.subr.bf16.mxu0 %v11311_v27 }
 0xfd6   : > { %10575 = vmatpush3.bf16.msra.mxu1 %v11217_v45 }
 0xfd7   : > { %10576 = vmatprep.subr.bf16.mxu1 %v11311_v27 }
 0xfd8   : > { %10557 = vmatpush3.bf16.msra.mxu0 %v11206_v41 }
 0xfd9   : > { %10558 = vmatprep.subr.bf16.mxu0 %v11311_v27 }
 0xfda   : > { %10577 = vmatpush3.bf16.msra.mxu1 %v11219_v35 }
 0xfdb   : > { %10578 = vmatprep.subr.bf16.mxu1 %v11311_v27 }
 0xfdc   : > { %10559 = vmatpush3.bf16.msra.mxu0 %v11207_v54 }
 0xfdd   : > { %10560 = vmatprep.subr.bf16.mxu0 %v11311_v27 }
 0xfde   : > { %10579 = vmatpush3.bf16.msra.mxu1 %v11221_v13 }
 0xfdf   : > { %10580 = vmatprep.subr.bf16.mxu1 %v11311_v27 }
 0xfe0   : > { %10561 = vmatpush3.bf16.msra.mxu0 %v11208_v34 }
 0xfe1   : > { %10586 = vmatprep.subr.bf16.mxu0 %v11311_v27 }
 0xfe2   : > { %10581 = vmatpush3.bf16.msra.mxu1 %v11223_v48 }
 0xfe3   : > { %10563 = vmatmul.mubr.bf16.vlgmr.msra.gmra.mrb[248].mxu0 %v7817_v18  ;;  %10606 = vmatprep.subr.bf16.mxu1 %v11311_v27 }
 0xfe4   : > { %10602 = vmatprep.mubr.msk.bf16.mxu0 %vm11312_vm7, %v11311_v27  ;;  %10587 = vmatpush3.bf16.msra.mxu0 %v11210_v8 }
 0xfe5   : > { %10588 = vmatprep.subr.bf16.mxu0 %v11311_v27 }
 0xfe8   : > { %10589 = vmatpush3.bf16.msra.mxu0 %v11212_v22 }
 0xfe9   : > { %10590 = vmatprep.subr.bf16.mxu0 %v11311_v27 }
 0xfec   : > { %10591 = vmatpush3.bf16.msra.mxu0 %v11214_v42 }
 0xfed   : > { %10592 = vmatprep.subr.bf16.mxu0 %v11311_v27 }
 0xff0   : > { %10593 = vmatpush3.bf16.msra.mxu0 %v11216_v44 }
 0xff1   : > { %10594 = vmatprep.subr.bf16.mxu0 %v11311_v27 }
 0xff4   : > { %10595 = vmatpush3.bf16.msra.mxu0 %v11218_v30 }
 0xff5   : > { %10596 = vmatprep.subr.bf16.mxu0 %v11311_v27 }
 0xff8   : > { %10597 = vmatpush3.bf16.msra.mxu0 %v11220_v19  ;;  %v8489_v19 = vld [vmem:[#allocation5 + $0xa0] sm:$0x1] }
 0xff9   : > { %10598 = vmatprep.subr.bf16.mxu0 %v11311_v27 }
 0xffc   : > { %10599 = vmatpush3.bf16.msra.mxu0 %v11222_v11 }
 0xffd   : > { %10600 = vmatprep.subr.bf16.mxu0 %v11311_v27 }
0x1000   : > { %10601 = vmatpush3.bf16.msra.mxu0 %v11224_v61  ;;  %v8488_v61 = vld [vmem:[#allocation5 + $0xa8] sm:$0x1] }
0x1096   : > { %v7948_v29 = vpop.f32.mrb[244].mxu0  ;;  %v8036_v59 = vpop.f32.mrb[188].mxu1 }
0x1097   : > { %v10524_v38 = vpop.f32.mrb[245].mxu0  ;;  %v10544_v17 = vpop.f32.mrb[189].mxu1  ;;  %v8044_v9 = vrot.slane %v7948_v29, 7  ;;  %v8136_v40 = vrot.slane %v8036_v59, 1 }
0x1098   : > { %v7951_v16 = vpop.f32.mrb[246].mxu0  ;;  %v8039_v5 = vpop.f32.mrb[190].mxu1 }
0x1099   : > { %v10525_v32 = vpop.f32.mrb[247].mxu0  ;;  %v10545_v63 = vpop.f32.mrb[191].mxu1  ;;  %v8046_v10 = vsel %vm660_vm2, 0.0, %v8044_v9  ;;  %v8138_v62 = vsel %vm660_vm2, %v8136_v40, 0.0 }
0x10b6   : > { %v8129_v55 = vpop.f32.mrb[248].mxu0 }
0x10b7   : > { %v8130_v53 = vadd.f32 %v8129_v55, %v8046_v10  ;;  %v10564_v21 = vpop.f32.mrb[249].mxu0 }
0x10b8   : > { %v8132_v56 = vpop.f32.mrb[250].mxu0 }
0x10b9   : > { %v8139_v31 = vadd.f32 %v8138_v62, %v8130_v53  ;;  %v10565_v14 = vpop.f32.mrb[251].mxu0 }
0x10bb   : > { %v8144_v20 = vadd.f32 %v9040_v12, %v8139_v31 }
0x10bd   : > { %v8145_v25 = vmax.f32 %v8144_v20, 0.0 }
0x10bf   : > { %v8146_v7 = vpack.c.bf16 %v8145_v25, %v8145_v25 }
0x10c1   : > { %10583 = vmatmul.mubr.bf16.vlgmr.msra.gmra.mrb[192].mxu1 %v8146_v7  ;;  %10603 = vmatmul.mubr.bf16.vlgmr.msra.gmra.mrb[252].mxu0 %v8146_v7 }
0x10c2   : > { %10607 = vmatpush3.bf16.msra.mxu1 %v11225_v43  ;;  %10622 = vmatprep.mubr.msk.bf16.mxu1 %vm11312_vm7, %v11311_v27 }
0x10c3   : > { %10608 = vmatprep.subr.bf16.mxu1 %v11311_v27 }
0x10c6   : > { %10609 = vmatpush3.bf16.msra.mxu1 %v11226_v28 }
0x10c7   : > { %10610 = vmatprep.subr.bf16.mxu1 %v11311_v27 }
0x10ca   : > { %10611 = vmatpush3.bf16.msra.mxu1 %v11227_v4 }
0x10cb   : > { %10612 = vmatprep.subr.bf16.mxu1 %v11311_v27 }
0x10ce   : > { %10613 = vmatpush3.bf16.msra.mxu1 %v11228_v50 }
0x10cf   : > { %10614 = vmatprep.subr.bf16.mxu1 %v11311_v27 }
0x10d2   : > { %10615 = vmatpush3.bf16.msra.mxu1 %v11229_v58 }
0x10d3   : > { %10616 = vmatprep.subr.bf16.mxu1 %v11311_v27 }
0x10d6   : > { %10617 = vmatpush3.bf16.msra.mxu1 %v11230_v36 }
0x10d7   : > { %10618 = vmatprep.subr.bf16.mxu1 %v11311_v27 }
0x10da   : > { %10619 = vmatpush3.bf16.msra.mxu1 %v11231_v39 }
0x10db   : > { %10620 = vmatprep.subr.bf16.mxu1 %v11311_v27  ;;  %v9065_v27 = vld [vmem:[#allocation5 + $0x98] ss:$0 sm:$0xff] }
0x10de   : > { %10621 = vmatpush3.bf16.msra.mxu1 %v11232_v60 }
0x10e1   : > { %10623 = vmatmul.mubr.bf16.vlgmr.msra.gmra.mrb[196].mxu1 %v8146_v7 }
0x1194   : > { %v8277_v26 = vpop.f32.mrb[192].mxu1  ;;  %v8365_v6 = vpop.f32.mrb[252].mxu0 }
0x1195   : > { %v10584_v0 = vpop.f32.mrb[193].mxu1  ;;  %v10604_v52 = vpop.f32.mrb[253].mxu0  ;;  %v8373_v18 = vrot.slane %v8277_v26, 7  ;;  %v8465_v57 = vrot.slane %v8365_v6, 1 }
0x1196   : > { %v8280_v3 = vpop.f32.mrb[194].mxu1  ;;  %v8368_v33 = vpop.f32.mrb[254].mxu0 }
0x1197   : > { %v10585_v49 = vpop.f32.mrb[195].mxu1  ;;  %v10605_v46 = vpop.f32.mrb[255].mxu0  ;;  %v8375_v2 = vsel %vm660_vm2, 0.0, %v8373_v18  ;;  %v8467_v54 = vsel %vm660_vm2, %v8465_v57, 0.0 }
0x11b4   : > { %v8458_v47 = vpop.f32.mrb[196].mxu1 }
0x11b5   : > { %v8459_v37 = vadd.f32 %v8458_v47, %v8375_v2  ;;  %v10624_v41 = vpop.f32.mrb[197].mxu1 }
0x11b6   : > { %v8461_v34 = vpop.f32.mrb[198].mxu1 }
0x11b7   : > { %v8468_v24 = vadd.f32 %v8467_v54, %v8459_v37  ;;  %v10625_v8 = vpop.f32.mrb[199].mxu1 }
0x11b9   : > { %v8473_v15 = vadd.f32 %v9065_v27, %v8468_v24 }
0x11bb   : > { %v8474_v22 = vadd.f32 %v8473_v15, %v13312_v51 }
0x11bd   : > { %v8475_v23 = vmax.f32 %v8474_v22, 0.0 }
0x11bf   : > { %v8477_v42 = vrot.slane %v8475_v23, 7  ;;  %v8481_v1 = vrot.slane %v8475_v23, 1 }
0x11c1   : > { %v8479_v44 = vsel %vm660_vm2, 0.0, %v8477_v42  ;;  %v8483_v30 = vsel %vm660_vm2, %v8481_v1, 0.0 }
0x11c2   : > { %v8480_v45 = vmax.f32 %v8479_v44, %v8475_v23 }
0x11c4   : > { %v8484_v35 = vmax.f32 %v8480_v45, %v8483_v30 }
0x11c6   : > { %8485 = vst [vmem:[#allocation2] sm:$0x3] %v8484_v35 }
0x11cd   : > { %v8486_v13 = vld [vmem:[#allocation2] ss:$2 sm:$0x1] }
0x11ce   : > { %v8490_v11 = vmul.f32 %v8489_v19, %v8486_v13 }
0x11d0   : > { %v8491_v48 = vsel %vm660_vm2, %v8490_v11, 0.0 }
0x11d1   : > { %8492 = vadd.xlane.f32.xlu0 %v8491_v48 }
0x125e   : > { %v8493_v51 = vpop.xlane.xlu0 %8492 }
0x125f   : > { %v8494_v29 = vadd.f32 %v8493_v51, %v8488_v61 }
0x1261   : > { %8496 = vst.msk [vmem:[%s196_s25] sm:$0x1] %vm8495_vm9, %v8494_v29 }
0x1262 PF: > { %s15_s12 = sadd.s32 1, %s11303_s12  }
0x1263   : > { %p12_p5 = scmp.ge.s32.totalorder %s15_s12, 4  }
0x1265   :  { %14 = sbr.rel (!%p12_p5) target bundleno = 2 (0x2), region = 93 }
0x126c   :  { %8514 = vsyncpa [#allocation4], 1 }
0x126d   :  { %8516 = vsyncpa [#allocation4 + $0x1], 1 }
0x126e   :  { %8517 = vsyncpa [#allocation6], 1 }

</bundles_post_ra>
